<compile_context>
chip_gen: v7x
topology: tpu7x:2x2x1
jax: 0.10.0
libtpu: 0.0.40
codegen_flags: <defaults>
</compile_context>

<pallas_src>
import functools

import jax
import jax.numpy as jnp
from jax import lax
from jax.experimental import pallas as pl
from jax.experimental.pallas import tpu as pltpu


# ---------------------------------------------------------------------------
# Generation-aware resource limits
# ---------------------------------------------------------------------------
def _detect_vmem_capacity_bytes():
    try:
        info = pltpu.get_tpu_info()
        cap = getattr(info, "vmem_capacity_bytes", None)
        if cap:
            return int(cap)
    except Exception:
        pass
    return 64 * 1024 * 1024   # conservative fallback (v7x-sized)


VMEM_CAPACITY = _detect_vmem_capacity_bytes()
# ~80% of physical, capped — headroom for Mosaic scratch + double buffers.
VMEM_LIMIT_BYTES = min(int(VMEM_CAPACITY * 0.8), 100 * 1024 * 1024)
# Bigger output tiles on 128 MiB parts (v5e/v6e), smaller on 64 MiB parts (v7x).
M_TILE_TARGET = 2048 if VMEM_CAPACITY <= 72 * 1024 * 1024 else 8192

# Pad sub-128 intermediate Cout up to 128: lane-dense unmasked stores and full
# MXU result-lane use; exact because padded channels stay identically zero.
PAD_CHANNELS_TO_128 = True


# ---------------------------------------------------------------------------
# Pallas kernels
# ---------------------------------------------------------------------------
def conv_tap_kernel(*refs, taps, th, ow, norm, act, has_bias, row_tiled):
    """Per-tap MXU matmul accumulation for one (sample, output tile).

    refs = (x_ref, w_ref[, b_ref], o_ref)
      x_ref : (HH, P, WW, K)   bf16, whole padded (parity-folded) sample
      w_ref : (T, K, Cout_t)   bf16, per-tap weight slices
      b_ref : (1, Cout_t)      f32  (only when has_bias)
      o_ref : (th*ow, oc)      output tile (oc <= Cout_t)
    """
    if has_bias:
        x_ref, w_ref, b_ref, o_ref = refs
    else:
        x_ref, w_ref, o_ref = refs

    k = w_ref.shape[1]
    cout = w_ref.shape[2]
    oc = o_ref.shape[-1]
    row0 = pl.program_id(1) * th if row_tiled else 0

    acc = jnp.zeros((th * ow, cout), jnp.float32)
    for t, (a, p, d) in enumerate(taps):
        xt = x_ref[pl.ds(row0 + a, th), p:p + 1, d:d + ow, :]      # (th,1,ow,k)
        # TODO(synk): check (pl.lower_as_mlir) whether this flatten materialises
        # a per-tap VMEM copy when ow % 8 != 0; if so switch to a full-width
        # matmul with a shifted accumulate.
        acc = acc + jnp.dot(xt.reshape(th * ow, k), w_ref[t],
                            preferred_element_type=jnp.float32)
    if has_bias:
        acc = acc + b_ref[...]
    if norm:
        # InstanceNorm2d(affine=False, eps=1e-5), single-pass f32 statistics.
        inv_n = 1.0 / (th * ow)
        mean = jnp.sum(acc, axis=0, keepdims=True) * inv_n
        ex2 = jnp.sum(acc * acc, axis=0, keepdims=True) * inv_n
        var = jnp.maximum(ex2 - mean * mean, 0.0)
        acc = (acc - mean) * lax.rsqrt(var + 1e-5)
    if act:
        acc = jnp.where(acc >= 0, acc, 0.2 * acc)                  # LeakyReLU(0.2)
    if oc != cout:
        acc = acc[:, :oc]
    o_ref[...] = acc.astype(o_ref.dtype)


def avgpool_kernel(p_ref, r_ref, o_ref, *, oh, ow):
    """avg_pool2d(3, stride=2, pad=1, count_include_pad=False), one sample.

    p_ref : (4, C, Hh, Wh) f32 parity planes; plane 2*p+q holds xpad[:, p::2, q::2]
    r_ref : (1, oh, ow)    f32 reciprocal of the valid-element count
    o_ref : (C, oh, ow)    W in the lane dim (lane-dense)
    """
    c = p_ref.shape[1]
    acc = jnp.zeros((c, oh, ow), jnp.float32)
    for di in range(3):
        for dj in range(3):
            plane = (di % 2) * 2 + (dj % 2)
            r0 = di // 2
            c0 = dj // 2
            acc = acc + p_ref[plane, :, r0:r0 + oh, c0:c0 + ow]
    o_ref[...] = (acc * r_ref[...]).astype(o_ref.dtype)


# ---------------------------------------------------------------------------
# Pallas-backed ops
# ---------------------------------------------------------------------------
def _row_tile(oh, ow):
    """Largest divisor of OH keeping the (th*OW, Cout) tile under target rows."""
    if oh * ow <= M_TILE_TARGET:
        return oh
    for cand in range(oh - 1, 0, -1):
        if oh % cand == 0 and cand * ow <= M_TILE_TARGET and (cand * ow) % 8 == 0:
            return cand
    return oh


def conv4x4_pallas(x, w4, b, *, stride, norm, act, out_dtype, out_channels=None):
    """4x4 conv (pad=1, stride 1|2) + optional InstanceNorm + LeakyReLU(0.2).

    x  : (B, H, W, Cin) NHWC (cast to bf16 for DMA/MXU)
    w4 : (4, 4, Cin, Cout) f32
    b  : (Cout,) f32 or None
    out_channels: store only the first `out_channels` lanes (default: Cout).
    """
    assert out_channels is None or not norm
    B, H, W, Cin = x.shape
    Cout = w4.shape[-1]
    oc = Cout if out_channels is None else out_channels

    xb = x.astype(jnp.bfloat16)
    xp = jnp.pad(xb, ((0, 0), (1, 1), (1, 1), (0, 0)))
    Hp, Wp = H + 2, W + 2
    OH = (Hp - 4) // stride + 1
    OW = (Wp - 4) // stride + 1

    if stride == 2:
        # Parity-folded view (PURE reshape of the padded input — no transpose):
        #   xs[b, i2, p, j2, q*Cin + c] = xp[b, 2*i2 + p, 2*j2 + q, c]
        if Hp % 2:
            xp = jnp.pad(xp, ((0, 0), (0, 1), (0, 0), (0, 0)))
            Hp += 1
        if Wp % 2:
            xp = jnp.pad(xp, ((0, 0), (0, 0), (0, 1), (0, 0)))
            Wp += 1
        Hs, Ws = Hp // 2, Wp // 2
        xs = xp.reshape(B, Hs, 2, Ws, 2 * Cin)
        # w4[2a+p, 2d+q, c, o]  ->  wt[(a,p,d), (q,c), o]   (pure reshape)
        wt = w4.reshape(2, 2, 2, 2, Cin, Cout).reshape(8, 2 * Cin, Cout)
        taps = tuple((a, p, d) for a in range(2) for p in range(2) for d in range(2))
    else:
        Hs, Ws = Hp, Wp
        xs = xp.reshape(B, Hp, 1, Wp, Cin)
        wt = w4.reshape(16, Cin, Cout)
        taps = tuple((di, 0, dj) for di in range(4) for dj in range(4))

    wt = wt.astype(jnp.bfloat16)
    K = xs.shape[-1]
    P = xs.shape[2]
    M = OH * OW
    has_bias = (b is not None) and (not norm)   # bias cancels under non-affine IN

    if norm:
        # IN statistics are per-channel -> Cout can be grid-tiled exactly.
        ct = 128 if (Cout > 128 and Cout % 128 == 0) else Cout
        grid = (B, Cout // ct)
        th, row_tiled = OH, False
        w_spec = pl.BlockSpec((len(taps), K, ct), lambda bb, g: (0, 0, g))
        out_spec = pl.BlockSpec((None, M, ct), lambda bb, g: (bb, 0, g))
    else:
        # TODO(synk): halo'd row blocks / manual row DMA so the x block scales
        # with the tile instead of the whole sample (v7x, >=512^2 inputs).
        th = _row_tile(OH, OW) if stride == 2 else OH
        row_tiled = th != OH
        grid = (B, OH // th)
        w_spec = pl.BlockSpec((len(taps), K, Cout), lambda bb, g: (0, 0, 0))
        out_spec = pl.BlockSpec((None, th * OW, oc), lambda bb, g: (bb, g, 0))

    in_specs = [
        pl.BlockSpec((None, Hs, P, Ws, K), lambda bb, g: (bb, 0, 0, 0, 0)),
        w_spec,
    ]
    args = [xs, wt]
    if has_bias:
        in_specs.append(pl.BlockSpec((1, Cout), lambda bb, g: (0, 0)))
        args.append(b.reshape(1, Cout).astype(jnp.float32))

    kernel = functools.partial(conv_tap_kernel, taps=taps, th=th, ow=OW,
                               norm=norm, act=act, has_bias=has_bias,
                               row_tiled=row_tiled)

    out = pl.pallas_call(
        kernel,
        out_shape=jax.ShapeDtypeStruct((B, M, oc), out_dtype),
        grid=grid,
        in_specs=in_specs,
        out_specs=out_spec,
        compiler_params=pltpu.CompilerParams(
            dimension_semantics=("parallel", "parallel"),
            vmem_limit_bytes=VMEM_LIMIT_BYTES),
    )(*args)
    return out.reshape(B, OH, OW, oc)


def avgpool_3x3_s2_pallas(x):
    """F.avg_pool2d(x, 3, 2, 1, count_include_pad=False) on an NCHW f32 input."""
    B, C, H, W = x.shape
    xp = jnp.pad(x, ((0, 0), (0, 0), (1, 1), (1, 1)))
    Hp, Wp = H + 2, W + 2
    OH = (Hp - 3) // 2 + 1
    OW = (Wp - 3) // 2 + 1
    if Hp % 2:
        xp = jnp.pad(xp, ((0, 0), (0, 0), (0, 1), (0, 0)))
        Hp += 1
    if Wp % 2:
        xp = jnp.pad(xp, ((0, 0), (0, 0), (0, 0), (0, 1)))
        Wp += 1
    Hh, Wh = Hp // 2, Wp // 2

    # Parity planes with W in the lane dim (lane-dense loads/stores), one pass.
    planes = (xp.reshape(B, C, Hh, 2, Wh, 2)
                .transpose(0, 3, 5, 1, 2, 4)              # (B, p, q, C, Hh, Wh)
                .reshape(B, 4, C, Hh, Wh))

    # Valid-element count per output position (count_include_pad=False), passed
    # as a reciprocal so the kernel multiplies instead of dividing.
    ones = jnp.pad(jnp.ones((H, W), jnp.float32), ((1, 1), (1, 1)))
    cnt = sum(ones[di:di + 2 * (OH - 1) + 1:2, dj:dj + 2 * (OW - 1) + 1:2]
              for di in range(3) for dj in range(3))
    rcnt = (1.0 / cnt).reshape(1, OH, OW)

    # TODO(synk): row-tile the pool grid with a 1-row halo for very large
    # inputs on v7x (whole-sample planes kept here for robustness).
    out = pl.pallas_call(
        functools.partial(avgpool_kernel, oh=OH, ow=OW),
        out_shape=jax.ShapeDtypeStruct((B, C, OH, OW), x.dtype),
        grid=(B,),
        in_specs=[
            pl.BlockSpec((None, 4, C, Hh, Wh), lambda bb: (bb, 0, 0, 0, 0)),
            pl.BlockSpec((1, OH, OW), lambda bb: (0, 0, 0)),
        ],
        out_specs=pl.BlockSpec((None, C, OH, OW), lambda bb: (bb, 0, 0, 0)),
        compiler_params=pltpu.CompilerParams(
            dimension_semantics=("parallel",),
            vmem_limit_bytes=VMEM_LIMIT_BYTES),
    )(planes, rcnt)
    return out


# ---------------------------------------------------------------------------
# Parameters (mirrors MultiscaleDiscriminator.__init__, including the ndf
# doubling that carries over across discriminators).
# ---------------------------------------------------------------------------
def _make_layer(key, cin, cout, *, stride, norm, act):
    key, kw, kb = jax.random.split(key, 3)
    fan_in = 4 * 4 * cin
    w = jax.random.normal(kw, (4, 4, cin, cout), jnp.float32) / jnp.sqrt(fan_in)
    b = 0.01 * jax.random.normal(kb, (cout,), jnp.float32)
    return key, dict(w=w, b=b, stride=stride, norm=norm, act=act)


def init_params(key, input_nc, ndf=32, n_layers=3, num_D=2):
    params = []
    nf = ndf
    for _ in range(num_D):
        disc = []
        key, layer = _make_layer(key, input_nc + 1, nf, stride=2, norm=False, act=True)
        disc.append(layer)
        for _ in range(n_layers - 1):
            key, layer = _make_layer(key, nf, nf * 2, stride=2, norm=True, act=True)
            disc.append(layer)
            nf *= 2
        key, layer = _make_layer(key, nf, 1, stride=1, norm=False, act=False)
        disc.append(layer)
        params.append(disc)
    return params


# ---------------------------------------------------------------------------
# Forward pass (matches MultiscaleDiscriminator.forward)
# ---------------------------------------------------------------------------
def _pad_axis(a, axis, new):
    pad = new - a.shape[axis]
    if pad <= 0:
        return a
    widths = [(0, 0)] * a.ndim
    widths[axis] = (0, pad)
    return jnp.pad(a, widths)


def multiscale_discriminator_forward(params, x_nchw, months):
    B, _, H, W = x_nchw.shape
    m = jnp.broadcast_to(months.reshape(B, 1, 1, 1).astype(jnp.float32),
                         (B, 1, H, W))
    x = jnp.concatenate([x_nchw.astype(jnp.float32), m], axis=1)   # NCHW pyramid

    outputs = []
    for disc in params:
        h = jnp.transpose(x, (0, 2, 3, 1))        # NHWC for the conv stack
        n_lay = len(disc)
        for li, layer in enumerate(disc):
            last = li == n_lay - 1
            w4, bv = layer["w"], layer["b"]
            # zero-pad Cin to the (possibly channel-padded) activation width
            w4 = _pad_axis(w4, 2, h.shape[-1])
            if last:
                # Final 4x4/s1 conv: compute with Cout padded to 128 (lane-dense
                # MXU use), but write only the single logical channel to HBM.
                logical = w4.shape[-1]
                w4 = _pad_axis(w4, 3, 128)
                bv = _pad_axis(bv, 0, 128)
                h = conv4x4_pallas(h, w4, bv, stride=layer["stride"],
                                   norm=layer["norm"], act=layer["act"],
                                   out_dtype=jnp.float32, out_channels=logical)
            else:
                if PAD_CHANNELS_TO_128 and w4.shape[-1] % 128 != 0:
                    newc = ((w4.shape[-1] + 127) // 128) * 128
                    w4 = _pad_axis(w4, 3, newc)
                    bv = _pad_axis(bv, 0, newc)
                h = conv4x4_pallas(h, w4, bv, stride=layer["stride"],
                                   norm=layer["norm"], act=layer["act"],
                                   out_dtype=jnp.bfloat16)
        outputs.append(jnp.transpose(h, (0, 3, 1, 2)))   # back to NCHW
        x = avgpool_3x3_s2_pallas(x)   # pooled even after the last D, as in PyTorch
    return outputs


# ---------------------------------------------------------------------------
# Pure-JAX reference (mirrors the same bf16-in / f32-accumulate numerics)
# ---------------------------------------------------------------------------
def _conv_ref(x, w4, b, stride, norm, act, out_dtype):
    y = lax.conv_general_dilated(
        x.astype(jnp.bfloat16), w4.astype(jnp.bfloat16),
        (stride, stride), [(1, 1), (1, 1)],
        dimension_numbers=("NHWC", "HWIO", "NHWC"),
        preferred_element_type=jnp.float32)
    if norm:
        # bias is mathematically cancelled by non-affine InstanceNorm -> skip.
        mean = jnp.mean(y, axis=(1, 2), keepdims=True)
        var = jnp.mean((y - mean) ** 2, axis=(1, 2), keepdims=True)
        y = (y - mean) * lax.rsqrt(var + 1e-5)
    else:
        y = y + b.reshape(1, 1, 1, -1)
    if act:
        y = jnp.where(y >= 0, y, 0.2 * y)
    return y.astype(out_dtype)


def _avgpool_ref(x):
    dims, strides = (1, 3, 3, 1), (1, 2, 2, 1)
    pads = [(0, 0), (1, 1), (1, 1), (0, 0)]
    s = lax.reduce_window(x, 0.0, lax.add, dims, strides, pads)
    c = lax.reduce_window(jnp.ones_like(x), 0.0, lax.add, dims, strides, pads)
    return s / c


def _forward_ref(params, x_nchw, months):
    B, _, H, W = x_nchw.shape
    x = jnp.transpose(x_nchw, (0, 2, 3, 1)).astype(jnp.float32)
    m = jnp.broadcast_to(months.reshape(B, 1, 1, 1).astype(jnp.float32),
                         (B, H, W, 1))
    x = jnp.concatenate([x, m], axis=-1)
    outs = []
    for disc in params:
        h = x
        for li, layer in enumerate(disc):
            last = li == len(disc) - 1
            out_dtype = jnp.float32 if last else jnp.bfloat16
            h = _conv_ref(h, layer["w"], layer["b"], layer["stride"],
                          layer["norm"], layer["act"], out_dtype)
        outs.append(jnp.transpose(h, (0, 3, 1, 2)))
        x = _avgpool_ref(x)
    return outs


# ---------------------------------------------------------------------------
if __name__ == "__main__":
    key = jax.random.PRNGKey(0)
    # Module defaults (ndf=32, n_layers=3, num_D=2) at a small 96x96 resolution;
    # this exercises the stride-2 parity path, Cout-tiled InstanceNorm layers,
    # the lane-dense pool and the trimmed final 1-channel conv.
    B, input_nc, H, W = 2, 4, 96, 96
    ndf, n_layers, num_D = 32, 3, 2

    key, kx, km, kp = jax.random.split(key, 4)
    x = jax.random.normal(kx, (B, input_nc, H, W), jnp.float32)
    months = jax.random.normal(km, (B,), jnp.float32)

    params = init_params(kp, input_nc, ndf=ndf, n_layers=n_layers, num_D=num_D)

    outs = multiscale_discriminator_forward(params, x, months)
    outs = [jax.block_until_ready(o) for o in outs]

    # sanity check against the pure-JAX reference (same bf16/f32 numerics)
    refs = _forward_ref(params, x, months)
    for o, r in zip(outs, refs):
        assert o.shape == r.shape, (o.shape, r.shape)
        err = float(jnp.max(jnp.abs(o - r)))
        assert err < 3e-2, f"max abs err {err}"

    print("KERNEL_OK")
</pallas_src>

<mosaic_0001>
module attributes {stable_mosaic.version = 11 : i64} {
  func.func @conv_tap_kernel(%arg0: i32, %arg1: i32, %arg2: memref<1x49x2x49x10xbf16, #tpu.memory_space<vmem>>, %arg3: memref<8x10x128xbf16, #tpu.memory_space<vmem>>, %arg4: memref<1x128xf32, #tpu.memory_space<vmem>>, %arg5: memref<1x1152x128xbf16, #tpu.memory_space<vmem>>) attributes {dimension_semantics = [#tpu.dimension_semantics<parallel>, #tpu.dimension_semantics<parallel>], iteration_bounds = array<i64: 2, 2>, scalar_prefetch = 0 : i64, scratch_operands = 0 : i64, tpu.core_type = #tpu.core_type<tc>, window_params = [{transform_indices = @transform_0, window_bounds = array<i64: 1, 49, 2, 49, 10>}, {pipeline_mode = #tpu.pipeline_mode<synchronous>, transform_indices = @transform_1, window_bounds = array<i64: 8, 10, 128>}, {pipeline_mode = #tpu.pipeline_mode<synchronous>, transform_indices = @transform_2, window_bounds = array<i64: 1, 128>}, {transform_indices = @transform_3, window_bounds = array<i64: 1, 1152, 128>}]} {
    %c24_i32 = arith.constant 24 : i32
    %0 = arith.muli %arg1, %c24_i32 : i32
    %cst = arith.constant 0.000000e+00 : f32
    %1 = vector.broadcast %cst : f32 to vector<1152x128xf32>
    %c0_i32 = arith.constant 0 : i32
    %2 = arith.addi %0, %c0_i32 : i32
    %c0 = arith.constant 0 : index
    %3 = arith.index_cast %2 : i32 to index
    %c0_0 = arith.constant 0 : index
    %c0_1 = arith.constant 0 : index
    %c0_2 = arith.constant 0 : index
    %4 = vector.load %arg2[%c0, %3, %c0_0, %c0_1, %c0_2] : memref<1x49x2x49x10xbf16, #tpu.memory_space<vmem>>, vector<1x24x1x48x10xbf16>
    %5 = vector.shape_cast %4 : vector<1x24x1x48x10xbf16> to vector<24x1x48x10xbf16>
    %6 = vector.shape_cast %5 : vector<24x1x48x10xbf16> to vector<1152x10xbf16>
    %c0_3 = arith.constant 0 : index
    %c0_4 = arith.constant 0 : index
    %c0_5 = arith.constant 0 : index
    %7 = vector.load %arg3[%c0_3, %c0_4, %c0_5] : memref<8x10x128xbf16, #tpu.memory_space<vmem>>, vector<1x10x128xbf16>
    %8 = vector.shape_cast %7 : vector<1x10x128xbf16> to vector<10x128xbf16>
    %cst_6 = arith.constant dense<0.000000e+00> : vector<1152x128xf32>
    %9 = tpu.matmul %6, %8, %cst_6 {dimension_numbers = #tpu.dot_dimension_numbers<[1], [0], [0], [1], [0, 0, 1, 1], [], []>} : vector<1152x10xbf16>, vector<10x128xbf16>, vector<1152x128xf32> -> vector<1152x128xf32>
    %10 = arith.addf %1, %9 : vector<1152x128xf32>
    %c0_i32_7 = arith.constant 0 : i32
    %11 = arith.addi %0, %c0_i32_7 : i32
    %c0_8 = arith.constant 0 : index
    %12 = arith.index_cast %11 : i32 to index
    %c0_9 = arith.constant 0 : index
    %c1 = arith.constant 1 : index
    %c0_10 = arith.constant 0 : index
    %13 = vector.load %arg2[%c0_8, %12, %c0_9, %c1, %c0_10] : memref<1x49x2x49x10xbf16, #tpu.memory_space<vmem>>, vector<1x24x1x48x10xbf16>
    %14 = vector.shape_cast %13 : vector<1x24x1x48x10xbf16> to vector<24x1x48x10xbf16>
    %15 = vector.shape_cast %14 : vector<24x1x48x10xbf16> to vector<1152x10xbf16>
    %c1_11 = arith.constant 1 : index
    %c0_12 = arith.constant 0 : index
    %c0_13 = arith.constant 0 : index
    %16 = vector.load %arg3[%c1_11, %c0_12, %c0_13] : memref<8x10x128xbf16, #tpu.memory_space<vmem>>, vector<1x10x128xbf16>
    %17 = vector.shape_cast %16 : vector<1x10x128xbf16> to vector<10x128xbf16>
    %cst_14 = arith.constant dense<0.000000e+00> : vector<1152x128xf32>
    %18 = tpu.matmul %15, %17, %cst_14 {dimension_numbers = #tpu.dot_dimension_numbers<[1], [0], [0], [1], [0, 0, 1, 1], [], []>} : vector<1152x10xbf16>, vector<10x128xbf16>, vector<1152x128xf32> -> vector<1152x128xf32>
    %19 = arith.addf %10, %18 : vector<1152x128xf32>
    %c0_i32_15 = arith.constant 0 : i32
    %20 = arith.addi %0, %c0_i32_15 : i32
    %c0_16 = arith.constant 0 : index
    %21 = arith.index_cast %20 : i32 to index
    %c1_17 = arith.constant 1 : index
    %c0_18 = arith.constant 0 : index
    %c0_19 = arith.constant 0 : index
    %22 = vector.load %arg2[%c0_16, %21, %c1_17, %c0_18, %c0_19] : memref<1x49x2x49x10xbf16, #tpu.memory_space<vmem>>, vector<1x24x1x48x10xbf16>
    %23 = vector.shape_cast %22 : vector<1x24x1x48x10xbf16> to vector<24x1x48x10xbf16>
    %24 = vector.shape_cast %23 : vector<24x1x48x10xbf16> to vector<1152x10xbf16>
    %c2 = arith.constant 2 : index
    %c0_20 = arith.constant 0 : index
    %c0_21 = arith.constant 0 : index
    %25 = vector.load %arg3[%c2, %c0_20, %c0_21] : memref<8x10x128xbf16, #tpu.memory_space<vmem>>, vector<1x10x128xbf16>
    %26 = vector.shape_cast %25 : vector<1x10x128xbf16> to vector<10x128xbf16>
    %cst_22 = arith.constant dense<0.000000e+00> : vector<1152x128xf32>
    %27 = tpu.matmul %24, %26, %cst_22 {dimension_numbers = #tpu.dot_dimension_numbers<[1], [0], [0], [1], [0, 0, 1, 1], [], []>} : vector<1152x10xbf16>, vector<10x128xbf16>, vector<1152x128xf32> -> vector<1152x128xf32>
    %28 = arith.addf %19, %27 : vector<1152x128xf32>
    %c0_i32_23 = arith.constant 0 : i32
    %29 = arith.addi %0, %c0_i32_23 : i32
    %c0_24 = arith.constant 0 : index
    %30 = arith.index_cast %29 : i32 to index
    %c1_25 = arith.constant 1 : index
    %c1_26 = arith.constant 1 : index
    %c0_27 = arith.constant 0 : index
    %31 = vector.load %arg2[%c0_24, %30, %c1_25, %c1_26, %c0_27] : memref<1x49x2x49x10xbf16, #tpu.memory_space<vmem>>, vector<1x24x1x48x10xbf16>
    %32 = vector.shape_cast %31 : vector<1x24x1x48x10xbf16> to vector<24x1x48x10xbf16>
    %33 = vector.shape_cast %32 : vector<24x1x48x10xbf16> to vector<1152x10xbf16>
    %c3 = arith.constant 3 : index
    %c0_28 = arith.constant 0 : index
    %c0_29 = arith.constant 0 : index
    %34 = vector.load %arg3[%c3, %c0_28, %c0_29] : memref<8x10x128xbf16, #tpu.memory_space<vmem>>, vector<1x10x128xbf16>
    %35 = vector.shape_cast %34 : vector<1x10x128xbf16> to vector<10x128xbf16>
    %cst_30 = arith.constant dense<0.000000e+00> : vector<1152x128xf32>
    %36 = tpu.matmul %33, %35, %cst_30 {dimension_numbers = #tpu.dot_dimension_numbers<[1], [0], [0], [1], [0, 0, 1, 1], [], []>} : vector<1152x10xbf16>, vector<10x128xbf16>, vector<1152x128xf32> -> vector<1152x128xf32>
    %37 = arith.addf %28, %36 : vector<1152x128xf32>
    %c1_i32 = arith.constant 1 : i32
    %38 = arith.addi %0, %c1_i32 : i32
    %c0_31 = arith.constant 0 : index
    %39 = arith.index_cast %38 : i32 to index
    %c0_32 = arith.constant 0 : index
    %c0_33 = arith.constant 0 : index
    %c0_34 = arith.constant 0 : index
    %40 = vector.load %arg2[%c0_31, %39, %c0_32, %c0_33, %c0_34] : memref<1x49x2x49x10xbf16, #tpu.memory_space<vmem>>, vector<1x24x1x48x10xbf16>
    %41 = vector.shape_cast %40 : vector<1x24x1x48x10xbf16> to vector<24x1x48x10xbf16>
    %42 = vector.shape_cast %41 : vector<24x1x48x10xbf16> to vector<1152x10xbf16>
    %c4 = arith.constant 4 : index
    %c0_35 = arith.constant 0 : index
    %c0_36 = arith.constant 0 : index
    %43 = vector.load %arg3[%c4, %c0_35, %c0_36] : memref<8x10x128xbf16, #tpu.memory_space<vmem>>, vector<1x10x128xbf16>
    %44 = vector.shape_cast %43 : vector<1x10x128xbf16> to vector<10x128xbf16>
    %cst_37 = arith.constant dense<0.000000e+00> : vector<1152x128xf32>
    %45 = tpu.matmul %42, %44, %cst_37 {dimension_numbers = #tpu.dot_dimension_numbers<[1], [0], [0], [1], [0, 0, 1, 1], [], []>} : vector<1152x10xbf16>, vector<10x128xbf16>, vector<1152x128xf32> -> vector<1152x128xf32>
    %46 = arith.addf %37, %45 : vector<1152x128xf32>
    %c1_i32_38 = arith.constant 1 : i32
    %47 = arith.addi %0, %c1_i32_38 : i32
    %c0_39 = arith.constant 0 : index
    %48 = arith.index_cast %47 : i32 to index
    %c0_40 = arith.constant 0 : index
    %c1_41 = arith.constant 1 : index
    %c0_42 = arith.constant 0 : index
    %49 = vector.load %arg2[%c0_39, %48, %c0_40, %c1_41, %c0_42] : memref<1x49x2x49x10xbf16, #tpu.memory_space<vmem>>, vector<1x24x1x48x10xbf16>
    %50 = vector.shape_cast %49 : vector<1x24x1x48x10xbf16> to vector<24x1x48x10xbf16>
    %51 = vector.shape_cast %50 : vector<24x1x48x10xbf16> to vector<1152x10xbf16>
    %c5 = arith.constant 5 : index
    %c0_43 = arith.constant 0 : index
    %c0_44 = arith.constant 0 : index
    %52 = vector.load %arg3[%c5, %c0_43, %c0_44] : memref<8x10x128xbf16, #tpu.memory_space<vmem>>, vector<1x10x128xbf16>
    %53 = vector.shape_cast %52 : vector<1x10x128xbf16> to vector<10x128xbf16>
    %cst_45 = arith.constant dense<0.000000e+00> : vector<1152x128xf32>
    %54 = tpu.matmul %51, %53, %cst_45 {dimension_numbers = #tpu.dot_dimension_numbers<[1], [0], [0], [1], [0, 0, 1, 1], [], []>} : vector<1152x10xbf16>, vector<10x128xbf16>, vector<1152x128xf32> -> vector<1152x128xf32>
    %55 = arith.addf %46, %54 : vector<1152x128xf32>
    %c1_i32_46 = arith.constant 1 : i32
    %56 = arith.addi %0, %c1_i32_46 : i32
    %c0_47 = arith.constant 0 : index
    %57 = arith.index_cast %56 : i32 to index
    %c1_48 = arith.constant 1 : index
    %c0_49 = arith.constant 0 : index
    %c0_50 = arith.constant 0 : index
    %58 = vector.load %arg2[%c0_47, %57, %c1_48, %c0_49, %c0_50] : memref<1x49x2x49x10xbf16, #tpu.memory_space<vmem>>, vector<1x24x1x48x10xbf16>
    %59 = vector.shape_cast %58 : vector<1x24x1x48x10xbf16> to vector<24x1x48x10xbf16>
    %60 = vector.shape_cast %59 : vector<24x1x48x10xbf16> to vector<1152x10xbf16>
    %c6 = arith.constant 6 : index
    %c0_51 = arith.constant 0 : index
    %c0_52 = arith.constant 0 : index
    %61 = vector.load %arg3[%c6, %c0_51, %c0_52] : memref<8x10x128xbf16, #tpu.memory_space<vmem>>, vector<1x10x128xbf16>
    %62 = vector.shape_cast %61 : vector<1x10x128xbf16> to vector<10x128xbf16>
    %cst_53 = arith.constant dense<0.000000e+00> : vector<1152x128xf32>
    %63 = tpu.matmul %60, %62, %cst_53 {dimension_numbers = #tpu.dot_dimension_numbers<[1], [0], [0], [1], [0, 0, 1, 1], [], []>} : vector<1152x10xbf16>, vector<10x128xbf16>, vector<1152x128xf32> -> vector<1152x128xf32>
    %64 = arith.addf %55, %63 : vector<1152x128xf32>
    %c1_i32_54 = arith.constant 1 : i32
    %65 = arith.addi %0, %c1_i32_54 : i32
    %c0_55 = arith.constant 0 : index
    %66 = arith.index_cast %65 : i32 to index
    %c1_56 = arith.constant 1 : index
    %c1_57 = arith.constant 1 : index
    %c0_58 = arith.constant 0 : index
    %67 = vector.load %arg2[%c0_55, %66, %c1_56, %c1_57, %c0_58] : memref<1x49x2x49x10xbf16, #tpu.memory_space<vmem>>, vector<1x24x1x48x10xbf16>
    %68 = vector.shape_cast %67 : vector<1x24x1x48x10xbf16> to vector<24x1x48x10xbf16>
    %69 = vector.shape_cast %68 : vector<24x1x48x10xbf16> to vector<1152x10xbf16>
    %c7 = arith.constant 7 : index
    %c0_59 = arith.constant 0 : index
    %c0_60 = arith.constant 0 : index
    %70 = vector.load %arg3[%c7, %c0_59, %c0_60] : memref<8x10x128xbf16, #tpu.memory_space<vmem>>, vector<1x10x128xbf16>
    %71 = vector.shape_cast %70 : vector<1x10x128xbf16> to vector<10x128xbf16>
    %cst_61 = arith.constant dense<0.000000e+00> : vector<1152x128xf32>
    %72 = tpu.matmul %69, %71, %cst_61 {dimension_numbers = #tpu.dot_dimension_numbers<[1], [0], [0], [1], [0, 0, 1, 1], [], []>} : vector<1152x10xbf16>, vector<10x128xbf16>, vector<1152x128xf32> -> vector<1152x128xf32>
    %73 = arith.addf %64, %72 : vector<1152x128xf32>
    %c0_62 = arith.constant 0 : index
    %c0_63 = arith.constant 0 : index
    %74 = vector.load %arg4[%c0_62, %c0_63] : memref<1x128xf32, #tpu.memory_space<vmem>>, vector<1x128xf32>
    %75 = vector.broadcast %74 : vector<1x128xf32> to vector<1152x128xf32>
    %76 = arith.addf %73, %75 : vector<1152x128xf32>
    %cst_64 = arith.constant 0.000000e+00 : f32
    %77 = vector.broadcast %cst_64 : f32 to vector<1152x128xf32>
    %78 = arith.cmpf oge, %76, %77 : vector<1152x128xf32>
    %cst_65 = arith.constant 2.000000e-01 : f32
    %79 = vector.broadcast %cst_65 : f32 to vector<1152x128xf32>
    %80 = arith.mulf %79, %76 : vector<1152x128xf32>
    %81 = arith.select %78, %76, %80 : vector<1152x128xi1>, vector<1152x128xf32>
    %82 = arith.truncf %81 : vector<1152x128xf32> to vector<1152x128xbf16>
    %c0_66 = arith.constant 0 : index
    %c0_67 = arith.constant 0 : index
    %c0_68 = arith.constant 0 : index
    %83 = vector.load %arg5[%c0_66, %c0_67, %c0_68] : memref<1x1152x128xbf16, #tpu.memory_space<vmem>>, vector<1x1152x128xbf16>
    %84 = vector.shape_cast %83 : vector<1x1152x128xbf16> to vector<1152x128xbf16>
    %85 = vector.shape_cast %82 : vector<1152x128xbf16> to vector<1x1152x128xbf16>
    tpu.vector_store %arg5[%c0_66, %c0_67, %c0_68], %85 {strides = array<i32>} : memref<1x1152x128xbf16, #tpu.memory_space<vmem>>, vector<1x1152x128xbf16>,
    return
  }
  func.func @transform_0(%arg0: i32, %arg1: i32) -> (i32, i32, i32, i32, i32) {
    %c0_i32 = arith.constant 0 : i32
    %c0_i32_0 = arith.constant 0 : i32
    %c0_i32_1 = arith.constant 0 : i32
    %c0_i32_2 = arith.constant 0 : i32
    %c0_i32_3 = arith.constant 0 : i32
    return %arg0, %c0_i32, %c0_i32_0, %c0_i32_1, %c0_i32_2 : i32, i32, i32, i32, i32
  }
  func.func @transform_1(%arg0: i32, %arg1: i32) -> (i32, i32, i32) {
    %c0_i32 = arith.constant 0 : i32
    %c0_i32_0 = arith.constant 0 : i32
    %c0_i32_1 = arith.constant 0 : i32
    %c0_i32_2 = arith.constant 0 : i32
    return %c0_i32, %c0_i32_0, %c0_i32_1 : i32, i32, i32
  }
  func.func @transform_2(%arg0: i32, %arg1: i32) -> (i32, i32) {
    %c0_i32 = arith.constant 0 : i32
    %c0_i32_0 = arith.constant 0 : i32
    %c0_i32_1 = arith.constant 0 : i32
    return %c0_i32, %c0_i32_0 : i32, i32
  }
  func.func @transform_3(%arg0: i32, %arg1: i32) -> (i32, i32, i32) {
    %c0_i32 = arith.constant 0 : i32
    %c0_i32_0 = arith.constant 0 : i32
    return %arg0, %arg1, %c0_i32 : i32, i32, i32
  }
}

</mosaic_0001>

<bundles_post_ra>
// kernel: tpu_custom_call.1
= control target key start
LH: loop header
LB: loop body
LE: loop exit
PB: predicated region body
PF: predicated region fallthrough
CT: control target
= control target key end

     0   :  { %8 = vsyncpa [#allocation3], 0  ;;  %s29170_s0 = inlined_call_operand.vmem [shape: bf16[2,49,2,49,10], index: 0, kind: input, shape index: {}]   ;;  %s29171_s1 = inlined_call_operand.vmem [shape: bf16[8,10,128], index: 1, kind: input, shape index: {}]   ;;  %s29172_s2 = inlined_call_operand.vmem [shape: f32[1,128], index: 2, kind: input, shape index: {}]   ;;  %s29173_s3 = inlined_call_operand.hbm [shape: bf16[2,2304,128], index: 3, kind: output, shape index: {}]  }
   0x1   :  { %10 = vsyncpa [#allocation3 + $0x1], 0  ;;  %s24969_s12 = smov 0   ;;  %s24971_s13 = smov 0  }
   0x2   :  { %s24973_s14 = smov 0   ;;  %s24975_s15 = smov 0  }
   0x3   :  { %s24977_s16 = smov 0   ;;  %s24979_s17 = smov 0  }
   0x4   :  { %s24981_s18 = smov 0   ;;  %s24983_s19 = smov 0  }
   0x5 LB: > { %s18717_s20 = sadd.s32 4294967295, %s24944_s19   ;;  %s18718_s21 = sadd.s32 4294967294, %s24944_s19   ;;  %s24944_s19 = sphi %s24983_s19, %s16_s19   ;;  %s24940_s18 = sphi %s24981_s18, %s29422_s18   ;;  %s24936_s17 = sphi %s24979_s17, %s29421_s17   ;;  %s24932_s16 = sphi %s24977_s16, %s29420_s16   ;;  %s24928_s15 = sphi %s24975_s15, %s29419_s15   ;;  %s24924_s14 = sphi %s24973_s14, %s29418_s14   ;;  %s24920_s13 = sphi %s24971_s13, %s29417_s13   ;;  %s24916_s12 = sphi %s24969_s12, %s29416_s12  }
   0x6   : > { %s25_s22 = sadd.s32 1, %s24936_s17  ;;  %s28_s23 = sadd.s32 1, %s24940_s18 }
   0x7   : > { %p26_p0 = scmp.ge.s32.totalorder %s25_s22, 2  ;;  %p115_p1 = scmp.ne.s32.totalorder %s24924_s14, %s24920_s13 }
   0x8   : > { %p116_p2 = scmp.eq.s32.totalorder %s18717_s20, 3  ;;  %p121_p5 = scmp.ne.s32.totalorder %s24920_s13, %s24916_s12 }
   0x9   : > { %s29424_s22 = smov (%p26_p0, %s25_s22), 0  ;;  %s29426_s23 = smov (!%p26_p0, %s28_s23), %s24940_s18 }
   0xa   : > { %s101_s24 = ssub.s32 %s24936_s17, %s29424_s22  ;;  %p25020_p3 = por %p116_p2, %p115_p1 }
   0xb   : > { %p30_p4 = scmp.ge.s32.totalorder %s29426_s23, 2  ;;  %p122_p6 = scmp.eq.s32.totalorder %s18718_s21, 3 }
   0xc   : > { %p18721_p7 = scmp.ge.s32.totalorder %s24944_s19, 1  ;;  %p154_p9 = scmp.lt.s32.totalorder %s24944_s19, 5 }
   0xd   : > { %s29428_s23 = smov (%p30_p4, %s29426_s23), 0  ;;  %p25029_p8 = por %p122_p6, %p121_p5 }
   0xe   : > { %s100_s27 = ssub.s32 %s24940_s18, %s29428_s23  ;;  %s105_s28 = sadd.s32 1, %s24924_s14 }
   0xf   : > { %s102_s29 = sor.u32 %s101_s24, %s100_s27  ;;  %p155_p10 = pnand %p18721_p7, %p154_p9 }
  0x10   : > { %p103_p11 = scmp.eq.s32.totalorder %s102_s29, 0 }
  0x11   : > { %158 = sbr.rel (%p155_p10) target bundleno = 1640 (0x668), region = 32 }
  0x12   : > { %s25038_s30 = scalar_select %p103_p11, %s24924_s14, %s105_s28  }
  0x18   : > { %vm2339_vm0 = vcmask 1044480   ;;  %p178_p12 = scmp.lt.s32.totalorder %s24932_s16, 1  ;;  %v24407_v0 = vld [vmem:[%s29171_s1 + $0x20] sm:$0x1f]   ;;  %v24410_v1 = vld [vmem:[%s29171_s1 + $0x8] sm:$0x1f]  }
  0x19   : > { %24327 = vmatprep.subr.msk.bf16.mxu0 %vm2339_vm0, %v24407_v0  ;;  %v9265_v2 = vsel %vm2339_vm0, %v24407_v0, 0  ;;  %s20987_s9 = smul.u32 1344, %s24928_s15  ;;  %vm2122_vm1 = vcmask 80896   ;;  %24323 = vmatprep.subr.msk.bf16.mxu1 %vm2339_vm0, %v24410_v1  ;;  %v2341_v3 = vsel %vm2339_vm0, %v24410_v1, 0  ;;  %v24413_v4 = vld [vmem:[%s29171_s1] sm:$0x1f]  }
  0x1a   : > { %s179_s6 = scalar_select %p178_p12, %s24932_s16, 1  ;;  %22732 = vmatpush3.bf16.msra.mxu0 %v9265_v2  ;;  %22148 = vmatpush3.bf16.msra.mxu1 %v2341_v3  ;;  %vm359_vm2 = vsmask.f32 3328  ;;  %v24415_v5 = vld [vmem:[%s29171_s1 + $0x28] sm:$0x1f]   ;;  %v25072_v10 = vsel %vm2339_vm0, %v24413_v4, 0 }
  0x1b   : > { %vm360_vm3 = vsmask.f32 7440  ;;  %24324 = vmatprep.subr.msk.bf16.mxu1 %vm2339_vm0, %v24413_v4  ;;  %24328 = vmatprep.subr.msk.bf16.mxu0 %vm2339_vm0, %v24415_v5  ;;  %v12165_v8 = vsel %vm2339_vm0, %v24415_v5, 0  ;;  %s18618_s24 = smul.u32 144, %s24928_s15 }
  0x1c   : > { %s24332_s10 = smul.u32 2744, %s179_s6  ;;  %vm25095_vm4 = vmor %vm359_vm2, %vm360_vm3  ;;  %s175_s6 = sand.u32 1, %s24920_s13  }
  0x1d   : > { %s27925_s7 = smul.u32 576, %s175_s6 }
  0x1e   : > { %s182_s27 = scalar_lea.vmem %s29170_s0, %s24332_s10 }
  0x1f   : > { %s25062_s4 = scalar_lea.vmem %s182_s27, %s20987_s9  ;;  %s27955_s8 = scalar_lea.vmem [#allocation2], %s27925_s7 }
  0x20   : > { %v24408_v6 = vld [vmem:[%s25062_s4 + $0x38] sm:$0xff]   ;;  %v24409_v7 = vld [vmem:[%s25062_s4 + $0x40] sm:$0xff]   ;;  %v24411_v9 = vld [vmem:[%s25062_s4 + $0x48] sm:$0xff]   ;;  %s24333_s27 = smul.u32 288, %s24932_s16  ;;  %s18626_s15 = sshll.u32 %s27955_s8, 4  ;;  %s29107_s15 = int_to_ptr.vmem [resolvable:$true] %s18626_s15 }
  0x21   : > { %22733 = vmatprep.mubr.msk.bf16.mxu0 %vm2122_vm1, %v24408_v6  ;;  %v189_v11 = vld [vmem:[%s25062_s4] sm:$0xf]  ;;  %v190_v12 = vld [vmem:[%s25062_s4 + $0x4] sm:$0xf]  ;;  %v25078_v13 = vld [vmem:[%s25062_s4 + $0x8] sm:$0xf] }
  0x22   : > { %22734 = vmatmul.mubr.msk.bf16.vlgmr.msra.gmra.mrb[0].mxu0 %vm2122_vm1, %v24409_v7  ;;  %v25082_v14 = vld [vmem:[%s25062_s4 + $0xc] sm:$0xf]  ;;  %v363_v15 = vshrl.u32 %v189_v11, 16  ;;  %v366_v16 = vshll.u32 %v189_v11, 16  ;;  %v372_v17 = vshll.u32 %v190_v12, 16  ;;  %v376_v18 = vshrl.u32 %v190_v12, 16  ;;  %s18623_s28 = sadd.s32 %s24333_s27, %s18618_s24 }
  0x23   : > { %22737 = vmatprep.mubr.msk.bf16.mxu0 %vm2122_vm1, %v24411_v9  ;;  %22878 = vmatpush3.bf16.msra.mxu0 %v12165_v8  ;;  %v382_v19 = vshll.u32 %v25078_v13, 16  ;;  %v386_v20 = vshrl.u32 %v25078_v13, 16  ;;  %v18873_v21 = vcombine.low %v25078_v13, %v25082_v14  ;;  %v24414_v26 = vld [vmem:[%s25062_s4 + $0x70] sm:$0xff]   ;;  %v24416_v27 = vld [vmem:[%s25062_s4 + $0x78] sm:$0xff]   ;;  %v392_v31 = vshll.u32 %v25082_v14, 16  ;;  %v24417_v3 = vld [vmem:[%s25062_s4 + $0x80] sm:$0xff]  }
  0x24   : > { %v365_v22 = vrot.slane %v363_v15, 4  ;;  %v368_v23 = vrot.slane %v366_v16, 5  ;;  %v374_v24 = vrot.slane %v372_v17, 5  ;;  %v378_v25 = vrot.slane %v376_v18, 4  ;;  %v193_v30 = vld [vmem:[%s25062_s4 + $0x10] sm:$0xf] }
  0x25   : > { %v384_v28 = vrot.slane %v382_v19, 5  ;;  %v388_v29 = vrot.slane %v386_v20, 4  ;;  %v396_v32 = vshrl.u32 %v25082_v14, 16  ;;  %v402_v35 = vshll.u32 %v193_v30, 16  ;;  %v194_v41 = vld [vmem:[%s25062_s4 + $0x14] sm:$0xf] }
  0x26   : > { %v369_v33 = vor.u32 %v368_v23, %v365_v22  ;;  %v379_v34 = vor.u32 %v378_v25, %v374_v24  ;;  %v406_v36 = vshrl.u32 %v193_v30, 16  ;;  %v394_v39 = vrot.slane %v392_v31, 5  ;;  %v335_v42 = vld [vmem:[%s25062_s4 + $0x18] sm:$0x1]  ;;  %v196_v56 = vld [vmem:[%s25062_s4 + $0x3c] sm:$0xf] }
  0x27   : > { %v389_v38 = vor.u32 %v388_v29, %v384_v28  ;;  %v398_v40 = vrot.slane %v396_v32, 4  ;;  %v404_v45 = vrot.slane %v402_v35, 5  ;;  %v412_v49 = vshll.u32 %v194_v41, 16  ;;  %v195_v55 = vld [vmem:[%s25062_s4 + $0x38] sm:$0xf]  ;;  %v24418_v15 = vld [vmem:[%s25062_s4 + $0xa8] sm:$0xff]  }
  0x28   : > { %v370_v43 = vrot.slane %v369_v33, 4  ;;  %v380_v44 = vrot.slane %v379_v34, 4  ;;  %v408_v46 = vrot.slane %v406_v36, 4  ;;  %v416_v50 = vshrl.u32 %v194_v41, 16  ;;  %v197_v61 = vld [vmem:[%s25062_s4 + $0x40] sm:$0xf] }
  0x29   : > { %v390_v47 = vrot.slane %v389_v38, 4  ;;  %v399_v48 = vor.u32 %v398_v40, %v394_v39  ;;  %v422_v54 = vshll.u32 %v335_v42, 16  ;;  %v414_v60 = vrot.slane %v412_v49, 5  ;;  %v198_v7 = vld [vmem:[%s25062_s4 + $0x44] sm:$0xf]  ;;  %v24419_v40 = vld [vmem:[%s25062_s4 + $0xb0] sm:$0xff]  }
  0x2a   : > { %22738 = vmatmul.mubr.msk.bf16.gmra.mrb[4].mxu0 %vm2122_vm1, %v24414_v26  ;;  %v375_v51 = vsel %vm25095_vm4, %v370_v43, %v374_v24  ;;  %v385_v52 = vsel %vm25095_vm4, %v380_v44, %v384_v28  ;;  %v409_v53 = vor.u32 %v408_v46, %v404_v45  ;;  %v418_v63 = vrot.slane %v416_v50, 4  ;;  %v199_v16 = vld [vmem:[%s25062_s4 + $0x48] sm:$0xf]  ;;  %v200_v26 = vld [vmem:[%s25062_s4 + $0x4c] sm:$0xf]  ;;  %s20984_s16 = sshll.u32 %s18623_s28, 6 }
  0x2b   : > { %22741 = vmatprep.mubr.msk.bf16.mxu0 %vm2122_vm1, %v24416_v27  ;;  %v18727_v57 = vcombine.low %v375_v51, %v385_v52  ;;  %v395_v58 = vsel %vm25095_vm4, %v390_v47, %v394_v39  ;;  %v400_v59 = vrot.slane %v399_v48, 4  ;;  %v424_v0 = vrot.slane %v422_v54, 5  ;;  %v336_v31 = vld [vmem:[%s25062_s4 + $0x50] sm:$0x1]  ;;  %v202_v46 = vld [vmem:[%s25062_s4 + $0x74] sm:$0xf]  ;;  %s29112_s7 = scalar_lea.hbm %s29173_s3, %s20984_s16 }
  0x2c   : > { %v410_v62 = vrot.slane %v409_v53, 4  ;;  %v427_v1 = vshrl.u32 %v195_v55, 16  ;;  %v430_v4 = vshll.u32 %v195_v55, 16  ;;  %v436_v5 = vshll.u32 %v196_v56, 16  ;;  %v24420_v55 = vld [vmem:[%s25062_s4 + $0xb8] sm:$0xff]   ;;  %s29118_s9 = scalar_lea.sflag [#allocation3], %s175_s6 }
  0x2d   : > { %22149 = vmatprep.mubr.msk.bf16.mxu1 %vm2122_vm1, %v18727_v57  ;;  %v405_v2 = vsel %vm25095_vm4, %v400_v59, %v404_v45  ;;  %v440_v6 = vshrl.u32 %v196_v56, 16  ;;  %v419_v11 = vor.u32 %v418_v63, %v414_v60  ;;  %v446_v20 = vshll.u32 %v197_v61, 16  ;;  %v201_v45 = vld [vmem:[%s25062_s4 + $0x70] sm:$0xf]  ;;  %v203_v56 = vld [vmem:[%s25062_s4 + $0x78] sm:$0xf] }
  0x2e   : > { %v18728_v8 = vcombine.low %v395_v58, %v405_v2  ;;  %v415_v9 = vsel %vm25095_vm4, %v410_v62, %v414_v60  ;;  %v429_v12 = vrot.slane %v427_v1, 4  ;;  %v432_v17 = vrot.slane %v430_v4, 5  ;;  %s24850_s10 = scalar_lea.vmem %s29107_s15, 9216 }
  0x2f   : > { %v438_v18 = vrot.slane %v436_v5, 5  ;;  %v442_v19 = vrot.slane %v440_v6, 4  ;;  %v420_v22 = vrot.slane %v419_v11, 4  ;;  %v450_v23 = vshrl.u32 %v197_v61, 16  ;;  %v204_v61 = vld [vmem:[%s25062_s4 + $0x7c] sm:$0xf]  ;;  %p24851_p13 = scmp.ne.s32.totalorder %s29107_s15, %s24850_s10 }
  0x30   : > { %22150 = vmatmul.mubr.msk.bf16.vlgmr.msra.gmra.mrb[0].mxu1 %vm2122_vm1, %v18728_v8  ;;  %v456_v24 = vshll.u32 %v198_v7, 16  ;;  %v460_v25 = vshrl.u32 %v198_v7, 16  ;;  %v433_v27 = vor.u32 %v432_v17, %v429_v12  ;;  %v448_v29 = vrot.slane %v446_v20, 5  ;;  %v205_v6 = vld [vmem:[%s25062_s4 + $0x80] sm:$0xf] }
  0x31   : > { %22294 = vmatpush3.bf16.msra.mxu1 %v25072_v10  ;;  %v443_v28 = vor.u32 %v442_v19, %v438_v18  ;;  %v466_v30 = vshll.u32 %v199_v16, 16  ;;  %v425_v32 = vsel %vm25095_vm4, %v420_v22, %v424_v0  ;;  %v452_v33 = vrot.slane %v450_v23, 4  ;;  %v24421_v23 = vld [vmem:[%s25062_s4 + $0xe0] sm:$0xff]   ;;  %p24852_p0 = pnand %p24851_p13, %p25020_p3 }
  0x32   : > { %22742 = vmatmul.mubr.msk.bf16.gmra.mrb[8].mxu0 %vm2122_vm1, %v24417_v3  ;;  %v458_v34 = vrot.slane %v456_v24, 5  ;;  %v462_v35 = vrot.slane %v460_v25, 4  ;;  %v18729_v36 = vcombine.low %v415_v9, %v425_v32  ;;  %v434_v10 = vrot.slane %v433_v27, 4  ;;  %v206_v24 = vld [vmem:[%s25062_s4 + $0x84] sm:$0xf] }
  0x33   : > { %22745 = vmatprep.mubr.msk.bf16.mxu0 %vm2122_vm1, %v24418_v15  ;;  %v444_v38 = vrot.slane %v443_v28, 4  ;;  %v468_v39 = vrot.slane %v466_v30, 5  ;;  %v453_v41 = vor.u32 %v452_v33, %v448_v29  ;;  %v470_v43 = vshrl.u32 %v199_v16, 16  ;;  %v337_v30 = vld [vmem:[%s25062_s4 + $0x88] sm:$0x1]  ;;  %p24853_p1 = pneg %p24852_p0 }
  0x34   : > { %v463_v42 = vor.u32 %v462_v35, %v458_v34  ;;  %v476_v44 = vshll.u32 %v200_v26, 16  ;;  %22153 = vmatprep.mubr.msk.bf16.mxu1 %vm2122_vm1, %v18729_v36  ;;  %v439_v47 = vsel %vm25095_vm4, %v434_v10, %v438_v18  ;;  %v480_v49 = vshrl.u32 %v200_v26, 16 }
  0x35   : > { %v449_v48 = vsel %vm25095_vm4, %v444_v38, %v448_v29  ;;  %v486_v50 = vshll.u32 %v336_v31, 16  ;;  %v454_v52 = vrot.slane %v453_v41, 4  ;;  %v472_v54 = vrot.slane %v470_v43, 4  ;;  %v24422_v29 = vld [vmem:[%s25062_s4 + $0xe8] sm:$0xff]  }
  0x36   : > { %v18730_v51 = vcombine.low %v439_v47, %v449_v48  ;;  %v464_v53 = vrot.slane %v463_v42, 4  ;;  %v478_v57 = vrot.slane %v476_v44, 5  ;;  %v482_v58 = vrot.slane %v480_v49, 4  ;;  %v208_v44 = vld [vmem:[%s25062_s4 + $0xac] sm:$0xf] }
  0x37   : > { %v488_v59 = vrot.slane %v486_v50, 5  ;;  %v491_v60 = vshrl.u32 %v201_v45, 16  ;;  %v459_v62 = vsel %vm25095_vm4, %v454_v52, %v458_v34  ;;  %v473_v0 = vor.u32 %v472_v54, %v468_v39 }
  0x38   : > { %22154 = vmatmul.mubr.msk.bf16.gmra.mrb[4].mxu1 %vm2122_vm1, %v18730_v51  ;;  %v469_v63 = vsel %vm25095_vm4, %v464_v53, %v468_v39  ;;  %v494_v1 = vshll.u32 %v201_v45, 16  ;;  %v483_v3 = vor.u32 %v482_v58, %v478_v57  ;;  %v500_v5 = vshll.u32 %v202_v46, 16  ;;  %v207_v39 = vld [vmem:[%s25062_s4 + $0xa8] sm:$0xf]  ;;  %v210_v58 = vld [vmem:[%s25062_s4 + $0xb4] sm:$0xf] }
  0x39   : > { %v18731_v2 = vcombine.low %v459_v62, %v469_v63  ;;  %v493_v4 = vrot.slane %v491_v60, 4  ;;  %v474_v7 = vrot.slane %v473_v0, 4  ;;  %v504_v9 = vshrl.u32 %v202_v46, 16 }
  0x3a   : > { %22746 = vmatmul.mubr.msk.bf16.gmra.mrb[12].mxu0 %vm2122_vm1, %v24419_v40  ;;  %v496_v8 = vrot.slane %v494_v1, 5  ;;  %v510_v11 = vshll.u32 %v203_v56, 16  ;;  %v484_v12 = vrot.slane %v483_v3, 4  ;;  %v502_v15 = vrot.slane %v500_v5, 5  ;;  %v24423_v1 = vld [vmem:[%s25062_s4 + $0xf0] sm:$0xff]  }
  0x3b   : > { %22749 = vmatprep.mubr.msk.bf16.mxu0 %vm2122_vm1, %v24420_v55  ;;  %22157 = vmatprep.mubr.msk.bf16.mxu1 %vm2122_vm1, %v18731_v2  ;;  %v514_v16 = vshrl.u32 %v203_v56, 16  ;;  %v520_v17 = vshll.u32 %v204_v61, 16  ;;  %v479_v18 = vsel %vm25095_vm4, %v474_v7, %v478_v57  ;;  %v506_v20 = vrot.slane %v504_v9, 4  ;;  %v209_v57 = vld [vmem:[%s25062_s4 + $0xb0] sm:$0xf] }
  0x3c   : > { %v497_v19 = vor.u32 %v496_v8, %v493_v4  ;;  %v512_v22 = vrot.slane %v510_v11, 5  ;;  %v489_v25 = vsel %vm25095_vm4, %v484_v12, %v488_v59  ;;  %v524_v28 = vshrl.u32 %v204_v61, 16  ;;  %v24424_v8 = vld [vmem:[%s25062_s4 + $0x118] sm:$0xff]  }
  0x3d   : > { %v516_v26 = vrot.slane %v514_v16, 4  ;;  %v522_v27 = vrot.slane %v520_v17, 5  ;;  %v18732_v31 = vcombine.low %v479_v18, %v489_v25  ;;  %v507_v33 = vor.u32 %v506_v20, %v502_v15 }
  0x3e   : > { %v498_v32 = vrot.slane %v497_v19, 4  ;;  %v530_v34 = vshll.u32 %v205_v6, 16  ;;  %v526_v36 = vrot.slane %v524_v28, 4  ;;  %v534_v10 = vshrl.u32 %v205_v6, 16 }
  0x3f   : > { %v517_v35 = vor.u32 %v516_v26, %v512_v22  ;;  %v540_v38 = vshll.u32 %v206_v24, 16  ;;  %v508_v41 = vrot.slane %v507_v33, 4  ;;  %v544_v43 = vshrl.u32 %v206_v24, 16 }
  0x40   : > { %22158 = vmatmul.mubr.msk.bf16.gmra.mrb[8].mxu1 %vm2122_vm1, %v18732_v31  ;;  %v503_v40 = vsel %vm25095_vm4, %v498_v32, %v502_v15  ;;  %v532_v42 = vrot.slane %v530_v34, 5  ;;  %v527_v46 = vor.u32 %v526_v36, %v522_v27  ;;  %v536_v47 = vrot.slane %v534_v10, 4  ;;  %v211_v15 = vld [vmem:[%s25062_s4 + $0xb8] sm:$0xf]  ;;  %v213_v32 = vld [vmem:[%s25062_s4 + $0xe0] sm:$0xf] }
  0x41   : > { %v518_v45 = vrot.slane %v517_v35, 4  ;;  %v542_v48 = vrot.slane %v540_v38, 5  ;;  %v513_v49 = vsel %vm25095_vm4, %v508_v41, %v512_v22  ;;  %v546_v50 = vrot.slane %v544_v43, 4  ;;  %v212_v22 = vld [vmem:[%s25062_s4 + $0xbc] sm:$0xf] }
  0x42   : > { %22750 = vmatmul.mubr.msk.bf16.gmra.mrb[16].mxu0 %vm2122_vm1, %v24421_v23  ;;  %v550_v51 = vshll.u32 %v337_v30, 16  ;;  %v555_v52 = vshrl.u32 %v207_v39, 16  ;;  %v18733_v53 = vcombine.low %v503_v40, %v513_v49  ;;  %v528_v55 = vrot.slane %v527_v46, 4  ;;  %v24426_v46 = vld [vmem:[%s25062_s4 + $0x128] sm:$0xff]  }
  0x43   : > { %22753 = vmatprep.mubr.msk.bf16.mxu0 %vm2122_vm1, %v24422_v29  ;;  %v523_v54 = vsel %vm25095_vm4, %v518_v45, %v522_v27  ;;  %v537_v56 = vor.u32 %v536_v47, %v532_v42  ;;  %v547_v59 = vor.u32 %v546_v50, %v542_v48  ;;  %v558_v62 = vshll.u32 %v207_v39, 16  ;;  %v338_v27 = vld [vmem:[%s25062_s4 + $0xc0] sm:$0x1]  ;;  %v214_v47 = vld [vmem:[%s25062_s4 + $0xe4] sm:$0xf] }
  0x44   : > { %v552_v60 = vrot.slane %v550_v51, 5  ;;  %v557_v61 = vrot.slane %v555_v52, 4  ;;  %22161 = vmatprep.mubr.msk.bf16.mxu1 %vm2122_vm1, %v18733_v53  ;;  %v533_v63 = vsel %vm25095_vm4, %v528_v55, %v532_v42  ;;  %v564_v2 = vshll.u32 %v208_v44, 16 }
  0x45   : > { %v538_v0 = vrot.slane %v537_v56, 4  ;;  %v568_v3 = vshrl.u32 %v208_v44, 16  ;;  %v18734_v4 = vcombine.low %v523_v54, %v533_v63  ;;  %v548_v5 = vrot.slane %v547_v59, 4  ;;  %v24425_v44 = vld [vmem:[%s25062_s4 + $0x120] sm:$0xff]   ;;  %v215_v54 = vld [vmem:[%s25062_s4 + $0xe8] sm:$0xf] }
  0x46   : > { %v560_v6 = vrot.slane %v558_v62, 5  ;;  %v574_v7 = vshll.u32 %v209_v57, 16  ;;  %v566_v11 = vrot.slane %v564_v2, 5  ;;  %v578_v16 = vshrl.u32 %v209_v57, 16  ;;  %v217_v2 = vld [vmem:[%s25062_s4 + $0xf0] sm:$0xf] }
  0x47   : > { %v543_v9 = vsel %vm25095_vm4, %v538_v0, %v542_v48  ;;  %v570_v12 = vrot.slane %v568_v3, 4  ;;  %v553_v17 = vsel %vm25095_vm4, %v548_v5, %v552_v60  ;;  %v584_v20 = vshll.u32 %v210_v58, 16 }
  0x48   : > { %22162 = vmatmul.mubr.msk.bf16.gmra.mrb[12].mxu1 %vm2122_vm1, %v18734_v4  ;;  %v561_v18 = vor.u32 %v560_v6, %v557_v61  ;;  %v576_v19 = vrot.slane %v574_v7, 5  ;;  %v18735_v23 = vcombine.low %v543_v9, %v553_v17  ;;  %v580_v25 = vrot.slane %v578_v16, 4  ;;  %v216_v61 = vld [vmem:[%s25062_s4 + $0xec] sm:$0xf] }
  0x49   : > { %v571_v24 = vor.u32 %v570_v12, %v566_v11  ;;  %v588_v26 = vshrl.u32 %v210_v58, 16  ;;  %v586_v29 = vrot.slane %v584_v20, 5  ;;  %v594_v30 = vshll.u32 %v211_v15, 16  ;;  %v24428_v20 = vld [vmem:[%s25062_s4 + $0x158] sm:$0xff]  }
  0x4a   : > { %22754 = vmatmul.mubr.msk.bf16.gmra.mrb[20].mxu0 %vm2122_vm1, %v24423_v1  ;;  %v562_v28 = vrot.slane %v561_v18, 4  ;;  %v598_v31 = vshrl.u32 %v211_v15, 16  ;;  %22165 = vmatprep.mubr.msk.bf16.mxu1 %vm2122_vm1, %v18735_v23  ;;  %v581_v34 = vor.u32 %v580_v25, %v576_v19  ;;  %v604_v36 = vshll.u32 %v212_v22, 16  ;;  %v218_v15 = vld [vmem:[%s25062_s4 + $0xf4] sm:$0xf] }
  0x4b   : > { %22757 = vmatprep.mubr.msk.bf16.mxu0 %vm2122_vm1, %v24424_v8  ;;  %v572_v33 = vrot.slane %v571_v24, 4  ;;  %v590_v35 = vrot.slane %v588_v26, 4  ;;  %v596_v38 = vrot.slane %v594_v30, 5  ;;  %v608_v40 = vshrl.u32 %v212_v22, 16  ;;  %v339_v22 = vld [vmem:[%s25062_s4 + $0xf8] sm:$0x1] }
  0x4c   : > { %v567_v10 = vsel %vm25095_vm4, %v562_v28, %v566_v11  ;;  %v600_v39 = vrot.slane %v598_v31, 4  ;;  %v582_v42 = vrot.slane %v581_v34, 4  ;;  %v606_v45 = vrot.slane %v604_v36, 5  ;;  %v24427_v11 = vld [vmem:[%s25062_s4 + $0x150] sm:$0xff]   ;;  %v219_v31 = vld [vmem:[%s25062_s4 + $0x118] sm:$0xf] }
  0x4d   : > { %v577_v41 = vsel %vm25095_vm4, %v572_v33, %v576_v19  ;;  %v591_v43 = vor.u32 %v590_v35, %v586_v29  ;;  %v610_v50 = vrot.slane %v608_v40, 4  ;;  %v614_v51 = vshll.u32 %v338_v27, 16 }
  0x4e   : > { %v18736_v48 = vcombine.low %v567_v10, %v577_v41  ;;  %v601_v49 = vor.u32 %v600_v39, %v596_v38  ;;  %v587_v52 = vsel %vm25095_vm4, %v582_v42, %v586_v29  ;;  %v619_v55 = vshrl.u32 %v213_v32, 16 }
  0x4f   : > { %v592_v53 = vrot.slane %v591_v43, 4  ;;  %v622_v56 = vshll.u32 %v213_v32, 16  ;;  %v611_v58 = vor.u32 %v610_v50, %v606_v45  ;;  %v616_v59 = vrot.slane %v614_v51, 5  ;;  %v220_v43 = vld [vmem:[%s25062_s4 + $0x11c] sm:$0xf] }
  0x50   : > { %22166 = vmatmul.mubr.msk.bf16.gmra.mrb[16].mxu1 %vm2122_vm1, %v18736_v48  ;;  %v602_v57 = vrot.slane %v601_v49, 4  ;;  %v628_v60 = vshll.u32 %v214_v47, 16  ;;  %v621_v63 = vrot.slane %v619_v55, 4  ;;  %v632_v1 = vshrl.u32 %v214_v47, 16  ;;  %v221_v49 = vld [vmem:[%s25062_s4 + $0x120] sm:$0xf] }
  0x51   : > { %v597_v62 = vsel %vm25095_vm4, %v592_v53, %v596_v38  ;;  %v624_v0 = vrot.slane %v622_v56, 5  ;;  %v612_v5 = vrot.slane %v611_v58, 4  ;;  %v638_v9 = vshll.u32 %v215_v54, 16 }
  0x52   : > { %22758 = vmatmul.mubr.msk.bf16.gmra.mrb[24].mxu0 %vm2122_vm1, %v24425_v44  ;;  %v18737_v3 = vcombine.low %v587_v52, %v597_v62  ;;  %v607_v4 = vsel %vm25095_vm4, %v602_v57, %v606_v45  ;;  %v630_v6 = vrot.slane %v628_v60, 5  ;;  %v634_v8 = vrot.slane %v632_v1, 4 }
  0x53   : > { %22761 = vmatprep.mubr.msk.bf16.mxu0 %vm2122_vm1, %v24426_v46  ;;  %v625_v7 = vor.u32 %v624_v0, %v621_v63  ;;  %v642_v12 = vshrl.u32 %v215_v54, 16  ;;  %v617_v16 = vsel %vm25095_vm4, %v612_v5, %v616_v59  ;;  %v648_v17 = vshll.u32 %v216_v61, 16  ;;  %v222_v54 = vld [vmem:[%s25062_s4 + $0x124] sm:$0xf]  ;;  %v24430_v0 = vld [vmem:[%s25062_s4 + $0x188] sm:$0xff]  }
  0x54   : > { %22169 = vmatprep.mubr.msk.bf16.mxu1 %vm2122_vm1, %v18737_v3  ;;  %v652_v18 = vshrl.u32 %v216_v61, 16  ;;  %v658_v19 = vshll.u32 %v217_v2, 16  ;;  %v18738_v23 = vcombine.low %v607_v4, %v617_v16  ;;  %v635_v25 = vor.u32 %v634_v8, %v630_v6  ;;  %v24429_v61 = vld [vmem:[%s25062_s4 + $0x160] sm:$0xff]   ;;  %v223_v4 = vld [vmem:[%s25062_s4 + $0x128] sm:$0xf] }
  0x55   : > { %v626_v24 = vrot.slane %v625_v7, 4  ;;  %v640_v26 = vrot.slane %v638_v9, 5  ;;  %v644_v27 = vrot.slane %v642_v12, 4  ;;  %v650_v28 = vrot.slane %v648_v17, 5  ;;  %v224_v17 = vld [vmem:[%s25062_s4 + $0x12c] sm:$0xf] }
  0x56   : > { %v654_v29 = vrot.slane %v652_v18, 4  ;;  %v660_v30 = vrot.slane %v658_v19, 5  ;;  %v636_v33 = vrot.slane %v635_v25, 4  ;;  %v662_v34 = vshrl.u32 %v217_v2, 16 }
  0x57   : > { %v631_v32 = vsel %vm25095_vm4, %v626_v24, %v630_v6  ;;  %v668_v35 = vshll.u32 %v218_v15, 16  ;;  %v645_v36 = vor.u32 %v644_v27, %v640_v26  ;;  %v672_v38 = vshrl.u32 %v218_v15, 16 }
  0x58   : > { %22170 = vmatmul.mubr.msk.bf16.gmra.mrb[20].mxu1 %vm2122_vm1, %v18738_v23  ;;  %v655_v10 = vor.u32 %v654_v29, %v650_v28  ;;  %v678_v39 = vshll.u32 %v339_v22, 16  ;;  %v641_v40 = vsel %vm25095_vm4, %v636_v33, %v640_v26  ;;  %v664_v41 = vrot.slane %v662_v34, 4  ;;  %v340_v23 = vld [vmem:[%s25062_s4 + $0x130] sm:$0x1] }
  0x59   : > { %v670_v42 = vrot.slane %v668_v35, 5  ;;  %v683_v44 = vshrl.u32 %v219_v31, 16  ;;  %v18739_v45 = vcombine.low %v631_v32, %v641_v40  ;;  %v646_v46 = vrot.slane %v645_v36, 4  ;;  %v225_v32 = vld [vmem:[%s25062_s4 + $0x150] sm:$0xf] }
  0x5a   : > { %22762 = vmatmul.mubr.msk.bf16.gmra.mrb[28].mxu0 %vm2122_vm1, %v24427_v11  ;;  %v656_v47 = vrot.slane %v655_v10, 4  ;;  %v674_v48 = vrot.slane %v672_v38, 4  ;;  %v665_v50 = vor.u32 %v664_v41, %v660_v30  ;;  %v680_v51 = vrot.slane %v678_v39, 5  ;;  %v226_v10 = vld [vmem:[%s25062_s4 + $0x154] sm:$0xf] }
  0x5b   : > { %22765 = vmatprep.mubr.msk.bf16.mxu0 %vm2122_vm1, %v24428_v20  ;;  %v685_v52 = vrot.slane %v683_v44, 4  ;;  %v686_v53 = vshll.u32 %v219_v31, 16  ;;  %22173 = vmatprep.mubr.msk.bf16.mxu1 %vm2122_vm1, %v18739_v45  ;;  %v651_v55 = vsel %vm25095_vm4, %v646_v46, %v650_v28  ;;  %v692_v58 = vshll.u32 %v220_v43, 16  ;;  %v24431_v39 = vld [vmem:[%s25062_s4 + $0x190] sm:$0xff]  }
  0x5c   : > { %v661_v56 = vsel %vm25095_vm4, %v656_v47, %v660_v30  ;;  %v675_v57 = vor.u32 %v674_v48, %v670_v42  ;;  %v666_v60 = vrot.slane %v665_v50, 4  ;;  %v696_v63 = vshrl.u32 %v220_v43, 16  ;;  %v227_v43 = vld [vmem:[%s25062_s4 + $0x158] sm:$0xf] }
  0x5d   : > { %v18740_v59 = vcombine.low %v651_v55, %v661_v56  ;;  %v688_v62 = vrot.slane %v686_v53, 5  ;;  %v694_v2 = vrot.slane %v692_v58, 5  ;;  %v702_v3 = vshll.u32 %v221_v49, 16  ;;  %v24432_v48 = vld [vmem:[%s25062_s4 + $0x198] sm:$0xff]   ;;  %v229_v58 = vld [vmem:[%s25062_s4 + $0x160] sm:$0xf] }
  0x5e   : > { %v676_v1 = vrot.slane %v675_v57, 4  ;;  %v706_v5 = vshrl.u32 %v221_v49, 16  ;;  %v671_v6 = vsel %vm25095_vm4, %v666_v60, %v670_v42  ;;  %v698_v8 = vrot.slane %v696_v63, 4  ;;  %v228_v53 = vld [vmem:[%s25062_s4 + $0x15c] sm:$0xf] }
  0x5f   : > { %v689_v7 = vor.u32 %v688_v62, %v685_v52  ;;  %v712_v9 = vshll.u32 %v222_v54, 16  ;;  %v704_v12 = vrot.slane %v702_v3, 5  ;;  %v716_v16 = vshrl.u32 %v222_v54, 16 }
  0x60   : > { %22174 = vmatmul.mubr.msk.bf16.gmra.mrb[24].mxu1 %vm2122_vm1, %v18740_v59  ;;  %v681_v11 = vsel %vm25095_vm4, %v676_v1, %v680_v51  ;;  %v708_v15 = vrot.slane %v706_v5, 4  ;;  %v699_v20 = vor.u32 %v698_v8, %v694_v2  ;;  %v722_v26 = vshll.u32 %v223_v4, 16 }
  0x61   : > { %v18741_v18 = vcombine.low %v671_v6, %v681_v11  ;;  %v690_v19 = vrot.slane %v689_v7, 4  ;;  %v714_v22 = vrot.slane %v712_v9, 5  ;;  %v718_v25 = vrot.slane %v716_v16, 4  ;;  %v230_v7 = vld [vmem:[%s25062_s4 + $0x164] sm:$0xf] }
  0x62   : > { %22766 = vmatmul.mubr.msk.bf16.gmra.mrb[32].mxu0 %vm2122_vm1, %v24429_v61  ;;  %v709_v24 = vor.u32 %v708_v15, %v704_v12  ;;  %v726_v27 = vshrl.u32 %v223_v4, 16  ;;  %v700_v29 = vrot.slane %v699_v20, 4  ;;  %v732_v30 = vshll.u32 %v224_v17, 16  ;;  %v24433_v16 = vld [vmem:[%s25062_s4 + $0x1c0] sm:$0xff]   ;;  %v24434_v20 = vld [vmem:[%s25062_s4 + $0x1c8] sm:$0xff]  }
  0x63   : > { %22769 = vmatprep.mubr.msk.bf16.mxu0 %vm2122_vm1, %v24430_v0  ;;  %22177 = vmatprep.mubr.msk.bf16.mxu1 %vm2122_vm1, %v18741_v18  ;;  %v695_v28 = vsel %vm25095_vm4, %v690_v19, %v694_v2  ;;  %v736_v31 = vshrl.u32 %v224_v17, 16  ;;  %v719_v34 = vor.u32 %v718_v25, %v714_v22  ;;  %v724_v35 = vrot.slane %v722_v26, 5 }
  0x64   : > { %v710_v33 = vrot.slane %v709_v24, 4  ;;  %v728_v36 = vrot.slane %v726_v27, 4  ;;  %v705_v38 = vsel %vm25095_vm4, %v700_v29, %v704_v12  ;;  %v734_v40 = vrot.slane %v732_v30, 5  ;;  %v341_v24 = vld [vmem:[%s25062_s4 + $0x168] sm:$0x1] }
  0x65   : > { %v738_v41 = vrot.slane %v736_v31, 4  ;;  %v742_v42 = vshll.u32 %v340_v23, 16  ;;  %v18742_v44 = vcombine.low %v695_v28, %v705_v38  ;;  %v720_v46 = vrot.slane %v719_v34, 4  ;;  %v231_v31 = vld [vmem:[%s25062_s4 + $0x188] sm:$0xf] }
  0x66   : > { %v715_v45 = vsel %vm25095_vm4, %v710_v33, %v714_v22  ;;  %v729_v47 = vor.u32 %v728_v36, %v724_v35  ;;  %v747_v51 = vshrl.u32 %v225_v32, 16  ;;  %v750_v52 = vshll.u32 %v225_v32, 16  ;;  %v232_v36 = vld [vmem:[%s25062_s4 + $0x18c] sm:$0xf] }
  0x67   : > { %v739_v49 = vor.u32 %v738_v41, %v734_v40  ;;  %v744_v50 = vrot.slane %v742_v42, 5  ;;  %v725_v54 = vsel %vm25095_vm4, %v720_v46, %v724_v35  ;;  %v756_v56 = vshll.u32 %v226_v10, 16 }
  0x68   : > { %22178 = vmatmul.mubr.msk.bf16.gmra.mrb[28].mxu1 %vm2122_vm1, %v18742_v44  ;;  %v730_v55 = vrot.slane %v729_v47, 4  ;;  %v760_v57 = vshrl.u32 %v226_v10, 16  ;;  %v18743_v59 = vcombine.low %v715_v45, %v725_v54  ;;  %v749_v61 = vrot.slane %v747_v51, 4 }
  0x69   : > { %v740_v60 = vrot.slane %v739_v49, 4  ;;  %v752_v62 = vrot.slane %v750_v52, 5  ;;  %v758_v0 = vrot.slane %v756_v56, 5  ;;  %v766_v2 = vshll.u32 %v227_v43, 16  ;;  %v24435_v52 = vld [vmem:[%s25062_s4 + $0x1d0] sm:$0xff]  }
  0x6a   : > { %22770 = vmatmul.mubr.msk.bf16.gmra.mrb[36].mxu0 %vm2122_vm1, %v24431_v39  ;;  %v735_v63 = vsel %vm25095_vm4, %v730_v55, %v734_v40  ;;  %v762_v1 = vrot.slane %v760_v57, 4  ;;  %22181 = vmatprep.mubr.msk.bf16.mxu1 %vm2122_vm1, %v18743_v59  ;;  %v770_v5 = vshrl.u32 %v227_v43, 16  ;;  %v776_v6 = vshll.u32 %v228_v53, 16  ;;  %v234_v55 = vld [vmem:[%s25062_s4 + $0x194] sm:$0xf] }
  0x6b   : > { %22773 = vmatprep.mubr.msk.bf16.mxu0 %vm2122_vm1, %v24432_v48  ;;  %v745_v3 = vsel %vm25095_vm4, %v740_v60, %v744_v50  ;;  %v753_v4 = vor.u32 %v752_v62, %v749_v61  ;;  %v768_v11 = vrot.slane %v766_v2, 5  ;;  %v780_v12 = vshrl.u32 %v228_v53, 16  ;;  %v233_v48 = vld [vmem:[%s25062_s4 + $0x190] sm:$0xf]  ;;  %v24436_v60 = vld [vmem:[%s25062_s4 + $0x1f8] sm:$0xff]  }
  0x6c   : > { %v18744_v8 = vcombine.low %v735_v63, %v745_v3  ;;  %v763_v9 = vor.u32 %v762_v1, %v758_v0  ;;  %v772_v17 = vrot.slane %v770_v5, 4  ;;  %v778_v18 = vrot.slane %v776_v6, 5  ;;  %v236_v6 = vld [vmem:[%s25062_s4 + $0x19c] sm:$0xf] }
  0x6d   : > { %v754_v15 = vrot.slane %v753_v4, 4  ;;  %v786_v19 = vshll.u32 %v229_v58, 16  ;;  %v782_v23 = vrot.slane %v780_v12, 4  ;;  %v790_v25 = vshrl.u32 %v229_v58, 16  ;;  %v342_v12 = vld [vmem:[%s25062_s4 + $0x1a0] sm:$0x1] }
  0x6e   : > { %v764_v22 = vrot.slane %v763_v9, 4  ;;  %v796_v26 = vshll.u32 %v230_v7, 16  ;;  %v773_v28 = vor.u32 %v772_v17, %v768_v11  ;;  %v800_v30 = vshrl.u32 %v230_v7, 16 }
  0x6f   : > { %v759_v27 = vsel %vm25095_vm4, %v754_v15, %v758_v0  ;;  %v788_v29 = vrot.slane %v786_v19, 5  ;;  %v783_v33 = vor.u32 %v782_v23, %v778_v18  ;;  %v792_v34 = vrot.slane %v790_v25, 4  ;;  %v235_v0 = vld [vmem:[%s25062_s4 + $0x198] sm:$0xf] }
  0x70   : > { %22182 = vmatmul.mubr.msk.bf16.gmra.mrb[32].mxu1 %vm2122_vm1, %v18744_v8  ;;  %v769_v32 = vsel %vm25095_vm4, %v764_v22, %v768_v11  ;;  %v798_v35 = vrot.slane %v796_v26, 5  ;;  %v774_v38 = vrot.slane %v773_v28, 4  ;;  %v802_v39 = vrot.slane %v800_v30, 4 }
  0x71   : > { %v18745_v10 = vcombine.low %v759_v27, %v769_v32  ;;  %v806_v40 = vshll.u32 %v341_v24, 16  ;;  %v784_v41 = vrot.slane %v783_v33, 4  ;;  %v793_v42 = vor.u32 %v792_v34, %v788_v29  ;;  %v237_v24 = vld [vmem:[%s25062_s4 + $0x1c0] sm:$0xf] }
  0x72   : > { %22774 = vmatmul.mubr.msk.bf16.gmra.mrb[40].mxu0 %vm2122_vm1, %v24433_v16  ;;  %v811_v43 = vshrl.u32 %v231_v31, 16  ;;  %v814_v44 = vshll.u32 %v231_v31, 16  ;;  %v779_v45 = vsel %vm25095_vm4, %v774_v38, %v778_v18  ;;  %v803_v46 = vor.u32 %v802_v39, %v798_v35 }
  0x73   : > { %22777 = vmatprep.mubr.msk.bf16.mxu0 %vm2122_vm1, %v24434_v20  ;;  %22185 = vmatprep.mubr.msk.bf16.mxu1 %vm2122_vm1, %v18745_v10  ;;  %v808_v47 = vrot.slane %v806_v40, 5  ;;  %v820_v49 = vshll.u32 %v232_v36, 16  ;;  %v789_v50 = vsel %vm25095_vm4, %v784_v41, %v788_v29  ;;  %v794_v51 = vrot.slane %v793_v42, 4  ;;  %v238_v29 = vld [vmem:[%s25062_s4 + $0x1c4] sm:$0xf] }
  0x74   : > { %v813_v53 = vrot.slane %v811_v43, 4  ;;  %v816_v54 = vrot.slane %v814_v44, 5  ;;  %v18746_v56 = vcombine.low %v779_v45, %v789_v50  ;;  %v804_v57 = vrot.slane %v803_v46, 4  ;;  %v24438_v43 = vld [vmem:[%s25062_s4 + $0x208] sm:$0xff]  }
  0x75   : > { %v822_v58 = vrot.slane %v820_v49, 5  ;;  %v824_v59 = vshrl.u32 %v232_v36, 16  ;;  %v799_v61 = vsel %vm25095_vm4, %v794_v51, %v798_v35  ;;  %v830_v63 = vshll.u32 %v233_v48, 16  ;;  %v24437_v36 = vld [vmem:[%s25062_s4 + $0x200] sm:$0xff]   ;;  %v239_v44 = vld [vmem:[%s25062_s4 + $0x1c8] sm:$0xf] }
  0x76   : > { %v817_v62 = vor.u32 %v816_v54, %v813_v53  ;;  %v834_v1 = vshrl.u32 %v233_v48, 16  ;;  %v809_v2 = vsel %vm25095_vm4, %v804_v57, %v808_v47  ;;  %v840_v4 = vshll.u32 %v234_v55, 16  ;;  %v240_v45 = vld [vmem:[%s25062_s4 + $0x1cc] sm:$0xf]  ;;  %v241_v57 = vld [vmem:[%s25062_s4 + $0x1d0] sm:$0xf] }
  0x77   : > { %v826_v3 = vrot.slane %v824_v59, 4  ;;  %v844_v5 = vshrl.u32 %v234_v55, 16  ;;  %v18747_v7 = vcombine.low %v799_v61, %v809_v2  ;;  %v832_v9 = vrot.slane %v830_v63, 5  ;;  %v242_v63 = vld [vmem:[%s25062_s4 + $0x1d4] sm:$0xf] }
  0x78   : > { %22186 = vmatmul.mubr.msk.bf16.gmra.mrb[36].mxu1 %vm2122_vm1, %v18746_v56  ;;  %v818_v8 = vrot.slane %v817_v62, 4  ;;  %v836_v11 = vrot.slane %v834_v1, 4  ;;  %v842_v16 = vrot.slane %v840_v4, 5  ;;  %v850_v18 = vshll.u32 %v235_v0, 16 }
  0x79   : > { %v827_v15 = vor.u32 %v826_v3, %v822_v58  ;;  %v846_v17 = vrot.slane %v844_v5, 4  ;;  %22189 = vmatprep.mubr.msk.bf16.mxu1 %vm2122_vm1, %v18747_v7  ;;  %v854_v22 = vshrl.u32 %v235_v0, 16  ;;  %v860_v23 = vshll.u32 %v236_v6, 16 }
  0x7a   : > { %22778 = vmatmul.mubr.msk.bf16.gmra.mrb[44].mxu0 %vm2122_vm1, %v24435_v52  ;;  %v823_v19 = vsel %vm25095_vm4, %v818_v8, %v822_v58  ;;  %v837_v20 = vor.u32 %v836_v11, %v832_v9  ;;  %v852_v27 = vrot.slane %v850_v18, 5  ;;  %v864_v28 = vshrl.u32 %v236_v6, 16  ;;  %v24439_v6 = vld [vmem:[%s25062_s4 + $0x230] sm:$0xff]  }
  0x7b   : > { %22781 = vmatprep.mubr.msk.bf16.mxu0 %vm2122_vm1, %v24436_v60  ;;  %v828_v25 = vrot.slane %v827_v15, 4  ;;  %v847_v26 = vor.u32 %v846_v17, %v842_v16  ;;  %v856_v31 = vrot.slane %v854_v22, 4  ;;  %v862_v32 = vrot.slane %v860_v23, 5 }
  0x7c   : > { %v838_v30 = vrot.slane %v837_v20, 4  ;;  %v870_v33 = vshll.u32 %v342_v12, 16  ;;  %v866_v10 = vrot.slane %v864_v28, 4  ;;  %v875_v38 = vshrl.u32 %v237_v24, 16 }
  0x7d   : > { %v833_v34 = vsel %vm25095_vm4, %v828_v25, %v832_v9  ;;  %v848_v35 = vrot.slane %v847_v26, 4  ;;  %v857_v41 = vor.u32 %v856_v31, %v852_v27  ;;  %v878_v49 = vshll.u32 %v237_v24, 16  ;;  %v343_v9 = vld [vmem:[%s25062_s4 + $0x1d8] sm:$0x1] }
  0x7e   : > { %v18748_v39 = vcombine.low %v823_v19, %v833_v34  ;;  %v843_v40 = vsel %vm25095_vm4, %v838_v30, %v842_v16  ;;  %v872_v42 = vrot.slane %v870_v33, 5  ;;  %v867_v47 = vor.u32 %v866_v10, %v862_v32  ;;  %v24440_v16 = vld [vmem:[%s25062_s4 + $0x238] sm:$0xff]  }
  0x7f   : > { %v853_v46 = vsel %vm25095_vm4, %v848_v35, %v852_v27  ;;  %v877_v48 = vrot.slane %v875_v38, 4  ;;  %v858_v51 = vrot.slane %v857_v41, 4  ;;  %v884_v52 = vshll.u32 %v238_v29, 16  ;;  %v243_v27 = vld [vmem:[%s25062_s4 + $0x1f8] sm:$0xf] }
  0x80   : > { %22190 = vmatmul.mubr.msk.bf16.gmra.mrb[40].mxu1 %vm2122_vm1, %v18748_v39  ;;  %v18749_v50 = vcombine.low %v843_v40, %v853_v46  ;;  %v888_v53 = vshrl.u32 %v238_v29, 16  ;;  %v868_v54 = vrot.slane %v867_v47, 4  ;;  %v880_v55 = vrot.slane %v878_v49, 5  ;;  %v245_v39 = vld [vmem:[%s25062_s4 + $0x200] sm:$0xf] }
  0x81   : > { %v894_v56 = vshll.u32 %v239_v44, 16  ;;  %v898_v58 = vshrl.u32 %v239_v44, 16  ;;  %v863_v59 = vsel %vm25095_vm4, %v858_v51, %v862_v32  ;;  %v886_v60 = vrot.slane %v884_v52, 5  ;;  %v244_v32 = vld [vmem:[%s25062_s4 + $0x1fc] sm:$0xf]  ;;  %v24441_v49 = vld [vmem:[%s25062_s4 + $0x240] sm:$0xff]  }
  0x82   : > { %22782 = vmatmul.mubr.msk.bf16.gmra.mrb[48].mxu0 %vm2122_vm1, %v24437_v36  ;;  %22193 = vmatprep.mubr.msk.bf16.mxu1 %vm2122_vm1, %v18749_v50  ;;  %v890_v61 = vrot.slane %v888_v53, 4  ;;  %v904_v62 = vshll.u32 %v240_v45, 16  ;;  %v873_v0 = vsel %vm25095_vm4, %v868_v54, %v872_v42  ;;  %v881_v1 = vor.u32 %v880_v55, %v877_v48  ;;  %v246_v46 = vld [vmem:[%s25062_s4 + $0x204] sm:$0xf] }
  0x83   : > { %22785 = vmatprep.mubr.msk.bf16.mxu0 %vm2122_vm1, %v24438_v43  ;;  %v896_v2 = vrot.slane %v894_v56, 5  ;;  %v900_v3 = vrot.slane %v898_v58, 4  ;;  %v18750_v4 = vcombine.low %v863_v59, %v873_v0  ;;  %v908_v8 = vshrl.u32 %v240_v45, 16  ;;  %v247_v56 = vld [vmem:[%s25062_s4 + $0x208] sm:$0xf] }
  0x84   : > { %v891_v5 = vor.u32 %v890_v61, %v886_v60  ;;  %v906_v7 = vrot.slane %v904_v62, 5  ;;  %v882_v11 = vrot.slane %v881_v1, 4  ;;  %v914_v15 = vshll.u32 %v241_v57, 16 }
  0x85   : > { %v901_v12 = vor.u32 %v900_v3, %v896_v2  ;;  %v918_v17 = vshrl.u32 %v241_v57, 16  ;;  %v910_v19 = vrot.slane %v908_v8, 4  ;;  %v924_v20 = vshll.u32 %v242_v63, 16 }
  0x86   : > { %v892_v18 = vrot.slane %v891_v5, 4  ;;  %v928_v22 = vshrl.u32 %v242_v63, 16  ;;  %v887_v23 = vsel %vm25095_vm4, %v882_v11, %v886_v60  ;;  %v916_v25 = vrot.slane %v914_v15, 5  ;;  %v24442_v60 = vld [vmem:[%s25062_s4 + $0x268] sm:$0xff]  }
  0x87   : > { %v902_v24 = vrot.slane %v901_v12, 4  ;;  %v920_v26 = vrot.slane %v918_v17, 4  ;;  %v911_v29 = vor.u32 %v910_v19, %v906_v7  ;;  %v926_v30 = vrot.slane %v924_v20, 5  ;;  %v249_v19 = vld [vmem:[%s25062_s4 + $0x230] sm:$0xf] }
  0x88   : > { %22194 = vmatmul.mubr.msk.bf16.gmra.mrb[44].mxu1 %vm2122_vm1, %v18750_v4  ;;  %v897_v28 = vsel %vm25095_vm4, %v892_v18, %v896_v2  ;;  %v930_v31 = vrot.slane %v928_v22, 4  ;;  %v934_v36 = vshll.u32 %v343_v9, 16  ;;  %v939_v40 = vshrl.u32 %v243_v27, 16  ;;  %v248_v2 = vld [vmem:[%s25062_s4 + $0x20c] sm:$0xf] }
  0x89   : > { %v18751_v33 = vcombine.low %v887_v23, %v897_v28  ;;  %v907_v34 = vsel %vm25095_vm4, %v902_v24, %v906_v7  ;;  %v921_v35 = vor.u32 %v920_v26, %v916_v25  ;;  %v912_v10 = vrot.slane %v911_v29, 4  ;;  %v344_v7 = vld [vmem:[%s25062_s4 + $0x210] sm:$0x1] }
  0x8a   : > { %22786 = vmatmul.mubr.msk.bf16.gmra.mrb[52].mxu0 %vm2122_vm1, %v24439_v6  ;;  %v931_v38 = vor.u32 %v930_v31, %v926_v30  ;;  %v942_v41 = vshll.u32 %v243_v27, 16  ;;  %v936_v43 = vrot.slane %v934_v36, 5  ;;  %v948_v44 = vshll.u32 %v244_v32, 16 }
  0x8b   : > { %22789 = vmatprep.mubr.msk.bf16.mxu0 %vm2122_vm1, %v24440_v16  ;;  %22197 = vmatprep.mubr.msk.bf16.mxu1 %vm2122_vm1, %v18751_v33  ;;  %v922_v42 = vrot.slane %v921_v35, 4  ;;  %v952_v45 = vshrl.u32 %v244_v32, 16  ;;  %v917_v47 = vsel %vm25095_vm4, %v912_v10, %v916_v25  ;;  %v941_v50 = vrot.slane %v939_v40, 4  ;;  %v250_v25 = vld [vmem:[%s25062_s4 + $0x234] sm:$0xf] }
  0x8c   : > { %v932_v48 = vrot.slane %v931_v38, 4  ;;  %v944_v51 = vrot.slane %v942_v41, 5  ;;  %v18752_v52 = vcombine.low %v907_v34, %v917_v47  ;;  %v950_v54 = vrot.slane %v948_v44, 5  ;;  %v24443_v32 = vld [vmem:[%s25062_s4 + $0x270] sm:$0xff]   ;;  %v24444_v38 = vld [vmem:[%s25062_s4 + $0x278] sm:$0xff]  }
  0x8d   : > { %v927_v53 = vsel %vm25095_vm4, %v922_v42, %v926_v30  ;;  %v954_v55 = vrot.slane %v952_v45, 4  ;;  %v958_v59 = vshll.u32 %v245_v39, 16  ;;  %v962_v61 = vshrl.u32 %v245_v39, 16  ;;  %v251_v30 = vld [vmem:[%s25062_s4 + $0x238] sm:$0xf] }
  0x8e   : > { %v937_v57 = vsel %vm25095_vm4, %v932_v48, %v936_v43  ;;  %v945_v58 = vor.u32 %v944_v51, %v941_v50  ;;  %v968_v0 = vshll.u32 %v246_v46, 16  ;;  %v972_v1 = vshrl.u32 %v246_v46, 16  ;;  %v252_v41 = vld [vmem:[%s25062_s4 + $0x23c] sm:$0xf]  ;;  %v253_v46 = vld [vmem:[%s25062_s4 + $0x240] sm:$0xf] }
  0x8f   : > { %v18753_v62 = vcombine.low %v927_v53, %v937_v57  ;;  %v955_v63 = vor.u32 %v954_v55, %v950_v54  ;;  %v960_v4 = vrot.slane %v958_v59, 5  ;;  %v964_v5 = vrot.slane %v962_v61, 4  ;;  %v254_v59 = vld [vmem:[%s25062_s4 + $0x244] sm:$0xf] }
  0x90   : > { %22198 = vmatmul.mubr.msk.bf16.gmra.mrb[48].mxu1 %vm2122_vm1, %v18752_v52  ;;  %v946_v3 = vrot.slane %v945_v58, 4  ;;  %v978_v6 = vshll.u32 %v247_v56, 16  ;;  %v970_v9 = vrot.slane %v968_v0, 5  ;;  %v974_v11 = vrot.slane %v972_v1, 4 }
  0x91   : > { %22201 = vmatprep.mubr.msk.bf16.mxu1 %vm2122_vm1, %v18753_v62  ;;  %v956_v8 = vrot.slane %v955_v63, 4  ;;  %v982_v12 = vshrl.u32 %v247_v56, 16  ;;  %v965_v16 = vor.u32 %v964_v5, %v960_v4  ;;  %v988_v18 = vshll.u32 %v248_v2, 16  ;;  %v24445_v5 = vld [vmem:[%s25062_s4 + $0x2a0] sm:$0xff]  }
  0x92   : > { %22790 = vmatmul.mubr.msk.bf16.gmra.mrb[56].mxu0 %vm2122_vm1, %v24441_v49  ;;  %v951_v15 = vsel %vm25095_vm4, %v946_v3, %v950_v54  ;;  %v980_v17 = vrot.slane %v978_v6, 5  ;;  %v975_v22 = vor.u32 %v974_v11, %v970_v9  ;;  %v992_v24 = vshrl.u32 %v248_v2, 16  ;;  %v255_v11 = vld [vmem:[%s25062_s4 + $0x268] sm:$0xf] }
  0x93   : > { %22793 = vmatprep.mubr.msk.bf16.mxu0 %vm2122_vm1, %v24442_v60  ;;  %v961_v20 = vsel %vm25095_vm4, %v956_v8, %v960_v4  ;;  %v984_v23 = vrot.slane %v982_v12, 4  ;;  %v966_v27 = vrot.slane %v965_v16, 4  ;;  %v990_v28 = vrot.slane %v988_v18, 5  ;;  %v345_v4 = vld [vmem:[%s25062_s4 + $0x248] sm:$0x1] }
  0x94   : > { %v18754_v26 = vcombine.low %v951_v15, %v961_v20  ;;  %v998_v29 = vshll.u32 %v344_v7, 16  ;;  %v976_v31 = vrot.slane %v975_v22, 4  ;;  %v994_v34 = vrot.slane %v992_v24, 4  ;;  %v24446_v16 = vld [vmem:[%s25062_s4 + $0x2a8] sm:$0xff]  }
  0x95   : > { %v985_v33 = vor.u32 %v984_v23, %v980_v17  ;;  %v1003_v35 = vshrl.u32 %v249_v19, 16  ;;  %v971_v36 = vsel %vm25095_vm4, %v966_v27, %v970_v9  ;;  %v1006_v39 = vshll.u32 %v249_v19, 16  ;;  %v256_v19 = vld [vmem:[%s25062_s4 + $0x26c] sm:$0xf] }
  0x96   : > { %v1000_v10 = vrot.slane %v998_v29, 5  ;;  %v1012_v40 = vshll.u32 %v250_v25, 16  ;;  %v981_v42 = vsel %vm25095_vm4, %v976_v31, %v980_v17  ;;  %v995_v44 = vor.u32 %v994_v34, %v990_v28  ;;  %v258_v34 = vld [vmem:[%s25062_s4 + $0x274] sm:$0xf] }
  0x97   : > { %v986_v43 = vrot.slane %v985_v33, 4  ;;  %v1005_v45 = vrot.slane %v1003_v35, 4  ;;  %v18755_v47 = vcombine.low %v971_v36, %v981_v42  ;;  %v1008_v48 = vrot.slane %v1006_v39, 5  ;;  %v257_v33 = vld [vmem:[%s25062_s4 + $0x270] sm:$0xf] }
  0x98   : > { %22202 = vmatmul.mubr.msk.bf16.gmra.mrb[52].mxu1 %vm2122_vm1, %v18754_v26  ;;  %v1014_v49 = vrot.slane %v1012_v40, 5  ;;  %v1016_v50 = vshrl.u32 %v250_v25, 16  ;;  %v996_v52 = vrot.slane %v995_v44, 4  ;;  %v1022_v53 = vshll.u32 %v251_v30, 16 }
  0x99   : > { %v991_v51 = vsel %vm25095_vm4, %v986_v43, %v990_v28  ;;  %v1026_v54 = vshrl.u32 %v251_v30, 16  ;;  %22205 = vmatprep.mubr.msk.bf16.mxu1 %vm2122_vm1, %v18755_v47  ;;  %v1009_v55 = vor.u32 %v1008_v48, %v1005_v45  ;;  %v1032_v57 = vshll.u32 %v252_v41, 16  ;;  %v24447_v45 = vld [vmem:[%s25062_s4 + $0x2b0] sm:$0xff]   ;;  %v259_v48 = vld [vmem:[%s25062_s4 + $0x278] sm:$0xf] }
  0x9a   : > { %22794 = vmatmul.mubr.msk.bf16.gmra.mrb[60].mxu0 %vm2122_vm1, %v24443_v32  ;;  %v1018_v56 = vrot.slane %v1016_v50, 4  ;;  %v1036_v58 = vshrl.u32 %v252_v41, 16  ;;  %v1001_v60 = vsel %vm25095_vm4, %v996_v52, %v1000_v10  ;;  %v1024_v61 = vrot.slane %v1022_v53, 5  ;;  %v24448_v52 = vld [vmem:[%s25062_s4 + $0x2d8] sm:$0xff]  }
  0x9b   : > { %22797 = vmatprep.mubr.msk.bf16.mxu0 %vm2122_vm1, %v24444_v38  ;;  %v1028_v62 = vrot.slane %v1026_v54, 4  ;;  %v1042_v63 = vshll.u32 %v253_v46, 16  ;;  %v18756_v0 = vcombine.low %v991_v51, %v1001_v60  ;;  %v1010_v1 = vrot.slane %v1009_v55, 4  ;;  %v260_v54 = vld [vmem:[%s25062_s4 + $0x27c] sm:$0xf] }
  0x9c   : > { %v1019_v2 = vor.u32 %v1018_v56, %v1014_v49  ;;  %v1034_v3 = vrot.slane %v1032_v57, 5  ;;  %v1038_v7 = vrot.slane %v1036_v58, 4  ;;  %v1046_v9 = vshrl.u32 %v253_v46, 16 }
  0x9d   : > { %v1029_v6 = vor.u32 %v1028_v62, %v1024_v61  ;;  %v1044_v8 = vrot.slane %v1042_v63, 5  ;;  %v1015_v12 = vsel %vm25095_vm4, %v1010_v1, %v1014_v49  ;;  %v1052_v17 = vshll.u32 %v254_v59, 16  ;;  %v346_v63 = vld [vmem:[%s25062_s4 + $0x280] sm:$0x1] }
  0x9e   : > { %v1020_v15 = vrot.slane %v1019_v2, 4  ;;  %v1056_v18 = vshrl.u32 %v254_v59, 16  ;;  %v1039_v22 = vor.u32 %v1038_v7, %v1034_v3  ;;  %v1048_v23 = vrot.slane %v1046_v9, 4 }
  0x9f   : > { %v1030_v20 = vrot.slane %v1029_v6, 4  ;;  %v1062_v24 = vshll.u32 %v345_v4, 16  ;;  %v1054_v26 = vrot.slane %v1052_v17, 5  ;;  %v1067_v28 = vshrl.u32 %v255_v11, 16  ;;  %v261_v4 = vld [vmem:[%s25062_s4 + $0x2a0] sm:$0xf] }
  0xa0   : > { %22206 = vmatmul.mubr.msk.bf16.gmra.mrb[56].mxu1 %vm2122_vm1, %v18756_v0  ;;  %v1025_v25 = vsel %vm25095_vm4, %v1020_v15, %v1024_v61  ;;  %v1058_v27 = vrot.slane %v1056_v18, 4  ;;  %v1040_v31 = vrot.slane %v1039_v22, 4  ;;  %v1049_v32 = vor.u32 %v1048_v23, %v1044_v8 }
  0xa1   : > { %v18757_v29 = vcombine.low %v1015_v12, %v1025_v25  ;;  %v1035_v30 = vsel %vm25095_vm4, %v1030_v20, %v1034_v3  ;;  %v1064_v36 = vrot.slane %v1062_v24, 5  ;;  %v1069_v10 = vrot.slane %v1067_v28, 4  ;;  %v262_v20 = vld [vmem:[%s25062_s4 + $0x2a4] sm:$0xf] }
  0xa2   : > { %22798 = vmatmul.mubr.msk.bf16.gmra.mrb[64].mxu0 %vm2122_vm1, %v24445_v5  ;;  %v1059_v35 = vor.u32 %v1058_v27, %v1054_v26  ;;  %v1070_v38 = vshll.u32 %v255_v11, 16  ;;  %v1045_v39 = vsel %vm25095_vm4, %v1040_v31, %v1044_v8  ;;  %v1050_v40 = vrot.slane %v1049_v32, 4  ;;  %v264_v32 = vld [vmem:[%s25062_s4 + $0x2ac] sm:$0xf] }
  0xa3   : > { %22801 = vmatprep.mubr.msk.bf16.mxu0 %vm2122_vm1, %v24446_v16  ;;  %22209 = vmatprep.mubr.msk.bf16.mxu1 %vm2122_vm1, %v18757_v29  ;;  %v1076_v41 = vshll.u32 %v256_v19, 16  ;;  %v1080_v42 = vshrl.u32 %v256_v19, 16  ;;  %v18758_v43 = vcombine.low %v1035_v30, %v1045_v39  ;;  %v1086_v47 = vshll.u32 %v257_v33, 16  ;;  %v24449_v29 = vld [vmem:[%s25062_s4 + $0x2e0] sm:$0xff]  }
  0xa4   : > { %v1060_v44 = vrot.slane %v1059_v35, 4  ;;  %v1072_v46 = vrot.slane %v1070_v38, 5  ;;  %v1055_v49 = vsel %vm25095_vm4, %v1050_v40, %v1054_v26  ;;  %v1090_v53 = vshrl.u32 %v257_v33, 16  ;;  %v263_v26 = vld [vmem:[%s25062_s4 + $0x2a8] sm:$0xf] }
  0xa5   : > { %v1078_v50 = vrot.slane %v1076_v41, 5  ;;  %v1082_v51 = vrot.slane %v1080_v42, 4  ;;  %v1088_v57 = vrot.slane %v1086_v47, 5  ;;  %v1096_v58 = vshll.u32 %v258_v34, 16  ;;  %v265_v38 = vld [vmem:[%s25062_s4 + $0x2b0] sm:$0xf] }
  0xa6   : > { %v1065_v55 = vsel %vm25095_vm4, %v1060_v44, %v1064_v36  ;;  %v1073_v56 = vor.u32 %v1072_v46, %v1069_v10  ;;  %v1092_v61 = vrot.slane %v1090_v53, 4  ;;  %v1100_v62 = vshrl.u32 %v258_v34, 16  ;;  %v24450_v36 = vld [vmem:[%s25062_s4 + $0x2e8] sm:$0xff]  }
  0xa7   : > { %v18759_v59 = vcombine.low %v1055_v49, %v1065_v55  ;;  %v1083_v60 = vor.u32 %v1082_v51, %v1078_v50  ;;  %v1098_v1 = vrot.slane %v1096_v58, 5  ;;  %v1106_v2 = vshll.u32 %v259_v48, 16  ;;  %v266_v51 = vld [vmem:[%s25062_s4 + $0x2b4] sm:$0xf] }
  0xa8   : > { %22210 = vmatmul.mubr.msk.bf16.gmra.mrb[60].mxu1 %vm2122_vm1, %v18758_v43  ;;  %v1074_v0 = vrot.slane %v1073_v56, 4  ;;  %v1110_v3 = vshrl.u32 %v259_v48, 16  ;;  %v1093_v6 = vor.u32 %v1092_v61, %v1088_v57  ;;  %v1102_v7 = vrot.slane %v1100_v62, 4  ;;  %v347_v56 = vld [vmem:[%s25062_s4 + $0x2b8] sm:$0x1] }
  0xa9   : > { %22213 = vmatprep.mubr.msk.bf16.mxu1 %vm2122_vm1, %v18759_v59  ;;  %v1084_v5 = vrot.slane %v1083_v60, 4  ;;  %v1116_v8 = vshll.u32 %v260_v54, 16  ;;  %v1108_v11 = vrot.slane %v1106_v2, 5  ;;  %v1120_v15 = vshrl.u32 %v260_v54, 16 }
  0xaa   : > { %22802 = vmatmul.mubr.msk.bf16.gmra.mrb[68].mxu0 %vm2122_vm1, %v24447_v45  ;;  %v1079_v9 = vsel %vm25095_vm4, %v1074_v0, %v1078_v50  ;;  %v1112_v12 = vrot.slane %v1110_v3, 4  ;;  %v1094_v17 = vrot.slane %v1093_v6, 4  ;;  %v1103_v18 = vor.u32 %v1102_v7, %v1098_v1 }
  0xab   : > { %22805 = vmatprep.mubr.msk.bf16.mxu0 %vm2122_vm1, %v24448_v52  ;;  %v1089_v16 = vsel %vm25095_vm4, %v1084_v5, %v1088_v57  ;;  %v1118_v19 = vrot.slane %v1116_v8, 5  ;;  %v1122_v24 = vrot.slane %v1120_v15, 4  ;;  %v1126_v25 = vshll.u32 %v346_v63, 16  ;;  %v24452_v5 = vld [vmem:[%s25062_s4 + $0x318] sm:$0xff]  }
  0xac   : > { %v18760_v22 = vcombine.low %v1079_v9, %v1089_v16  ;;  %v1113_v23 = vor.u32 %v1112_v12, %v1108_v11  ;;  %v1099_v27 = vsel %vm25095_vm4, %v1094_v17, %v1098_v1  ;;  %v1104_v28 = vrot.slane %v1103_v18, 4  ;;  %v267_v1 = vld [vmem:[%s25062_s4 + $0x2d8] sm:$0xf]  ;;  %v268_v18 = vld [vmem:[%s25062_s4 + $0x2dc] sm:$0xf] }
  0xad   : > { %v1131_v30 = vshrl.u32 %v261_v4, 16  ;;  %v1134_v31 = vshll.u32 %v261_v4, 16  ;;  %v1123_v34 = vor.u32 %v1122_v24, %v1118_v19  ;;  %v1128_v35 = vrot.slane %v1126_v25, 5  ;;  %v24451_v4 = vld [vmem:[%s25062_s4 + $0x310] sm:$0xff]   ;;  %v269_v25 = vld [vmem:[%s25062_s4 + $0x2e0] sm:$0xf] }
  0xae   : > { %v1114_v33 = vrot.slane %v1113_v23, 4  ;;  %v1140_v10 = vshll.u32 %v262_v20, 16  ;;  %v1109_v39 = vsel %vm25095_vm4, %v1104_v28, %v1108_v11  ;;  %v1144_v42 = vshrl.u32 %v262_v20, 16 }
  0xaf   : > { %v1133_v40 = vrot.slane %v1131_v30, 4  ;;  %v1136_v41 = vrot.slane %v1134_v31, 5  ;;  %v18761_v43 = vcombine.low %v1099_v27, %v1109_v39  ;;  %v1124_v45 = vrot.slane %v1123_v34, 4  ;;  %v270_v34 = vld [vmem:[%s25062_s4 + $0x2e4] sm:$0xf] }
  0xb0   : > { %22214 = vmatmul.mubr.msk.bf16.gmra.mrb[64].mxu1 %vm2122_vm1, %v18760_v22  ;;  %v1119_v44 = vsel %vm25095_vm4, %v1114_v33, %v1118_v19  ;;  %v1142_v46 = vrot.slane %v1140_v10, 5  ;;  %v1146_v48 = vrot.slane %v1144_v42, 4  ;;  %v1150_v49 = vshll.u32 %v263_v26, 16  ;;  %v24453_v10 = vld [vmem:[%s25062_s4 + $0x320] sm:$0xff]  }
  0xb1   : > { %v1137_v47 = vor.u32 %v1136_v41, %v1133_v40  ;;  %v1154_v50 = vshrl.u32 %v263_v26, 16  ;;  %22217 = vmatprep.mubr.msk.bf16.mxu1 %vm2122_vm1, %v18761_v43  ;;  %v1129_v52 = vsel %vm25095_vm4, %v1124_v45, %v1128_v35  ;;  %v1160_v53 = vshll.u32 %v264_v32, 16  ;;  %v271_v43 = vld [vmem:[%s25062_s4 + $0x2e8] sm:$0xf] }
  0xb2   : > { %22806 = vmatmul.mubr.msk.bf16.gmra.mrb[72].mxu0 %vm2122_vm1, %v24449_v29  ;;  %v1164_v54 = vshrl.u32 %v264_v32, 16  ;;  %v1170_v55 = vshll.u32 %v265_v38, 16  ;;  %v18762_v57 = vcombine.low %v1119_v44, %v1129_v52  ;;  %v1147_v59 = vor.u32 %v1146_v48, %v1142_v46 }
  0xb3   : > { %22809 = vmatprep.mubr.msk.bf16.mxu0 %vm2122_vm1, %v24450_v36  ;;  %v1138_v58 = vrot.slane %v1137_v47, 4  ;;  %v1152_v60 = vrot.slane %v1150_v49, 5  ;;  %v1156_v61 = vrot.slane %v1154_v50, 4  ;;  %v1162_v62 = vrot.slane %v1160_v53, 5 }
  0xb4   : > { %v1166_v63 = vrot.slane %v1164_v54, 4  ;;  %v1172_v0 = vrot.slane %v1170_v55, 5  ;;  %v1148_v3 = vrot.slane %v1147_v59, 4  ;;  %v1174_v6 = vshrl.u32 %v265_v38, 16  ;;  %v272_v54 = vld [vmem:[%s25062_s4 + $0x2ec] sm:$0xf] }
  0xb5   : > { %v1143_v2 = vsel %vm25095_vm4, %v1138_v58, %v1142_v46  ;;  %v1180_v7 = vshll.u32 %v266_v51, 16  ;;  %v1157_v8 = vor.u32 %v1156_v61, %v1152_v60  ;;  %v1184_v11 = vshrl.u32 %v266_v51, 16  ;;  %v24454_v51 = vld [vmem:[%s25062_s4 + $0x348] sm:$0xff]   ;;  %v348_v59 = vld [vmem:[%s25062_s4 + $0x2f0] sm:$0x1] }
  0xb6   : > { %v1167_v9 = vor.u32 %v1166_v63, %v1162_v62  ;;  %v1190_v12 = vshll.u32 %v347_v56, 16  ;;  %v1153_v15 = vsel %vm25095_vm4, %v1148_v3, %v1152_v60  ;;  %v1176_v16 = vrot.slane %v1174_v6, 4 }
  0xb7   : > { %v1182_v17 = vrot.slane %v1180_v7, 5  ;;  %v1195_v19 = vshrl.u32 %v267_v1, 16  ;;  %v18763_v20 = vcombine.low %v1143_v2, %v1153_v15  ;;  %v1158_v22 = vrot.slane %v1157_v8, 4 }
  0xb8   : > { %22218 = vmatmul.mubr.msk.bf16.gmra.mrb[68].mxu1 %vm2122_vm1, %v18762_v57  ;;  %v1168_v23 = vrot.slane %v1167_v9, 4  ;;  %v1186_v24 = vrot.slane %v1184_v11, 4  ;;  %v1177_v26 = vor.u32 %v1176_v16, %v1172_v0  ;;  %v1192_v27 = vrot.slane %v1190_v12, 5  ;;  %v274_v9 = vld [vmem:[%s25062_s4 + $0x314] sm:$0xf] }
  0xb9   : > { %v1197_v28 = vrot.slane %v1195_v19, 4  ;;  %v1198_v29 = vshll.u32 %v267_v1, 16  ;;  %22221 = vmatprep.mubr.msk.bf16.mxu1 %vm2122_vm1, %v18763_v20  ;;  %v1163_v30 = vsel %vm25095_vm4, %v1158_v22, %v1162_v62  ;;  %v1204_v33 = vshll.u32 %v268_v18, 16  ;;  %v275_v22 = vld [vmem:[%s25062_s4 + $0x318] sm:$0xf] }
  0xba   : > { %22810 = vmatmul.mubr.msk.bf16.gmra.mrb[76].mxu0 %vm2122_vm1, %v24451_v4  ;;  %v1173_v31 = vsel %vm25095_vm4, %v1168_v23, %v1172_v0  ;;  %v1187_v32 = vor.u32 %v1186_v24, %v1182_v17  ;;  %v1178_v36 = vrot.slane %v1177_v26, 4  ;;  %v1208_v39 = vshrl.u32 %v268_v18, 16  ;;  %v273_v4 = vld [vmem:[%s25062_s4 + $0x310] sm:$0xf] }
  0xbb   : > { %22813 = vmatprep.mubr.msk.bf16.mxu0 %vm2122_vm1, %v24452_v5  ;;  %v18764_v35 = vcombine.low %v1163_v30, %v1173_v31  ;;  %v1200_v38 = vrot.slane %v1198_v29, 5  ;;  %v1206_v41 = vrot.slane %v1204_v33, 5  ;;  %v1214_v42 = vshll.u32 %v269_v25, 16  ;;  %v24455_v23 = vld [vmem:[%s25062_s4 + $0x350] sm:$0xff]   ;;  %v24456_v31 = vld [vmem:[%s25062_s4 + $0x358] sm:$0xff]  }
  0xbc   : > { %v1188_v40 = vrot.slane %v1187_v32, 4  ;;  %v1218_v44 = vshrl.u32 %v269_v25, 16  ;;  %v1183_v45 = vsel %vm25095_vm4, %v1178_v36, %v1182_v17  ;;  %v1210_v47 = vrot.slane %v1208_v39, 4 }
  0xbd   : > { %v1201_v46 = vor.u32 %v1200_v38, %v1197_v28  ;;  %v1224_v48 = vshll.u32 %v270_v34, 16  ;;  %v1216_v50 = vrot.slane %v1214_v42, 5  ;;  %v1228_v53 = vshrl.u32 %v270_v34, 16  ;;  %v276_v28 = vld [vmem:[%s25062_s4 + $0x31c] sm:$0xf] }
  0xbe   : > { %v1193_v49 = vsel %vm25095_vm4, %v1188_v40, %v1192_v27  ;;  %v1220_v52 = vrot.slane %v1218_v44, 4  ;;  %v1211_v57 = vor.u32 %v1210_v47, %v1206_v41  ;;  %v1234_v62 = vshll.u32 %v271_v43, 16  ;;  %v277_v34 = vld [vmem:[%s25062_s4 + $0x320] sm:$0xf]  ;;  %v278_v47 = vld [vmem:[%s25062_s4 + $0x324] sm:$0xf] }
  0xbf   : > { %v18765_v55 = vcombine.low %v1183_v45, %v1193_v49  ;;  %v1202_v56 = vrot.slane %v1201_v46, 4  ;;  %v1226_v58 = vrot.slane %v1224_v48, 5  ;;  %v1230_v61 = vrot.slane %v1228_v53, 4  ;;  %v24457_v53 = vld [vmem:[%s25062_s4 + $0x380] sm:$0xff]  }
  0xc0   : > { %22222 = vmatmul.mubr.msk.bf16.gmra.mrb[72].mxu1 %vm2122_vm1, %v18764_v35  ;;  %v1221_v60 = vor.u32 %v1220_v52, %v1216_v50  ;;  %v1238_v63 = vshrl.u32 %v271_v43, 16  ;;  %v1212_v1 = vrot.slane %v1211_v57, 4  ;;  %v1244_v2 = vshll.u32 %v272_v54, 16  ;;  %v349_v57 = vld [vmem:[%s25062_s4 + $0x328] sm:$0x1] }
  0xc1   : > { %22225 = vmatprep.mubr.msk.bf16.mxu1 %vm2122_vm1, %v18765_v55  ;;  %v1207_v0 = vsel %vm25095_vm4, %v1202_v56, %v1206_v41  ;;  %v1248_v3 = vshrl.u32 %v272_v54, 16  ;;  %v1231_v6 = vor.u32 %v1230_v61, %v1226_v58  ;;  %v1236_v7 = vrot.slane %v1234_v62, 5  ;;  %v279_v62 = vld [vmem:[%s25062_s4 + $0x348] sm:$0xf] }
  0xc2   : > { %22814 = vmatmul.mubr.msk.bf16.gmra.mrb[80].mxu0 %vm2122_vm1, %v24453_v10  ;;  %v1222_v5 = vrot.slane %v1221_v60, 4  ;;  %v1240_v8 = vrot.slane %v1238_v63, 4  ;;  %v1217_v11 = vsel %vm25095_vm4, %v1212_v1, %v1216_v50  ;;  %v1246_v12 = vrot.slane %v1244_v2, 5 }
  0xc3   : > { %22817 = vmatprep.mubr.msk.bf16.mxu0 %vm2122_vm1, %v24454_v51  ;;  %v1250_v15 = vrot.slane %v1248_v3, 4  ;;  %v1254_v16 = vshll.u32 %v348_v59, 16  ;;  %v18766_v17 = vcombine.low %v1207_v0, %v1217_v11  ;;  %v1232_v19 = vrot.slane %v1231_v6, 4 }
  0xc4   : > { %v1227_v18 = vsel %vm25095_vm4, %v1222_v5, %v1226_v58  ;;  %v1241_v20 = vor.u32 %v1240_v8, %v1236_v7  ;;  %v1259_v26 = vshrl.u32 %v273_v4, 16  ;;  %v1262_v27 = vshll.u32 %v273_v4, 16  ;;  %v24458_v5 = vld [vmem:[%s25062_s4 + $0x388] sm:$0xff]  }
  0xc5   : > { %v1251_v24 = vor.u32 %v1250_v15, %v1246_v12  ;;  %v1256_v25 = vrot.slane %v1254_v16, 5  ;;  %v1237_v29 = vsel %vm25095_vm4, %v1232_v19, %v1236_v7  ;;  %v1268_v32 = vshll.u32 %v274_v9, 16  ;;  %v280_v8 = vld [vmem:[%s25062_s4 + $0x34c] sm:$0xf]  ;;  %v281_v16 = vld [vmem:[%s25062_s4 + $0x350] sm:$0xf] }
  0xc6   : > { %v1242_v30 = vrot.slane %v1241_v20, 4  ;;  %v1272_v33 = vshrl.u32 %v274_v9, 16  ;;  %v18767_v35 = vcombine.low %v1227_v18, %v1237_v29  ;;  %v1261_v10 = vrot.slane %v1259_v26, 4  ;;  %v282_v26 = vld [vmem:[%s25062_s4 + $0x354] sm:$0xf] }
  0xc7   : > { %v1252_v36 = vrot.slane %v1251_v24, 4  ;;  %v1264_v38 = vrot.slane %v1262_v27, 5  ;;  %v1270_v40 = vrot.slane %v1268_v32, 5  ;;  %v1278_v42 = vshll.u32 %v275_v22, 16 }
  0xc8   : > { %22226 = vmatmul.mubr.msk.bf16.gmra.mrb[76].mxu1 %vm2122_vm1, %v18766_v17  ;;  %v1247_v39 = vsel %vm25095_vm4, %v1242_v30, %v1246_v12  ;;  %v1274_v41 = vrot.slane %v1272_v33, 4  ;;  %v1282_v45 = vshrl.u32 %v275_v22, 16  ;;  %v1288_v46 = vshll.u32 %v276_v28, 16 }
  0xc9   : > { %22229 = vmatprep.mubr.msk.bf16.mxu1 %vm2122_vm1, %v18767_v35  ;;  %v1257_v43 = vsel %vm25095_vm4, %v1252_v36, %v1256_v25  ;;  %v1265_v44 = vor.u32 %v1264_v38, %v1261_v10  ;;  %v1280_v50 = vrot.slane %v1278_v42, 5  ;;  %v1292_v51 = vshrl.u32 %v276_v28, 16  ;;  %v24459_v42 = vld [vmem:[%s25062_s4 + $0x390] sm:$0xff]  }
  0xca   : > { %22818 = vmatmul.mubr.msk.bf16.gmra.mrb[84].mxu0 %vm2122_vm1, %v24455_v23  ;;  %v18768_v48 = vcombine.low %v1247_v39, %v1257_v43  ;;  %v1275_v49 = vor.u32 %v1274_v41, %v1270_v40  ;;  %v1284_v54 = vrot.slane %v1282_v45, 4  ;;  %v1290_v55 = vrot.slane %v1288_v46, 5  ;;  %v350_v46 = vld [vmem:[%s25062_s4 + $0x360] sm:$0x1] }
  0xcb   : > { %22821 = vmatprep.mubr.msk.bf16.mxu0 %vm2122_vm1, %v24456_v31  ;;  %v1266_v52 = vrot.slane %v1265_v44, 4  ;;  %v1298_v56 = vshll.u32 %v277_v34, 16  ;;  %v1294_v59 = vrot.slane %v1292_v51, 4  ;;  %v1302_v60 = vshrl.u32 %v277_v34, 16  ;;  %v283_v31 = vld [vmem:[%s25062_s4 + $0x358] sm:$0xf] }
  0xcc   : > { %v1276_v58 = vrot.slane %v1275_v49, 4  ;;  %v1308_v61 = vshll.u32 %v278_v47, 16  ;;  %v1285_v0 = vor.u32 %v1284_v54, %v1280_v50  ;;  %v1312_v2 = vshrl.u32 %v278_v47, 16 }
  0xcd   : > { %v1271_v63 = vsel %vm25095_vm4, %v1266_v52, %v1270_v40  ;;  %v1300_v1 = vrot.slane %v1298_v56, 5  ;;  %v1295_v4 = vor.u32 %v1294_v59, %v1290_v55  ;;  %v1304_v6 = vrot.slane %v1302_v60, 4  ;;  %v284_v40 = vld [vmem:[%s25062_s4 + $0x35c] sm:$0xf]  ;;  %v285_v60 = vld [vmem:[%s25062_s4 + $0x380] sm:$0xf] }
  0xce   : > { %v1281_v3 = vsel %vm25095_vm4, %v1276_v58, %v1280_v50  ;;  %v1310_v7 = vrot.slane %v1308_v61, 5  ;;  %v1286_v11 = vrot.slane %v1285_v0, 4  ;;  %v1314_v12 = vrot.slane %v1312_v2, 4  ;;  %v24460_v50 = vld [vmem:[%s25062_s4 + $0x3b8] sm:$0xff]  }
  0xcf   : > { %v18769_v9 = vcombine.low %v1271_v63, %v1281_v3  ;;  %v1318_v15 = vshll.u32 %v349_v57, 16  ;;  %v1296_v17 = vrot.slane %v1295_v4, 4  ;;  %v1305_v18 = vor.u32 %v1304_v6, %v1300_v1 }
  0xd0   : > { %22230 = vmatmul.mubr.msk.bf16.gmra.mrb[80].mxu1 %vm2122_vm1, %v18768_v48  ;;  %v1323_v19 = vshrl.u32 %v279_v62, 16  ;;  %v1326_v20 = vshll.u32 %v279_v62, 16  ;;  %v1291_v22 = vsel %vm25095_vm4, %v1286_v11, %v1290_v55  ;;  %v1315_v23 = vor.u32 %v1314_v12, %v1310_v7 }
  0xd1   : > { %22233 = vmatprep.mubr.msk.bf16.mxu1 %vm2122_vm1, %v18769_v9  ;;  %v1320_v24 = vrot.slane %v1318_v15, 5  ;;  %v1332_v25 = vshll.u32 %v280_v8, 16  ;;  %v1301_v27 = vsel %vm25095_vm4, %v1296_v17, %v1300_v1  ;;  %v1306_v28 = vrot.slane %v1305_v18, 4  ;;  %v286_v1 = vld [vmem:[%s25062_s4 + $0x384] sm:$0xf] }
  0xd2   : > { %22822 = vmatmul.mubr.msk.bf16.gmra.mrb[88].mxu0 %vm2122_vm1, %v24457_v53  ;;  %v1325_v29 = vrot.slane %v1323_v19, 4  ;;  %v1328_v30 = vrot.slane %v1326_v20, 5  ;;  %v18770_v32 = vcombine.low %v1291_v22, %v1301_v27  ;;  %v1316_v33 = vrot.slane %v1315_v23, 4  ;;  %v24461_v15 = vld [vmem:[%s25062_s4 + $0x3c0] sm:$0xff]   ;;  %v287_v18 = vld [vmem:[%s25062_s4 + $0x388] sm:$0xf] }
  0xd3   : > { %22825 = vmatprep.mubr.msk.bf16.mxu0 %vm2122_vm1, %v24458_v5  ;;  %v1334_v34 = vrot.slane %v1332_v25, 5  ;;  %v1336_v35 = vshrl.u32 %v280_v8, 16  ;;  %v1311_v36 = vsel %vm25095_vm4, %v1306_v28, %v1310_v7  ;;  %v1342_v38 = vshll.u32 %v281_v16, 16  ;;  %v288_v19 = vld [vmem:[%s25062_s4 + $0x38c] sm:$0xf] }
  0xd4   : > { %v1329_v10 = vor.u32 %v1328_v30, %v1325_v29  ;;  %v1346_v39 = vshrl.u32 %v281_v16, 16  ;;  %v1321_v41 = vsel %vm25095_vm4, %v1316_v33, %v1320_v24  ;;  %v1352_v44 = vshll.u32 %v282_v26, 16  ;;  %v24462_v27 = vld [vmem:[%s25062_s4 + $0x3c8] sm:$0xff]   ;;  %v289_v33 = vld [vmem:[%s25062_s4 + $0x390] sm:$0xf] }
  0xd5   : > { %v1338_v43 = vrot.slane %v1336_v35, 4  ;;  %v1356_v45 = vshrl.u32 %v282_v26, 16  ;;  %v18771_v47 = vcombine.low %v1311_v36, %v1321_v41  ;;  %v1344_v49 = vrot.slane %v1342_v38, 5 }
  0xd6   : > { %v1330_v48 = vrot.slane %v1329_v10, 4  ;;  %v1348_v51 = vrot.slane %v1346_v39, 4  ;;  %v1354_v53 = vrot.slane %v1352_v44, 5  ;;  %v1362_v55 = vshll.u32 %v283_v31, 16 }
  0xd7   : > { %v1339_v52 = vor.u32 %v1338_v43, %v1334_v34  ;;  %v1358_v54 = vrot.slane %v1356_v45, 4  ;;  %v1366_v58 = vshrl.u32 %v283_v31, 16  ;;  %v1372_v59 = vshll.u32 %v284_v40, 16  ;;  %v290_v43 = vld [vmem:[%s25062_s4 + $0x394] sm:$0xf] }
  0xd8   : > { %22234 = vmatmul.mubr.msk.bf16.gmra.mrb[84].mxu1 %vm2122_vm1, %v18770_v32  ;;  %v1335_v56 = vsel %vm25095_vm4, %v1330_v48, %v1334_v34  ;;  %v1349_v57 = vor.u32 %v1348_v51, %v1344_v49  ;;  %v1364_v63 = vrot.slane %v1362_v55, 5  ;;  %v1376_v0 = vshrl.u32 %v284_v40, 16  ;;  %v351_v48 = vld [vmem:[%s25062_s4 + $0x398] sm:$0x1] }
  0xd9   : > { %22237 = vmatprep.mubr.msk.bf16.mxu1 %vm2122_vm1, %v18771_v47  ;;  %v1340_v61 = vrot.slane %v1339_v52, 4  ;;  %v1359_v62 = vor.u32 %v1358_v54, %v1354_v53  ;;  %v1368_v3 = vrot.slane %v1366_v58, 4  ;;  %v1374_v4 = vrot.slane %v1372_v59, 5 }
  0xda   : > { %22826 = vmatmul.mubr.msk.bf16.gmra.mrb[92].mxu0 %vm2122_vm1, %v24459_v42  ;;  %v1350_v2 = vrot.slane %v1349_v57, 4  ;;  %v1382_v5 = vshll.u32 %v350_v46, 16  ;;  %v1378_v8 = vrot.slane %v1376_v0, 4  ;;  %v1387_v9 = vshrl.u32 %v285_v60, 16 }
  0xdb   : > { %22829 = vmatprep.mubr.msk.bf16.mxu0 %vm2122_vm1, %v24460_v50  ;;  %v1345_v6 = vsel %vm25095_vm4, %v1340_v61, %v1344_v49  ;;  %v1360_v7 = vrot.slane %v1359_v62, 4  ;;  %v1369_v16 = vor.u32 %v1368_v3, %v1364_v63  ;;  %v1390_v24 = vshll.u32 %v285_v60, 16  ;;  %v24463_v50 = vld [vmem:[%s25062_s4 + $0x3f0] sm:$0xff]   ;;  %v24464_v61 = vld [vmem:[%s25062_s4 + $0x3f8] sm:$0xff]  }
  0xdc   : > { %v18772_v11 = vcombine.low %v1335_v56, %v1345_v6  ;;  %v1355_v12 = vsel %vm25095_vm4, %v1350_v2, %v1354_v53  ;;  %v1384_v17 = vrot.slane %v1382_v5, 5  ;;  %v1379_v22 = vor.u32 %v1378_v8, %v1374_v4 }
  0xdd   : > { %v1365_v20 = vsel %vm25095_vm4, %v1360_v7, %v1364_v63  ;;  %v1389_v23 = vrot.slane %v1387_v9, 4  ;;  %v1370_v26 = vrot.slane %v1369_v16, 4  ;;  %v1396_v28 = vshll.u32 %v286_v1, 16  ;;  %v291_v63 = vld [vmem:[%s25062_s4 + $0x3b8] sm:$0xf] }
  0xde   : > { %v18773_v25 = vcombine.low %v1355_v12, %v1365_v20  ;;  %v1400_v29 = vshrl.u32 %v286_v1, 16  ;;  %v1380_v30 = vrot.slane %v1379_v22, 4  ;;  %v1392_v31 = vrot.slane %v1390_v24, 5  ;;  %v293_v9 = vld [vmem:[%s25062_s4 + $0x3c0] sm:$0xf] }
  0xdf   : > { %v1406_v32 = vshll.u32 %v287_v18, 16  ;;  %v1410_v34 = vshrl.u32 %v287_v18, 16  ;;  %v1375_v35 = vsel %vm25095_vm4, %v1370_v26, %v1374_v4  ;;  %v1398_v36 = vrot.slane %v1396_v28, 5  ;;  %v292_v4 = vld [vmem:[%s25062_s4 + $0x3bc] sm:$0xf] }
  0xe0   : > { %22238 = vmatmul.mubr.msk.bf16.gmra.mrb[88].mxu1 %vm2122_vm1, %v18772_v11  ;;  %v1402_v10 = vrot.slane %v1400_v29, 4  ;;  %v1416_v38 = vshll.u32 %v288_v19, 16  ;;  %v1385_v39 = vsel %vm25095_vm4, %v1380_v30, %v1384_v17  ;;  %v1393_v40 = vor.u32 %v1392_v31, %v1389_v23  ;;  %v294_v17 = vld [vmem:[%s25062_s4 + $0x3c4] sm:$0xf]  ;;  %v295_v31 = vld [vmem:[%s25062_s4 + $0x3c8] sm:$0xf] }
  0xe1   : > { %22241 = vmatprep.mubr.msk.bf16.mxu1 %vm2122_vm1, %v18773_v25  ;;  %v1408_v41 = vrot.slane %v1406_v32, 5  ;;  %v1412_v42 = vrot.slane %v1410_v34, 4  ;;  %v18774_v44 = vcombine.low %v1375_v35, %v1385_v39  ;;  %v1420_v47 = vshrl.u32 %v288_v19, 16 }
  0xe2   : > { %22830 = vmatmul.mubr.msk.bf16.gmra.mrb[96].mxu0 %vm2122_vm1, %v24461_v15  ;;  %v1403_v45 = vor.u32 %v1402_v10, %v1398_v36  ;;  %v1418_v46 = vrot.slane %v1416_v38, 5  ;;  %v1394_v49 = vrot.slane %v1393_v40, 4  ;;  %v1426_v52 = vshll.u32 %v289_v33, 16 }
  0xe3   : > { %22833 = vmatprep.mubr.msk.bf16.mxu0 %vm2122_vm1, %v24462_v27  ;;  %v1413_v51 = vor.u32 %v1412_v42, %v1408_v41  ;;  %v1430_v53 = vshrl.u32 %v289_v33, 16  ;;  %v1422_v55 = vrot.slane %v1420_v47, 4  ;;  %v1436_v56 = vshll.u32 %v290_v43, 16  ;;  %v24465_v33 = vld [vmem:[%s25062_s4 + $0x400] sm:$0xff]   ;;  %v296_v42 = vld [vmem:[%s25062_s4 + $0x3cc] sm:$0xf] }
  0xe4   : > { %v1404_v54 = vrot.slane %v1403_v45, 4  ;;  %v1440_v57 = vshrl.u32 %v290_v43, 16  ;;  %v1399_v58 = vsel %vm25095_vm4, %v1394_v49, %v1398_v36  ;;  %v1428_v60 = vrot.slane %v1426_v52, 5  ;;  %v24466_v36 = vld [vmem:[%s25062_s4 + $0x428] sm:$0xff]   ;;  %v352_v47 = vld [vmem:[%s25062_s4 + $0x3d0] sm:$0x1] }
  0xe5   : > { %v1414_v59 = vrot.slane %v1413_v51, 4  ;;  %v1432_v62 = vrot.slane %v1430_v53, 4  ;;  %v1423_v1 = vor.u32 %v1422_v55, %v1418_v46  ;;  %v1438_v2 = vrot.slane %v1436_v56, 5  ;;  %v297_v56 = vld [vmem:[%s25062_s4 + $0x3f0] sm:$0xf] }
  0xe6   : > { %v1409_v0 = vsel %vm25095_vm4, %v1404_v54, %v1408_v41  ;;  %v1442_v3 = vrot.slane %v1440_v57, 4  ;;  %v1446_v8 = vshll.u32 %v351_v48, 16  ;;  %v1451_v15 = vshrl.u32 %v291_v63, 16 }
  0xe7   : > { %v18775_v5 = vcombine.low %v1399_v58, %v1409_v0  ;;  %v1419_v6 = vsel %vm25095_vm4, %v1414_v59, %v1418_v46  ;;  %v1433_v7 = vor.u32 %v1432_v62, %v1428_v60  ;;  %v1424_v11 = vrot.slane %v1423_v1, 4 }
  0xe8   : > { %22242 = vmatmul.mubr.msk.bf16.gmra.mrb[92].mxu1 %vm2122_vm1, %v18774_v44  ;;  %v1443_v12 = vor.u32 %v1442_v3, %v1438_v2  ;;  %v1454_v16 = vshll.u32 %v291_v63, 16  ;;  %v1448_v19 = vrot.slane %v1446_v8, 5  ;;  %v1460_v20 = vshll.u32 %v292_v4, 16  ;;  %v24467_v8 = vld [vmem:[%s25062_s4 + $0x430] sm:$0xff]  }
  0xe9   : > { %22245 = vmatprep.mubr.msk.bf16.mxu1 %vm2122_vm1, %v18775_v5  ;;  %v1434_v18 = vrot.slane %v1433_v7, 4  ;;  %v1464_v22 = vshrl.u32 %v292_v4, 16  ;;  %v1429_v23 = vsel %vm25095_vm4, %v1424_v11, %v1428_v60  ;;  %v1453_v25 = vrot.slane %v1451_v15, 4  ;;  %v299_v5 = vld [vmem:[%s25062_s4 + $0x3f8] sm:$0xf] }
  0xea   : > { %22834 = vmatmul.mubr.msk.bf16.gmra.mrb[100].mxu0 %vm2122_vm1, %v24463_v50  ;;  %v1444_v24 = vrot.slane %v1443_v12, 4  ;;  %v1456_v26 = vrot.slane %v1454_v16, 5  ;;  %v18776_v27 = vcombine.low %v1419_v6, %v1429_v23  ;;  %v1462_v29 = vrot.slane %v1460_v20, 5  ;;  %v300_v15 = vld [vmem:[%s25062_s4 + $0x3fc] sm:$0xf] }
  0xeb   : > { %22837 = vmatprep.mubr.msk.bf16.mxu0 %vm2122_vm1, %v24464_v61  ;;  %v1439_v28 = vsel %vm25095_vm4, %v1434_v18, %v1438_v2  ;;  %v1466_v30 = vrot.slane %v1464_v22, 4  ;;  %v1470_v35 = vshll.u32 %v293_v9, 16  ;;  %v1474_v10 = vshrl.u32 %v293_v9, 16  ;;  %v298_v61 = vld [vmem:[%s25062_s4 + $0x3f4] sm:$0xf]  ;;  %v24468_v23 = vld [vmem:[%s25062_s4 + $0x438] sm:$0xff]  }
  0xec   : > { %v1449_v32 = vsel %vm25095_vm4, %v1444_v24, %v1448_v19  ;;  %v1457_v34 = vor.u32 %v1456_v26, %v1453_v25  ;;  %v1480_v40 = vshll.u32 %v294_v17, 16  ;;  %v1484_v41 = vshrl.u32 %v294_v17, 16  ;;  %v301_v20 = vld [vmem:[%s25062_s4 + $0x400] sm:$0xf] }
  0xed   : > { %v18777_v38 = vcombine.low %v1439_v28, %v1449_v32  ;;  %v1467_v39 = vor.u32 %v1466_v30, %v1462_v29  ;;  %v1472_v44 = vrot.slane %v1470_v35, 5  ;;  %v1476_v45 = vrot.slane %v1474_v10, 4  ;;  %v302_v35 = vld [vmem:[%s25062_s4 + $0x404] sm:$0xf] }
  0xee   : > { %v1458_v43 = vrot.slane %v1457_v34, 4  ;;  %v1490_v46 = vshll.u32 %v295_v31, 16  ;;  %v1482_v49 = vrot.slane %v1480_v40, 5  ;;  %v1486_v50 = vrot.slane %v1484_v41, 4 }
  0xef   : > { %v1468_v48 = vrot.slane %v1467_v39, 4  ;;  %v1494_v51 = vshrl.u32 %v295_v31, 16  ;;  %v1477_v53 = vor.u32 %v1476_v45, %v1472_v44  ;;  %v1500_v55 = vshll.u32 %v296_v42, 16 }
  0xf0   : > { %22246 = vmatmul.mubr.msk.bf16.gmra.mrb[96].mxu1 %vm2122_vm1, %v18776_v27  ;;  %v1463_v52 = vsel %vm25095_vm4, %v1458_v43, %v1462_v29  ;;  %v1492_v54 = vrot.slane %v1490_v46, 5  ;;  %v1487_v58 = vor.u32 %v1486_v50, %v1482_v49  ;;  %v1504_v60 = vshrl.u32 %v296_v42, 16 }
  0xf1   : > { %22249 = vmatprep.mubr.msk.bf16.mxu1 %vm2122_vm1, %v18777_v38  ;;  %v1473_v57 = vsel %vm25095_vm4, %v1468_v48, %v1472_v44  ;;  %v1496_v59 = vrot.slane %v1494_v51, 4  ;;  %v1478_v63 = vrot.slane %v1477_v53, 4  ;;  %v1502_v0 = vrot.slane %v1500_v55, 5  ;;  %v353_v44 = vld [vmem:[%s25062_s4 + $0x408] sm:$0x1] }
  0xf2   : > { %22838 = vmatmul.mubr.msk.bf16.gmra.mrb[104].mxu0 %vm2122_vm1, %v24465_v33  ;;  %v18778_v62 = vcombine.low %v1463_v52, %v1473_v57  ;;  %v1510_v1 = vshll.u32 %v352_v47, 16  ;;  %v1488_v2 = vrot.slane %v1487_v58, 4  ;;  %v1506_v4 = vrot.slane %v1504_v60, 4  ;;  %v24470_v60 = vld [vmem:[%s25062_s4 + $0x468] sm:$0xff]  }
  0xf3   : > { %22841 = vmatprep.mubr.msk.bf16.mxu0 %vm2122_vm1, %v24466_v36  ;;  %v1497_v3 = vor.u32 %v1496_v59, %v1492_v54  ;;  %v1515_v6 = vshrl.u32 %v297_v56, 16  ;;  %v1483_v7 = vsel %vm25095_vm4, %v1478_v63, %v1482_v49  ;;  %v1518_v11 = vshll.u32 %v297_v56, 16  ;;  %v303_v49 = vld [vmem:[%s25062_s4 + $0x428] sm:$0xf]  ;;  %v304_v63 = vld [vmem:[%s25062_s4 + $0x42c] sm:$0xf] }
  0xf4   : > { %v1512_v9 = vrot.slane %v1510_v1, 5  ;;  %v1524_v12 = vshll.u32 %v298_v61, 16  ;;  %v1493_v16 = vsel %vm25095_vm4, %v1488_v2, %v1492_v54  ;;  %v1507_v18 = vor.u32 %v1506_v4, %v1502_v0  ;;  %v24469_v54 = vld [vmem:[%s25062_s4 + $0x460] sm:$0xff]  }
  0xf5   : > { %v1498_v17 = vrot.slane %v1497_v3, 4  ;;  %v1517_v19 = vrot.slane %v1515_v6, 4  ;;  %v18779_v22 = vcombine.low %v1483_v7, %v1493_v16  ;;  %v1520_v24 = vrot.slane %v1518_v11, 5 }
  0xf6   : > { %v1526_v25 = vrot.slane %v1524_v12, 5  ;;  %v1528_v26 = vshrl.u32 %v298_v61, 16  ;;  %v1508_v28 = vrot.slane %v1507_v18, 4  ;;  %v1534_v29 = vshll.u32 %v299_v5, 16 }
  0xf7   : > { %v1503_v27 = vsel %vm25095_vm4, %v1498_v17, %v1502_v0  ;;  %v1538_v30 = vshrl.u32 %v299_v5, 16  ;;  %v1521_v31 = vor.u32 %v1520_v24, %v1517_v19  ;;  %v1544_v33 = vshll.u32 %v300_v15, 16  ;;  %v305_v5 = vld [vmem:[%s25062_s4 + $0x430] sm:$0xf]  ;;  %v306_v17 = vld [vmem:[%s25062_s4 + $0x434] sm:$0xf] }
  0xf8   : > { %22250 = vmatmul.mubr.msk.bf16.gmra.mrb[100].mxu1 %vm2122_vm1, %v18778_v62  ;;  %v1530_v32 = vrot.slane %v1528_v26, 4  ;;  %v1548_v34 = vshrl.u32 %v300_v15, 16  ;;  %v1513_v36 = vsel %vm25095_vm4, %v1508_v28, %v1512_v9  ;;  %v1536_v10 = vrot.slane %v1534_v29, 5  ;;  %v307_v26 = vld [vmem:[%s25062_s4 + $0x438] sm:$0xf] }
  0xf9   : > { %22253 = vmatprep.mubr.msk.bf16.mxu1 %vm2122_vm1, %v18779_v22  ;;  %v1540_v38 = vrot.slane %v1538_v30, 4  ;;  %v1554_v39 = vshll.u32 %v301_v20, 16  ;;  %v18780_v40 = vcombine.low %v1503_v27, %v1513_v36  ;;  %v1522_v41 = vrot.slane %v1521_v31, 4 }
  0xfa   : > { %22842 = vmatmul.mubr.msk.bf16.gmra.mrb[108].mxu0 %vm2122_vm1, %v24467_v8  ;;  %v1531_v42 = vor.u32 %v1530_v32, %v1526_v25  ;;  %v1546_v43 = vrot.slane %v1544_v33, 5  ;;  %v1550_v46 = vrot.slane %v1548_v34, 4  ;;  %v1558_v48 = vshrl.u32 %v301_v20, 16  ;;  %v308_v32 = vld [vmem:[%s25062_s4 + $0x43c] sm:$0xf]  ;;  %v24471_v34 = vld [vmem:[%s25062_s4 + $0x470] sm:$0xff]  }
  0xfb   : > { %22845 = vmatprep.mubr.msk.bf16.mxu0 %vm2122_vm1, %v24468_v23  ;;  %v1541_v45 = vor.u32 %v1540_v38, %v1536_v10  ;;  %v1556_v47 = vrot.slane %v1554_v39, 5  ;;  %v1527_v50 = vsel %vm25095_vm4, %v1522_v41, %v1526_v25  ;;  %v1564_v52 = vshll.u32 %v302_v35, 16  ;;  %v24472_v39 = vld [vmem:[%s25062_s4 + $0x498] sm:$0xff]  }
  0xfc   : > { %v1532_v51 = vrot.slane %v1531_v42, 4  ;;  %v1568_v53 = vshrl.u32 %v302_v35, 16  ;;  %v1551_v56 = vor.u32 %v1550_v46, %v1546_v43  ;;  %v1560_v57 = vrot.slane %v1558_v48, 4  ;;  %v354_v46 = vld [vmem:[%s25062_s4 + $0x440] sm:$0x1] }
  0xfd   : > { %v1542_v55 = vrot.slane %v1541_v45, 4  ;;  %v1574_v58 = vshll.u32 %v353_v44, 16  ;;  %v1566_v61 = vrot.slane %v1564_v52, 5  ;;  %v1579_v0 = vshrl.u32 %v303_v49, 16  ;;  %v309_v52 = vld [vmem:[%s25062_s4 + $0x460] sm:$0xf] }
  0xfe   : > { %v1537_v59 = vsel %vm25095_vm4, %v1532_v51, %v1536_v10  ;;  %v1570_v62 = vrot.slane %v1568_v53, 4  ;;  %v1552_v3 = vrot.slane %v1551_v56, 4  ;;  %v1561_v4 = vor.u32 %v1560_v57, %v1556_v47  ;;  %v310_v57 = vld [vmem:[%s25062_s4 + $0x464] sm:$0xf] }
  0xff   : > { %v18781_v1 = vcombine.low %v1527_v50, %v1537_v59  ;;  %v1547_v2 = vsel %vm25095_vm4, %v1542_v55, %v1546_v43  ;;  %v1576_v7 = vrot.slane %v1574_v58, 5  ;;  %v1581_v8 = vrot.slane %v1579_v0, 4  ;;  %v25642_v58 = vld [vmem:[%s29171_s1 + $0x10] sm:$0x1f]  }
 0x100   : > { %22254 = vmatmul.mubr.msk.bf16.gmra.mrb[104].mxu1 %vm2122_vm1, %v18780_v40  ;;  %v1571_v6 = vor.u32 %v1570_v62, %v1566_v61  ;;  %v1582_v9 = vshll.u32 %v303_v49, 16  ;;  %v1557_v11 = vsel %vm25095_vm4, %v1552_v3, %v1556_v47  ;;  %v1562_v12 = vrot.slane %v1561_v4, 4  ;;  %24325 = vmatprep.subr.msk.bf16.mxu1 %vm2339_vm0, %v25642_v58  ;;  %v25653_v4 = vld [vmem:[%s29171_s1 + $0x30] sm:$0x1f]  }
 0x101   : > { %22257 = vmatprep.mubr.msk.bf16.mxu1 %vm2122_vm1, %v18781_v1  ;;  %v1588_v15 = vshll.u32 %v304_v63, 16  ;;  %v1592_v16 = vshrl.u32 %v304_v63, 16  ;;  %v18782_v18 = vcombine.low %v1547_v2, %v1557_v11  ;;  %v1598_v22 = vshll.u32 %v305_v5, 16  ;;  %v311_v63 = vld [vmem:[%s25062_s4 + $0x468] sm:$0xf]  ;;  %24329 = vmatprep.subr.msk.bf16.mxu0 %vm2339_vm0, %v25653_v4 }
 0x102   : > { %22846 = vmatmul.mubr.msk.bf16.gmra.mrb[112].mxu0 %vm2122_vm1, %v24469_v54  ;;  %v1572_v19 = vrot.slane %v1571_v6, 4  ;;  %v1584_v20 = vrot.slane %v1582_v9, 5  ;;  %v1567_v23 = vsel %vm25095_vm4, %v1562_v12, %v1566_v61  ;;  %v1602_v27 = vshrl.u32 %v305_v5, 16  ;;  %v312_v9 = vld [vmem:[%s25062_s4 + $0x46c] sm:$0xf]  ;;  %v24473_v12 = vld [vmem:[%s25062_s4 + $0x4a0] sm:$0xff]  }
 0x103   : > { %22849 = vmatprep.mubr.msk.bf16.mxu0 %vm2122_vm1, %v24470_v60  ;;  %v1590_v24 = vrot.slane %v1588_v15, 5  ;;  %v1594_v25 = vrot.slane %v1592_v16, 4  ;;  %v1600_v30 = vrot.slane %v1598_v22, 5  ;;  %v1608_v31 = vshll.u32 %v306_v17, 16 }
 0x104   : > { %v1577_v28 = vsel %vm25095_vm4, %v1572_v19, %v1576_v7  ;;  %v1585_v29 = vor.u32 %v1584_v20, %v1581_v8  ;;  %v1604_v36 = vrot.slane %v1602_v27, 4  ;;  %v1612_v10 = vshrl.u32 %v306_v17, 16 }
 0x105   : > { %v18783_v33 = vcombine.low %v1567_v23, %v1577_v28  ;;  %v1595_v35 = vor.u32 %v1594_v25, %v1590_v24  ;;  %v1610_v40 = vrot.slane %v1608_v31, 5  ;;  %v1618_v41 = vshll.u32 %v307_v26, 16  ;;  %v24474_v23 = vld [vmem:[%s25062_s4 + $0x4a8] sm:$0xff]  }
 0x106   : > { %v1586_v38 = vrot.slane %v1585_v29, 4  ;;  %v1622_v42 = vshrl.u32 %v307_v26, 16  ;;  %v1605_v44 = vor.u32 %v1604_v36, %v1600_v30  ;;  %v1614_v45 = vrot.slane %v1612_v10, 4 }
 0x107   : > { %v1596_v43 = vrot.slane %v1595_v35, 4  ;;  %v1628_v47 = vshll.u32 %v308_v32, 16  ;;  %v1620_v49 = vrot.slane %v1618_v41, 5  ;;  %v1632_v51 = vshrl.u32 %v308_v32, 16 }
 0x108   : > { %22258 = vmatmul.mubr.msk.bf16.gmra.mrb[108].mxu1 %vm2122_vm1, %v18782_v18  ;;  %v1591_v48 = vsel %vm25095_vm4, %v1586_v38, %v1590_v24  ;;  %v1624_v50 = vrot.slane %v1622_v42, 4  ;;  %v1606_v54 = vrot.slane %v1605_v44, 4  ;;  %v1615_v55 = vor.u32 %v1614_v45, %v1610_v40  ;;  %v313_v18 = vld [vmem:[%s25062_s4 + $0x470] sm:$0xf]  ;;  %v355_v38 = vld [vmem:[%s25062_s4 + $0x478] sm:$0x1] }
 0x109   : > { %22261 = vmatprep.mubr.msk.bf16.mxu1 %vm2122_vm1, %v18783_v33  ;;  %v1601_v53 = vsel %vm25095_vm4, %v1596_v43, %v1600_v30  ;;  %v1630_v56 = vrot.slane %v1628_v47, 5  ;;  %v1634_v61 = vrot.slane %v1632_v51, 4  ;;  %v1638_v62 = vshll.u32 %v354_v46, 16  ;;  %v314_v33 = vld [vmem:[%s25062_s4 + $0x474] sm:$0xf] }
 0x10a   : > { %22850 = vmatmul.mubr.msk.bf16.gmra.mrb[116].mxu0 %vm2122_vm1, %v24471_v34  ;;  %v18784_v59 = vcombine.low %v1591_v48, %v1601_v53  ;;  %v1625_v60 = vor.u32 %v1624_v50, %v1620_v49  ;;  %v1611_v0 = vsel %vm25095_vm4, %v1606_v54, %v1610_v40  ;;  %v1616_v1 = vrot.slane %v1615_v55, 4  ;;  %v315_v43 = vld [vmem:[%s25062_s4 + $0x498] sm:$0xf]  ;;  %v24475_v53 = vld [vmem:[%s25062_s4 + $0x4d0] sm:$0xff]  }
 0x10b   : > { %22853 = vmatprep.mubr.msk.bf16.mxu0 %vm2122_vm1, %v24472_v39  ;;  %v1643_v2 = vshrl.u32 %v309_v52, 16  ;;  %v1646_v3 = vshll.u32 %v309_v52, 16  ;;  %v1635_v6 = vor.u32 %v1634_v61, %v1630_v56  ;;  %v1640_v7 = vrot.slane %v1638_v62, 5  ;;  %v24476_v62 = vld [vmem:[%s25062_s4 + $0x4d8] sm:$0xff]  }
 0x10c   : > { %v1626_v5 = vrot.slane %v1625_v60, 4  ;;  %v1652_v8 = vshll.u32 %v310_v57, 16  ;;  %v1621_v11 = vsel %vm25095_vm4, %v1616_v1, %v1620_v49  ;;  %v1656_v17 = vshrl.u32 %v310_v57, 16 }
 0x10d   : > { %v1645_v15 = vrot.slane %v1643_v2, 4  ;;  %v1648_v16 = vrot.slane %v1646_v3, 5  ;;  %v18785_v19 = vcombine.low %v1611_v0, %v1621_v11  ;;  %v1636_v22 = vrot.slane %v1635_v6, 4  ;;  %v317_v2 = vld [vmem:[%s25062_s4 + $0x4a0] sm:$0xf] }
 0x10e   : > { %v1631_v20 = vsel %vm25095_vm4, %v1626_v5, %v1630_v56  ;;  %v1654_v24 = vrot.slane %v1652_v8, 5  ;;  %v1658_v26 = vrot.slane %v1656_v17, 4  ;;  %v1662_v27 = vshll.u32 %v311_v63, 16  ;;  %v316_v56 = vld [vmem:[%s25062_s4 + $0x49c] sm:$0xf] }
 0x10f   : > { %v1649_v25 = vor.u32 %v1648_v16, %v1645_v15  ;;  %v1666_v28 = vshrl.u32 %v311_v63, 16  ;;  %v1641_v29 = vsel %vm25095_vm4, %v1636_v22, %v1640_v7  ;;  %v1672_v30 = vshll.u32 %v312_v9, 16  ;;  %v318_v11 = vld [vmem:[%s25062_s4 + $0x4a4] sm:$0xf] }
 0x110   : > { %22262 = vmatmul.mubr.msk.bf16.gmra.mrb[112].mxu1 %vm2122_vm1, %v18784_v59  ;;  %v1676_v31 = vshrl.u32 %v312_v9, 16  ;;  %v1682_v32 = vshll.u32 %v313_v18, 16  ;;  %v18786_v34 = vcombine.low %v1631_v20, %v1641_v29  ;;  %v1659_v36 = vor.u32 %v1658_v26, %v1654_v24  ;;  %v319_v26 = vld [vmem:[%s25062_s4 + $0x4a8] sm:$0xf] }
 0x111   : > { %22265 = vmatprep.mubr.msk.bf16.mxu1 %vm2122_vm1, %v18785_v19  ;;  %v1650_v35 = vrot.slane %v1649_v25, 4  ;;  %v1664_v10 = vrot.slane %v1662_v27, 5  ;;  %v1668_v39 = vrot.slane %v1666_v28, 4  ;;  %v1674_v40 = vrot.slane %v1672_v30, 5 }
 0x112   : > { %22854 = vmatmul.mubr.msk.bf16.gmra.mrb[120].mxu0 %vm2122_vm1, %v24473_v12  ;;  %v1678_v41 = vrot.slane %v1676_v31, 4  ;;  %v1684_v42 = vrot.slane %v1682_v32, 5  ;;  %v1660_v45 = vrot.slane %v1659_v36, 4  ;;  %v1686_v46 = vshrl.u32 %v313_v18, 16  ;;  %v320_v32 = vld [vmem:[%s25062_s4 + $0x4ac] sm:$0xf] }
 0x113   : > { %22857 = vmatprep.mubr.msk.bf16.mxu0 %vm2122_vm1, %v24474_v23  ;;  %v1655_v44 = vsel %vm25095_vm4, %v1650_v35, %v1654_v24  ;;  %v1692_v47 = vshll.u32 %v314_v33, 16  ;;  %v1669_v48 = vor.u32 %v1668_v39, %v1664_v10  ;;  %v1696_v50 = vshrl.u32 %v314_v33, 16 }
 0x114   : > { %v1679_v49 = vor.u32 %v1678_v41, %v1674_v40  ;;  %v1702_v51 = vshll.u32 %v355_v38, 16  ;;  %v1665_v52 = vsel %vm25095_vm4, %v1660_v45, %v1664_v10  ;;  %v1688_v54 = vrot.slane %v1686_v46, 4  ;;  %v24478_v38 = vld [vmem:[%s25062_s4 + $0x508] sm:$0xff]  }
 0x115   : > { %v1694_v55 = vrot.slane %v1692_v47, 5  ;;  %v1707_v57 = vshrl.u32 %v315_v43, 16  ;;  %v18787_v59 = vcombine.low %v1655_v44, %v1665_v52  ;;  %v1670_v60 = vrot.slane %v1669_v48, 4  ;;  %v321_v52 = vld [vmem:[%s25062_s4 + $0x4d0] sm:$0xf] }
 0x116   : > { %v1680_v61 = vrot.slane %v1679_v49, 4  ;;  %v1698_v63 = vrot.slane %v1696_v50, 4  ;;  %v1689_v0 = vor.u32 %v1688_v54, %v1684_v42  ;;  %v1704_v1 = vrot.slane %v1702_v51, 5 }
 0x117   : > { %v1709_v3 = vrot.slane %v1707_v57, 4  ;;  %v1710_v5 = vshll.u32 %v315_v43, 16  ;;  %v1675_v6 = vsel %vm25095_vm4, %v1670_v60, %v1674_v40  ;;  %v1716_v9 = vshll.u32 %v316_v56, 16  ;;  %v322_v57 = vld [vmem:[%s25062_s4 + $0x4d4] sm:$0xf] }
 0x118   : > { %22266 = vmatmul.mubr.msk.bf16.gmra.mrb[116].mxu1 %vm2122_vm1, %v18786_v34  ;;  %v1685_v7 = vsel %vm25095_vm4, %v1680_v61, %v1684_v42  ;;  %v1699_v8 = vor.u32 %v1698_v63, %v1694_v55  ;;  %v1690_v15 = vrot.slane %v1689_v0, 4  ;;  %v1720_v17 = vshrl.u32 %v316_v56, 16  ;;  %v24477_v34 = vld [vmem:[%s25062_s4 + $0x4e0] sm:$0xff]   ;;  %v356_v42 = vld [vmem:[%s25062_s4 + $0x4b0] sm:$0x1] }
 0x119   : > { %22269 = vmatprep.mubr.msk.bf16.mxu1 %vm2122_vm1, %v18787_v59  ;;  %v18788_v12 = vcombine.low %v1675_v6, %v1685_v7  ;;  %v1712_v16 = vrot.slane %v1710_v5, 5  ;;  %v1718_v19 = vrot.slane %v1716_v9, 5  ;;  %v1726_v20 = vshll.u32 %v317_v2, 16  ;;  %v324_v9 = vld [vmem:[%s25062_s4 + $0x4dc] sm:$0xf] }
 0x11a   : > { %22858 = vmatmul.mubr.msk.bf16.gmra.mrb[124].mxu0 %vm2122_vm1, %v24475_v53  ;;  %v1700_v18 = vrot.slane %v1699_v8, 4  ;;  %v1730_v22 = vshrl.u32 %v317_v2, 16  ;;  %v1695_v23 = vsel %vm25095_vm4, %v1690_v15, %v1694_v55  ;;  %v1722_v25 = vrot.slane %v1720_v17, 4 }
 0x11b   : > { %22861 = vmatprep.mubr.msk.bf16.mxu0 %vm2122_vm1, %v24476_v62  ;;  %v1713_v24 = vor.u32 %v1712_v16, %v1709_v3  ;;  %v1736_v27 = vshll.u32 %v318_v11, 16  ;;  %v1728_v29 = vrot.slane %v1726_v20, 5  ;;  %v1740_v31 = vshrl.u32 %v318_v11, 16 }
 0x11c   : > { %v1705_v28 = vsel %vm25095_vm4, %v1700_v18, %v1704_v1  ;;  %v1732_v30 = vrot.slane %v1730_v22, 4  ;;  %v1723_v36 = vor.u32 %v1722_v25, %v1718_v19  ;;  %v1746_v41 = vshll.u32 %v319_v26, 16  ;;  %v323_v1 = vld [vmem:[%s25062_s4 + $0x4d8] sm:$0xf] }
 0x11d   : > { %v18789_v33 = vcombine.low %v1695_v23, %v1705_v28  ;;  %v1714_v35 = vrot.slane %v1713_v24, 4  ;;  %v1738_v10 = vrot.slane %v1736_v27, 5  ;;  %v1742_v40 = vrot.slane %v1740_v31, 4  ;;  %v325_v24 = vld [vmem:[%s25062_s4 + $0x4e0] sm:$0xf] }
 0x11e   : > { %v1733_v39 = vor.u32 %v1732_v30, %v1728_v29  ;;  %v1750_v43 = vshrl.u32 %v319_v26, 16  ;;  %v1724_v45 = vrot.slane %v1723_v36, 4  ;;  %v1756_v46 = vshll.u32 %v320_v32, 16 }
 0x11f   : > { %v1719_v44 = vsel %vm25095_vm4, %v1714_v35, %v1718_v19  ;;  %v1760_v47 = vshrl.u32 %v320_v32, 16  ;;  %v1743_v49 = vor.u32 %v1742_v40, %v1738_v10  ;;  %v1748_v50 = vrot.slane %v1746_v41, 5  ;;  %v24480_v19 = vld [vmem:[%s25062_s4 + $0x518] sm:$0xff]   ;;  %v357_v40 = vld [vmem:[%s25062_s4 + $0x4e8] sm:$0x1] }
 0x120   : > { %22270 = vmatmul.mubr.msk.bf16.gmra.mrb[120].mxu1 %vm2122_vm1, %v18788_v12  ;;  %v1734_v48 = vrot.slane %v1733_v39, 4  ;;  %v1752_v51 = vrot.slane %v1750_v43, 4  ;;  %v1729_v53 = vsel %vm25095_vm4, %v1724_v45, %v1728_v29  ;;  %v1758_v54 = vrot.slane %v1756_v46, 5  ;;  %v24479_v12 = vld [vmem:[%s25062_s4 + $0x510] sm:$0xff]   ;;  %v326_v29 = vld [vmem:[%s25062_s4 + $0x4e4] sm:$0xf] }
 0x121   : > { %22273 = vmatprep.mubr.msk.bf16.mxu1 %vm2122_vm1, %v18789_v33  ;;  %v1762_v55 = vrot.slane %v1760_v47, 4  ;;  %v1766_v56 = vshll.u32 %v356_v42, 16  ;;  %v18790_v59 = vcombine.low %v1719_v44, %v1729_v53  ;;  %v1744_v61 = vrot.slane %v1743_v49, 4  ;;  %v327_v47 = vld [vmem:[%s25062_s4 + $0x508] sm:$0xf] }
 0x122   : > { %22862 = vmatmul.mubr.msk.bf16.gmra.mrb[128].mxu0 %vm2122_vm1, %v24477_v34  ;;  %v1739_v60 = vsel %vm25095_vm4, %v1734_v48, %v1738_v10  ;;  %v1753_v62 = vor.u32 %v1752_v51, %v1748_v50  ;;  %v1771_v2 = vshrl.u32 %v321_v52, 16  ;;  %v1774_v3 = vshll.u32 %v321_v52, 16  ;;  %v328_v52 = vld [vmem:[%s25062_s4 + $0x50c] sm:$0xf] }
 0x123   : > { %22865 = vmatprep.mubr.msk.bf16.mxu0 %vm2122_vm1, %v24478_v38  ;;  %v1763_v63 = vor.u32 %v1762_v55, %v1758_v54  ;;  %v1768_v0 = vrot.slane %v1766_v56, 5  ;;  %v1749_v5 = vsel %vm25095_vm4, %v1744_v61, %v1748_v50  ;;  %v1780_v7 = vshll.u32 %v322_v57, 16 }
 0x124   : > { %v1754_v6 = vrot.slane %v1753_v62, 4  ;;  %v1784_v8 = vshrl.u32 %v322_v57, 16  ;;  %v18791_v11 = vcombine.low %v1739_v60, %v1749_v5  ;;  %v1773_v16 = vrot.slane %v1771_v2, 4  ;;  %v24482_v60 = vld [vmem:[%s25062_s4 + $0x548] sm:$0xff]  }
 0x125   : > { %v1764_v15 = vrot.slane %v1763_v63, 4  ;;  %v1776_v17 = vrot.slane %v1774_v3, 5  ;;  %v1782_v20 = vrot.slane %v1780_v7, 5  ;;  %v1790_v23 = vshll.u32 %v323_v1, 16  ;;  %v329_v3 = vld [vmem:[%s25062_s4 + $0x510] sm:$0xf] }
 0x126   : > { %v1759_v18 = vsel %vm25095_vm4, %v1754_v6, %v1758_v54  ;;  %v1786_v22 = vrot.slane %v1784_v8, 4  ;;  %v1794_v27 = vshrl.u32 %v323_v1, 16  ;;  %v1800_v28 = vshll.u32 %v324_v9, 16  ;;  %v24481_v54 = vld [vmem:[%s25062_s4 + $0x540] sm:$0xff]   ;;  %v19916_v6 = vld [vmem:[%s25062_s4 + $0x38] sm:$0xf] }
 0x127   : > { %v1769_v25 = vsel %vm25095_vm4, %v1764_v15, %v1768_v0  ;;  %v1777_v26 = vor.u32 %v1776_v17, %v1773_v16  ;;  %v1792_v32 = vrot.slane %v1790_v23, 5  ;;  %v1804_v33 = vshrl.u32 %v324_v9, 16 }
 0x128   : > { %22274 = vmatmul.mubr.msk.bf16.gmra.mrb[124].mxu1 %vm2122_vm1, %v18790_v59  ;;  %v18792_v30 = vcombine.low %v1759_v18, %v1769_v25  ;;  %v1787_v31 = vor.u32 %v1786_v22, %v1782_v20  ;;  %v1796_v35 = vrot.slane %v1794_v27, 4  ;;  %v1802_v36 = vrot.slane %v1800_v28, 5 }
 0x129   : > { %22277 = vmatprep.mubr.msk.bf16.mxu1 %vm2122_vm1, %v18791_v11  ;;  %v1778_v34 = vrot.slane %v1777_v26, 4  ;;  %v1810_v10 = vshll.u32 %v325_v24, 16  ;;  %v1806_v39 = vrot.slane %v1804_v33, 4  ;;  %v1814_v41 = vshrl.u32 %v325_v24, 16  ;;  %v19918_v26 = vld [vmem:[%s25062_s4 + $0x40] sm:$0xf] }
 0x12a   : > { %22866 = vmatmul.mubr.msk.bf16.gmra.mrb[132].mxu0 %vm2122_vm1, %v24479_v12  ;;  %v1788_v38 = vrot.slane %v1787_v31, 4  ;;  %v1820_v42 = vshll.u32 %v326_v29, 16  ;;  %v1797_v44 = vor.u32 %v1796_v35, %v1792_v32  ;;  %v1824_v46 = vshrl.u32 %v326_v29, 16  ;;  %v19917_v12 = vld [vmem:[%s25062_s4 + $0x3c] sm:$0xf] }
 0x12b   : > { %22869 = vmatprep.mubr.msk.bf16.mxu0 %vm2122_vm1, %v24480_v19  ;;  %v1783_v43 = vsel %vm25095_vm4, %v1778_v34, %v1782_v20  ;;  %v1812_v45 = vrot.slane %v1810_v10, 5  ;;  %v1807_v49 = vor.u32 %v1806_v39, %v1802_v36  ;;  %v1816_v50 = vrot.slane %v1814_v41, 4  ;;  %v330_v33 = vld [vmem:[%s25062_s4 + $0x514] sm:$0xf] }
 0x12c   : > { %v1793_v48 = vsel %vm25095_vm4, %v1788_v38, %v1792_v32  ;;  %v1822_v51 = vrot.slane %v1820_v42, 5  ;;  %v1798_v55 = vrot.slane %v1797_v44, 4  ;;  %v1826_v56 = vrot.slane %v1824_v46, 4  ;;  %v24483_v34 = vld [vmem:[%s25062_s4 + $0x550] sm:$0xff]   ;;  %v331_v46 = vld [vmem:[%s25062_s4 + $0x518] sm:$0xf] }
 0x12d   : > { %v18793_v53 = vcombine.low %v1783_v43, %v1793_v48  ;;  %v1830_v57 = vshll.u32 %v357_v40, 16  ;;  %v1808_v59 = vrot.slane %v1807_v49, 4  ;;  %v1817_v61 = vor.u32 %v1816_v50, %v1812_v45 }
 0x12e   : > { %v1835_v62 = vshrl.u32 %v327_v47, 16  ;;  %v1838_v63 = vshll.u32 %v327_v47, 16  ;;  %v1803_v0 = vsel %vm25095_vm4, %v1798_v55, %v1802_v36  ;;  %v1827_v1 = vor.u32 %v1826_v56, %v1822_v51 }
 0x12f   : > { %v1832_v2 = vrot.slane %v1830_v57, 5  ;;  %v1844_v5 = vshll.u32 %v328_v52, 16  ;;  %v1813_v7 = vsel %vm25095_vm4, %v1808_v59, %v1812_v45  ;;  %v1818_v8 = vrot.slane %v1817_v61, 4  ;;  %v19920_v57 = vld [vmem:[%s25062_s4 + $0x48] sm:$0xf] }
 0x130   : > { %22278 = vmatmul.mubr.msk.bf16.gmra.mrb[128].mxu1 %vm2122_vm1, %v18792_v30  ;;  %v1837_v9 = vrot.slane %v1835_v62, 4  ;;  %v1840_v11 = vrot.slane %v1838_v63, 5  ;;  %v18794_v15 = vcombine.low %v1803_v0, %v1813_v7  ;;  %v1828_v16 = vrot.slane %v1827_v1, 4 }
 0x131   : > { %22281 = vmatprep.mubr.msk.bf16.mxu1 %vm2122_vm1, %v18793_v53  ;;  %v1846_v17 = vrot.slane %v1844_v5, 5  ;;  %v1848_v18 = vshrl.u32 %v328_v52, 16  ;;  %v1823_v19 = vsel %vm25095_vm4, %v1818_v8, %v1822_v51  ;;  %v1854_v22 = vshll.u32 %v329_v3, 16  ;;  %v19919_v52 = vld [vmem:[%s25062_s4 + $0x44] sm:$0xf] }
 0x132   : > { %22870 = vmatmul.mubr.msk.bf16.gmra.mrb[136].mxu0 %vm2122_vm1, %v24481_v54  ;;  %v1841_v20 = vor.u32 %v1840_v11, %v1837_v9  ;;  %v10189_v23 = vshrl.u32 %v19916_v6, 16  ;;  %v1833_v24 = vsel %vm25095_vm4, %v1828_v16, %v1832_v2  ;;  %v10192_v27 = vshll.u32 %v19916_v6, 16  ;;  %v332_v8 = vld [vmem:[%s25062_s4 + $0x51c] sm:$0xf]  ;;  %v358_v16 = vld [vmem:[%s25062_s4 + $0x520] sm:$0x1] }
 0x133   : > { %22873 = vmatprep.mubr.msk.bf16.mxu0 %vm2122_vm1, %v24482_v60  ;;  %v1850_v25 = vrot.slane %v1848_v18, 4  ;;  %v10198_v28 = vshll.u32 %v19917_v12, 16  ;;  %v18795_v29 = vcombine.low %v1823_v19, %v1833_v24  ;;  %v1856_v31 = vrot.slane %v1854_v22, 5  ;;  %v19921_v22 = vld [vmem:[%s25062_s4 + $0x4c] sm:$0xf] }
 0x134   : > { %v1842_v30 = vrot.slane %v1841_v20, 4  ;;  %v10191_v32 = vrot.slane %v10189_v23, 4  ;;  %v10194_v36 = vrot.slane %v10192_v27, 5  ;;  %v10202_v38 = vshrl.u32 %v19917_v12, 16 }
 0x135   : > { %v1851_v35 = vor.u32 %v1850_v25, %v1846_v17  ;;  %v10200_v10 = vrot.slane %v10198_v28, 5  ;;  %v10208_v40 = vshll.u32 %v19918_v26, 16  ;;  %v10212_v41 = vshrl.u32 %v19918_v26, 16 }
 0x136   : > { %v1847_v39 = vsel %vm25095_vm4, %v1842_v30, %v1846_v17  ;;  %v1858_v42 = vshrl.u32 %v329_v3, 16  ;;  %v10195_v44 = vor.u32 %v10194_v36, %v10191_v32  ;;  %v10204_v45 = vrot.slane %v10202_v38, 4 }
 0x137   : > { %v1852_v43 = vrot.slane %v1851_v35, 4  ;;  %v1864_v47 = vshll.u32 %v330_v33, 16  ;;  %v10210_v48 = vrot.slane %v10208_v40, 5  ;;  %v10214_v49 = vrot.slane %v10212_v41, 4 }
 0x138   : > { %22282 = vmatmul.mubr.msk.bf16.gmra.mrb[132].mxu1 %vm2122_vm1, %v18794_v15  ;;  %v1860_v50 = vrot.slane %v1858_v42, 4  ;;  %v1868_v51 = vshrl.u32 %v330_v33, 16  ;;  %v10196_v54 = vrot.slane %v10195_v44, 4  ;;  %v10205_v55 = vor.u32 %v10204_v45, %v10200_v10  ;;  %v19923_v44 = vld [vmem:[%s25062_s4 + $0x70] sm:$0xf] }
 0x139   : > { %22285 = vmatprep.mubr.msk.bf16.mxu1 %vm2122_vm1, %v18795_v29  ;;  %v1857_v53 = vsel %vm25095_vm4, %v1852_v43, %v1856_v31  ;;  %v1866_v56 = vrot.slane %v1864_v47, 5  ;;  %v10215_v60 = vor.u32 %v10214_v49, %v10210_v48  ;;  %v1874_v1 = vshll.u32 %v331_v46, 16  ;;  %v24704_v49 = vld [vmem:[%s25062_s4 + $0x4] sm:$0xf] }
 0x13a   : > { %22874 = vmatmul.mubr.msk.bf16.gmra.mrb[140].mxu0 %vm2122_vm1, %v24483_v34  ;;  %v18796_v59 = vcombine.low %v1847_v39, %v1857_v53  ;;  %v1861_v61 = vor.u32 %v1860_v50, %v1856_v31  ;;  %v1870_v62 = vrot.slane %v1868_v51, 4  ;;  %v10201_v63 = vsel %vm25095_vm4, %v10196_v54, %v10200_v10  ;;  %v19922_v31 = vld [vmem:[%s25062_s4 + $0x50] sm:$0x1]  ;;  %v19924_v51 = vld [vmem:[%s25062_s4 + $0x74] sm:$0xf] }
 0x13b   : > { %v10206_v0 = vrot.slane %v10205_v55, 4  ;;  %v10218_v2 = vshll.u32 %v19919_v52, 16  ;;  %v10216_v3 = vrot.slane %v10215_v60, 4  ;;  %v10222_v7 = vshrl.u32 %v19919_v52, 16 }
 0x13c   : > { %v1862_v5 = vrot.slane %v1861_v61, 4  ;;  %v1871_v6 = vor.u32 %v1870_v62, %v1866_v56  ;;  %v1876_v11 = vrot.slane %v1874_v1, 5  ;;  %v10228_v15 = vshll.u32 %v19920_v57, 16 }
 0x13d   : > { %v10211_v9 = vsel %vm25095_vm4, %v10206_v0, %v10210_v48  ;;  %v10220_v12 = vrot.slane %v10218_v2, 5  ;;  %v10224_v20 = vrot.slane %v10222_v7, 4  ;;  %v1878_v25 = vshrl.u32 %v331_v46, 16  ;;  %v24703_v48 = vld [vmem:[%s25062_s4] sm:$0xf] }
 0x13e   : > { %v20086_v17 = vcombine.low %v10201_v63, %v10211_v9  ;;  %v1867_v18 = vsel %vm25095_vm4, %v1862_v5, %v1866_v56  ;;  %v1872_v19 = vrot.slane %v1871_v6, 4  ;;  %v10230_v24 = vrot.slane %v10228_v15, 5  ;;  %v19925_v56 = vld [vmem:[%s25062_s4 + $0x78] sm:$0xf]  ;;  %v19926_v2 = vld [vmem:[%s25062_s4 + $0x7c] sm:$0xf] }
 0x13f   : > { %v10221_v23 = vsel %vm25095_vm4, %v10216_v3, %v10220_v12  ;;  %v1884_v26 = vshll.u32 %v332_v8, 16  ;;  %v10225_v28 = vor.u32 %v10224_v20, %v10220_v12  ;;  %v1888_v29 = vshrl.u32 %v332_v8, 16  ;;  %v19927_v8 = vld [vmem:[%s25062_s4 + $0x80] sm:$0xf] }
 0x140   : > { %22286 = vmatmul.mubr.msk.bf16.gmra.mrb[136].mxu1 %vm2122_vm1, %v18796_v59  ;;  %22879 = vmatprep.mubr.msk.bf16.mxu0 %vm2122_vm1, %v20086_v17  ;;  %v1877_v27 = vsel %vm25095_vm4, %v1872_v19, %v1876_v11  ;;  %v1894_v30 = vshll.u32 %v358_v16, 16  ;;  %v1880_v33 = vrot.slane %v1878_v25, 4  ;;  %v10232_v35 = vshrl.u32 %v19920_v57, 16 }
 0x141   : > { %v18797_v32 = vcombine.low %v1867_v18, %v1877_v27  ;;  %v1886_v34 = vrot.slane %v1884_v26, 5  ;;  %v10226_v36 = vrot.slane %v10225_v28, 4  ;;  %v1890_v10 = vrot.slane %v1888_v29, 4  ;;  %v19928_v29 = vld [vmem:[%s25062_s4 + $0x84] sm:$0xf] }
 0x142   : > { %v1896_v38 = vrot.slane %v1894_v30, 5  ;;  %v10238_v39 = vshll.u32 %v19921_v22, 16  ;;  %v1881_v40 = vor.u32 %v1880_v33, %v1876_v11  ;;  %v10234_v41 = vrot.slane %v10232_v35, 4  ;;  %v19929_v33 = vld [vmem:[%s25062_s4 + $0x88] sm:$0x1] }
 0x143   : > { %22289 = vmatprep.mubr.msk.bf16.mxu1 %vm2122_vm1, %v18797_v32  ;;  %v10242_v42 = vshrl.u32 %v19921_v22, 16  ;;  %v10248_v43 = vshll.u32 %v19922_v31, 16  ;;  %v10231_v45 = vsel %vm25095_vm4, %v10226_v36, %v10230_v24  ;;  %v1891_v46 = vor.u32 %v1890_v10, %v1886_v34  ;;  %v24705_v36 = vld [vmem:[%s25062_s4 + $0x10] sm:$0xf]  ;;  %v24706_v10 = vld [vmem:[%s25062_s4 + $0x14] sm:$0xf] }
 0x144   : > { %v10240_v47 = vrot.slane %v10238_v39, 5  ;;  %v18872_v50 = vcombine.low %v24703_v48, %v24704_v49  ;;  %v20087_v52 = vcombine.low %v10221_v23, %v10231_v45  ;;  %v1882_v53 = vrot.slane %v1881_v40, 4  ;;  %v19930_v39 = vld [vmem:[%s25062_s4 + $0xa8] sm:$0xf] }
 0x145   : > { %v10235_v54 = vor.u32 %v10234_v41, %v10230_v24  ;;  %v10244_v55 = vrot.slane %v10242_v42, 4  ;;  %v1892_v57 = vrot.slane %v1891_v46, 4  ;;  %v10250_v59 = vrot.slane %v10248_v43, 5 }
 0x146   : > { %v10253_v60 = vshrl.u32 %v19923_v44, 16  ;;  %v10256_v61 = vshll.u32 %v19923_v44, 16  ;;  %22880 = vmatmul.mubr.msk.bf16.vlgmr.msra.gmra.mrb[0].mxu0 %vm2122_vm1, %v20087_v52  ;;  %v1887_v62 = vsel %vm25095_vm4, %v1882_v53, %v1886_v34  ;;  %v10262_v1 = vshll.u32 %v19924_v51, 16  ;;  %v19931_v44 = vld [vmem:[%s25062_s4 + $0xac] sm:$0xf] }
 0x147   : > { %v10236_v63 = vrot.slane %v10235_v54, 4  ;;  %v10245_v0 = vor.u32 %v10244_v55, %v10240_v47  ;;  %v1897_v3 = vsel %vm25095_vm4, %v1892_v57, %v1896_v38  ;;  %v10266_v7 = vshrl.u32 %v19924_v51, 16  ;;  %v19932_v53 = vld [vmem:[%s25062_s4 + $0xb0] sm:$0xf]  ;;  %v24707_v57 = vld [vmem:[%s25062_s4 + $0x38] sm:$0xf] }
 0x148   : > { %v10255_v5 = vrot.slane %v10253_v60, 4  ;;  %v10258_v6 = vrot.slane %v10256_v61, 5  ;;  %v18798_v9 = vcombine.low %v1887_v62, %v1897_v3  ;;  %v10264_v15 = vrot.slane %v10262_v1, 5 }
 0x149   : > { %v10241_v11 = vsel %vm25095_vm4, %v10236_v63, %v10240_v47  ;;  %v10246_v12 = vrot.slane %v10245_v0, 4  ;;  %v10268_v17 = vrot.slane %v10266_v7, 4  ;;  %v10272_v18 = vshll.u32 %v19925_v56, 16  ;;  %v19933_v7 = vld [vmem:[%s25062_s4 + $0xb4] sm:$0xf] }
 0x14a   : > { %v10259_v16 = vor.u32 %v10258_v6, %v10255_v5  ;;  %v10276_v19 = vshrl.u32 %v19925_v56, 16  ;;  %22290 = vmatmul.mubr.msk.bf16.gmra.mrb[140].mxu1 %vm2122_vm1, %v18798_v9  ;;  %v4877_v22 = vsel %vm2339_vm0, %v25642_v58, 0  ;;  %v13652_v23 = vsel %vm2339_vm0, %v25653_v4, 0 }
 0x14b   : > { %v10251_v20 = vsel %vm25095_vm4, %v10246_v12, %v10250_v59  ;;  %v10282_v24 = vshll.u32 %v19926_v2, 16  ;;  %22295 = vmatprep.mubr.msk.bf16.mxu1 %vm2122_vm1, %v18872_v50  ;;  %v10269_v27 = vor.u32 %v10268_v17, %v10264_v15  ;;  %v10274_v28 = vrot.slane %v10272_v18, 5  ;;  %23024 = vmatpush3.bf16.msra.mxu0 %v13652_v23  ;;  %v24708_v59 = vld [vmem:[%s25062_s4 + $0x3c] sm:$0xf]  ;;  %v24709_v23 = vld [vmem:[%s25062_s4 + $0x40] sm:$0xf] }
 0x14c   : > { %v20088_v25 = vcombine.low %v10241_v11, %v10251_v20  ;;  %v10260_v26 = vrot.slane %v10259_v16, 4  ;;  %v10278_v30 = vrot.slane %v10276_v19, 4  ;;  %v10286_v32 = vshrl.u32 %v19926_v2, 16  ;;  %v19935_v20 = vld [vmem:[%s25062_s4 + $0xbc] sm:$0xf] }
 0x14d   : > { %v10284_v31 = vrot.slane %v10282_v24, 5  ;;  %v10292_v58 = vshll.u32 %v19927_v8, 16  ;;  %v10270_v34 = vrot.slane %v10269_v27, 4  ;;  %v10296_v35 = vshrl.u32 %v19927_v8, 16  ;;  %v24710_v24 = vld [vmem:[%s25062_s4 + $0x44] sm:$0xf] }
 0x14e   : > { %22883 = vmatprep.mubr.msk.bf16.mxu0 %vm2122_vm1, %v20088_v25  ;;  %v10265_v4 = vsel %vm25095_vm4, %v10260_v26, %v10264_v15  ;;  %v18874_v38 = vcombine.low %v24705_v36, %v24706_v10  ;;  %v10279_v40 = vor.u32 %v10278_v30, %v10274_v28  ;;  %v10288_v41 = vrot.slane %v10286_v32, 4  ;;  %v19934_v15 = vld [vmem:[%s25062_s4 + $0xb8] sm:$0xf]  ;;  %v19936_v32 = vld [vmem:[%s25062_s4 + $0xc0] sm:$0x1] }
 0x14f   : > { %v10294_v42 = vrot.slane %v10292_v58, 5  ;;  %v10302_v43 = vshll.u32 %v19928_v29, 16  ;;  %v10275_v45 = vsel %vm25095_vm4, %v10270_v34, %v10274_v28  ;;  %v10298_v46 = vrot.slane %v10296_v35, 4 }
 0x150   : > { %v10306_v47 = vshrl.u32 %v19928_v29, 16  ;;  %v10312_v48 = vshll.u32 %v19929_v33, 16  ;;  %v20089_v49 = vcombine.low %v10265_v4, %v10275_v45  ;;  %v10280_v50 = vrot.slane %v10279_v40, 4  ;;  %v19937_v45 = vld [vmem:[%s25062_s4 + $0xe0] sm:$0xf] }
 0x151   : > { %v10289_v51 = vor.u32 %v10288_v41, %v10284_v31  ;;  %v10304_v52 = vrot.slane %v10302_v43, 5  ;;  %v10299_v54 = vor.u32 %v10298_v46, %v10294_v42  ;;  %v18875_v60 = vcombine.low %v24707_v57, %v24708_v59 }
 0x152   : > { %v10308_v55 = vrot.slane %v10306_v47, 4  ;;  %v10314_v56 = vrot.slane %v10312_v48, 5  ;;  %22884 = vmatmul.mubr.msk.bf16.gmra.mrb[4].mxu0 %vm2122_vm1, %v20089_v49  ;;  %22296 = vmatmul.mubr.msk.bf16.vlgmr.msra.gmra.mrb[0].mxu1 %vm2122_vm1, %v18873_v21  ;;  %v10285_v61 = vsel %vm25095_vm4, %v10280_v50, %v10284_v31  ;;  %v10317_v63 = vshrl.u32 %v19930_v39, 16  ;;  %v19938_v50 = vld [vmem:[%s25062_s4 + $0xe4] sm:$0xf] }
 0x153   : > { %v10290_v62 = vrot.slane %v10289_v51, 4  ;;  %v10320_v0 = vshll.u32 %v19930_v39, 16  ;;  %22440 = vmatpush3.bf16.msra.mxu1 %v4877_v22  ;;  %22299 = vmatprep.mubr.msk.bf16.mxu1 %vm2122_vm1, %v18874_v38  ;;  %v10300_v1 = vrot.slane %v10299_v54, 4  ;;  %v10326_v3 = vshll.u32 %v19931_v44, 16  ;;  %v24711_v38 = vld [vmem:[%s25062_s4 + $0x48] sm:$0xf] }
 0x154   : > { %v10309_v2 = vor.u32 %v10308_v55, %v10304_v52  ;;  %v10330_v5 = vshrl.u32 %v19931_v44, 16  ;;  %v10319_v14 = vrot.slane %v10317_v63, 4  ;;  %v10336_v6 = vshll.u32 %v19932_v53, 16  ;;  %v24712_v39 = vld [vmem:[%s25062_s4 + $0x4c] sm:$0xf] }
 0x155   : > { %v10295_v13 = vsel %vm25095_vm4, %v10290_v62, %v10294_v42  ;;  %v10322_v21 = vrot.slane %v10320_v0, 5  ;;  %v10305_v9 = vsel %vm25095_vm4, %v10300_v1, %v10304_v52  ;;  %v10328_v12 = vrot.slane %v10326_v3, 5  ;;  %v19939_v55 = vld [vmem:[%s25062_s4 + $0xe8] sm:$0xf]  ;;  %v19940_v3 = vld [vmem:[%s25062_s4 + $0xec] sm:$0xf] }
 0x156   : > { %v20090_v8 = vcombine.low %v10285_v61, %v10295_v13  ;;  %v10310_v11 = vrot.slane %v10309_v2, 4  ;;  %v10332_v17 = vrot.slane %v10330_v5, 4  ;;  %v10338_v18 = vrot.slane %v10336_v6, 5  ;;  %v24714_v61 = vld [vmem:[%s25062_s4 + $0x74] sm:$0xf] }
 0x157   : > { %v10323_v16 = vor.u32 %v10322_v21, %v10319_v14  ;;  %v10340_v19 = vshrl.u32 %v19932_v53, 16  ;;  %v18876_v25 = vcombine.low %v24709_v23, %v24710_v24  ;;  %v10346_v26 = vshll.u32 %v19933_v7, 16  ;;  %v19941_v6 = vld [vmem:[%s25062_s4 + $0xf0] sm:$0xf] }
 0x158   : > { %22887 = vmatprep.mubr.msk.bf16.mxu0 %vm2122_vm1, %v20090_v8  ;;  %v10315_v22 = vsel %vm25095_vm4, %v10310_v11, %v10314_v56  ;;  %v10350_v27 = vshrl.u32 %v19933_v7, 16  ;;  %v10333_v30 = vor.u32 %v10332_v17, %v10328_v12  ;;  %v10356_v4 = vshll.u32 %v19934_v15, 16 }
 0x159   : > { %v20091_v28 = vcombine.low %v10305_v9, %v10315_v22  ;;  %v10324_v29 = vrot.slane %v10323_v16, 4  ;;  %v10342_v31 = vrot.slane %v10340_v19, 4  ;;  %v10348_v58 = vrot.slane %v10346_v26, 5  ;;  %v24716_v22 = vld [vmem:[%s25062_s4 + $0x7c] sm:$0xf] }
 0x15a   : > { %v10352_v33 = vrot.slane %v10350_v27, 4  ;;  %v10360_v34 = vshrl.u32 %v19934_v15, 16  ;;  %22300 = vmatmul.mubr.msk.bf16.gmra.mrb[4].mxu1 %vm2122_vm1, %v18875_v60  ;;  %v10334_v36 = vrot.slane %v10333_v30, 4  ;;  %v18877_v40 = vcombine.low %v24711_v38, %v24712_v39  ;;  %v24713_v60 = vld [vmem:[%s25062_s4 + $0x70] sm:$0xf] }
 0x15b   : > { %22888 = vmatmul.mubr.msk.bf16.gmra.mrb[8].mxu0 %vm2122_vm1, %v20091_v28  ;;  %v10329_v35 = vsel %vm25095_vm4, %v10324_v29, %v10328_v12  ;;  %v10343_v10 = vor.u32 %v10342_v31, %v10338_v18  ;;  %22303 = vmatprep.mubr.msk.bf16.mxu1 %vm2122_vm1, %v18876_v25  ;;  %v10358_v42 = vrot.slane %v10356_v4, 5  ;;  %v10366_v44 = vshll.u32 %v19935_v20, 16  ;;  %v19942_v29 = vld [vmem:[%s25062_s4 + $0xf4] sm:$0xf] }
 0x15c   : > { %v10353_v41 = vor.u32 %v10352_v33, %v10348_v58  ;;  %v10362_v43 = vrot.slane %v10360_v34, 4  ;;  %v10339_v46 = vsel %vm25095_vm4, %v10334_v36, %v10338_v18  ;;  %v10370_v48 = vshrl.u32 %v19935_v20, 16  ;;  %v24715_v20 = vld [vmem:[%s25062_s4 + $0x78] sm:$0xf] }
 0x15d   : > { %v10344_v47 = vrot.slane %v10343_v10, 4  ;;  %v10376_v49 = vshll.u32 %v19936_v32, 16  ;;  %v20092_v51 = vcombine.low %v10329_v35, %v10339_v46  ;;  %v10368_v54 = vrot.slane %v10366_v44, 5  ;;  %v19943_v33 = vld [vmem:[%s25062_s4 + $0xf8] sm:$0x1] }
 0x15e   : > { %v10354_v52 = vrot.slane %v10353_v41, 4  ;;  %v10363_v53 = vor.u32 %v10362_v43, %v10358_v42  ;;  %v10372_v57 = vrot.slane %v10370_v48, 4  ;;  %v18878_v62 = vcombine.low %v24713_v60, %v24714_v61  ;;  %v19944_v10 = vld [vmem:[%s25062_s4 + $0x118] sm:$0xf]  ;;  %v24718_v41 = vld [vmem:[%s25062_s4 + $0x84] sm:$0xf] }
 0x15f   : > { %v10349_v56 = vsel %vm25095_vm4, %v10344_v47, %v10348_v58  ;;  %v10378_v59 = vrot.slane %v10376_v49, 5  ;;  %22891 = vmatprep.mubr.msk.bf16.mxu0 %vm2122_vm1, %v20092_v51  ;;  %v10381_v1 = vshrl.u32 %v19937_v45, 16  ;;  %v10384_v2 = vshll.u32 %v19937_v45, 16  ;;  %v19945_v44 = vld [vmem:[%s25062_s4 + $0x11c] sm:$0xf] }
 0x160   : > { %v10359_v63 = vsel %vm25095_vm4, %v10354_v52, %v10358_v42  ;;  %v10364_v0 = vrot.slane %v10363_v53, 4  ;;  %v10373_v13 = vor.u32 %v10372_v57, %v10368_v54  ;;  %v10390_v14 = vshll.u32 %v19938_v50, 16  ;;  %v19946_v53 = vld [vmem:[%s25062_s4 + $0x120] sm:$0xf]  ;;  %v24719_v57 = vld [vmem:[%s25062_s4 + $0xa8] sm:$0xf] }
 0x161   : > { %v20093_v5 = vcombine.low %v10349_v56, %v10359_v63  ;;  %v10394_v21 = vshrl.u32 %v19938_v50, 16  ;;  %v10383_v8 = vrot.slane %v10381_v1, 4  ;;  %v10386_v9 = vrot.slane %v10384_v2, 5 }
 0x162   : > { %v10369_v7 = vsel %vm25095_vm4, %v10364_v0, %v10368_v54  ;;  %v10400_v11 = vshll.u32 %v19939_v55, 16  ;;  %22304 = vmatmul.mubr.msk.bf16.gmra.mrb[8].mxu1 %vm2122_vm1, %v18877_v40  ;;  %v10374_v12 = vrot.slane %v10373_v13, 4  ;;  %v10392_v15 = vrot.slane %v10390_v14, 5  ;;  %v24717_v40 = vld [vmem:[%s25062_s4 + $0x80] sm:$0xf] }
 0x163   : > { %22892 = vmatmul.mubr.msk.bf16.gmra.mrb[12].mxu0 %vm2122_vm1, %v20093_v5  ;;  %v10396_v16 = vrot.slane %v10394_v21, 4  ;;  %v10404_v17 = vshrl.u32 %v19939_v55, 16  ;;  %22307 = vmatprep.mubr.msk.bf16.mxu1 %vm2122_vm1, %v18878_v62  ;;  %v10387_v18 = vor.u32 %v10386_v9, %v10383_v8  ;;  %v18879_v23 = vcombine.low %v24715_v20, %v24716_v22  ;;  %v24722_v20 = vld [vmem:[%s25062_s4 + $0xb4] sm:$0xf] }
 0x164   : > { %v10402_v19 = vrot.slane %v10400_v11, 5  ;;  %v10410_v24 = vshll.u32 %v19940_v3, 16  ;;  %v10379_v25 = vsel %vm25095_vm4, %v10374_v12, %v10378_v59  ;;  %v10414_v28 = vshrl.u32 %v19940_v3, 16  ;;  %v24720_v59 = vld [vmem:[%s25062_s4 + $0xac] sm:$0xf] }
 0x165   : > { %v10397_v26 = vor.u32 %v10396_v16, %v10392_v15  ;;  %v10406_v27 = vrot.slane %v10404_v17, 4  ;;  %v20094_v30 = vcombine.low %v10369_v7, %v10379_v25  ;;  %v10388_v31 = vrot.slane %v10387_v18, 4  ;;  %v19947_v7 = vld [vmem:[%s25062_s4 + $0x124] sm:$0xf] }
 0x166   : > { %v10412_v32 = vrot.slane %v10410_v24, 5  ;;  %v10420_v58 = vshll.u32 %v19941_v6, 16  ;;  %v10416_v35 = vrot.slane %v10414_v28, 4  ;;  %v10424_v36 = vshrl.u32 %v19941_v6, 16 }
 0x167   : > { %v10398_v4 = vrot.slane %v10397_v26, 4  ;;  %v10407_v34 = vor.u32 %v10406_v27, %v10402_v19  ;;  %22895 = vmatprep.mubr.msk.bf16.mxu0 %vm2122_vm1, %v20094_v30  ;;  %v10393_v38 = vsel %vm25095_vm4, %v10388_v31, %v10392_v15  ;;  %v18880_v42 = vcombine.low %v24717_v40, %v24718_v41  ;;  %v19948_v15 = vld [vmem:[%s25062_s4 + $0x128] sm:$0xf]  ;;  %v24723_v41 = vld [vmem:[%s25062_s4 + $0xb8] sm:$0xf] }
 0x168   : > { %v10422_v39 = vrot.slane %v10420_v58, 5  ;;  %v10430_v43 = vshll.u32 %v19942_v29, 16  ;;  %v10417_v47 = vor.u32 %v10416_v35, %v10412_v32  ;;  %v10426_v48 = vrot.slane %v10424_v36, 4 }
 0x169   : > { %v10403_v45 = vsel %vm25095_vm4, %v10398_v4, %v10402_v19  ;;  %v10408_v46 = vrot.slane %v10407_v34, 4  ;;  %v10434_v51 = vshrl.u32 %v19942_v29, 16  ;;  %v10440_v52 = vshll.u32 %v19943_v33, 16  ;;  %v24721_v19 = vld [vmem:[%s25062_s4 + $0xb0] sm:$0xf] }
 0x16a   : > { %v20095_v49 = vcombine.low %v10393_v38, %v10403_v45  ;;  %v10432_v50 = vrot.slane %v10430_v43, 5  ;;  %22308 = vmatmul.mubr.msk.bf16.gmra.mrb[12].mxu1 %vm2122_vm1, %v18879_v23  ;;  %v10418_v55 = vrot.slane %v10417_v47, 4  ;;  %v10427_v56 = vor.u32 %v10426_v48, %v10422_v39  ;;  %v19949_v23 = vld [vmem:[%s25062_s4 + $0x12c] sm:$0xf]  ;;  %v19951_v45 = vld [vmem:[%s25062_s4 + $0x150] sm:$0xf] }
 0x16b   : > { %v10413_v54 = vsel %vm25095_vm4, %v10408_v46, %v10412_v32  ;;  %v18881_v60 = vcombine.low %v24719_v57, %v24720_v59  ;;  %22311 = vmatprep.mubr.msk.bf16.mxu1 %vm2122_vm1, %v18880_v42  ;;  %v10436_v61 = vrot.slane %v10434_v51, 4  ;;  %v10442_v62 = vrot.slane %v10440_v52, 5  ;;  %v19950_v32 = vld [vmem:[%s25062_s4 + $0x130] sm:$0x1]  ;;  %v24724_v42 = vld [vmem:[%s25062_s4 + $0xbc] sm:$0xf] }
 0x16c   : > { %22896 = vmatmul.mubr.msk.bf16.gmra.mrb[16].mxu0 %vm2122_vm1, %v20095_v49  ;;  %v10445_v63 = vshrl.u32 %v19944_v10, 16  ;;  %v10448_v0 = vshll.u32 %v19944_v10, 16  ;;  %v10423_v1 = vsel %vm25095_vm4, %v10418_v55, %v10422_v39  ;;  %v10428_v2 = vrot.slane %v10427_v56, 4  ;;  %v24726_v55 = vld [vmem:[%s25062_s4 + $0xe4] sm:$0xf] }
 0x16d   : > { %v10454_v3 = vshll.u32 %v19945_v44, 16  ;;  %v10458_v5 = vshrl.u32 %v19945_v44, 16  ;;  %v20096_v13 = vcombine.low %v10413_v54, %v10423_v1  ;;  %v10437_v14 = vor.u32 %v10436_v61, %v10432_v50  ;;  %v24725_v54 = vld [vmem:[%s25062_s4 + $0xe0] sm:$0xf]  ;;  %v19953_v57 = vld [vmem:[%s25062_s4 + $0x158] sm:$0xf] }
 0x16e   : > { %v10447_v21 = vrot.slane %v10445_v63, 4  ;;  %v10450_v6 = vrot.slane %v10448_v0, 5  ;;  %v10433_v8 = vsel %vm25095_vm4, %v10428_v2, %v10432_v50  ;;  %v10464_v12 = vshll.u32 %v19946_v53, 16  ;;  %v19952_v50 = vld [vmem:[%s25062_s4 + $0x154] sm:$0xf] }
 0x16f   : > { %v10456_v9 = vrot.slane %v10454_v3, 5  ;;  %v10460_v11 = vrot.slane %v10458_v5, 4  ;;  %22899 = vmatprep.mubr.msk.bf16.mxu0 %vm2122_vm1, %v20096_v13  ;;  %v10438_v16 = vrot.slane %v10437_v14, 4  ;;  %v10468_v18 = vshrl.u32 %v19946_v53, 16  ;;  %v19954_v3 = vld [vmem:[%s25062_s4 + $0x15c] sm:$0xf] }
 0x170   : > { %v10451_v17 = vor.u32 %v10450_v6, %v10447_v21  ;;  %v18882_v22 = vcombine.low %v24721_v19, %v24722_v20  ;;  %v10466_v25 = vrot.slane %v10464_v12, 5  ;;  %v10474_v26 = vshll.u32 %v19947_v7, 16  ;;  %v19955_v6 = vld [vmem:[%s25062_s4 + $0x160] sm:$0xf] }
 0x171   : > { %v10461_v24 = vor.u32 %v10460_v11, %v10456_v9  ;;  %v10478_v27 = vshrl.u32 %v19947_v7, 16  ;;  %v10443_v28 = vsel %vm25095_vm4, %v10438_v16, %v10442_v62  ;;  %v10470_v30 = vrot.slane %v10468_v18, 4  ;;  %v24728_v18 = vld [vmem:[%s25062_s4 + $0xec] sm:$0xf] }
 0x172   : > { %v10452_v29 = vrot.slane %v10451_v17, 4  ;;  %v10484_v31 = vshll.u32 %v19948_v15, 16  ;;  %v20097_v58 = vcombine.low %v10433_v8, %v10443_v28  ;;  %22312 = vmatmul.mubr.msk.bf16.gmra.mrb[16].mxu1 %vm2122_vm1, %v18881_v60  ;;  %v10476_v4 = vrot.slane %v10474_v26, 5  ;;  %v24727_v17 = vld [vmem:[%s25062_s4 + $0xe8] sm:$0xf] }
 0x173   : > { %v10462_v33 = vrot.slane %v10461_v24, 4  ;;  %v10480_v34 = vrot.slane %v10478_v27, 4  ;;  %22315 = vmatprep.mubr.msk.bf16.mxu1 %vm2122_vm1, %v18882_v22  ;;  %v10471_v36 = vor.u32 %v10470_v30, %v10466_v25  ;;  %v10488_v38 = vshrl.u32 %v19948_v15, 16 }
 0x174   : > { %v10457_v35 = vsel %vm25095_vm4, %v10452_v29, %v10456_v9  ;;  %v10486_v10 = vrot.slane %v10484_v31, 5  ;;  %22900 = vmatmul.mubr.msk.bf16.gmra.mrb[20].mxu0 %vm2122_vm1, %v20097_v58  ;;  %v18883_v43 = vcombine.low %v24723_v41, %v24724_v42  ;;  %v10494_v44 = vshll.u32 %v19949_v23, 16  ;;  %v19956_v29 = vld [vmem:[%s25062_s4 + $0x164] sm:$0xf]  ;;  %v24730_v41 = vld [vmem:[%s25062_s4 + $0xf4] sm:$0xf] }
 0x175   : > { %v10467_v39 = vsel %vm25095_vm4, %v10462_v33, %v10466_v25  ;;  %v10481_v40 = vor.u32 %v10480_v34, %v10476_v4  ;;  %v10472_v47 = vrot.slane %v10471_v36, 4  ;;  %v10490_v48 = vrot.slane %v10488_v38, 4  ;;  %v19957_v33 = vld [vmem:[%s25062_s4 + $0x168] sm:$0x1] }
 0x176   : > { %v20098_v46 = vcombine.low %v10457_v35, %v10467_v39  ;;  %v10498_v49 = vshrl.u32 %v19949_v23, 16  ;;  %v10496_v52 = vrot.slane %v10494_v44, 5  ;;  %v10504_v53 = vshll.u32 %v19950_v32, 16  ;;  %v19959_v44 = vld [vmem:[%s25062_s4 + $0x18c] sm:$0xf] }
 0x177   : > { %v10482_v51 = vrot.slane %v10481_v40, 4  ;;  %v18884_v56 = vcombine.low %v24725_v54, %v24726_v55  ;;  %v10477_v59 = vsel %vm25095_vm4, %v10472_v47, %v10476_v4  ;;  %v10491_v60 = vor.u32 %v10490_v48, %v10486_v10  ;;  %v24729_v40 = vld [vmem:[%s25062_s4 + $0xf0] sm:$0xf] }
 0x178   : > { %22903 = vmatprep.mubr.msk.bf16.mxu0 %vm2122_vm1, %v20098_v46  ;;  %v10500_v61 = vrot.slane %v10498_v49, 4  ;;  %v10509_v62 = vshrl.u32 %v19951_v45, 16  ;;  %v10506_v0 = vrot.slane %v10504_v53, 5  ;;  %v10512_v1 = vshll.u32 %v19951_v45, 16  ;;  %v24732_v53 = vld [vmem:[%s25062_s4 + $0x11c] sm:$0xf] }
 0x179   : > { %v10487_v63 = vsel %vm25095_vm4, %v10482_v51, %v10486_v10  ;;  %v10518_v2 = vshll.u32 %v19952_v50, 16  ;;  %v10492_v13 = vrot.slane %v10491_v60, 4  ;;  %v10522_v9 = vshrl.u32 %v19952_v50, 16  ;;  %v19958_v10 = vld [vmem:[%s25062_s4 + $0x188] sm:$0xf] }
 0x17a   : > { %v20099_v5 = vcombine.low %v10477_v59, %v10487_v63  ;;  %v10501_v14 = vor.u32 %v10500_v61, %v10496_v52  ;;  %v10511_v21 = vrot.slane %v10509_v62, 4  ;;  %22316 = vmatmul.mubr.msk.bf16.gmra.mrb[20].mxu1 %vm2122_vm1, %v18883_v43  ;;  %v10514_v7 = vrot.slane %v10512_v1, 5  ;;  %v19960_v55 = vld [vmem:[%s25062_s4 + $0x190] sm:$0xf] }
 0x17b   : > { %v10520_v8 = vrot.slane %v10518_v2, 5  ;;  %v10528_v11 = vshll.u32 %v19953_v57, 16  ;;  %v10497_v12 = vsel %vm25095_vm4, %v10492_v13, %v10496_v52  ;;  %22319 = vmatprep.mubr.msk.bf16.mxu1 %vm2122_vm1, %v18884_v56  ;;  %v10532_v16 = vshrl.u32 %v19953_v57, 16  ;;  %v24731_v52 = vld [vmem:[%s25062_s4 + $0x118] sm:$0xf] }
 0x17c   : > { %v10502_v15 = vrot.slane %v10501_v14, 4  ;;  %v18885_v19 = vcombine.low %v24727_v17, %v24728_v18  ;;  %22904 = vmatmul.mubr.msk.bf16.gmra.mrb[24].mxu0 %vm2122_vm1, %v20099_v5  ;;  %v10515_v20 = vor.u32 %v10514_v7, %v10511_v21  ;;  %v10524_v22 = vrot.slane %v10522_v9, 4  ;;  %v19961_v7 = vld [vmem:[%s25062_s4 + $0x194] sm:$0xf] }
 0x17d   : > { %v10530_v23 = vrot.slane %v10528_v11, 5  ;;  %v10538_v24 = vshll.u32 %v19954_v3, 16  ;;  %v10534_v26 = vrot.slane %v10532_v16, 4  ;;  %v10542_v27 = vshrl.u32 %v19954_v3, 16 }
 0x17e   : > { %v10507_v25 = vsel %vm25095_vm4, %v10502_v15, %v10506_v0  ;;  %v10548_v28 = vshll.u32 %v19955_v6, 16  ;;  %v10516_v31 = vrot.slane %v10515_v20, 4  ;;  %v10525_v32 = vor.u32 %v10524_v22, %v10520_v8  ;;  %v19962_v15 = vld [vmem:[%s25062_s4 + $0x198] sm:$0xf]  ;;  %v24734_v20 = vld [vmem:[%s25062_s4 + $0x124] sm:$0xf] }
 0x17f   : > { %v20100_v30 = vcombine.low %v10497_v12, %v10507_v25  ;;  %v10540_v58 = vrot.slane %v10538_v24, 5  ;;  %v10535_v4 = vor.u32 %v10534_v26, %v10530_v23  ;;  %v10544_v34 = vrot.slane %v10542_v27, 4 }
 0x180   : > { %v10550_v35 = vrot.slane %v10548_v28, 5  ;;  %v10552_v36 = vshrl.u32 %v19955_v6, 16  ;;  %v10521_v38 = vsel %vm25095_vm4, %v10516_v31, %v10520_v8  ;;  %v10526_v39 = vrot.slane %v10525_v32, 4  ;;  %v19964_v32 = vld [vmem:[%s25062_s4 + $0x1a0] sm:$0x1] }
 0x181   : > { %22907 = vmatprep.mubr.msk.bf16.mxu0 %vm2122_vm1, %v20100_v30  ;;  %v18886_v42 = vcombine.low %v24729_v40, %v24730_v41  ;;  %v10558_v43 = vshll.u32 %v19956_v29, 16  ;;  %v10536_v45 = vrot.slane %v10535_v4, 4  ;;  %v10545_v46 = vor.u32 %v10544_v34, %v10540_v58  ;;  %v24735_v41 = vld [vmem:[%s25062_s4 + $0x128] sm:$0xf] }
 0x182   : > { %v10554_v47 = vrot.slane %v10552_v36, 4  ;;  %v10562_v48 = vshrl.u32 %v19956_v29, 16  ;;  %v10531_v49 = vsel %vm25095_vm4, %v10526_v39, %v10530_v23  ;;  %22320 = vmatmul.mubr.msk.bf16.gmra.mrb[24].mxu1 %vm2122_vm1, %v18885_v19  ;;  %v10568_v51 = vshll.u32 %v19957_v33, 16  ;;  %v24733_v19 = vld [vmem:[%s25062_s4 + $0x120] sm:$0xf] }
 0x183   : > { %v10560_v50 = vrot.slane %v10558_v43, 5  ;;  %v18887_v54 = vcombine.low %v24731_v52, %v24732_v53  ;;  %v20101_v56 = vcombine.low %v10521_v38, %v10531_v49  ;;  %v10541_v57 = vsel %vm25095_vm4, %v10536_v45, %v10540_v58  ;;  %22323 = vmatprep.mubr.msk.bf16.mxu1 %vm2122_vm1, %v18886_v42  ;;  %v19963_v23 = vld [vmem:[%s25062_s4 + $0x19c] sm:$0xf]  ;;  %v24736_v42 = vld [vmem:[%s25062_s4 + $0x12c] sm:$0xf] }
 0x184   : > { %v10546_v59 = vrot.slane %v10545_v46, 4  ;;  %v10555_v60 = vor.u32 %v10554_v47, %v10550_v35  ;;  %v10564_v61 = vrot.slane %v10562_v48, 4  ;;  %v10570_v62 = vrot.slane %v10568_v51, 5  ;;  %v19965_v45 = vld [vmem:[%s25062_s4 + $0x1c0] sm:$0xf] }
 0x185   : > { %v10573_v63 = vshrl.u32 %v19958_v10, 16  ;;  %v10576_v0 = vshll.u32 %v19958_v10, 16  ;;  %22908 = vmatmul.mubr.msk.bf16.gmra.mrb[28].mxu0 %vm2122_vm1, %v20101_v56  ;;  %v10582_v3 = vshll.u32 %v19959_v44, 16  ;;  %v10586_v5 = vshrl.u32 %v19959_v44, 16 }
 0x186   : > { %v10551_v1 = vsel %vm25095_vm4, %v10546_v59, %v10550_v35  ;;  %v10556_v2 = vrot.slane %v10555_v60, 4  ;;  %v10565_v14 = vor.u32 %v10564_v61, %v10560_v50  ;;  %v10592_v12 = vshll.u32 %v19960_v55, 16 }
 0x187   : > { %v20102_v13 = vcombine.low %v10541_v57, %v10551_v1  ;;  %v10575_v21 = vrot.slane %v10573_v63, 4  ;;  %v10578_v6 = vrot.slane %v10576_v0, 5  ;;  %v10584_v9 = vrot.slane %v10582_v3, 5  ;;  %v19967_v57 = vld [vmem:[%s25062_s4 + $0x1c8] sm:$0xf] }
 0x188   : > { %v10561_v8 = vsel %vm25095_vm4, %v10556_v2, %v10560_v50  ;;  %v10588_v11 = vrot.slane %v10586_v5, 4  ;;  %v10566_v16 = vrot.slane %v10565_v14, 4  ;;  %v10596_v18 = vshrl.u32 %v19960_v55, 16  ;;  %v19966_v50 = vld [vmem:[%s25062_s4 + $0x1c4] sm:$0xf] }
 0x189   : > { %22911 = vmatprep.mubr.msk.bf16.mxu0 %vm2122_vm1, %v20102_v13  ;;  %v10579_v17 = vor.u32 %v10578_v6, %v10575_v21  ;;  %v18888_v22 = vcombine.low %v24733_v19, %v24734_v20  ;;  %v10594_v25 = vrot.slane %v10592_v12, 5  ;;  %v10602_v26 = vshll.u32 %v19961_v7, 16  ;;  %v24738_v55 = vld [vmem:[%s25062_s4 + $0x154] sm:$0xf]  ;;  %v19968_v3 = vld [vmem:[%s25062_s4 + $0x1cc] sm:$0xf] }
 0x18a   : > { %v10589_v24 = vor.u32 %v10588_v11, %v10584_v9  ;;  %v10606_v27 = vshrl.u32 %v19961_v7, 16  ;;  %v10571_v28 = vsel %vm25095_vm4, %v10566_v16, %v10570_v62  ;;  %22324 = vmatmul.mubr.msk.bf16.gmra.mrb[28].mxu1 %vm2122_vm1, %v18887_v54  ;;  %v10598_v30 = vrot.slane %v10596_v18, 4  ;;  %v24737_v54 = vld [vmem:[%s25062_s4 + $0x150] sm:$0xf]  ;;  %v24740_v18 = vld [vmem:[%s25062_s4 + $0x15c] sm:$0xf] }
 0x18b   : > { %v10580_v29 = vrot.slane %v10579_v17, 4  ;;  %v10612_v31 = vshll.u32 %v19962_v15, 16  ;;  %v20103_v58 = vcombine.low %v10561_v8, %v10571_v28  ;;  %22327 = vmatprep.mubr.msk.bf16.mxu1 %vm2122_vm1, %v18888_v22  ;;  %v10604_v4 = vrot.slane %v10602_v26, 5  ;;  %v19969_v6 = vld [vmem:[%s25062_s4 + $0x1d0] sm:$0xf] }
 0x18c   : > { %v10590_v33 = vrot.slane %v10589_v24, 4  ;;  %v10608_v34 = vrot.slane %v10606_v27, 4  ;;  %v10599_v36 = vor.u32 %v10598_v30, %v10594_v25  ;;  %v10616_v38 = vshrl.u32 %v19962_v15, 16  ;;  %v24739_v17 = vld [vmem:[%s25062_s4 + $0x158] sm:$0xf] }
 0x18d   : > { %v10585_v35 = vsel %vm25095_vm4, %v10580_v29, %v10584_v9  ;;  %v10614_v10 = vrot.slane %v10612_v31, 5  ;;  %22912 = vmatmul.mubr.msk.bf16.gmra.mrb[32].mxu0 %vm2122_vm1, %v20103_v58  ;;  %v18889_v43 = vcombine.low %v24735_v41, %v24736_v42  ;;  %v10622_v44 = vshll.u32 %v19963_v23, 16  ;;  %v19970_v29 = vld [vmem:[%s25062_s4 + $0x1d4] sm:$0xf]  ;;  %v24742_v41 = vld [vmem:[%s25062_s4 + $0x164] sm:$0xf] }
 0x18e   : > { %v10595_v39 = vsel %vm25095_vm4, %v10590_v33, %v10594_v25  ;;  %v10609_v40 = vor.u32 %v10608_v34, %v10604_v4  ;;  %v10600_v47 = vrot.slane %v10599_v36, 4  ;;  %v10618_v48 = vrot.slane %v10616_v38, 4  ;;  %v19971_v33 = vld [vmem:[%s25062_s4 + $0x1d8] sm:$0x1] }
 0x18f   : > { %v20104_v46 = vcombine.low %v10585_v35, %v10595_v39  ;;  %v10626_v49 = vshrl.u32 %v19963_v23, 16  ;;  %v10624_v52 = vrot.slane %v10622_v44, 5  ;;  %v10632_v53 = vshll.u32 %v19964_v32, 16  ;;  %v19973_v44 = vld [vmem:[%s25062_s4 + $0x1fc] sm:$0xf] }
 0x190   : > { %v10610_v51 = vrot.slane %v10609_v40, 4  ;;  %v18890_v56 = vcombine.low %v24737_v54, %v24738_v55  ;;  %v10605_v59 = vsel %vm25095_vm4, %v10600_v47, %v10604_v4  ;;  %v10619_v60 = vor.u32 %v10618_v48, %v10614_v10  ;;  %v24741_v40 = vld [vmem:[%s25062_s4 + $0x160] sm:$0xf] }
 0x191   : > { %22915 = vmatprep.mubr.msk.bf16.mxu0 %vm2122_vm1, %v20104_v46  ;;  %v10628_v61 = vrot.slane %v10626_v49, 4  ;;  %v10637_v62 = vshrl.u32 %v19965_v45, 16  ;;  %v10634_v0 = vrot.slane %v10632_v53, 5  ;;  %v10640_v1 = vshll.u32 %v19965_v45, 16  ;;  %v24744_v53 = vld [vmem:[%s25062_s4 + $0x18c] sm:$0xf] }
 0x192   : > { %v10615_v63 = vsel %vm25095_vm4, %v10610_v51, %v10614_v10  ;;  %v10646_v2 = vshll.u32 %v19966_v50, 16  ;;  %22328 = vmatmul.mubr.msk.bf16.gmra.mrb[32].mxu1 %vm2122_vm1, %v18889_v43  ;;  %v10620_v13 = vrot.slane %v10619_v60, 4  ;;  %v10650_v9 = vshrl.u32 %v19966_v50, 16  ;;  %v19972_v10 = vld [vmem:[%s25062_s4 + $0x1f8] sm:$0xf] }
 0x193   : > { %v20105_v5 = vcombine.low %v10605_v59, %v10615_v63  ;;  %v10629_v14 = vor.u32 %v10628_v61, %v10624_v52  ;;  %v10639_v21 = vrot.slane %v10637_v62, 4  ;;  %22331 = vmatprep.mubr.msk.bf16.mxu1 %vm2122_vm1, %v18890_v56  ;;  %v10642_v7 = vrot.slane %v10640_v1, 5  ;;  %v19974_v55 = vld [vmem:[%s25062_s4 + $0x200] sm:$0xf] }
 0x194   : > { %v10648_v8 = vrot.slane %v10646_v2, 5  ;;  %v10656_v11 = vshll.u32 %v19967_v57, 16  ;;  %v10625_v12 = vsel %vm25095_vm4, %v10620_v13, %v10624_v52  ;;  %v10660_v16 = vshrl.u32 %v19967_v57, 16  ;;  %v24743_v52 = vld [vmem:[%s25062_s4 + $0x188] sm:$0xf] }
 0x195   : > { %v10630_v15 = vrot.slane %v10629_v14, 4  ;;  %v18891_v19 = vcombine.low %v24739_v17, %v24740_v18  ;;  %22916 = vmatmul.mubr.msk.bf16.gmra.mrb[36].mxu0 %vm2122_vm1, %v20105_v5  ;;  %v10643_v20 = vor.u32 %v10642_v7, %v10639_v21  ;;  %v10652_v22 = vrot.slane %v10650_v9, 4  ;;  %v19975_v7 = vld [vmem:[%s25062_s4 + $0x204] sm:$0xf] }
 0x196   : > { %v10658_v23 = vrot.slane %v10656_v11, 5  ;;  %v10666_v24 = vshll.u32 %v19968_v3, 16  ;;  %v10662_v26 = vrot.slane %v10660_v16, 4  ;;  %v10670_v27 = vshrl.u32 %v19968_v3, 16 }
 0x197   : > { %v10635_v25 = vsel %vm25095_vm4, %v10630_v15, %v10634_v0  ;;  %v10676_v28 = vshll.u32 %v19969_v6, 16  ;;  %v10644_v31 = vrot.slane %v10643_v20, 4  ;;  %v10653_v32 = vor.u32 %v10652_v22, %v10648_v8  ;;  %v19976_v15 = vld [vmem:[%s25062_s4 + $0x208] sm:$0xf]  ;;  %v24746_v20 = vld [vmem:[%s25062_s4 + $0x194] sm:$0xf] }
 0x198   : > { %v20106_v30 = vcombine.low %v10625_v12, %v10635_v25  ;;  %v10668_v58 = vrot.slane %v10666_v24, 5  ;;  %v10663_v4 = vor.u32 %v10662_v26, %v10658_v23  ;;  %v10672_v34 = vrot.slane %v10670_v27, 4 }
 0x199   : > { %v10678_v35 = vrot.slane %v10676_v28, 5  ;;  %v10680_v36 = vshrl.u32 %v19969_v6, 16  ;;  %v10649_v38 = vsel %vm25095_vm4, %v10644_v31, %v10648_v8  ;;  %v10654_v39 = vrot.slane %v10653_v32, 4  ;;  %v19978_v32 = vld [vmem:[%s25062_s4 + $0x210] sm:$0x1] }
 0x19a   : > { %22919 = vmatprep.mubr.msk.bf16.mxu0 %vm2122_vm1, %v20106_v30  ;;  %v18892_v42 = vcombine.low %v24741_v40, %v24742_v41  ;;  %v10686_v43 = vshll.u32 %v19970_v29, 16  ;;  %22332 = vmatmul.mubr.msk.bf16.gmra.mrb[36].mxu1 %vm2122_vm1, %v18891_v19  ;;  %v10664_v45 = vrot.slane %v10663_v4, 4  ;;  %v10673_v46 = vor.u32 %v10672_v34, %v10668_v58  ;;  %v24745_v19 = vld [vmem:[%s25062_s4 + $0x190] sm:$0xf]  ;;  %v24747_v41 = vld [vmem:[%s25062_s4 + $0x198] sm:$0xf] }
 0x19b   : > { %v10682_v47 = vrot.slane %v10680_v36, 4  ;;  %v10690_v48 = vshrl.u32 %v19970_v29, 16  ;;  %v10659_v49 = vsel %vm25095_vm4, %v10654_v39, %v10658_v23  ;;  %v10696_v51 = vshll.u32 %v19971_v33, 16  ;;  %v19977_v23 = vld [vmem:[%s25062_s4 + $0x20c] sm:$0xf] }
 0x19c   : > { %22335 = vmatprep.mubr.msk.bf16.mxu1 %vm2122_vm1, %v18892_v42  ;;  %v10688_v50 = vrot.slane %v10686_v43, 5  ;;  %v18893_v54 = vcombine.low %v24743_v52, %v24744_v53  ;;  %v20107_v56 = vcombine.low %v10649_v38, %v10659_v49  ;;  %v10669_v57 = vsel %vm25095_vm4, %v10664_v45, %v10668_v58  ;;  %v24748_v42 = vld [vmem:[%s25062_s4 + $0x19c] sm:$0xf]  ;;  %v19979_v45 = vld [vmem:[%s25062_s4 + $0x230] sm:$0xf] }
 0x19d   : > { %v10674_v59 = vrot.slane %v10673_v46, 4  ;;  %v10683_v60 = vor.u32 %v10682_v47, %v10678_v35  ;;  %v10692_v61 = vrot.slane %v10690_v48, 4  ;;  %v10698_v62 = vrot.slane %v10696_v51, 5 }
 0x19e   : > { %v10701_v63 = vshrl.u32 %v19972_v10, 16  ;;  %v10704_v0 = vshll.u32 %v19972_v10, 16  ;;  %22920 = vmatmul.mubr.msk.bf16.gmra.mrb[40].mxu0 %vm2122_vm1, %v20107_v56  ;;  %v10710_v3 = vshll.u32 %v19973_v44, 16  ;;  %v10714_v5 = vshrl.u32 %v19973_v44, 16 }
 0x19f   : > { %v10679_v1 = vsel %vm25095_vm4, %v10674_v59, %v10678_v35  ;;  %v10684_v2 = vrot.slane %v10683_v60, 4  ;;  %v10693_v14 = vor.u32 %v10692_v61, %v10688_v50  ;;  %v10720_v12 = vshll.u32 %v19974_v55, 16 }
 0x1a0   : > { %v20108_v13 = vcombine.low %v10669_v57, %v10679_v1  ;;  %v10703_v21 = vrot.slane %v10701_v63, 4  ;;  %v10706_v6 = vrot.slane %v10704_v0, 5  ;;  %v10712_v9 = vrot.slane %v10710_v3, 5  ;;  %v19981_v57 = vld [vmem:[%s25062_s4 + $0x238] sm:$0xf] }
 0x1a1   : > { %v10689_v8 = vsel %vm25095_vm4, %v10684_v2, %v10688_v50  ;;  %v10716_v11 = vrot.slane %v10714_v5, 4  ;;  %v10694_v16 = vrot.slane %v10693_v14, 4  ;;  %v10724_v18 = vshrl.u32 %v19974_v55, 16  ;;  %v19980_v50 = vld [vmem:[%s25062_s4 + $0x234] sm:$0xf] }
 0x1a2   : > { %22923 = vmatprep.mubr.msk.bf16.mxu0 %vm2122_vm1, %v20108_v13  ;;  %v10707_v17 = vor.u32 %v10706_v6, %v10703_v21  ;;  %v18894_v22 = vcombine.low %v24745_v19, %v24746_v20  ;;  %22336 = vmatmul.mubr.msk.bf16.gmra.mrb[40].mxu1 %vm2122_vm1, %v18893_v54  ;;  %v10722_v25 = vrot.slane %v10720_v12, 5  ;;  %v10730_v26 = vshll.u32 %v19975_v7, 16  ;;  %v24749_v54 = vld [vmem:[%s25062_s4 + $0x1c0] sm:$0xf]  ;;  %v24750_v55 = vld [vmem:[%s25062_s4 + $0x1c4] sm:$0xf] }
 0x1a3   : > { %v10717_v24 = vor.u32 %v10716_v11, %v10712_v9  ;;  %v10734_v27 = vshrl.u32 %v19975_v7, 16  ;;  %v10699_v28 = vsel %vm25095_vm4, %v10694_v16, %v10698_v62  ;;  %v10726_v30 = vrot.slane %v10724_v18, 4  ;;  %v19982_v3 = vld [vmem:[%s25062_s4 + $0x23c] sm:$0xf]  ;;  %v19983_v6 = vld [vmem:[%s25062_s4 + $0x240] sm:$0xf] }
 0x1a4   : > { %v10708_v29 = vrot.slane %v10707_v17, 4  ;;  %22339 = vmatprep.mubr.msk.bf16.mxu1 %vm2122_vm1, %v18894_v22  ;;  %v10740_v31 = vshll.u32 %v19976_v15, 16  ;;  %v20109_v58 = vcombine.low %v10689_v8, %v10699_v28  ;;  %v10732_v4 = vrot.slane %v10730_v26, 5  ;;  %v24751_v17 = vld [vmem:[%s25062_s4 + $0x1c8] sm:$0xf] }
 0x1a5   : > { %v10718_v33 = vrot.slane %v10717_v24, 4  ;;  %v10736_v34 = vrot.slane %v10734_v27, 4  ;;  %v10727_v36 = vor.u32 %v10726_v30, %v10722_v25  ;;  %v10744_v38 = vshrl.u32 %v19976_v15, 16  ;;  %v24752_v18 = vld [vmem:[%s25062_s4 + $0x1cc] sm:$0xf] }
 0x1a6   : > { %v10713_v35 = vsel %vm25095_vm4, %v10708_v29, %v10712_v9  ;;  %v10742_v10 = vrot.slane %v10740_v31, 5  ;;  %22924 = vmatmul.mubr.msk.bf16.gmra.mrb[44].mxu0 %vm2122_vm1, %v20109_v58  ;;  %v18895_v43 = vcombine.low %v24747_v41, %v24748_v42  ;;  %v10750_v44 = vshll.u32 %v19977_v23, 16  ;;  %v19984_v29 = vld [vmem:[%s25062_s4 + $0x244] sm:$0xf]  ;;  %v24754_v41 = vld [vmem:[%s25062_s4 + $0x1d4] sm:$0xf] }
 0x1a7   : > { %v10723_v39 = vsel %vm25095_vm4, %v10718_v33, %v10722_v25  ;;  %v10737_v40 = vor.u32 %v10736_v34, %v10732_v4  ;;  %v10728_v47 = vrot.slane %v10727_v36, 4  ;;  %v10746_v48 = vrot.slane %v10744_v38, 4  ;;  %v19985_v33 = vld [vmem:[%s25062_s4 + $0x248] sm:$0x1] }
 0x1a8   : > { %v20110_v46 = vcombine.low %v10713_v35, %v10723_v39  ;;  %v10754_v49 = vshrl.u32 %v19977_v23, 16  ;;  %v10752_v52 = vrot.slane %v10750_v44, 5  ;;  %v10760_v53 = vshll.u32 %v19978_v32, 16  ;;  %v19987_v44 = vld [vmem:[%s25062_s4 + $0x26c] sm:$0xf] }
 0x1a9   : > { %v10738_v51 = vrot.slane %v10737_v40, 4  ;;  %v18896_v56 = vcombine.low %v24749_v54, %v24750_v55  ;;  %v10733_v59 = vsel %vm25095_vm4, %v10728_v47, %v10732_v4  ;;  %v10747_v60 = vor.u32 %v10746_v48, %v10742_v10  ;;  %v24753_v40 = vld [vmem:[%s25062_s4 + $0x1d0] sm:$0xf] }
 0x1aa   : > { %22927 = vmatprep.mubr.msk.bf16.mxu0 %vm2122_vm1, %v20110_v46  ;;  %v10756_v61 = vrot.slane %v10754_v49, 4  ;;  %v10765_v62 = vshrl.u32 %v19979_v45, 16  ;;  %22340 = vmatmul.mubr.msk.bf16.gmra.mrb[44].mxu1 %vm2122_vm1, %v18895_v43  ;;  %v10762_v0 = vrot.slane %v10760_v53, 5  ;;  %v10768_v1 = vshll.u32 %v19979_v45, 16  ;;  %v24756_v53 = vld [vmem:[%s25062_s4 + $0x1fc] sm:$0xf] }
 0x1ab   : > { %v10743_v63 = vsel %vm25095_vm4, %v10738_v51, %v10742_v10  ;;  %v10774_v2 = vshll.u32 %v19980_v50, 16  ;;  %v10748_v13 = vrot.slane %v10747_v60, 4  ;;  %22343 = vmatprep.mubr.msk.bf16.mxu1 %vm2122_vm1, %v18896_v56  ;;  %v10778_v9 = vshrl.u32 %v19980_v50, 16  ;;  %v19986_v10 = vld [vmem:[%s25062_s4 + $0x268] sm:$0xf] }
 0x1ac   : > { %v20111_v5 = vcombine.low %v10733_v59, %v10743_v63  ;;  %v10757_v14 = vor.u32 %v10756_v61, %v10752_v52  ;;  %v10767_v21 = vrot.slane %v10765_v62, 4  ;;  %v10770_v7 = vrot.slane %v10768_v1, 5  ;;  %v19988_v55 = vld [vmem:[%s25062_s4 + $0x270] sm:$0xf] }
 0x1ad   : > { %v10776_v8 = vrot.slane %v10774_v2, 5  ;;  %v10784_v11 = vshll.u32 %v19981_v57, 16  ;;  %v10753_v12 = vsel %vm25095_vm4, %v10748_v13, %v10752_v52  ;;  %v10788_v16 = vshrl.u32 %v19981_v57, 16  ;;  %v24755_v52 = vld [vmem:[%s25062_s4 + $0x1f8] sm:$0xf] }
 0x1ae   : > { %v10758_v15 = vrot.slane %v10757_v14, 4  ;;  %v18897_v19 = vcombine.low %v24751_v17, %v24752_v18  ;;  %22928 = vmatmul.mubr.msk.bf16.gmra.mrb[48].mxu0 %vm2122_vm1, %v20111_v5  ;;  %v10771_v20 = vor.u32 %v10770_v7, %v10767_v21  ;;  %v10780_v22 = vrot.slane %v10778_v9, 4  ;;  %v19989_v7 = vld [vmem:[%s25062_s4 + $0x274] sm:$0xf] }
 0x1af   : > { %v10786_v23 = vrot.slane %v10784_v11, 5  ;;  %v10794_v24 = vshll.u32 %v19982_v3, 16  ;;  %v10790_v26 = vrot.slane %v10788_v16, 4  ;;  %v10798_v27 = vshrl.u32 %v19982_v3, 16 }
 0x1b0   : > { %v10763_v25 = vsel %vm25095_vm4, %v10758_v15, %v10762_v0  ;;  %v10804_v28 = vshll.u32 %v19983_v6, 16  ;;  %v10772_v31 = vrot.slane %v10771_v20, 4  ;;  %v10781_v32 = vor.u32 %v10780_v22, %v10776_v8  ;;  %v19990_v15 = vld [vmem:[%s25062_s4 + $0x278] sm:$0xf]  ;;  %v24758_v20 = vld [vmem:[%s25062_s4 + $0x204] sm:$0xf] }
 0x1b1   : > { %v20112_v30 = vcombine.low %v10753_v12, %v10763_v25  ;;  %v10796_v58 = vrot.slane %v10794_v24, 5  ;;  %v10791_v4 = vor.u32 %v10790_v26, %v10786_v23  ;;  %v10800_v34 = vrot.slane %v10798_v27, 4 }
 0x1b2   : > { %v10806_v35 = vrot.slane %v10804_v28, 5  ;;  %v10808_v36 = vshrl.u32 %v19983_v6, 16  ;;  %v10777_v38 = vsel %vm25095_vm4, %v10772_v31, %v10776_v8  ;;  %v10782_v39 = vrot.slane %v10781_v32, 4  ;;  %22344 = vmatmul.mubr.msk.bf16.gmra.mrb[48].mxu1 %vm2122_vm1, %v18897_v19  ;;  %v24757_v19 = vld [vmem:[%s25062_s4 + $0x200] sm:$0xf] }
 0x1b3   : > { %22931 = vmatprep.mubr.msk.bf16.mxu0 %vm2122_vm1, %v20112_v30  ;;  %v18898_v42 = vcombine.low %v24753_v40, %v24754_v41  ;;  %v10814_v43 = vshll.u32 %v19984_v29, 16  ;;  %v10792_v45 = vrot.slane %v10791_v4, 4  ;;  %v10801_v46 = vor.u32 %v10800_v34, %v10796_v58  ;;  %v19992_v32 = vld [vmem:[%s25062_s4 + $0x280] sm:$0x1]  ;;  %v24759_v41 = vld [vmem:[%s25062_s4 + $0x208] sm:$0xf] }
 0x1b4   : > { %v10810_v47 = vrot.slane %v10808_v36, 4  ;;  %v10818_v48 = vshrl.u32 %v19984_v29, 16  ;;  %v10787_v49 = vsel %vm25095_vm4, %v10782_v39, %v10786_v23  ;;  %v10824_v51 = vshll.u32 %v19985_v33, 16  ;;  %v19991_v23 = vld [vmem:[%s25062_s4 + $0x27c] sm:$0xf] }
 0x1b5   : > { %22347 = vmatprep.mubr.msk.bf16.mxu1 %vm2122_vm1, %v18898_v42  ;;  %v10816_v50 = vrot.slane %v10814_v43, 5  ;;  %v18899_v54 = vcombine.low %v24755_v52, %v24756_v53  ;;  %v20113_v56 = vcombine.low %v10777_v38, %v10787_v49  ;;  %v10797_v57 = vsel %vm25095_vm4, %v10792_v45, %v10796_v58  ;;  %v24760_v42 = vld [vmem:[%s25062_s4 + $0x20c] sm:$0xf]  ;;  %v19993_v45 = vld [vmem:[%s25062_s4 + $0x2a0] sm:$0xf] }
 0x1b6   : > { %v10802_v59 = vrot.slane %v10801_v46, 4  ;;  %v10811_v60 = vor.u32 %v10810_v47, %v10806_v35  ;;  %v10820_v61 = vrot.slane %v10818_v48, 4  ;;  %v10826_v62 = vrot.slane %v10824_v51, 5 }
 0x1b7   : > { %v10829_v63 = vshrl.u32 %v19986_v10, 16  ;;  %v10832_v0 = vshll.u32 %v19986_v10, 16  ;;  %22932 = vmatmul.mubr.msk.bf16.gmra.mrb[52].mxu0 %vm2122_vm1, %v20113_v56  ;;  %v10838_v3 = vshll.u32 %v19987_v44, 16  ;;  %v10842_v5 = vshrl.u32 %v19987_v44, 16 }
 0x1b8   : > { %v10807_v1 = vsel %vm25095_vm4, %v10802_v59, %v10806_v35  ;;  %v10812_v2 = vrot.slane %v10811_v60, 4  ;;  %v10821_v14 = vor.u32 %v10820_v61, %v10816_v50  ;;  %v10848_v12 = vshll.u32 %v19988_v55, 16 }
 0x1b9   : > { %v20114_v13 = vcombine.low %v10797_v57, %v10807_v1  ;;  %v10831_v21 = vrot.slane %v10829_v63, 4  ;;  %v10834_v6 = vrot.slane %v10832_v0, 5  ;;  %v10840_v9 = vrot.slane %v10838_v3, 5  ;;  %v19995_v57 = vld [vmem:[%s25062_s4 + $0x2a8] sm:$0xf] }
 0x1ba   : > { %v10817_v8 = vsel %vm25095_vm4, %v10812_v2, %v10816_v50  ;;  %v10844_v11 = vrot.slane %v10842_v5, 4  ;;  %v10822_v16 = vrot.slane %v10821_v14, 4  ;;  %22348 = vmatmul.mubr.msk.bf16.gmra.mrb[52].mxu1 %vm2122_vm1, %v18899_v54  ;;  %v10852_v18 = vshrl.u32 %v19988_v55, 16  ;;  %v19994_v50 = vld [vmem:[%s25062_s4 + $0x2a4] sm:$0xf] }
 0x1bb   : > { %22935 = vmatprep.mubr.msk.bf16.mxu0 %vm2122_vm1, %v20114_v13  ;;  %v10835_v17 = vor.u32 %v10834_v6, %v10831_v21  ;;  %v18900_v22 = vcombine.low %v24757_v19, %v24758_v20  ;;  %v10850_v25 = vrot.slane %v10848_v12, 5  ;;  %v10858_v26 = vshll.u32 %v19989_v7, 16  ;;  %v24761_v54 = vld [vmem:[%s25062_s4 + $0x230] sm:$0xf]  ;;  %v24762_v55 = vld [vmem:[%s25062_s4 + $0x234] sm:$0xf] }
 0x1bc   : > { %v10845_v24 = vor.u32 %v10844_v11, %v10840_v9  ;;  %v10862_v27 = vshrl.u32 %v19989_v7, 16  ;;  %v10827_v28 = vsel %vm25095_vm4, %v10822_v16, %v10826_v62  ;;  %v10854_v30 = vrot.slane %v10852_v18, 4  ;;  %v19996_v3 = vld [vmem:[%s25062_s4 + $0x2ac] sm:$0xf]  ;;  %v19997_v6 = vld [vmem:[%s25062_s4 + $0x2b0] sm:$0xf] }
 0x1bd   : > { %v10836_v29 = vrot.slane %v10835_v17, 4  ;;  %22351 = vmatprep.mubr.msk.bf16.mxu1 %vm2122_vm1, %v18900_v22  ;;  %v10868_v31 = vshll.u32 %v19990_v15, 16  ;;  %v20115_v58 = vcombine.low %v10817_v8, %v10827_v28  ;;  %v10860_v4 = vrot.slane %v10858_v26, 5  ;;  %v24763_v17 = vld [vmem:[%s25062_s4 + $0x238] sm:$0xf] }
 0x1be   : > { %v10846_v33 = vrot.slane %v10845_v24, 4  ;;  %v10864_v34 = vrot.slane %v10862_v27, 4  ;;  %v10855_v36 = vor.u32 %v10854_v30, %v10850_v25  ;;  %v10872_v38 = vshrl.u32 %v19990_v15, 16  ;;  %v24764_v18 = vld [vmem:[%s25062_s4 + $0x23c] sm:$0xf] }
 0x1bf   : > { %v10841_v35 = vsel %vm25095_vm4, %v10836_v29, %v10840_v9  ;;  %v10870_v10 = vrot.slane %v10868_v31, 5  ;;  %22936 = vmatmul.mubr.msk.bf16.gmra.mrb[56].mxu0 %vm2122_vm1, %v20115_v58  ;;  %v18901_v43 = vcombine.low %v24759_v41, %v24760_v42  ;;  %v10878_v44 = vshll.u32 %v19991_v23, 16  ;;  %v19998_v29 = vld [vmem:[%s25062_s4 + $0x2b4] sm:$0xf]  ;;  %v24766_v41 = vld [vmem:[%s25062_s4 + $0x244] sm:$0xf] }
 0x1c0   : > { %v10851_v39 = vsel %vm25095_vm4, %v10846_v33, %v10850_v25  ;;  %v10865_v40 = vor.u32 %v10864_v34, %v10860_v4  ;;  %v10856_v47 = vrot.slane %v10855_v36, 4  ;;  %v10874_v48 = vrot.slane %v10872_v38, 4  ;;  %v19999_v33 = vld [vmem:[%s25062_s4 + $0x2b8] sm:$0x1] }
 0x1c1   : > { %v20116_v46 = vcombine.low %v10841_v35, %v10851_v39  ;;  %v10882_v49 = vshrl.u32 %v19991_v23, 16  ;;  %v10880_v52 = vrot.slane %v10878_v44, 5  ;;  %v10888_v53 = vshll.u32 %v19992_v32, 16  ;;  %v20001_v44 = vld [vmem:[%s25062_s4 + $0x2dc] sm:$0xf] }
 0x1c2   : > { %v10866_v51 = vrot.slane %v10865_v40, 4  ;;  %v18902_v56 = vcombine.low %v24761_v54, %v24762_v55  ;;  %v10861_v59 = vsel %vm25095_vm4, %v10856_v47, %v10860_v4  ;;  %22352 = vmatmul.mubr.msk.bf16.gmra.mrb[56].mxu1 %vm2122_vm1, %v18901_v43  ;;  %v10875_v60 = vor.u32 %v10874_v48, %v10870_v10  ;;  %v24765_v40 = vld [vmem:[%s25062_s4 + $0x240] sm:$0xf] }
 0x1c3   : > { %22939 = vmatprep.mubr.msk.bf16.mxu0 %vm2122_vm1, %v20116_v46  ;;  %v10884_v61 = vrot.slane %v10882_v49, 4  ;;  %v10893_v62 = vshrl.u32 %v19993_v45, 16  ;;  %v10890_v0 = vrot.slane %v10888_v53, 5  ;;  %v10896_v1 = vshll.u32 %v19993_v45, 16  ;;  %v24768_v53 = vld [vmem:[%s25062_s4 + $0x26c] sm:$0xf] }
 0x1c4   : > { %v10871_v63 = vsel %vm25095_vm4, %v10866_v51, %v10870_v10  ;;  %22355 = vmatprep.mubr.msk.bf16.mxu1 %vm2122_vm1, %v18902_v56  ;;  %v10902_v2 = vshll.u32 %v19994_v50, 16  ;;  %v10876_v13 = vrot.slane %v10875_v60, 4  ;;  %v10906_v9 = vshrl.u32 %v19994_v50, 16  ;;  %v20000_v10 = vld [vmem:[%s25062_s4 + $0x2d8] sm:$0xf] }
 0x1c5   : > { %v20117_v5 = vcombine.low %v10861_v59, %v10871_v63  ;;  %v10885_v14 = vor.u32 %v10884_v61, %v10880_v52  ;;  %v10895_v21 = vrot.slane %v10893_v62, 4  ;;  %v10898_v7 = vrot.slane %v10896_v1, 5  ;;  %v20002_v55 = vld [vmem:[%s25062_s4 + $0x2e0] sm:$0xf] }
 0x1c6   : > { %v10904_v8 = vrot.slane %v10902_v2, 5  ;;  %v10912_v11 = vshll.u32 %v19995_v57, 16  ;;  %v10881_v12 = vsel %vm25095_vm4, %v10876_v13, %v10880_v52  ;;  %v10916_v16 = vshrl.u32 %v19995_v57, 16  ;;  %v24767_v52 = vld [vmem:[%s25062_s4 + $0x268] sm:$0xf] }
 0x1c7   : > { %v10886_v15 = vrot.slane %v10885_v14, 4  ;;  %v18903_v19 = vcombine.low %v24763_v17, %v24764_v18  ;;  %22940 = vmatmul.mubr.msk.bf16.gmra.mrb[60].mxu0 %vm2122_vm1, %v20117_v5  ;;  %v10899_v20 = vor.u32 %v10898_v7, %v10895_v21  ;;  %v10908_v22 = vrot.slane %v10906_v9, 4  ;;  %v20003_v7 = vld [vmem:[%s25062_s4 + $0x2e4] sm:$0xf] }
 0x1c8   : > { %v10914_v23 = vrot.slane %v10912_v11, 5  ;;  %v10922_v24 = vshll.u32 %v19996_v3, 16  ;;  %v10918_v26 = vrot.slane %v10916_v16, 4  ;;  %v10926_v27 = vshrl.u32 %v19996_v3, 16 }
 0x1c9   : > { %v10891_v25 = vsel %vm25095_vm4, %v10886_v15, %v10890_v0  ;;  %v10932_v28 = vshll.u32 %v19997_v6, 16  ;;  %v10900_v31 = vrot.slane %v10899_v20, 4  ;;  %v10909_v32 = vor.u32 %v10908_v22, %v10904_v8  ;;  %v20004_v15 = vld [vmem:[%s25062_s4 + $0x2e8] sm:$0xf]  ;;  %v24770_v20 = vld [vmem:[%s25062_s4 + $0x274] sm:$0xf] }
 0x1ca   : > { %v20118_v30 = vcombine.low %v10881_v12, %v10891_v25  ;;  %v10924_v58 = vrot.slane %v10922_v24, 5  ;;  %22356 = vmatmul.mubr.msk.bf16.gmra.mrb[60].mxu1 %vm2122_vm1, %v18903_v19  ;;  %v10919_v4 = vor.u32 %v10918_v26, %v10914_v23  ;;  %v10928_v34 = vrot.slane %v10926_v27, 4  ;;  %v24769_v19 = vld [vmem:[%s25062_s4 + $0x270] sm:$0xf] }
 0x1cb   : > { %v10934_v35 = vrot.slane %v10932_v28, 5  ;;  %v10936_v36 = vshrl.u32 %v19997_v6, 16  ;;  %v10905_v38 = vsel %vm25095_vm4, %v10900_v31, %v10904_v8  ;;  %v10910_v39 = vrot.slane %v10909_v32, 4  ;;  %v20006_v32 = vld [vmem:[%s25062_s4 + $0x2f0] sm:$0x1] }
 0x1cc   : > { %22943 = vmatprep.mubr.msk.bf16.mxu0 %vm2122_vm1, %v20118_v30  ;;  %v18904_v42 = vcombine.low %v24765_v40, %v24766_v41  ;;  %v10942_v43 = vshll.u32 %v19998_v29, 16  ;;  %v10920_v45 = vrot.slane %v10919_v4, 4  ;;  %v10929_v46 = vor.u32 %v10928_v34, %v10924_v58  ;;  %v24771_v41 = vld [vmem:[%s25062_s4 + $0x278] sm:$0xf] }
 0x1cd   : > { %v10938_v47 = vrot.slane %v10936_v36, 4  ;;  %v10946_v48 = vshrl.u32 %v19998_v29, 16  ;;  %v10915_v49 = vsel %vm25095_vm4, %v10910_v39, %v10914_v23  ;;  %v10952_v51 = vshll.u32 %v19999_v33, 16  ;;  %v20005_v23 = vld [vmem:[%s25062_s4 + $0x2ec] sm:$0xf] }
 0x1ce   : > { %22359 = vmatprep.mubr.msk.bf16.mxu1 %vm2122_vm1, %v18904_v42  ;;  %v10944_v50 = vrot.slane %v10942_v43, 5  ;;  %v18905_v54 = vcombine.low %v24767_v52, %v24768_v53  ;;  %v20119_v56 = vcombine.low %v10905_v38, %v10915_v49  ;;  %v10925_v57 = vsel %vm25095_vm4, %v10920_v45, %v10924_v58  ;;  %v24772_v42 = vld [vmem:[%s25062_s4 + $0x27c] sm:$0xf]  ;;  %v20007_v45 = vld [vmem:[%s25062_s4 + $0x310] sm:$0xf] }
 0x1cf   : > { %v10930_v59 = vrot.slane %v10929_v46, 4  ;;  %v10939_v60 = vor.u32 %v10938_v47, %v10934_v35  ;;  %v10948_v61 = vrot.slane %v10946_v48, 4  ;;  %v10954_v62 = vrot.slane %v10952_v51, 5 }
 0x1d0   : > { %v10957_v63 = vshrl.u32 %v20000_v10, 16  ;;  %v10960_v0 = vshll.u32 %v20000_v10, 16  ;;  %22944 = vmatmul.mubr.msk.bf16.gmra.mrb[64].mxu0 %vm2122_vm1, %v20119_v56  ;;  %v10966_v3 = vshll.u32 %v20001_v44, 16  ;;  %v10970_v5 = vshrl.u32 %v20001_v44, 16 }
 0x1d1   : > { %v10935_v1 = vsel %vm25095_vm4, %v10930_v59, %v10934_v35  ;;  %v10940_v2 = vrot.slane %v10939_v60, 4  ;;  %v10949_v14 = vor.u32 %v10948_v61, %v10944_v50  ;;  %v10976_v12 = vshll.u32 %v20002_v55, 16 }
 0x1d2   : > { %v20120_v13 = vcombine.low %v10925_v57, %v10935_v1  ;;  %v10959_v21 = vrot.slane %v10957_v63, 4  ;;  %v10962_v6 = vrot.slane %v10960_v0, 5  ;;  %22360 = vmatmul.mubr.msk.bf16.gmra.mrb[64].mxu1 %vm2122_vm1, %v18905_v54  ;;  %v10968_v9 = vrot.slane %v10966_v3, 5  ;;  %v24773_v54 = vld [vmem:[%s25062_s4 + $0x2a0] sm:$0xf] }
 0x1d3   : > { %v10945_v8 = vsel %vm25095_vm4, %v10940_v2, %v10944_v50  ;;  %v10972_v11 = vrot.slane %v10970_v5, 4  ;;  %v10950_v16 = vrot.slane %v10949_v14, 4  ;;  %v10980_v18 = vshrl.u32 %v20002_v55, 16  ;;  %v20008_v50 = vld [vmem:[%s25062_s4 + $0x314] sm:$0xf] }
 0x1d4   : > { %22947 = vmatprep.mubr.msk.bf16.mxu0 %vm2122_vm1, %v20120_v13  ;;  %v10963_v17 = vor.u32 %v10962_v6, %v10959_v21  ;;  %v18906_v22 = vcombine.low %v24769_v19, %v24770_v20  ;;  %v10978_v25 = vrot.slane %v10976_v12, 5  ;;  %v10986_v26 = vshll.u32 %v20003_v7, 16  ;;  %v24774_v55 = vld [vmem:[%s25062_s4 + $0x2a4] sm:$0xf]  ;;  %v20009_v57 = vld [vmem:[%s25062_s4 + $0x318] sm:$0xf] }
 0x1d5   : > { %v10973_v24 = vor.u32 %v10972_v11, %v10968_v9  ;;  %v10990_v27 = vshrl.u32 %v20003_v7, 16  ;;  %v10955_v28 = vsel %vm25095_vm4, %v10950_v16, %v10954_v62  ;;  %v10982_v30 = vrot.slane %v10980_v18, 4  ;;  %v20010_v3 = vld [vmem:[%s25062_s4 + $0x31c] sm:$0xf]  ;;  %v20011_v6 = vld [vmem:[%s25062_s4 + $0x320] sm:$0xf] }
 0x1d6   : > { %v10964_v29 = vrot.slane %v10963_v17, 4  ;;  %22363 = vmatprep.mubr.msk.bf16.mxu1 %vm2122_vm1, %v18906_v22  ;;  %v10996_v31 = vshll.u32 %v20004_v15, 16  ;;  %v20121_v58 = vcombine.low %v10945_v8, %v10955_v28  ;;  %v10988_v4 = vrot.slane %v10986_v26, 5  ;;  %v24775_v17 = vld [vmem:[%s25062_s4 + $0x2a8] sm:$0xf] }
 0x1d7   : > { %v10974_v33 = vrot.slane %v10973_v24, 4  ;;  %v10992_v34 = vrot.slane %v10990_v27, 4  ;;  %v10983_v36 = vor.u32 %v10982_v30, %v10978_v25  ;;  %v11000_v38 = vshrl.u32 %v20004_v15, 16  ;;  %v24776_v18 = vld [vmem:[%s25062_s4 + $0x2ac] sm:$0xf] }
 0x1d8   : > { %v10969_v35 = vsel %vm25095_vm4, %v10964_v29, %v10968_v9  ;;  %v10998_v10 = vrot.slane %v10996_v31, 5  ;;  %22948 = vmatmul.mubr.msk.bf16.gmra.mrb[68].mxu0 %vm2122_vm1, %v20121_v58  ;;  %v18907_v43 = vcombine.low %v24771_v41, %v24772_v42  ;;  %v11006_v44 = vshll.u32 %v20005_v23, 16  ;;  %v20012_v29 = vld [vmem:[%s25062_s4 + $0x324] sm:$0xf]  ;;  %v24778_v41 = vld [vmem:[%s25062_s4 + $0x2b4] sm:$0xf] }
 0x1d9   : > { %v10979_v39 = vsel %vm25095_vm4, %v10974_v33, %v10978_v25  ;;  %v10993_v40 = vor.u32 %v10992_v34, %v10988_v4  ;;  %v10984_v47 = vrot.slane %v10983_v36, 4  ;;  %v11002_v48 = vrot.slane %v11000_v38, 4  ;;  %v20013_v33 = vld [vmem:[%s25062_s4 + $0x328] sm:$0x1] }
 0x1da   : > { %v20122_v46 = vcombine.low %v10969_v35, %v10979_v39  ;;  %v11010_v49 = vshrl.u32 %v20005_v23, 16  ;;  %22364 = vmatmul.mubr.msk.bf16.gmra.mrb[68].mxu1 %vm2122_vm1, %v18907_v43  ;;  %v11008_v52 = vrot.slane %v11006_v44, 5  ;;  %v11016_v53 = vshll.u32 %v20006_v32, 16  ;;  %v20015_v44 = vld [vmem:[%s25062_s4 + $0x34c] sm:$0xf] }
 0x1db   : > { %v10994_v51 = vrot.slane %v10993_v40, 4  ;;  %v18908_v56 = vcombine.low %v24773_v54, %v24774_v55  ;;  %v10989_v59 = vsel %vm25095_vm4, %v10984_v47, %v10988_v4  ;;  %v11003_v60 = vor.u32 %v11002_v48, %v10998_v10  ;;  %v24777_v40 = vld [vmem:[%s25062_s4 + $0x2b0] sm:$0xf] }
 0x1dc   : > { %22951 = vmatprep.mubr.msk.bf16.mxu0 %vm2122_vm1, %v20122_v46  ;;  %v11012_v61 = vrot.slane %v11010_v49, 4  ;;  %v11021_v62 = vshrl.u32 %v20007_v45, 16  ;;  %v11018_v0 = vrot.slane %v11016_v53, 5  ;;  %v11024_v1 = vshll.u32 %v20007_v45, 16  ;;  %v24780_v53 = vld [vmem:[%s25062_s4 + $0x2dc] sm:$0xf] }
 0x1dd   : > { %v10999_v63 = vsel %vm25095_vm4, %v10994_v51, %v10998_v10  ;;  %22367 = vmatprep.mubr.msk.bf16.mxu1 %vm2122_vm1, %v18908_v56  ;;  %v11030_v2 = vshll.u32 %v20008_v50, 16  ;;  %v11004_v13 = vrot.slane %v11003_v60, 4  ;;  %v11034_v9 = vshrl.u32 %v20008_v50, 16  ;;  %v20014_v10 = vld [vmem:[%s25062_s4 + $0x348] sm:$0xf] }
 0x1de   : > { %v20123_v5 = vcombine.low %v10989_v59, %v10999_v63  ;;  %v11013_v14 = vor.u32 %v11012_v61, %v11008_v52  ;;  %v11023_v21 = vrot.slane %v11021_v62, 4  ;;  %v11026_v7 = vrot.slane %v11024_v1, 5  ;;  %v20016_v55 = vld [vmem:[%s25062_s4 + $0x350] sm:$0xf]  ;;  %v20017_v1 = vld [vmem:[%s25062_s4 + $0x354] sm:$0xf] }
 0x1df   : > { %v11032_v8 = vrot.slane %v11030_v2, 5  ;;  %v11040_v11 = vshll.u32 %v20009_v57, 16  ;;  %v11009_v12 = vsel %vm25095_vm4, %v11004_v13, %v11008_v52  ;;  %v11044_v16 = vshrl.u32 %v20009_v57, 16  ;;  %v24779_v52 = vld [vmem:[%s25062_s4 + $0x2d8] sm:$0xf] }
 0x1e0   : > { %v11014_v15 = vrot.slane %v11013_v14, 4  ;;  %v18909_v19 = vcombine.low %v24775_v17, %v24776_v18  ;;  %22952 = vmatmul.mubr.msk.bf16.gmra.mrb[72].mxu0 %vm2122_vm1, %v20123_v5  ;;  %v11027_v20 = vor.u32 %v11026_v7, %v11023_v21  ;;  %v11036_v22 = vrot.slane %v11034_v9, 4  ;;  %v20018_v14 = vld [vmem:[%s25062_s4 + $0x358] sm:$0xf] }
 0x1e1   : > { %v11042_v23 = vrot.slane %v11040_v11, 5  ;;  %v11050_v24 = vshll.u32 %v20010_v3, 16  ;;  %v11046_v26 = vrot.slane %v11044_v16, 4  ;;  %v11054_v27 = vshrl.u32 %v20010_v3, 16 }
 0x1e2   : > { %v11019_v25 = vsel %vm25095_vm4, %v11014_v15, %v11018_v0  ;;  %v11060_v28 = vshll.u32 %v20011_v6, 16  ;;  %v11028_v31 = vrot.slane %v11027_v20, 4  ;;  %v11037_v32 = vor.u32 %v11036_v22, %v11032_v8  ;;  %22368 = vmatmul.mubr.msk.bf16.gmra.mrb[72].mxu1 %vm2122_vm1, %v18909_v19  ;;  %v24781_v19 = vld [vmem:[%s25062_s4 + $0x2e0] sm:$0xf]  ;;  %v24782_v20 = vld [vmem:[%s25062_s4 + $0x2e4] sm:$0xf] }
 0x1e3   : > { %v20124_v30 = vcombine.low %v11009_v12, %v11019_v25  ;;  %v11052_v58 = vrot.slane %v11050_v24, 5  ;;  %v11047_v4 = vor.u32 %v11046_v26, %v11042_v23  ;;  %v11056_v34 = vrot.slane %v11054_v27, 4 }
 0x1e4   : > { %v11062_v35 = vrot.slane %v11060_v28, 5  ;;  %v11064_v36 = vshrl.u32 %v20011_v6, 16  ;;  %v11033_v38 = vsel %vm25095_vm4, %v11028_v31, %v11032_v8  ;;  %v11038_v39 = vrot.slane %v11037_v32, 4  ;;  %v20020_v32 = vld [vmem:[%s25062_s4 + $0x360] sm:$0x1] }
 0x1e5   : > { %22955 = vmatprep.mubr.msk.bf16.mxu0 %vm2122_vm1, %v20124_v30  ;;  %v18910_v42 = vcombine.low %v24777_v40, %v24778_v41  ;;  %v11070_v43 = vshll.u32 %v20012_v29, 16  ;;  %v11048_v45 = vrot.slane %v11047_v4, 4  ;;  %v11057_v46 = vor.u32 %v11056_v34, %v11052_v58  ;;  %v20022_v40 = vld [vmem:[%s25062_s4 + $0x384] sm:$0xf] }
 0x1e6   : > { %v11066_v47 = vrot.slane %v11064_v36, 4  ;;  %v11074_v48 = vshrl.u32 %v20012_v29, 16  ;;  %v11043_v49 = vsel %vm25095_vm4, %v11038_v39, %v11042_v23  ;;  %v11080_v51 = vshll.u32 %v20013_v33, 16  ;;  %v20019_v23 = vld [vmem:[%s25062_s4 + $0x35c] sm:$0xf] }
 0x1e7   : > { %22371 = vmatprep.mubr.msk.bf16.mxu1 %vm2122_vm1, %v18910_v42  ;;  %v11072_v50 = vrot.slane %v11070_v43, 5  ;;  %v18911_v54 = vcombine.low %v24779_v52, %v24780_v53  ;;  %v20125_v56 = vcombine.low %v11033_v38, %v11043_v49  ;;  %v11053_v57 = vsel %vm25095_vm4, %v11048_v45, %v11052_v58  ;;  %v24783_v43 = vld [vmem:[%s25062_s4 + $0x2e8] sm:$0xf] }
 0x1e8   : > { %v11058_v59 = vrot.slane %v11057_v46, 4  ;;  %v11067_v60 = vor.u32 %v11066_v47, %v11062_v35  ;;  %v11076_v61 = vrot.slane %v11074_v48, 4  ;;  %v11082_v62 = vrot.slane %v11080_v51, 5  ;;  %v20023_v51 = vld [vmem:[%s25062_s4 + $0x388] sm:$0xf] }
 0x1e9   : > { %v11085_v63 = vshrl.u32 %v20014_v10, 16  ;;  %v11088_v0 = vshll.u32 %v20014_v10, 16  ;;  %22956 = vmatmul.mubr.msk.bf16.gmra.mrb[76].mxu0 %vm2122_vm1, %v20125_v56  ;;  %v11094_v5 = vshll.u32 %v20015_v44, 16  ;;  %v11098_v13 = vshrl.u32 %v20015_v44, 16  ;;  %v24784_v44 = vld [vmem:[%s25062_s4 + $0x2ec] sm:$0xf] }
 0x1ea   : > { %v11063_v2 = vsel %vm25095_vm4, %v11058_v59, %v11062_v35  ;;  %v11068_v3 = vrot.slane %v11067_v60, 4  ;;  %v11077_v6 = vor.u32 %v11076_v61, %v11072_v50  ;;  %22372 = vmatmul.mubr.msk.bf16.gmra.mrb[76].mxu1 %vm2122_vm1, %v18911_v54  ;;  %v11104_v15 = vshll.u32 %v20016_v55, 16  ;;  %v20021_v35 = vld [vmem:[%s25062_s4 + $0x380] sm:$0xf]  ;;  %v24786_v56 = vld [vmem:[%s25062_s4 + $0x314] sm:$0xf] }
 0x1eb   : > { %v20126_v21 = vcombine.low %v11053_v57, %v11063_v2  ;;  %v11087_v7 = vrot.slane %v11085_v63, 4  ;;  %v11090_v8 = vrot.slane %v11088_v0, 5  ;;  %v11096_v11 = vrot.slane %v11094_v5, 5 }
 0x1ec   : > { %v11073_v9 = vsel %vm25095_vm4, %v11068_v3, %v11072_v50  ;;  %v11100_v12 = vrot.slane %v11098_v13, 4  ;;  %v11078_v16 = vrot.slane %v11077_v6, 4  ;;  %v11108_v18 = vshrl.u32 %v20016_v55, 16  ;;  %v24785_v55 = vld [vmem:[%s25062_s4 + $0x310] sm:$0xf] }
 0x1ed   : > { %22959 = vmatprep.mubr.msk.bf16.mxu0 %vm2122_vm1, %v20126_v21  ;;  %v11091_v17 = vor.u32 %v11090_v8, %v11087_v7  ;;  %v18912_v22 = vcombine.low %v24781_v19, %v24782_v20  ;;  %v11106_v25 = vrot.slane %v11104_v15, 5  ;;  %v11114_v26 = vshll.u32 %v20017_v1, 16  ;;  %v20024_v21 = vld [vmem:[%s25062_s4 + $0x38c] sm:$0xf]  ;;  %v20026_v20 = vld [vmem:[%s25062_s4 + $0x394] sm:$0xf] }
 0x1ee   : > { %v11101_v24 = vor.u32 %v11100_v12, %v11096_v11  ;;  %v11118_v27 = vshrl.u32 %v20017_v1, 16  ;;  %v11083_v28 = vsel %vm25095_vm4, %v11078_v16, %v11082_v62  ;;  %v11110_v30 = vrot.slane %v11108_v18, 4  ;;  %v24788_v18 = vld [vmem:[%s25062_s4 + $0x31c] sm:$0xf] }
 0x1ef   : > { %v11092_v29 = vrot.slane %v11091_v17, 4  ;;  %22375 = vmatprep.mubr.msk.bf16.mxu1 %vm2122_vm1, %v18912_v22  ;;  %v11124_v31 = vshll.u32 %v20018_v14, 16  ;;  %v20127_v58 = vcombine.low %v11073_v9, %v11083_v28  ;;  %v11116_v4 = vrot.slane %v11114_v26, 5  ;;  %v24787_v17 = vld [vmem:[%s25062_s4 + $0x318] sm:$0xf] }
 0x1f0   : > { %v11102_v33 = vrot.slane %v11101_v24, 4  ;;  %v11120_v34 = vrot.slane %v11118_v27, 4  ;;  %v11111_v10 = vor.u32 %v11110_v30, %v11106_v25  ;;  %v11128_v39 = vshrl.u32 %v20018_v14, 16  ;;  %v24561_v22 = vld [vmem:[%s29171_s1 + $0x18] sm:$0x1f]  }
 0x1f1   : > { %v11097_v36 = vsel %vm25095_vm4, %v11092_v29, %v11096_v11  ;;  %v11126_v38 = vrot.slane %v11124_v31, 5  ;;  %22960 = vmatmul.mubr.msk.bf16.gmra.mrb[80].mxu0 %vm2122_vm1, %v20127_v58  ;;  %v18913_v45 = vcombine.low %v24783_v43, %v24784_v44  ;;  %v11134_v46 = vshll.u32 %v20019_v23, 16  ;;  %v20025_v11 = vld [vmem:[%s25062_s4 + $0x390] sm:$0xf]  ;;  %v20027_v31 = vld [vmem:[%s25062_s4 + $0x398] sm:$0x1]  ;;  %24326 = vmatprep.subr.msk.bf16.mxu1 %vm2339_vm0, %v24561_v22 }
 0x1f2   : > { %v11107_v41 = vsel %vm25095_vm4, %v11102_v33, %v11106_v25  ;;  %v11121_v42 = vor.u32 %v11120_v34, %v11116_v4  ;;  %v11112_v48 = vrot.slane %v11111_v10, 4  ;;  %v11130_v49 = vrot.slane %v11128_v39, 4  ;;  %v24793_v22 = vld [vmem:[%s25062_s4 + $0x350] sm:$0xf] }
 0x1f3   : > { %v20128_v47 = vcombine.low %v11097_v36, %v11107_v41  ;;  %v11138_v50 = vshrl.u32 %v20019_v23, 16  ;;  %22376 = vmatmul.mubr.msk.bf16.gmra.mrb[80].mxu1 %vm2122_vm1, %v18913_v45  ;;  %v11136_v53 = vrot.slane %v11134_v46, 5  ;;  %v11144_v54 = vshll.u32 %v20020_v32, 16  ;;  %v24789_v41 = vld [vmem:[%s25062_s4 + $0x320] sm:$0xf] }
 0x1f4   : > { %v11122_v52 = vrot.slane %v11121_v42, 4  ;;  %v18914_v57 = vcombine.low %v24785_v55, %v24786_v56  ;;  %v11117_v59 = vsel %vm25095_vm4, %v11112_v48, %v11116_v4  ;;  %v11131_v60 = vor.u32 %v11130_v49, %v11126_v38  ;;  %v24790_v42 = vld [vmem:[%s25062_s4 + $0x324] sm:$0xf]  ;;  %v24563_v49 = vld [vmem:[%s29171_s1 + $0x38] sm:$0x1f]  }
 0x1f5   : > { %22963 = vmatprep.mubr.msk.bf16.mxu0 %vm2122_vm1, %v20128_v47  ;;  %v11140_v61 = vrot.slane %v11138_v50, 4  ;;  %v11149_v62 = vshrl.u32 %v20021_v35, 16  ;;  %v11146_v0 = vrot.slane %v11144_v54, 5  ;;  %v11152_v1 = vshll.u32 %v20021_v35, 16  ;;  %v24792_v54 = vld [vmem:[%s25062_s4 + $0x34c] sm:$0xf]  ;;  %24330 = vmatprep.subr.msk.bf16.mxu0 %vm2339_vm0, %v24563_v49 }
 0x1f6   : > { %v11127_v63 = vsel %vm25095_vm4, %v11122_v52, %v11126_v38  ;;  %22379 = vmatprep.mubr.msk.bf16.mxu1 %vm2122_vm1, %v18914_v57  ;;  %v11158_v2 = vshll.u32 %v20022_v40, 16  ;;  %v11132_v5 = vrot.slane %v11131_v60, 4  ;;  %v11162_v8 = vshrl.u32 %v20022_v40, 16  ;;  %v20028_v38 = vld [vmem:[%s25062_s4 + $0x3b8] sm:$0xf] }
 0x1f7   : > { %v20129_v3 = vcombine.low %v11117_v59, %v11127_v63  ;;  %v11141_v13 = vor.u32 %v11140_v61, %v11136_v53  ;;  %v11151_v14 = vrot.slane %v11149_v62, 4  ;;  %v11154_v6 = vrot.slane %v11152_v1, 5  ;;  %v20029_v56 = vld [vmem:[%s25062_s4 + $0x3bc] sm:$0xf]  ;;  %v20030_v57 = vld [vmem:[%s25062_s4 + $0x3c0] sm:$0xf] }
 0x1f8   : > { %v11160_v7 = vrot.slane %v11158_v2, 5  ;;  %v11168_v9 = vshll.u32 %v20023_v51, 16  ;;  %v11137_v12 = vsel %vm25095_vm4, %v11132_v5, %v11136_v53  ;;  %v11172_v16 = vshrl.u32 %v20023_v51, 16  ;;  %v24791_v53 = vld [vmem:[%s25062_s4 + $0x348] sm:$0xf] }
 0x1f9   : > { %v11142_v15 = vrot.slane %v11141_v13, 4  ;;  %v18915_v19 = vcombine.low %v24787_v17, %v24788_v18  ;;  %22964 = vmatmul.mubr.msk.bf16.gmra.mrb[84].mxu0 %vm2122_vm1, %v20129_v3  ;;  %v11155_v23 = vor.u32 %v11154_v6, %v11151_v14  ;;  %v11164_v24 = vrot.slane %v11162_v8, 4  ;;  %v20031_v3 = vld [vmem:[%s25062_s4 + $0x3c4] sm:$0xf]  ;;  %v20032_v6 = vld [vmem:[%s25062_s4 + $0x3c8] sm:$0xf] }
 0x1fa   : > { %v11170_v25 = vrot.slane %v11168_v9, 5  ;;  %v11178_v26 = vshll.u32 %v20024_v21, 16  ;;  %v11174_v28 = vrot.slane %v11172_v16, 4  ;;  %v11182_v29 = vshrl.u32 %v20024_v21, 16 }
 0x1fb   : > { %v11147_v27 = vsel %vm25095_vm4, %v11142_v15, %v11146_v0  ;;  %v11188_v30 = vshll.u32 %v20025_v11, 16  ;;  %v11156_v58 = vrot.slane %v11155_v23, 4  ;;  %v11165_v33 = vor.u32 %v11164_v24, %v11160_v7  ;;  %22380 = vmatmul.mubr.msk.bf16.gmra.mrb[84].mxu1 %vm2122_vm1, %v18915_v19  ;;  %v24794_v23 = vld [vmem:[%s25062_s4 + $0x354] sm:$0xf] }
 0x1fc   : > { %v20130_v32 = vcombine.low %v11137_v12, %v11147_v27  ;;  %v11180_v4 = vrot.slane %v11178_v26, 5  ;;  %v11175_v34 = vor.u32 %v11174_v28, %v11170_v25  ;;  %v11184_v35 = vrot.slane %v11182_v29, 4  ;;  %v20033_v29 = vld [vmem:[%s25062_s4 + $0x3cc] sm:$0xf] }
 0x1fd   : > { %v11190_v36 = vrot.slane %v11188_v30, 5  ;;  %v11192_v10 = vshrl.u32 %v20025_v11, 16  ;;  %v11161_v39 = vsel %vm25095_vm4, %v11156_v58, %v11160_v7  ;;  %v11166_v40 = vrot.slane %v11165_v33, 4  ;;  %v20034_v33 = vld [vmem:[%s25062_s4 + $0x3d0] sm:$0x1] }
 0x1fe   : > { %22967 = vmatprep.mubr.msk.bf16.mxu0 %vm2122_vm1, %v20130_v32  ;;  %v18916_v43 = vcombine.low %v24789_v41, %v24790_v42  ;;  %v11198_v44 = vshll.u32 %v20026_v20, 16  ;;  %v11176_v45 = vrot.slane %v11175_v34, 4  ;;  %v11185_v46 = vor.u32 %v11184_v35, %v11180_v4  ;;  %v20036_v42 = vld [vmem:[%s25062_s4 + $0x3f4] sm:$0xf] }
 0x1ff   : > { %v11194_v47 = vrot.slane %v11192_v10, 4  ;;  %v11202_v48 = vshrl.u32 %v20026_v20, 16  ;;  %v11171_v50 = vsel %vm25095_vm4, %v11166_v40, %v11170_v25  ;;  %v11208_v52 = vshll.u32 %v20027_v31, 16  ;;  %v20035_v10 = vld [vmem:[%s25062_s4 + $0x3f0] sm:$0xf] }
 0x200   : > { %22383 = vmatprep.mubr.msk.bf16.mxu1 %vm2122_vm1, %v18916_v43  ;;  %v11200_v51 = vrot.slane %v11198_v44, 5  ;;  %v18917_v55 = vcombine.low %v24791_v53, %v24792_v54  ;;  %v20131_v59 = vcombine.low %v11161_v39, %v11171_v50  ;;  %v11181_v60 = vsel %vm25095_vm4, %v11176_v45, %v11180_v4  ;;  %v24795_v45 = vld [vmem:[%s25062_s4 + $0x358] sm:$0xf] }
 0x201   : > { %v11186_v61 = vrot.slane %v11185_v46, 4  ;;  %v11195_v62 = vor.u32 %v11194_v47, %v11190_v36  ;;  %v11204_v63 = vrot.slane %v11202_v48, 4  ;;  %v11210_v0 = vrot.slane %v11208_v52, 5  ;;  %v24796_v46 = vld [vmem:[%s25062_s4 + $0x35c] sm:$0xf] }
 0x202   : > { %v11213_v1 = vshrl.u32 %v20028_v38, 16  ;;  %v11216_v2 = vshll.u32 %v20028_v38, 16  ;;  %22968 = vmatmul.mubr.msk.bf16.gmra.mrb[88].mxu0 %vm2122_vm1, %v20131_v59  ;;  %v11222_v14 = vshll.u32 %v20029_v56, 16  ;;  %v11226_v21 = vshrl.u32 %v20029_v56, 16  ;;  %v20037_v53 = vld [vmem:[%s25062_s4 + $0x3f8] sm:$0xf] }
 0x203   : > { %v11191_v5 = vsel %vm25095_vm4, %v11186_v61, %v11190_v36  ;;  %v11196_v13 = vrot.slane %v11195_v62, 4  ;;  %v11205_v8 = vor.u32 %v11204_v63, %v11200_v51  ;;  %22384 = vmatmul.mubr.msk.bf16.gmra.mrb[88].mxu1 %vm2122_vm1, %v18917_v55  ;;  %v11232_v17 = vshll.u32 %v20030_v57, 16  ;;  %v24798_v59 = vld [vmem:[%s25062_s4 + $0x384] sm:$0xf] }
 0x204   : > { %v20132_v7 = vcombine.low %v11181_v60, %v11191_v5  ;;  %v11215_v9 = vrot.slane %v11213_v1, 4  ;;  %v11218_v11 = vrot.slane %v11216_v2, 5  ;;  %v11224_v15 = vrot.slane %v11222_v14, 5 }
 0x205   : > { %v11201_v12 = vsel %vm25095_vm4, %v11196_v13, %v11200_v51  ;;  %v11228_v16 = vrot.slane %v11226_v21, 4  ;;  %v11206_v18 = vrot.slane %v11205_v8, 4  ;;  %v11236_v20 = vshrl.u32 %v20030_v57, 16  ;;  %v24797_v57 = vld [vmem:[%s25062_s4 + $0x380] sm:$0xf] }
 0x206   : > { %22971 = vmatprep.mubr.msk.bf16.mxu0 %vm2122_vm1, %v20132_v7  ;;  %v11219_v19 = vor.u32 %v11218_v11, %v11215_v9  ;;  %v18918_v24 = vcombine.low %v24793_v22, %v24794_v23  ;;  %v11234_v26 = vrot.slane %v11232_v17, 5  ;;  %v11242_v27 = vshll.u32 %v20031_v3, 16  ;;  %v20038_v13 = vld [vmem:[%s25062_s4 + $0x3fc] sm:$0xf]  ;;  %v20039_v8 = vld [vmem:[%s25062_s4 + $0x400] sm:$0xf] }
 0x207   : > { %v11229_v25 = vor.u32 %v11228_v16, %v11224_v15  ;;  %v11246_v28 = vshrl.u32 %v20031_v3, 16  ;;  %v11211_v30 = vsel %vm25095_vm4, %v11206_v18, %v11210_v0  ;;  %v11238_v32 = vrot.slane %v11236_v20, 4  ;;  %v24800_v20 = vld [vmem:[%s25062_s4 + $0x38c] sm:$0xf]  ;;  %v20040_v23 = vld [vmem:[%s25062_s4 + $0x404] sm:$0xf] }
 0x208   : > { %v11220_v31 = vrot.slane %v11219_v19, 4  ;;  %22387 = vmatprep.mubr.msk.bf16.mxu1 %vm2122_vm1, %v18918_v24  ;;  %v11252_v58 = vshll.u32 %v20032_v6, 16  ;;  %v20133_v4 = vcombine.low %v11201_v12, %v11211_v30  ;;  %v11244_v35 = vrot.slane %v11242_v27, 5  ;;  %v24799_v19 = vld [vmem:[%s25062_s4 + $0x388] sm:$0xf] }
 0x209   : > { %v11230_v34 = vrot.slane %v11229_v25, 4  ;;  %v11248_v36 = vrot.slane %v11246_v28, 4  ;;  %v11239_v39 = vor.u32 %v11238_v32, %v11234_v26  ;;  %v11256_v41 = vshrl.u32 %v20032_v6, 16  ;;  %v20041_v32 = vld [vmem:[%s25062_s4 + $0x408] sm:$0x1] }
 0x20a   : > { %v11225_v38 = vsel %vm25095_vm4, %v11220_v31, %v11224_v15  ;;  %v11254_v40 = vrot.slane %v11252_v58, 5  ;;  %22972 = vmatmul.mubr.msk.bf16.gmra.mrb[92].mxu0 %vm2122_vm1, %v20133_v4  ;;  %v18919_v47 = vcombine.low %v24795_v45, %v24796_v46  ;;  %v11262_v48 = vshll.u32 %v20033_v29, 16  ;;  %v20042_v45 = vld [vmem:[%s25062_s4 + $0x428] sm:$0xf] }
 0x20b   : > { %v11235_v43 = vsel %vm25095_vm4, %v11230_v34, %v11234_v26  ;;  %v11249_v44 = vor.u32 %v11248_v36, %v11244_v35  ;;  %v11240_v50 = vrot.slane %v11239_v39, 4  ;;  %v11258_v51 = vrot.slane %v11256_v41, 4  ;;  %v24801_v41 = vld [vmem:[%s25062_s4 + $0x390] sm:$0xf] }
 0x20c   : > { %v20134_v49 = vcombine.low %v11225_v38, %v11235_v43  ;;  %v11266_v52 = vshrl.u32 %v20033_v29, 16  ;;  %22388 = vmatmul.mubr.msk.bf16.gmra.mrb[92].mxu1 %vm2122_vm1, %v18919_v47  ;;  %v11264_v55 = vrot.slane %v11262_v48, 5  ;;  %v11272_v56 = vshll.u32 %v20034_v33, 16 }
 0x20d   : > { %v11250_v54 = vrot.slane %v11249_v44, 4  ;;  %v18920_v60 = vcombine.low %v24797_v57, %v24798_v59  ;;  %v11245_v61 = vsel %vm25095_vm4, %v11240_v50, %v11244_v35  ;;  %v11259_v62 = vor.u32 %v11258_v51, %v11254_v40  ;;  %v20043_v50 = vld [vmem:[%s25062_s4 + $0x42c] sm:$0xf]  ;;  %v20044_v57 = vld [vmem:[%s25062_s4 + $0x430] sm:$0xf] }
 0x20e   : > { %22975 = vmatprep.mubr.msk.bf16.mxu0 %vm2122_vm1, %v20134_v49  ;;  %v11268_v63 = vrot.slane %v11266_v52, 4  ;;  %v11277_v0 = vshrl.u32 %v20035_v10, 16  ;;  %v11274_v2 = vrot.slane %v11272_v56, 5  ;;  %v11280_v3 = vshll.u32 %v20035_v10, 16 }
 0x20f   : > { %v11255_v1 = vsel %vm25095_vm4, %v11250_v54, %v11254_v40  ;;  %22391 = vmatprep.mubr.msk.bf16.mxu1 %vm2122_vm1, %v18920_v60  ;;  %v11286_v5 = vshll.u32 %v20036_v42, 16  ;;  %v11260_v21 = vrot.slane %v11259_v62, 4  ;;  %v11290_v12 = vshrl.u32 %v20036_v42, 16  ;;  %v24802_v42 = vld [vmem:[%s25062_s4 + $0x394] sm:$0xf] }
 0x210   : > { %v20135_v14 = vcombine.low %v11245_v61, %v11255_v1  ;;  %v11269_v6 = vor.u32 %v11268_v63, %v11264_v55  ;;  %v11279_v7 = vrot.slane %v11277_v0, 4  ;;  %v11282_v9 = vrot.slane %v11280_v3, 5  ;;  %v24803_v54 = vld [vmem:[%s25062_s4 + $0x3b8] sm:$0xf]  ;;  %v20045_v3 = vld [vmem:[%s25062_s4 + $0x434] sm:$0xf] }
 0x211   : > { %v11288_v11 = vrot.slane %v11286_v5, 5  ;;  %v11296_v15 = vshll.u32 %v20037_v53, 16  ;;  %v11265_v16 = vsel %vm25095_vm4, %v11260_v21, %v11264_v55  ;;  %v11300_v18 = vshrl.u32 %v20037_v53, 16  ;;  %v24804_v55 = vld [vmem:[%s25062_s4 + $0x3bc] sm:$0xf] }
 0x212   : > { %v11270_v17 = vrot.slane %v11269_v6, 4  ;;  %v18921_v22 = vcombine.low %v24799_v19, %v24800_v20  ;;  %22976 = vmatmul.mubr.msk.bf16.gmra.mrb[96].mxu0 %vm2122_vm1, %v20135_v14  ;;  %v11283_v24 = vor.u32 %v11282_v9, %v11279_v7  ;;  %v11292_v25 = vrot.slane %v11290_v12, 4  ;;  %v20046_v6 = vld [vmem:[%s25062_s4 + $0x438] sm:$0xf] }
 0x213   : > { %v11298_v26 = vrot.slane %v11296_v15, 5  ;;  %v11306_v27 = vshll.u32 %v20038_v13, 16  ;;  %v11302_v29 = vrot.slane %v11300_v18, 4  ;;  %v11310_v30 = vshrl.u32 %v20038_v13, 16 }
 0x214   : > { %v11275_v28 = vsel %vm25095_vm4, %v11270_v17, %v11274_v2  ;;  %v11316_v31 = vshll.u32 %v20039_v8, 16  ;;  %v11284_v33 = vrot.slane %v11283_v24, 4  ;;  %v11293_v4 = vor.u32 %v11292_v25, %v11288_v11  ;;  %22392 = vmatmul.mubr.msk.bf16.gmra.mrb[96].mxu1 %vm2122_vm1, %v18921_v22  ;;  %v24805_v22 = vld [vmem:[%s25062_s4 + $0x3c0] sm:$0xf] }
 0x215   : > { %v20136_v58 = vcombine.low %v11265_v16, %v11275_v28  ;;  %v11308_v34 = vrot.slane %v11306_v27, 5  ;;  %v11303_v35 = vor.u32 %v11302_v29, %v11298_v26  ;;  %v11312_v36 = vrot.slane %v11310_v30, 4  ;;  %v20047_v29 = vld [vmem:[%s25062_s4 + $0x43c] sm:$0xf] }
 0x216   : > { %v11318_v10 = vrot.slane %v11316_v31, 5  ;;  %v11320_v38 = vshrl.u32 %v20039_v8, 16  ;;  %v11289_v39 = vsel %vm25095_vm4, %v11284_v33, %v11288_v11  ;;  %v11294_v40 = vrot.slane %v11293_v4, 4  ;;  %v20048_v33 = vld [vmem:[%s25062_s4 + $0x440] sm:$0x1] }
 0x217   : > { %22979 = vmatprep.mubr.msk.bf16.mxu0 %vm2122_vm1, %v20136_v58  ;;  %v18922_v43 = vcombine.low %v24801_v41, %v24802_v42  ;;  %v11326_v44 = vshll.u32 %v20040_v23, 16  ;;  %v11304_v46 = vrot.slane %v11303_v35, 4  ;;  %v11313_v47 = vor.u32 %v11312_v36, %v11308_v34  ;;  %v20050_v42 = vld [vmem:[%s25062_s4 + $0x464] sm:$0xf] }
 0x218   : > { %v11322_v48 = vrot.slane %v11320_v38, 4  ;;  %v11330_v49 = vshrl.u32 %v20040_v23, 16  ;;  %v11299_v51 = vsel %vm25095_vm4, %v11294_v40, %v11298_v26  ;;  %v11336_v53 = vshll.u32 %v20041_v32, 16  ;;  %v24806_v23 = vld [vmem:[%s25062_s4 + $0x3c4] sm:$0xf] }
 0x219   : > { %22395 = vmatprep.mubr.msk.bf16.mxu1 %vm2122_vm1, %v18922_v43  ;;  %v11328_v52 = vrot.slane %v11326_v44, 5  ;;  %v18923_v56 = vcombine.low %v24803_v54, %v24804_v55  ;;  %v20137_v59 = vcombine.low %v11289_v39, %v11299_v51  ;;  %v11309_v60 = vsel %vm25095_vm4, %v11304_v46, %v11308_v34  ;;  %v24808_v46 = vld [vmem:[%s25062_s4 + $0x3cc] sm:$0xf] }
 0x21a   : > { %v11314_v61 = vrot.slane %v11313_v47, 4  ;;  %v11323_v62 = vor.u32 %v11322_v48, %v11318_v10  ;;  %v11332_v63 = vrot.slane %v11330_v49, 4  ;;  %v11338_v0 = vrot.slane %v11336_v53, 5  ;;  %v20051_v53 = vld [vmem:[%s25062_s4 + $0x468] sm:$0xf] }
 0x21b   : > { %v11341_v1 = vshrl.u32 %v20042_v45, 16  ;;  %v11344_v2 = vshll.u32 %v20042_v45, 16  ;;  %22980 = vmatmul.mubr.msk.bf16.gmra.mrb[100].mxu0 %vm2122_vm1, %v20137_v59  ;;  %v11350_v14 = vshll.u32 %v20043_v50, 16  ;;  %v11354_v21 = vshrl.u32 %v20043_v50, 16  ;;  %v24807_v45 = vld [vmem:[%s25062_s4 + $0x3c8] sm:$0xf] }
 0x21c   : > { %v11319_v5 = vsel %vm25095_vm4, %v11314_v61, %v11318_v10  ;;  %v11324_v13 = vrot.slane %v11323_v62, 4  ;;  %v11333_v8 = vor.u32 %v11332_v63, %v11328_v52  ;;  %22396 = vmatmul.mubr.msk.bf16.gmra.mrb[100].mxu1 %vm2122_vm1, %v18923_v56  ;;  %v11360_v17 = vshll.u32 %v20044_v57, 16  ;;  %v20049_v10 = vld [vmem:[%s25062_s4 + $0x460] sm:$0xf]  ;;  %v24810_v59 = vld [vmem:[%s25062_s4 + $0x3f4] sm:$0xf] }
 0x21d   : > { %v20138_v7 = vcombine.low %v11309_v60, %v11319_v5  ;;  %v11343_v9 = vrot.slane %v11341_v1, 4  ;;  %v11346_v11 = vrot.slane %v11344_v2, 5  ;;  %v11352_v15 = vrot.slane %v11350_v14, 5  ;;  %v20052_v1 = vld [vmem:[%s25062_s4 + $0x46c] sm:$0xf] }
 0x21e   : > { %v11329_v12 = vsel %vm25095_vm4, %v11324_v13, %v11328_v52  ;;  %v11356_v16 = vrot.slane %v11354_v21, 4  ;;  %v11334_v18 = vrot.slane %v11333_v8, 4  ;;  %v11364_v20 = vshrl.u32 %v20044_v57, 16  ;;  %v24809_v57 = vld [vmem:[%s25062_s4 + $0x3f0] sm:$0xf] }
 0x21f   : > { %22983 = vmatprep.mubr.msk.bf16.mxu0 %vm2122_vm1, %v20138_v7  ;;  %v11347_v19 = vor.u32 %v11346_v11, %v11343_v9  ;;  %v18924_v24 = vcombine.low %v24805_v22, %v24806_v23  ;;  %v11362_v26 = vrot.slane %v11360_v17, 5  ;;  %v11370_v27 = vshll.u32 %v20045_v3, 16  ;;  %v20053_v14 = vld [vmem:[%s25062_s4 + $0x470] sm:$0xf]  ;;  %v20054_v23 = vld [vmem:[%s25062_s4 + $0x474] sm:$0xf] }
 0x220   : > { %v11357_v25 = vor.u32 %v11356_v16, %v11352_v15  ;;  %v11374_v28 = vshrl.u32 %v20045_v3, 16  ;;  %v11339_v30 = vsel %vm25095_vm4, %v11334_v18, %v11338_v0  ;;  %v11366_v32 = vrot.slane %v11364_v20, 4  ;;  %v24812_v20 = vld [vmem:[%s25062_s4 + $0x3fc] sm:$0xf] }
 0x221   : > { %v11348_v31 = vrot.slane %v11347_v19, 4  ;;  %22399 = vmatprep.mubr.msk.bf16.mxu1 %vm2122_vm1, %v18924_v24  ;;  %v11380_v58 = vshll.u32 %v20046_v6, 16  ;;  %v20139_v4 = vcombine.low %v11329_v12, %v11339_v30  ;;  %v11372_v35 = vrot.slane %v11370_v27, 5  ;;  %v24811_v19 = vld [vmem:[%s25062_s4 + $0x3f8] sm:$0xf] }
 0x222   : > { %v11358_v34 = vrot.slane %v11357_v25, 4  ;;  %v11376_v36 = vrot.slane %v11374_v28, 4  ;;  %v11367_v39 = vor.u32 %v11366_v32, %v11362_v26  ;;  %v11384_v41 = vshrl.u32 %v20046_v6, 16  ;;  %v20055_v32 = vld [vmem:[%s25062_s4 + $0x478] sm:$0x1] }
 0x223   : > { %v11353_v38 = vsel %vm25095_vm4, %v11348_v31, %v11352_v15  ;;  %v11382_v40 = vrot.slane %v11380_v58, 5  ;;  %22984 = vmatmul.mubr.msk.bf16.gmra.mrb[104].mxu0 %vm2122_vm1, %v20139_v4  ;;  %v18925_v47 = vcombine.low %v24807_v45, %v24808_v46  ;;  %v11390_v48 = vshll.u32 %v20047_v29, 16  ;;  %v20057_v46 = vld [vmem:[%s25062_s4 + $0x49c] sm:$0xf] }
 0x224   : > { %v11363_v43 = vsel %vm25095_vm4, %v11358_v34, %v11362_v26  ;;  %v11377_v44 = vor.u32 %v11376_v36, %v11372_v35  ;;  %v11368_v50 = vrot.slane %v11367_v39, 4  ;;  %v11386_v51 = vrot.slane %v11384_v41, 4  ;;  %v20056_v39 = vld [vmem:[%s25062_s4 + $0x498] sm:$0xf] }
 0x225   : > { %v20140_v49 = vcombine.low %v11353_v38, %v11363_v43  ;;  %v11394_v52 = vshrl.u32 %v20047_v29, 16  ;;  %22400 = vmatmul.mubr.msk.bf16.gmra.mrb[104].mxu1 %vm2122_vm1, %v18925_v47  ;;  %v11392_v55 = vrot.slane %v11390_v48, 5  ;;  %v11400_v56 = vshll.u32 %v20048_v33, 16  ;;  %v24814_v43 = vld [vmem:[%s25062_s4 + $0x404] sm:$0xf] }
 0x226   : > { %v11378_v54 = vrot.slane %v11377_v44, 4  ;;  %v18926_v60 = vcombine.low %v24809_v57, %v24810_v59  ;;  %v11373_v61 = vsel %vm25095_vm4, %v11368_v50, %v11372_v35  ;;  %v11387_v62 = vor.u32 %v11386_v51, %v11382_v40  ;;  %v20058_v57 = vld [vmem:[%s25062_s4 + $0x4a0] sm:$0xf] }
 0x227   : > { %22987 = vmatprep.mubr.msk.bf16.mxu0 %vm2122_vm1, %v20140_v49  ;;  %v11396_v63 = vrot.slane %v11394_v52, 4  ;;  %v11405_v0 = vshrl.u32 %v20049_v10, 16  ;;  %v11402_v3 = vrot.slane %v11400_v56, 5  ;;  %v11408_v5 = vshll.u32 %v20049_v10, 16 }
 0x228   : > { %v11383_v2 = vsel %vm25095_vm4, %v11378_v54, %v11382_v40  ;;  %22403 = vmatprep.mubr.msk.bf16.mxu1 %vm2122_vm1, %v18926_v60  ;;  %v11414_v13 = vshll.u32 %v20050_v42, 16  ;;  %v11388_v6 = vrot.slane %v11387_v62, 4  ;;  %v11418_v12 = vshrl.u32 %v20050_v42, 16  ;;  %v24813_v42 = vld [vmem:[%s25062_s4 + $0x400] sm:$0xf] }
 0x229   : > { %v20141_v21 = vcombine.low %v11373_v61, %v11383_v2  ;;  %v11397_v7 = vor.u32 %v11396_v63, %v11392_v55  ;;  %v11407_v8 = vrot.slane %v11405_v0, 4  ;;  %v11410_v9 = vrot.slane %v11408_v5, 5  ;;  %v24815_v54 = vld [vmem:[%s25062_s4 + $0x428] sm:$0xf] }
 0x22a   : > { %v11416_v11 = vrot.slane %v11414_v13, 5  ;;  %v11424_v15 = vshll.u32 %v20051_v53, 16  ;;  %v11393_v16 = vsel %vm25095_vm4, %v11388_v6, %v11392_v55  ;;  %v11428_v18 = vshrl.u32 %v20051_v53, 16  ;;  %v24816_v55 = vld [vmem:[%s25062_s4 + $0x42c] sm:$0xf] }
 0x22b   : > { %v11398_v17 = vrot.slane %v11397_v7, 4  ;;  %v18927_v22 = vcombine.low %v24811_v19, %v24812_v20  ;;  %22988 = vmatmul.mubr.msk.bf16.gmra.mrb[108].mxu0 %vm2122_vm1, %v20141_v21  ;;  %v11411_v24 = vor.u32 %v11410_v9, %v11407_v8  ;;  %v11420_v25 = vrot.slane %v11418_v12, 4 }
 0x22c   : > { %v11426_v26 = vrot.slane %v11424_v15, 5  ;;  %v11434_v27 = vshll.u32 %v20052_v1, 16  ;;  %v11430_v29 = vrot.slane %v11428_v18, 4  ;;  %v11438_v30 = vshrl.u32 %v20052_v1, 16 }
 0x22d   : > { %v11403_v28 = vsel %vm25095_vm4, %v11398_v17, %v11402_v3  ;;  %v11444_v31 = vshll.u32 %v20053_v14, 16  ;;  %v11412_v33 = vrot.slane %v11411_v24, 4  ;;  %v11421_v4 = vor.u32 %v11420_v25, %v11416_v11  ;;  %22404 = vmatmul.mubr.msk.bf16.gmra.mrb[108].mxu1 %vm2122_vm1, %v18927_v22  ;;  %v20059_v3 = vld [vmem:[%s25062_s4 + $0x4a4] sm:$0xf]  ;;  %v20060_v17 = vld [vmem:[%s25062_s4 + $0x4a8] sm:$0xf] }
 0x22e   : > { %v20142_v58 = vcombine.low %v11393_v16, %v11403_v28  ;;  %v11436_v34 = vrot.slane %v11434_v27, 5  ;;  %v11431_v35 = vor.u32 %v11430_v29, %v11426_v26  ;;  %v11440_v36 = vrot.slane %v11438_v30, 4  ;;  %v24817_v22 = vld [vmem:[%s25062_s4 + $0x430] sm:$0xf]  ;;  %v20061_v25 = vld [vmem:[%s25062_s4 + $0x4ac] sm:$0xf] }
 0x22f   : > { %v11446_v10 = vrot.slane %v11444_v31, 5  ;;  %v11448_v38 = vshrl.u32 %v20053_v14, 16  ;;  %v11417_v40 = vsel %vm25095_vm4, %v11412_v33, %v11416_v11  ;;  %v11422_v41 = vrot.slane %v11421_v4, 4  ;;  %v20062_v33 = vld [vmem:[%s25062_s4 + $0x4b0] sm:$0x1] }
 0x230   : > { %22991 = vmatprep.mubr.msk.bf16.mxu0 %vm2122_vm1, %v20142_v58  ;;  %v18928_v44 = vcombine.low %v24813_v42, %v24814_v43  ;;  %v11454_v45 = vshll.u32 %v20054_v23, 16  ;;  %v11432_v47 = vrot.slane %v11431_v35, 4  ;;  %v11441_v48 = vor.u32 %v11440_v36, %v11436_v34  ;;  %v20064_v42 = vld [vmem:[%s25062_s4 + $0x4d4] sm:$0xf] }
 0x231   : > { %v11450_v49 = vrot.slane %v11448_v38, 4  ;;  %v11458_v50 = vshrl.u32 %v20054_v23, 16  ;;  %v11427_v51 = vsel %vm25095_vm4, %v11422_v41, %v11426_v26  ;;  %v11464_v53 = vshll.u32 %v20055_v32, 16  ;;  %v24818_v23 = vld [vmem:[%s25062_s4 + $0x434] sm:$0xf] }
 0x232   : > { %22407 = vmatprep.mubr.msk.bf16.mxu1 %vm2122_vm1, %v18928_v44  ;;  %v11456_v52 = vrot.slane %v11454_v45, 5  ;;  %v18929_v56 = vcombine.low %v24815_v54, %v24816_v55  ;;  %v20143_v59 = vcombine.low %v11417_v40, %v11427_v51  ;;  %v11437_v60 = vsel %vm25095_vm4, %v11432_v47, %v11436_v34  ;;  %v24819_v45 = vld [vmem:[%s25062_s4 + $0x438] sm:$0xf] }
 0x233   : > { %v11442_v61 = vrot.slane %v11441_v48, 4  ;;  %v11451_v62 = vor.u32 %v11450_v49, %v11446_v10  ;;  %v11460_v63 = vrot.slane %v11458_v50, 4  ;;  %v11466_v0 = vrot.slane %v11464_v53, 5 }
 0x234   : > { %v11469_v1 = vshrl.u32 %v20056_v39, 16  ;;  %v11472_v2 = vshll.u32 %v20056_v39, 16  ;;  %22992 = vmatmul.mubr.msk.bf16.gmra.mrb[112].mxu0 %vm2122_vm1, %v20143_v59  ;;  %v11478_v14 = vshll.u32 %v20057_v46, 16  ;;  %v11482_v21 = vshrl.u32 %v20057_v46, 16  ;;  %v24820_v46 = vld [vmem:[%s25062_s4 + $0x43c] sm:$0xf] }
 0x235   : > { %v11447_v5 = vsel %vm25095_vm4, %v11442_v61, %v11446_v10  ;;  %v11452_v13 = vrot.slane %v11451_v62, 4  ;;  %v11461_v7 = vor.u32 %v11460_v63, %v11456_v52  ;;  %22408 = vmatmul.mubr.msk.bf16.gmra.mrb[112].mxu1 %vm2122_vm1, %v18929_v56  ;;  %v11488_v16 = vshll.u32 %v20058_v57, 16  ;;  %v20063_v10 = vld [vmem:[%s25062_s4 + $0x4d0] sm:$0xf]  ;;  %v24821_v56 = vld [vmem:[%s25062_s4 + $0x460] sm:$0xf] }
 0x236   : > { %v20144_v6 = vcombine.low %v11437_v60, %v11447_v5  ;;  %v11471_v8 = vrot.slane %v11469_v1, 4  ;;  %v11474_v9 = vrot.slane %v11472_v2, 5  ;;  %v11480_v12 = vrot.slane %v11478_v14, 5  ;;  %v20065_v60 = vld [vmem:[%s25062_s4 + $0x4d8] sm:$0xf] }
 0x237   : > { %v11457_v11 = vsel %vm25095_vm4, %v11452_v13, %v11456_v52  ;;  %v11484_v15 = vrot.slane %v11482_v21, 4  ;;  %v11462_v18 = vrot.slane %v11461_v7, 4  ;;  %v11492_v20 = vshrl.u32 %v20058_v57, 16  ;;  %v24822_v57 = vld [vmem:[%s25062_s4 + $0x464] sm:$0xf] }
 0x238   : > { %22995 = vmatprep.mubr.msk.bf16.mxu0 %vm2122_vm1, %v20144_v6  ;;  %v11475_v19 = vor.u32 %v11474_v9, %v11471_v8  ;;  %v18930_v24 = vcombine.low %v24817_v22, %v24818_v23  ;;  %v11490_v27 = vrot.slane %v11488_v16, 5  ;;  %v11498_v28 = vshll.u32 %v20059_v3, 16  ;;  %v20066_v1 = vld [vmem:[%s25062_s4 + $0x4dc] sm:$0xf]  ;;  %v20067_v14 = vld [vmem:[%s25062_s4 + $0x4e0] sm:$0xf] }
 0x239   : > { %v11485_v26 = vor.u32 %v11484_v15, %v11480_v12  ;;  %v11502_v29 = vshrl.u32 %v20059_v3, 16  ;;  %v11467_v30 = vsel %vm25095_vm4, %v11462_v18, %v11466_v0  ;;  %v11494_v32 = vrot.slane %v11492_v20, 4  ;;  %v24824_v20 = vld [vmem:[%s25062_s4 + $0x46c] sm:$0xf]  ;;  %v20068_v23 = vld [vmem:[%s25062_s4 + $0x4e4] sm:$0xf] }
 0x23a   : > { %v11476_v31 = vrot.slane %v11475_v19, 4  ;;  %22411 = vmatprep.mubr.msk.bf16.mxu1 %vm2122_vm1, %v18930_v24  ;;  %v11508_v58 = vshll.u32 %v20060_v17, 16  ;;  %v20145_v4 = vcombine.low %v11457_v11, %v11467_v30  ;;  %v11500_v35 = vrot.slane %v11498_v28, 5  ;;  %v24823_v19 = vld [vmem:[%s25062_s4 + $0x468] sm:$0xf] }
 0x23b   : > { %v11486_v34 = vrot.slane %v11485_v26, 4  ;;  %v11504_v36 = vrot.slane %v11502_v29, 4  ;;  %v11495_v39 = vor.u32 %v11494_v32, %v11490_v27  ;;  %v11512_v41 = vshrl.u32 %v20060_v17, 16 }
 0x23c   : > { %v11481_v38 = vsel %vm25095_vm4, %v11476_v31, %v11480_v12  ;;  %v11510_v40 = vrot.slane %v11508_v58, 5  ;;  %22996 = vmatmul.mubr.msk.bf16.gmra.mrb[116].mxu0 %vm2122_vm1, %v20145_v4  ;;  %v18931_v47 = vcombine.low %v24819_v45, %v24820_v46  ;;  %v11518_v48 = vshll.u32 %v20061_v25, 16  ;;  %v20071_v46 = vld [vmem:[%s25062_s4 + $0x50c] sm:$0xf] }
 0x23d   : > { %v11491_v43 = vsel %vm25095_vm4, %v11486_v34, %v11490_v27  ;;  %v11505_v44 = vor.u32 %v11504_v36, %v11500_v35  ;;  %v11496_v50 = vrot.slane %v11495_v39, 4  ;;  %v11514_v51 = vrot.slane %v11512_v41, 4  ;;  %v20069_v34 = vld [vmem:[%s25062_s4 + $0x4e8] sm:$0x1] }
 0x23e   : > { %v20146_v49 = vcombine.low %v11481_v38, %v11491_v43  ;;  %v11522_v52 = vshrl.u32 %v20061_v25, 16  ;;  %22412 = vmatmul.mubr.msk.bf16.gmra.mrb[116].mxu1 %vm2122_vm1, %v18931_v47  ;;  %v11520_v54 = vrot.slane %v11518_v48, 5  ;;  %v11528_v55 = vshll.u32 %v20062_v33, 16  ;;  %v20070_v39 = vld [vmem:[%s25062_s4 + $0x508] sm:$0xf] }
 0x23f   : > { %v11506_v53 = vrot.slane %v11505_v44, 4  ;;  %v18932_v59 = vcombine.low %v24821_v56, %v24822_v57  ;;  %v11501_v61 = vsel %vm25095_vm4, %v11496_v50, %v11500_v35  ;;  %v11515_v62 = vor.u32 %v11514_v51, %v11510_v40  ;;  %v24826_v43 = vld [vmem:[%s25062_s4 + $0x474] sm:$0xf]  ;;  %v20072_v57 = vld [vmem:[%s25062_s4 + $0x510] sm:$0xf] }
 0x240   : > { %22999 = vmatprep.mubr.msk.bf16.mxu0 %vm2122_vm1, %v20146_v49  ;;  %v11524_v63 = vrot.slane %v11522_v52, 4  ;;  %v11533_v0 = vshrl.u32 %v20063_v10, 16  ;;  %v11530_v3 = vrot.slane %v11528_v55, 5  ;;  %v11536_v5 = vshll.u32 %v20063_v10, 16  ;;  %v24828_v55 = vld [vmem:[%s25062_s4 + $0x49c] sm:$0xf] }
 0x241   : > { %v11511_v2 = vsel %vm25095_vm4, %v11506_v53, %v11510_v40  ;;  %22415 = vmatprep.mubr.msk.bf16.mxu1 %vm2122_vm1, %v18932_v59  ;;  %v11542_v13 = vshll.u32 %v20064_v42, 16  ;;  %v11516_v6 = vrot.slane %v11515_v62, 4  ;;  %v11546_v12 = vshrl.u32 %v20064_v42, 16  ;;  %v24825_v42 = vld [vmem:[%s25062_s4 + $0x470] sm:$0xf] }
 0x242   : > { %v20147_v21 = vcombine.low %v11501_v61, %v11511_v2  ;;  %v11525_v7 = vor.u32 %v11524_v63, %v11520_v54  ;;  %v11535_v8 = vrot.slane %v11533_v0, 4  ;;  %v11538_v9 = vrot.slane %v11536_v5, 5 }
 0x243   : > { %v11544_v11 = vrot.slane %v11542_v13, 5  ;;  %v11552_v15 = vshll.u32 %v20065_v60, 16  ;;  %v11521_v16 = vsel %vm25095_vm4, %v11516_v6, %v11520_v54  ;;  %v11556_v18 = vshrl.u32 %v20065_v60, 16  ;;  %v24827_v54 = vld [vmem:[%s25062_s4 + $0x498] sm:$0xf] }
 0x244   : > { %v11526_v17 = vrot.slane %v11525_v7, 4  ;;  %v18933_v22 = vcombine.low %v24823_v19, %v24824_v20  ;;  %23000 = vmatmul.mubr.msk.bf16.gmra.mrb[120].mxu0 %vm2122_vm1, %v20147_v21  ;;  %v11539_v24 = vor.u32 %v11538_v9, %v11535_v8  ;;  %v11548_v25 = vrot.slane %v11546_v12, 4  ;;  %v20073_v9 = vld [vmem:[%s25062_s4 + $0x514] sm:$0xf] }
 0x245   : > { %v11554_v26 = vrot.slane %v11552_v15, 5  ;;  %v11562_v27 = vshll.u32 %v20066_v1, 16  ;;  %v11558_v29 = vrot.slane %v11556_v18, 4  ;;  %v11566_v30 = vshrl.u32 %v20066_v1, 16 }
 0x246   : > { %v11531_v28 = vsel %vm25095_vm4, %v11526_v17, %v11530_v3  ;;  %v11572_v31 = vshll.u32 %v20067_v14, 16  ;;  %v11540_v58 = vrot.slane %v11539_v24, 4  ;;  %v11549_v33 = vor.u32 %v11548_v25, %v11544_v11  ;;  %22416 = vmatmul.mubr.msk.bf16.gmra.mrb[120].mxu1 %vm2122_vm1, %v18933_v22  ;;  %v20074_v17 = vld [vmem:[%s25062_s4 + $0x518] sm:$0xf]  ;;  %v24829_v22 = vld [vmem:[%s25062_s4 + $0x4a0] sm:$0xf] }
 0x247   : > { %v20148_v32 = vcombine.low %v11521_v16, %v11531_v28  ;;  %v11564_v4 = vrot.slane %v11562_v27, 5  ;;  %v11559_v35 = vor.u32 %v11558_v29, %v11554_v26  ;;  %v11568_v36 = vrot.slane %v11566_v30, 4  ;;  %v20075_v25 = vld [vmem:[%s25062_s4 + $0x51c] sm:$0xf] }
 0x248   : > { %v11574_v10 = vrot.slane %v11572_v31, 5  ;;  %v11576_v38 = vshrl.u32 %v20067_v14, 16  ;;  %v11545_v40 = vsel %vm25095_vm4, %v11540_v58, %v11544_v11  ;;  %v11550_v41 = vrot.slane %v11549_v33, 4  ;;  %v20076_v33 = vld [vmem:[%s25062_s4 + $0x520] sm:$0x1] }
 0x249   : > { %23003 = vmatprep.mubr.msk.bf16.mxu0 %vm2122_vm1, %v20148_v32  ;;  %v18934_v44 = vcombine.low %v24825_v42, %v24826_v43  ;;  %v11582_v45 = vshll.u32 %v20068_v23, 16  ;;  %v11560_v47 = vrot.slane %v11559_v35, 4  ;;  %v11569_v48 = vor.u32 %v11568_v36, %v11564_v4 }
 0x24a   : > { %v11578_v49 = vrot.slane %v11576_v38, 4  ;;  %v11586_v50 = vshrl.u32 %v20068_v23, 16  ;;  %v11555_v51 = vsel %vm25095_vm4, %v11550_v41, %v11554_v26  ;;  %v11592_v53 = vshll.u32 %v20069_v34, 16  ;;  %v24830_v23 = vld [vmem:[%s25062_s4 + $0x4a4] sm:$0xf] }
 0x24b   : > { %22419 = vmatprep.mubr.msk.bf16.mxu1 %vm2122_vm1, %v18934_v44  ;;  %v11584_v52 = vrot.slane %v11582_v45, 5  ;;  %v18935_v56 = vcombine.low %v24827_v54, %v24828_v55  ;;  %v20149_v59 = vcombine.low %v11545_v40, %v11555_v51  ;;  %v11565_v60 = vsel %vm25095_vm4, %v11560_v47, %v11564_v4  ;;  %v24831_v44 = vld [vmem:[%s25062_s4 + $0x4a8] sm:$0xf]  ;;  %v24832_v45 = vld [vmem:[%s25062_s4 + $0x4ac] sm:$0xf] }
 0x24c   : > { %v11570_v61 = vrot.slane %v11569_v48, 4  ;;  %v11579_v62 = vor.u32 %v11578_v49, %v11574_v10  ;;  %v11588_v63 = vrot.slane %v11586_v50, 4  ;;  %v11594_v0 = vrot.slane %v11592_v53, 5 }
 0x24d   : > { %v11597_v1 = vshrl.u32 %v20070_v39, 16  ;;  %v11600_v2 = vshll.u32 %v20070_v39, 16  ;;  %23004 = vmatmul.mubr.msk.bf16.gmra.mrb[124].mxu0 %vm2122_vm1, %v20149_v59  ;;  %v11606_v13 = vshll.u32 %v20071_v46, 16  ;;  %v11610_v14 = vshrl.u32 %v20071_v46, 16 }
 0x24e   : > { %v11575_v3 = vsel %vm25095_vm4, %v11570_v61, %v11574_v10  ;;  %v11580_v5 = vrot.slane %v11579_v62, 4  ;;  %v11589_v6 = vor.u32 %v11588_v63, %v11584_v52  ;;  %22420 = vmatmul.mubr.msk.bf16.gmra.mrb[124].mxu1 %vm2122_vm1, %v18935_v56  ;;  %v11616_v16 = vshll.u32 %v20072_v57, 16  ;;  %v20077_v10 = vld [vmem:[%s25062_s4 + $0x540] sm:$0xf]  ;;  %v24833_v56 = vld [vmem:[%s25062_s4 + $0x4d0] sm:$0xf] }
 0x24f   : > { %v20150_v21 = vcombine.low %v11565_v60, %v11575_v3  ;;  %v11599_v7 = vrot.slane %v11597_v1, 4  ;;  %v11602_v8 = vrot.slane %v11600_v2, 5  ;;  %v11608_v12 = vrot.slane %v11606_v13, 5  ;;  %v20079_v60 = vld [vmem:[%s25062_s4 + $0x548] sm:$0xf] }
 0x250   : > { %v11585_v11 = vsel %vm25095_vm4, %v11580_v5, %v11584_v52  ;;  %v11612_v15 = vrot.slane %v11610_v14, 4  ;;  %v11590_v18 = vrot.slane %v11589_v6, 4  ;;  %v11620_v20 = vshrl.u32 %v20072_v57, 16  ;;  %v20078_v52 = vld [vmem:[%s25062_s4 + $0x544] sm:$0xf] }
 0x251   : > { %23007 = vmatprep.mubr.msk.bf16.mxu0 %vm2122_vm1, %v20150_v21  ;;  %v11603_v19 = vor.u32 %v11602_v8, %v11599_v7  ;;  %v18936_v24 = vcombine.low %v24829_v22, %v24830_v23  ;;  %v11618_v27 = vrot.slane %v11616_v16, 5  ;;  %v11626_v28 = vshll.u32 %v20073_v9, 16  ;;  %v24834_v57 = vld [vmem:[%s25062_s4 + $0x4d4] sm:$0xf]  ;;  %v20080_v1 = vld [vmem:[%s25062_s4 + $0x54c] sm:$0xf] }
 0x252   : > { %v11613_v26 = vor.u32 %v11612_v15, %v11608_v12  ;;  %v11630_v29 = vshrl.u32 %v20073_v9, 16  ;;  %v11595_v30 = vsel %vm25095_vm4, %v11590_v18, %v11594_v0  ;;  %v11622_v32 = vrot.slane %v11620_v20, 4  ;;  %v20081_v15 = vld [vmem:[%s25062_s4 + $0x550] sm:$0xf]  ;;  %v24836_v20 = vld [vmem:[%s25062_s4 + $0x4dc] sm:$0xf] }
 0x253   : > { %v11604_v31 = vrot.slane %v11603_v19, 4  ;;  %22423 = vmatprep.mubr.msk.bf16.mxu1 %vm2122_vm1, %v18936_v24  ;;  %v11636_v58 = vshll.u32 %v20074_v17, 16  ;;  %v20151_v4 = vcombine.low %v11585_v11, %v11595_v30  ;;  %v11628_v35 = vrot.slane %v11626_v28, 5  ;;  %v24835_v19 = vld [vmem:[%s25062_s4 + $0x4d8] sm:$0xf] }
 0x254   : > { %v11614_v34 = vrot.slane %v11613_v26, 4  ;;  %v11632_v36 = vrot.slane %v11630_v29, 4  ;;  %v11623_v39 = vor.u32 %v11622_v32, %v11618_v27  ;;  %v11640_v41 = vshrl.u32 %v20074_v17, 16 }
 0x255   : > { %v11609_v38 = vsel %vm25095_vm4, %v11604_v31, %v11608_v12  ;;  %v11638_v40 = vrot.slane %v11636_v58, 5  ;;  %23008 = vmatmul.mubr.msk.bf16.gmra.mrb[128].mxu0 %vm2122_vm1, %v20151_v4  ;;  %v18937_v46 = vcombine.low %v24831_v44, %v24832_v45  ;;  %v11646_v47 = vshll.u32 %v20075_v25, 16  ;;  %v20082_v31 = vld [vmem:[%s25062_s4 + $0x554] sm:$0xf] }
 0x256   : > { %v11619_v42 = vsel %vm25095_vm4, %v11614_v34, %v11618_v27  ;;  %v11633_v43 = vor.u32 %v11632_v36, %v11628_v35  ;;  %v11624_v49 = vrot.slane %v11623_v39, 4  ;;  %v11642_v50 = vrot.slane %v11640_v41, 4  ;;  %v24837_v41 = vld [vmem:[%s25062_s4 + $0x4e0] sm:$0xf] }
 0x257   : > { %v20152_v48 = vcombine.low %v11609_v38, %v11619_v42  ;;  %v11650_v51 = vshrl.u32 %v20075_v25, 16  ;;  %22424 = vmatmul.mubr.msk.bf16.gmra.mrb[128].mxu1 %vm2122_vm1, %v18937_v46  ;;  %v11648_v54 = vrot.slane %v11646_v47, 5  ;;  %v11656_v55 = vshll.u32 %v20076_v33, 16  ;;  %v20083_v38 = vld [vmem:[%s25062_s4 + $0x558] sm:$0x1] }
 0x258   : > { %v11634_v53 = vrot.slane %v11633_v43, 4  ;;  %v18938_v59 = vcombine.low %v24833_v56, %v24834_v57  ;;  %v11629_v61 = vsel %vm25095_vm4, %v11624_v49, %v11628_v35  ;;  %v11643_v62 = vor.u32 %v11642_v50, %v11638_v40  ;;  %v24838_v42 = vld [vmem:[%s25062_s4 + $0x4e4] sm:$0xf] }
 0x259   : > { %23011 = vmatprep.mubr.msk.bf16.mxu0 %vm2122_vm1, %v20152_v48  ;;  %v11652_v63 = vrot.slane %v11650_v51, 4  ;;  %v11661_v0 = vshrl.u32 %v20077_v10, 16  ;;  %v11658_v3 = vrot.slane %v11656_v55, 5  ;;  %v11664_v5 = vshll.u32 %v20077_v10, 16 }
 0x25a   : > { %v11639_v2 = vsel %vm25095_vm4, %v11634_v53, %v11638_v40  ;;  %22427 = vmatprep.mubr.msk.bf16.mxu1 %vm2122_vm1, %v18938_v59  ;;  %v11670_v13 = vshll.u32 %v20078_v52, 16  ;;  %v11644_v21 = vrot.slane %v11643_v62, 4  ;;  %v11674_v11 = vshrl.u32 %v20078_v52, 16  ;;  %v24839_v52 = vld [vmem:[%s25062_s4 + $0x508] sm:$0xf] }
 0x25b   : > { %v20153_v14 = vcombine.low %v11629_v61, %v11639_v2  ;;  %v11653_v6 = vor.u32 %v11652_v63, %v11648_v54  ;;  %v11663_v7 = vrot.slane %v11661_v0, 4  ;;  %v11666_v8 = vrot.slane %v11664_v5, 5  ;;  %v24840_v53 = vld [vmem:[%s25062_s4 + $0x50c] sm:$0xf]  ;;  %v24841_v61 = vld [vmem:[%s25062_s4 + $0x510] sm:$0xf] }
 0x25c   : > { %v11672_v9 = vrot.slane %v11670_v13, 5  ;;  %v11680_v12 = vshll.u32 %v20079_v60, 16  ;;  %v11649_v16 = vsel %vm25095_vm4, %v11644_v21, %v11648_v54  ;;  %v11684_v18 = vshrl.u32 %v20079_v60, 16  ;;  %v24842_v62 = vld [vmem:[%s25062_s4 + $0x514] sm:$0xf] }
 0x25d   : > { %v11654_v17 = vrot.slane %v11653_v6, 4  ;;  %v18939_v22 = vcombine.low %v24835_v19, %v24836_v20  ;;  %23012 = vmatmul.mubr.msk.bf16.gmra.mrb[132].mxu0 %vm2122_vm1, %v20153_v14  ;;  %v11667_v23 = vor.u32 %v11666_v8, %v11663_v7  ;;  %v11676_v24 = vrot.slane %v11674_v11, 4  ;;  %v24555_v6 = vld [vmem:[%s25062_s4 + $0x54] sm:$0xff]   ;;  %v24844_v8 = vld [vmem:[%s25062_s4 + $0x51c] sm:$0xf] }
 0x25e   : > { %v11682_v25 = vrot.slane %v11680_v12, 5  ;;  %v11690_v26 = vshll.u32 %v20080_v1, 16  ;;  %v11686_v28 = vrot.slane %v11684_v18, 4  ;;  %v11694_v29 = vshrl.u32 %v20080_v1, 16  ;;  %v24843_v7 = vld [vmem:[%s25062_s4 + $0x518] sm:$0xf] }
 0x25f   : > { %v11659_v27 = vsel %vm25095_vm4, %v11654_v17, %v11658_v3  ;;  %v11700_v30 = vshll.u32 %v20081_v15, 16  ;;  %v11668_v58 = vrot.slane %v11667_v23, 4  ;;  %v11677_v33 = vor.u32 %v11676_v24, %v11672_v9  ;;  %22428 = vmatmul.mubr.msk.bf16.gmra.mrb[132].mxu1 %vm2122_vm1, %v18939_v22  ;;  %v24560_v12 = vld [vmem:[%s25062_s4 + $0x1c] sm:$0xff]   ;;  %v24564_v17 = vld [vmem:[%s25062_s4 + $0x24] sm:$0xff]   ;;  %v24566_v23 = vld [vmem:[%s25062_s4 + $0x2c] sm:$0xff]  }
 0x260   : > { %v20154_v32 = vcombine.low %v11649_v16, %v11659_v27  ;;  %v11692_v4 = vrot.slane %v11690_v26, 5  ;;  %v11687_v34 = vor.u32 %v11686_v28, %v11682_v25  ;;  %v11696_v35 = vrot.slane %v11694_v29, 4  ;;  %v24559_v16 = vld [vmem:[%s25062_s4 + $0x64] sm:$0xff]   ;;  %v24845_v18 = vld [vmem:[%s29171_s1 + $0x18] sm:$0x1f]   ;;  %v24562_v24 = vld [vmem:[%s25062_s4 + $0x8c] sm:$0xff]  }
 0x261   : > { %v11702_v36 = vrot.slane %v11700_v30, 5  ;;  %v11704_v10 = vshrl.u32 %v20081_v15, 16  ;;  %v11673_v39 = vsel %vm25095_vm4, %v11668_v58, %v11672_v9  ;;  %v11678_v40 = vrot.slane %v11677_v33, 4  ;;  %v24557_v15 = vld [vmem:[%s25062_s4 + $0x5c] sm:$0xff]   ;;  %v24568_v26 = vld [vmem:[%s25062_s4 + $0x54] sm:$0xff]   ;;  %v24569_v29 = vld [vmem:[%s25062_s4 + $0xc4] sm:$0xff]  }
 0x262   : > { %23015 = vmatprep.mubr.msk.bf16.mxu0 %vm2122_vm1, %v20154_v32  ;;  %v18940_v43 = vcombine.low %v24837_v41, %v24838_v42  ;;  %v11710_v44 = vshll.u32 %v20082_v31, 16  ;;  %v11688_v45 = vrot.slane %v11687_v34, 4  ;;  %v11697_v46 = vor.u32 %v11696_v35, %v11692_v4  ;;  %v24846_v20 = vld [vmem:[%s29171_s1 + $0x38] sm:$0x1f]   ;;  %v24572_v30 = vld [vmem:[%s25062_s4 + $0x64] sm:$0xff]   ;;  %v24571_v32 = vld [vmem:[%s25062_s4 + $0xcc] sm:$0xff]  }
 0x263   : > { %v11706_v47 = vrot.slane %v11704_v10, 4  ;;  %v11714_v48 = vshrl.u32 %v20082_v31, 16  ;;  %v11683_v49 = vsel %vm25095_vm4, %v11678_v40, %v11682_v25  ;;  %v11720_v51 = vshll.u32 %v20083_v38, 16  ;;  %v24565_v25 = vld [vmem:[%s25062_s4 + $0x94] sm:$0xff]   ;;  %v24570_v27 = vld [vmem:[%s25062_s4 + $0x5c] sm:$0xff]   ;;  %v24574_v31 = vld [vmem:[%s25062_s4 + $0x8c] sm:$0xff]  }
 0x264   : > { %22431 = vmatprep.mubr.msk.bf16.mxu1 %vm2122_vm1, %v18940_v43  ;;  %v11712_v50 = vrot.slane %v11710_v44, 5  ;;  %v18941_v54 = vcombine.low %v24839_v52, %v24840_v53  ;;  %v20155_v55 = vcombine.low %v11673_v39, %v11683_v49  ;;  %v11693_v56 = vsel %vm25095_vm4, %v11688_v45, %v11692_v4  ;;  %v24567_v28 = vld [vmem:[%s25062_s4 + $0x9c] sm:$0xff]   ;;  %v24573_v58 = vld [vmem:[%s25062_s4 + $0xd4] sm:$0xff]   ;;  %v24577_v35 = vld [vmem:[%s25062_s4 + $0x104] sm:$0xff]  }
 0x265   : > { %v11698_v57 = vrot.slane %v11697_v46, 4  ;;  %v11707_v59 = vor.u32 %v11706_v47, %v11702_v36  ;;  %v11716_v60 = vrot.slane %v11714_v48, 4  ;;  %v18942_v63 = vcombine.low %v24841_v61, %v24842_v62  ;;  %v24576_v33 = vld [vmem:[%s25062_s4 + $0x94] sm:$0xff]   ;;  %v24578_v4 = vld [vmem:[%s25062_s4 + $0x9c] sm:$0xff]   ;;  %v24582_v10 = vld [vmem:[%s25062_s4 + $0xcc] sm:$0xff]  }
 0x266   : > { %23016 = vmatmul.mubr.msk.bf16.gmra.mrb[136].mxu0 %vm2122_vm1, %v20155_v55  ;;  %v11722_v5 = vrot.slane %v11720_v51, 5  ;;  %v18943_v9 = vcombine.low %v24843_v7, %v24844_v8  ;;  %v7777_v19 = vsel %vm2339_vm0, %v24845_v18, 0  ;;  %v16552_v22 = vsel %vm2339_vm0, %v24846_v20, 0  ;;  %v24575_v34 = vld [vmem:[%s25062_s4 + $0xfc] sm:$0xff]   ;;  %v24579_v38 = vld [vmem:[%s25062_s4 + $0x10c] sm:$0xff]   ;;  %v24581_v39 = vld [vmem:[%s25062_s4 + $0x134] sm:$0xff]  }
 0x267   : > { %v11703_v0 = vsel %vm25095_vm4, %v11698_v57, %v11702_v36  ;;  %v11708_v1 = vrot.slane %v11707_v59, 4  ;;  %v11717_v3 = vor.u32 %v11716_v60, %v11712_v50  ;;  %22432 = vmatmul.mubr.msk.bf16.gmra.mrb[136].mxu1 %vm2122_vm1, %v18941_v54  ;;  %v24580_v36 = vld [vmem:[%s25062_s4 + $0xc4] sm:$0xff]   ;;  %v24584_v40 = vld [vmem:[%s25062_s4 + $0xd4] sm:$0xff]   ;;  %v24586_v41 = vld [vmem:[%s25062_s4 + $0xfc] sm:$0xff]  }
 0x268   : > { %v20156_v2 = vcombine.low %v11693_v56, %v11703_v0  ;;  %22435 = vmatprep.mubr.msk.bf16.mxu1 %vm2122_vm1, %v18942_v63  ;;  %v24583_v42 = vld [vmem:[%s25062_s4 + $0x13c] sm:$0xff]   ;;  %v24585_v43 = vld [vmem:[%s25062_s4 + $0x144] sm:$0xff]   ;;  %v24590_v45 = vld [vmem:[%s25062_s4 + $0x10c] sm:$0xff]  }
 0x269   : > { %v11713_v13 = vsel %vm25095_vm4, %v11708_v1, %v11712_v50  ;;  %v11718_v14 = vrot.slane %v11717_v3, 4  ;;  %v24588_v44 = vld [vmem:[%s25062_s4 + $0x104] sm:$0xff]   ;;  %v24587_v46 = vld [vmem:[%s25062_s4 + $0x16c] sm:$0xff]   ;;  %v24589_v47 = vld [vmem:[%s25062_s4 + $0x174] sm:$0xff]  }
 0x26a   : > { %23019 = vmatprep.mubr.msk.bf16.mxu0 %vm2122_vm1, %v20156_v2  ;;  %v24592_v48 = vld [vmem:[%s25062_s4 + $0x134] sm:$0xff]   ;;  %v24594_v49 = vld [vmem:[%s25062_s4 + $0x13c] sm:$0xff]   ;;  %v24593_v51 = vld [vmem:[%s25062_s4 + $0x1a4] sm:$0xff]  }
 0x26b   : > { %v11723_v21 = vsel %vm25095_vm4, %v11718_v14, %v11722_v5  ;;  %v24591_v50 = vld [vmem:[%s25062_s4 + $0x17c] sm:$0xff]   ;;  %v24596_v52 = vld [vmem:[%s25062_s4 + $0x144] sm:$0xff]   ;;  %v24598_v53 = vld [vmem:[%s25062_s4 + $0x16c] sm:$0xff]  }
 0x26c   : > { %v20157_v11 = vcombine.low %v11713_v13, %v11723_v21  ;;  %v24595_v54 = vld [vmem:[%s25062_s4 + $0x1ac] sm:$0xff]   ;;  %v24597_v55 = vld [vmem:[%s25062_s4 + $0x1b4] sm:$0xff]   ;;  %v24602_v57 = vld [vmem:[%s25062_s4 + $0x17c] sm:$0xff]  }
 0x26d   : > { %v24600_v56 = vld [vmem:[%s25062_s4 + $0x174] sm:$0xff]   ;;  %v24599_v59 = vld [vmem:[%s25062_s4 + $0x1dc] sm:$0xff]   ;;  %v24601_v60 = vld [vmem:[%s25062_s4 + $0x1e4] sm:$0xff]  }
 0x26e   : > { %23020 = vmatmul.mubr.msk.bf16.gmra.mrb[140].mxu0 %vm2122_vm1, %v20157_v11  ;;  %v24604_v61 = vld [vmem:[%s25062_s4 + $0x1a4] sm:$0xff]   ;;  %v24606_v62 = vld [vmem:[%s25062_s4 + $0x1ac] sm:$0xff]   ;;  %v24605_v0 = vld [vmem:[%s25062_s4 + $0x214] sm:$0xff]  }
 0x26f   : > { %23025 = vmatprep.mubr.msk.bf16.mxu0 %vm2122_vm1, %v24555_v6  ;;  %22436 = vmatmul.mubr.msk.bf16.gmra.mrb[140].mxu1 %vm2122_vm1, %v18943_v9  ;;  %v24603_v63 = vld [vmem:[%s25062_s4 + $0x1ec] sm:$0xff]   ;;  %v24608_v1 = vld [vmem:[%s25062_s4 + $0x1b4] sm:$0xff]   ;;  %v24610_v2 = vld [vmem:[%s25062_s4 + $0x1dc] sm:$0xff]  }
 0x270   : > { %22441 = vmatprep.mubr.msk.bf16.mxu1 %vm2122_vm1, %v24560_v12  ;;  %v24607_v3 = vld [vmem:[%s25062_s4 + $0x21c] sm:$0xff]   ;;  %v24609_v5 = vld [vmem:[%s25062_s4 + $0x224] sm:$0xff]   ;;  %v24614_v14 = vld [vmem:[%s25062_s4 + $0x1ec] sm:$0xff]  }
 0x271   : > { %v24612_v13 = vld [vmem:[%s25062_s4 + $0x1e4] sm:$0xff]   ;;  %v24611_v21 = vld [vmem:[%s25062_s4 + $0x24c] sm:$0xff]   ;;  %v24613_v6 = vld [vmem:[%s25062_s4 + $0x254] sm:$0xff]  }
 0x272   : > { %v24616_v7 = vld [vmem:[%s25062_s4 + $0x214] sm:$0xff]   ;;  %v24618_v8 = vld [vmem:[%s25062_s4 + $0x21c] sm:$0xff]   ;;  %v24617_v11 = vld [vmem:[%s25062_s4 + $0x284] sm:$0xff]  }
 0x273   : > { %v24615_v9 = vld [vmem:[%s25062_s4 + $0x25c] sm:$0xff]   ;;  %v24620_v12 = vld [vmem:[%s25062_s4 + $0x224] sm:$0xff]   ;;  %v24624_v18 = vld [vmem:[%s25062_s4 + $0x254] sm:$0xff]  }
 0x274   : > { %v24623_v20 = vld [vmem:[%s25062_s4 + $0x2bc] sm:$0xff]  }
 0x276   : > { %23026 = vmatmul.mubr.msk.bf16.vlgmr.msra.gmra.mrb[0].mxu0 %vm2122_vm1, %v24557_v15  ;;  %v24622_v15 = vld [vmem:[%s25062_s4 + $0x24c] sm:$0xff]  }
 0x277   : > { %23029 = vmatprep.mubr.msk.bf16.mxu0 %vm2122_vm1, %v24559_v16  ;;  %22442 = vmatmul.mubr.msk.bf16.vlgmr.msra.gmra.mrb[0].mxu1 %vm2122_vm1, %v24564_v17  ;;  %v24619_v16 = vld [vmem:[%s25062_s4 + $0x28c] sm:$0xff]   ;;  %v24621_v17 = vld [vmem:[%s25062_s4 + $0x294] sm:$0xff]  }
 0x278   : > { %22586 = vmatpush3.bf16.msra.mxu1 %v7777_v19  ;;  %23170 = vmatpush3.bf16.msra.mxu0 %v16552_v22  ;;  %v24626_v19 = vld [vmem:[%s25062_s4 + $0x25c] sm:$0xff]   ;;  %v24625_v22 = vld [vmem:[%s25062_s4 + $0x2c4] sm:$0xff]  }
 0x279   : > { %22445 = vmatprep.mubr.msk.bf16.mxu1 %vm2122_vm1, %v24566_v23  ;;  %v24628_v23 = vld [vmem:[%s25062_s4 + $0x284] sm:$0xff]  }
 0x27e   : > { %23030 = vmatmul.mubr.msk.bf16.gmra.mrb[4].mxu0 %vm2122_vm1, %v24562_v24  ;;  %v24630_v24 = vld [vmem:[%s25062_s4 + $0x28c] sm:$0xff]  }
 0x27f   : > { %23033 = vmatprep.mubr.msk.bf16.mxu0 %vm2122_vm1, %v24565_v25  ;;  %22446 = vmatmul.mubr.msk.bf16.gmra.mrb[4].mxu1 %vm2122_vm1, %v24568_v26  ;;  %v24627_v25 = vld [vmem:[%s25062_s4 + $0x2cc] sm:$0xff]   ;;  %v24629_v26 = vld [vmem:[%s25062_s4 + $0x2f4] sm:$0xff]  }
 0x280   : > { %22449 = vmatprep.mubr.msk.bf16.mxu1 %vm2122_vm1, %v24570_v27  ;;  %v24632_v27 = vld [vmem:[%s25062_s4 + $0x294] sm:$0xff]  }
 0x286   : > { %23034 = vmatmul.mubr.msk.bf16.gmra.mrb[8].mxu0 %vm2122_vm1, %v24567_v28  ;;  %v24634_v28 = vld [vmem:[%s25062_s4 + $0x2bc] sm:$0xff]  }
 0x287   : > { %23037 = vmatprep.mubr.msk.bf16.mxu0 %vm2122_vm1, %v24569_v29  ;;  %22450 = vmatmul.mubr.msk.bf16.gmra.mrb[8].mxu1 %vm2122_vm1, %v24572_v30  ;;  %v24631_v29 = vld [vmem:[%s25062_s4 + $0x2fc] sm:$0xff]   ;;  %v24633_v30 = vld [vmem:[%s25062_s4 + $0x304] sm:$0xff]  }
 0x288   : > { %22453 = vmatprep.mubr.msk.bf16.mxu1 %vm2122_vm1, %v24574_v31  ;;  %v24636_v31 = vld [vmem:[%s25062_s4 + $0x2c4] sm:$0xff]  }
 0x28e   : > { %23038 = vmatmul.mubr.msk.bf16.gmra.mrb[12].mxu0 %vm2122_vm1, %v24571_v32  ;;  %v24638_v32 = vld [vmem:[%s25062_s4 + $0x2cc] sm:$0xff]  }
 0x28f   : > { %23041 = vmatprep.mubr.msk.bf16.mxu0 %vm2122_vm1, %v24573_v58  ;;  %22454 = vmatmul.mubr.msk.bf16.gmra.mrb[12].mxu1 %vm2122_vm1, %v24576_v33  ;;  %v24635_v58 = vld [vmem:[%s25062_s4 + $0x32c] sm:$0xff]   ;;  %v20524_v33 = vld [vmem:[%s25062_s4 + $0x54] sm:$0xf] }
 0x290   : > { %22457 = vmatprep.mubr.msk.bf16.mxu1 %vm2122_vm1, %v24578_v4  ;;  %v20525_v4 = vld [vmem:[%s25062_s4 + $0x58] sm:$0xf] }
 0x296   : > { %23042 = vmatmul.mubr.msk.bf16.gmra.mrb[16].mxu0 %vm2122_vm1, %v24575_v34  ;;  %v20526_v34 = vld [vmem:[%s25062_s4 + $0x5c] sm:$0xf] }
 0x297   : > { %23045 = vmatprep.mubr.msk.bf16.mxu0 %vm2122_vm1, %v24577_v35  ;;  %22458 = vmatmul.mubr.msk.bf16.gmra.mrb[16].mxu1 %vm2122_vm1, %v24580_v36  ;;  %v14576_v35 = vshrl.u32 %v20524_v33, 16  ;;  %v14579_v36 = vshll.u32 %v20524_v33, 16 }
 0x298   : > { %22461 = vmatprep.mubr.msk.bf16.mxu1 %vm2122_vm1, %v24582_v10  ;;  %v14585_v10 = vshll.u32 %v20525_v4, 16 }
 0x29e   : > { %23046 = vmatmul.mubr.msk.bf16.gmra.mrb[20].mxu0 %vm2122_vm1, %v24579_v38  ;;  %v14589_v38 = vshrl.u32 %v20525_v4, 16 }
 0x29f   : > { %23049 = vmatprep.mubr.msk.bf16.mxu0 %vm2122_vm1, %v24581_v39  ;;  %22462 = vmatmul.mubr.msk.bf16.gmra.mrb[20].mxu1 %vm2122_vm1, %v24584_v40  ;;  %v24637_v39 = vld [vmem:[%s25062_s4 + $0x334] sm:$0xff]  }
 0x2a0   : > { %22465 = vmatprep.mubr.msk.bf16.mxu1 %vm2122_vm1, %v24586_v41  ;;  %v24640_v40 = vld [vmem:[%s25062_s4 + $0x2f4] sm:$0xff]   ;;  %v14595_v41 = vshll.u32 %v20526_v34, 16 }
 0x2a6   : > { %23050 = vmatmul.mubr.msk.bf16.gmra.mrb[24].mxu0 %vm2122_vm1, %v24583_v42  ;;  %v14599_v42 = vshrl.u32 %v20526_v34, 16 }
 0x2a7   : > { %23053 = vmatprep.mubr.msk.bf16.mxu0 %vm2122_vm1, %v24585_v43  ;;  %22466 = vmatmul.mubr.msk.bf16.gmra.mrb[24].mxu1 %vm2122_vm1, %v24588_v44  ;;  %v20527_v43 = vld [vmem:[%s25062_s4 + $0x60] sm:$0xf] }
 0x2a8   : > { %22469 = vmatprep.mubr.msk.bf16.mxu1 %vm2122_vm1, %v24590_v45  ;;  %v24642_v44 = vld [vmem:[%s25062_s4 + $0x2fc] sm:$0xff]   ;;  %v14578_v45 = vrot.slane %v14576_v35, 4 }
 0x2ae   : > { %23054 = vmatmul.mubr.msk.bf16.gmra.mrb[28].mxu0 %vm2122_vm1, %v24587_v46  ;;  %v14581_v46 = vrot.slane %v14579_v36, 5 }
 0x2af   : > { %23057 = vmatprep.mubr.msk.bf16.mxu0 %vm2122_vm1, %v24589_v47  ;;  %22470 = vmatmul.mubr.msk.bf16.gmra.mrb[28].mxu1 %vm2122_vm1, %v24592_v48  ;;  %v14587_v47 = vrot.slane %v14585_v10, 5  ;;  %v14591_v48 = vrot.slane %v14589_v38, 4 }
 0x2b0   : > { %22473 = vmatprep.mubr.msk.bf16.mxu1 %vm2122_vm1, %v24594_v49  ;;  %v14597_v49 = vrot.slane %v14595_v41, 5 }
 0x2b6   : > { %23058 = vmatmul.mubr.msk.bf16.gmra.mrb[32].mxu0 %vm2122_vm1, %v24591_v50  ;;  %v14601_v50 = vrot.slane %v14599_v42, 4 }
 0x2b7   : > { %23061 = vmatprep.mubr.msk.bf16.mxu0 %vm2122_vm1, %v24593_v51  ;;  %22474 = vmatmul.mubr.msk.bf16.gmra.mrb[32].mxu1 %vm2122_vm1, %v24596_v52  ;;  %v14605_v51 = vshll.u32 %v20527_v43, 16  ;;  %v14609_v52 = vshrl.u32 %v20527_v43, 16  ;;  %v20532_v43 = vld [vmem:[%s25062_s4 + $0x90] sm:$0xf] }
 0x2b8   : > { %22477 = vmatprep.mubr.msk.bf16.mxu1 %vm2122_vm1, %v24598_v53  ;;  %v14582_v53 = vor.u32 %v14581_v46, %v14578_v45  ;;  %v24643_v45 = vld [vmem:[%s25062_s4 + $0x36c] sm:$0xff]  }
 0x2be   : > { %23062 = vmatmul.mubr.msk.bf16.gmra.mrb[36].mxu0 %vm2122_vm1, %v24595_v54  ;;  %v14592_v54 = vor.u32 %v14591_v48, %v14587_v47 }
 0x2bf   : > { %23065 = vmatprep.mubr.msk.bf16.mxu0 %vm2122_vm1, %v24597_v55  ;;  %22478 = vmatmul.mubr.msk.bf16.gmra.mrb[36].mxu1 %vm2122_vm1, %v24600_v56  ;;  %v20528_v55 = vld [vmem:[%s25062_s4 + $0x64] sm:$0xf]  ;;  %v14602_v56 = vor.u32 %v14601_v50, %v14597_v49 }
 0x2c0   : > { %22481 = vmatprep.mubr.msk.bf16.mxu1 %vm2122_vm1, %v24602_v57  ;;  %v14607_v57 = vrot.slane %v14605_v51, 5  ;;  %v24645_v51 = vld [vmem:[%s25062_s4 + $0x374] sm:$0xff]  }
 0x2c6   : > { %23066 = vmatmul.mubr.msk.bf16.gmra.mrb[40].mxu0 %vm2122_vm1, %v24599_v59  ;;  %v14611_v59 = vrot.slane %v14609_v52, 4  ;;  %v24648_v52 = vld [vmem:[%s25062_s4 + $0x334] sm:$0xff]  }
 0x2c7   : > { %23069 = vmatprep.mubr.msk.bf16.mxu0 %vm2122_vm1, %v24601_v60  ;;  %22482 = vmatmul.mubr.msk.bf16.gmra.mrb[40].mxu1 %vm2122_vm1, %v24604_v61  ;;  %v14615_v60 = vshll.u32 %v20528_v55, 16  ;;  %v14583_v61 = vrot.slane %v14582_v53, 4 }
 0x2c8   : > { %22485 = vmatprep.mubr.msk.bf16.mxu1 %vm2122_vm1, %v24606_v62  ;;  %v14593_v62 = vrot.slane %v14592_v54, 4 }
 0x2ce   : > { %23070 = vmatmul.mubr.msk.bf16.gmra.mrb[44].mxu0 %vm2122_vm1, %v24603_v63  ;;  %v24639_v63 = vld [vmem:[%s25062_s4 + $0x33c] sm:$0xff]  }
 0x2cf   : > { %23073 = vmatprep.mubr.msk.bf16.mxu0 %vm2122_vm1, %v24605_v0  ;;  %22486 = vmatmul.mubr.msk.bf16.gmra.mrb[44].mxu1 %vm2122_vm1, %v24608_v1  ;;  %v14603_v0 = vrot.slane %v14602_v56, 4  ;;  %v14612_v1 = vor.u32 %v14611_v59, %v14607_v57 }
 0x2d0   : > { %22489 = vmatprep.mubr.msk.bf16.mxu1 %vm2122_vm1, %v24610_v2  ;;  %v14617_v2 = vrot.slane %v14615_v60, 5 }
 0x2d6   : > { %23074 = vmatmul.mubr.msk.bf16.gmra.mrb[48].mxu0 %vm2122_vm1, %v24607_v3  ;;  %v20529_v3 = vld [vmem:[%s25062_s4 + $0x68] sm:$0xf] }
 0x2d7   : > { %23077 = vmatprep.mubr.msk.bf16.mxu0 %vm2122_vm1, %v24609_v5  ;;  %22490 = vmatmul.mubr.msk.bf16.gmra.mrb[48].mxu1 %vm2122_vm1, %v24612_v13  ;;  %v24641_v5 = vld [vmem:[%s25062_s4 + $0x364] sm:$0xff]  }
 0x2d8   : > { %22493 = vmatprep.mubr.msk.bf16.mxu1 %vm2122_vm1, %v24614_v14  ;;  %v24644_v13 = vld [vmem:[%s25062_s4 + $0x304] sm:$0xff]   ;;  %v24646_v14 = vld [vmem:[%s25062_s4 + $0x32c] sm:$0xff]  }
 0x2de   : > { %23078 = vmatmul.mubr.msk.bf16.gmra.mrb[52].mxu0 %vm2122_vm1, %v24611_v21  ;;  %v14588_v21 = vsel %vm25095_vm4, %v14583_v61, %v14587_v47 }
 0x2df   : > { %23081 = vmatprep.mubr.msk.bf16.mxu0 %vm2122_vm1, %v24613_v6  ;;  %22494 = vmatmul.mubr.msk.bf16.gmra.mrb[52].mxu1 %vm2122_vm1, %v24616_v7  ;;  %v14598_v6 = vsel %vm25095_vm4, %v14593_v62, %v14597_v49  ;;  %v14619_v7 = vshrl.u32 %v20528_v55, 16  ;;  %v20533_v49 = vld [vmem:[%s25062_s4 + $0x94] sm:$0xf]  ;;  %v14649_v62 = vshll.u32 %v20532_v43, 16 }
 0x2e0   : > { %22497 = vmatprep.mubr.msk.bf16.mxu1 %vm2122_vm1, %v24618_v8  ;;  %v14625_v8 = vshll.u32 %v20529_v3, 16 }
 0x2e6   : > { %23082 = vmatmul.mubr.msk.bf16.gmra.mrb[56].mxu0 %vm2122_vm1, %v24615_v9  ;;  %v26716_v9 = vcombine.low %v14588_v21, %v14598_v6 }
 0x2e7   : > { %23085 = vmatprep.mubr.msk.bf16.mxu0 %vm2122_vm1, %v24617_v11  ;;  %22498 = vmatmul.mubr.msk.bf16.gmra.mrb[56].mxu1 %vm2122_vm1, %v24620_v12  ;;  %v14608_v11 = vsel %vm25095_vm4, %v14603_v0, %v14607_v57  ;;  %v14613_v12 = vrot.slane %v14612_v1, 4  ;;  %v24650_v57 = vld [vmem:[%s25062_s4 + $0x33c] sm:$0xff]  }
 0x2e8   : > { %22501 = vmatprep.mubr.msk.bf16.mxu1 %vm2122_vm1, %v24622_v15  ;;  %v14629_v15 = vshrl.u32 %v20529_v3, 16  ;;  %v14659_v3 = vshll.u32 %v20533_v49, 16 }
 0x2ee   : > { %23086 = vmatmul.mubr.msk.bf16.gmra.mrb[60].mxu0 %vm2122_vm1, %v24619_v16  ;;  %v19309_v16 = vld [vmem:[%s25062_s4 + $0x1c] sm:$0xf] }
 0x2ef   : > { %23089 = vmatprep.mubr.msk.bf16.mxu0 %vm2122_vm1, %v24621_v17  ;;  %22502 = vmatmul.mubr.msk.bf16.gmra.mrb[60].mxu1 %vm2122_vm1, %v24624_v18  ;;  %v19310_v17 = vld [vmem:[%s25062_s4 + $0x20] sm:$0xf]  ;;  %v14621_v18 = vrot.slane %v14619_v7, 4  ;;  %v14651_v7 = vrot.slane %v14649_v62, 5 }
 0x2f0   : > { %22505 = vmatprep.mubr.msk.bf16.mxu1 %vm2122_vm1, %v24626_v19  ;;  %v14627_v19 = vrot.slane %v14625_v8, 5 }
 0x2f6   : > { %23090 = vmatmul.mubr.msk.bf16.gmra.mrb[64].mxu0 %vm2122_vm1, %v24623_v20  ;;  %v19311_v20 = vld [vmem:[%s25062_s4 + $0x24] sm:$0xf] }
 0x2f7   : > { %23093 = vmatprep.mubr.msk.bf16.mxu0 %vm2122_vm1, %v24625_v22  ;;  %22506 = vmatmul.mubr.msk.bf16.gmra.mrb[64].mxu1 %vm2122_vm1, %v24628_v23  ;;  %v5801_v22 = vshrl.u32 %v19309_v16, 16  ;;  %v5804_v23 = vshll.u32 %v19309_v16, 16  ;;  %v5820_v38 = vshll.u32 %v19311_v20, 16 }
 0x2f8   : > { %22509 = vmatprep.mubr.msk.bf16.mxu1 %vm2122_vm1, %v24630_v24  ;;  %v14618_v24 = vsel %vm25095_vm4, %v14613_v12, %v14617_v2  ;;  %v14663_v12 = vshrl.u32 %v20533_v49, 16 }
 0x2f9   : > { %v5806_v4 = vrot.slane %v5804_v23, 5  ;;  %v5822_v47 = vrot.slane %v5820_v38, 5  ;;  %v20535_v23 = vld [vmem:[%s25062_s4 + $0x9c] sm:$0xf] }
 0x2fe   : > { %23094 = vmatmul.mubr.msk.bf16.gmra.mrb[68].mxu0 %vm2122_vm1, %v24627_v25  ;;  %v20530_v25 = vld [vmem:[%s25062_s4 + $0x6c] sm:$0x1] }
 0x2ff   : > { %23097 = vmatprep.mubr.msk.bf16.mxu0 %vm2122_vm1, %v24629_v26  ;;  %22510 = vmatmul.mubr.msk.bf16.gmra.mrb[68].mxu1 %vm2122_vm1, %v24632_v27  ;;  %v14631_v26 = vrot.slane %v14629_v15, 4  ;;  %v5810_v27 = vshll.u32 %v19310_v17, 16 }
 0x300   : > { %22513 = vmatprep.mubr.msk.bf16.mxu1 %vm2122_vm1, %v24634_v28  ;;  %v5814_v28 = vshrl.u32 %v19310_v17, 16 }
 0x301   : > { %v14632_v33 = vor.u32 %v14631_v26, %v14627_v19  ;;  %v5812_v34 = vrot.slane %v5810_v27, 5  ;;  %v24647_v26 = vld [vmem:[%s25062_s4 + $0x39c] sm:$0xff]  }
 0x302   : > { %v5816_v35 = vrot.slane %v5814_v28, 4 }
 0x304   : > { %v5817_v42 = vor.u32 %v5816_v35, %v5812_v34 }
 0x306   : > { %23098 = vmatmul.mubr.msk.bf16.gmra.mrb[72].mxu0 %vm2122_vm1, %v24631_v29  ;;  %v26727_v29 = vcombine.low %v14608_v11, %v14618_v24  ;;  %v5818_v55 = vrot.slane %v5817_v42, 4  ;;  %v14661_v11 = vrot.slane %v14659_v3, 5  ;;  %v14665_v24 = vrot.slane %v14663_v12, 4  ;;  %v19316_v3 = vld [vmem:[%s25062_s4 + $0x54] sm:$0xf] }
 0x307   : > { %23101 = vmatprep.mubr.msk.bf16.mxu0 %vm2122_vm1, %v24633_v30  ;;  %22514 = vmatmul.mubr.msk.bf16.gmra.mrb[72].mxu1 %vm2122_vm1, %v24636_v31  ;;  %v14622_v30 = vor.u32 %v14621_v18, %v14617_v2  ;;  %v14635_v31 = vshll.u32 %v20530_v25, 16  ;;  %v14653_v2 = vshrl.u32 %v20532_v43, 16  ;;  %v24656_v12 = vld [vmem:[%s25062_s4 + $0x374] sm:$0xff]  }
 0x308   : > { %22517 = vmatprep.mubr.msk.bf16.mxu1 %vm2122_vm1, %v24638_v32  ;;  %v5803_v32 = vrot.slane %v5801_v22, 4  ;;  %v5823_v1 = vsel %vm25095_vm4, %v5818_v55, %v5822_v47  ;;  %v14666_v35 = vor.u32 %v14665_v24, %v14661_v11  ;;  %v5865_v24 = vshrl.u32 %v19316_v3, 16 }
 0x309   : > { %v14623_v36 = vrot.slane %v14622_v30, 4  ;;  %v14637_v10 = vrot.slane %v14635_v31, 5  ;;  %v14655_v8 = vrot.slane %v14653_v2, 4 }
 0x30a   : > { %v5807_v41 = vor.u32 %v5806_v4, %v5803_v32  ;;  %v19314_v32 = vld [vmem:[%s25062_s4 + $0x30] sm:$0xf]  ;;  %v14667_v43 = vrot.slane %v14666_v35, 4 }
 0x30b   : > { %v14628_v46 = vsel %vm25095_vm4, %v14623_v36, %v14627_v19  ;;  %v5854_v55 = vshrl.u32 %v19314_v32, 16 }
 0x30c   : > { %v5808_v54 = vrot.slane %v5807_v41, 4 }
 0x30e   : > { %23102 = vmatmul.mubr.msk.bf16.gmra.mrb[76].mxu0 %vm2122_vm1, %v24635_v58  ;;  %v20531_v58 = vld [vmem:[%s25062_s4 + $0x8c] sm:$0xf]  ;;  %v5813_v0 = vsel %vm25095_vm4, %v5808_v54, %v5812_v34 }
 0x30f   : > { %23105 = vmatprep.mubr.msk.bf16.mxu0 %vm2122_vm1, %v24637_v39  ;;  %22518 = vmatmul.mubr.msk.bf16.gmra.mrb[76].mxu1 %vm2122_vm1, %v24640_v40  ;;  %v5824_v39 = vshrl.u32 %v19311_v20, 16  ;;  %v14633_v40 = vrot.slane %v14632_v33, 4  ;;  %v14643_v50 = vshll.u32 %v20531_v58, 16  ;;  %v26753_v21 = vcombine.low %v5813_v0, %v5823_v1  ;;  %v24652_v33 = vld [vmem:[%s25062_s4 + $0x364] sm:$0xff]  }
 0x310   : > { %22521 = vmatprep.mubr.msk.bf16.mxu1 %vm2122_vm1, %v24642_v44  ;;  %v14640_v44 = vshrl.u32 %v20531_v58, 16  ;;  %v14656_v20 = vor.u32 %v14655_v8, %v14651_v7  ;;  %v24649_v58 = vld [vmem:[%s25062_s4 + $0x3a4] sm:$0xff]   ;;  %v5856_v1 = vrot.slane %v5854_v55, 4  ;;  %v19317_v8 = vld [vmem:[%s25062_s4 + $0x58] sm:$0xf] }
 0x311   : > { %v5826_v48 = vrot.slane %v5824_v39, 4  ;;  %v14638_v53 = vsel %vm25095_vm4, %v14633_v40, %v14637_v10  ;;  %v14645_v61 = vrot.slane %v14643_v50, 5  ;;  %v24654_v10 = vld [vmem:[%s25062_s4 + $0x36c] sm:$0xff]   ;;  %v14679_v39 = vshll.u32 %v20535_v23, 16  ;;  %v24660_v55 = vld [vmem:[%s25062_s4 + $0x3a4] sm:$0xff]  }
 0x312   : > { %v14642_v56 = vrot.slane %v14640_v44, 4  ;;  %v26743_v59 = vcombine.low %v14628_v46, %v14638_v53  ;;  %v14657_v4 = vrot.slane %v14656_v20, 4  ;;  %v14683_v40 = vshrl.u32 %v20535_v23, 16  ;;  %v19318_v23 = vld [vmem:[%s25062_s4 + $0x5c] sm:$0xf] }
 0x313   : > { %v5827_v60 = vor.u32 %v5826_v48, %v5822_v47  ;;  %v5850_v46 = vshll.u32 %v19314_v32, 16  ;;  %v14681_v49 = vrot.slane %v14679_v39, 5  ;;  %v5867_v32 = vrot.slane %v5865_v24, 4 }
 0x314   : > { %v14646_v6 = vor.u32 %v14645_v61, %v14642_v56  ;;  %v14662_v42 = vsel %vm25095_vm4, %v14657_v4, %v14661_v11  ;;  %v20537_v61 = vld [vmem:[%s25062_s4 + $0xa4] sm:$0x1]  ;;  %v14685_v62 = vrot.slane %v14683_v40, 4  ;;  %v24653_v11 = vld [vmem:[%s25062_s4 + $0x3d4] sm:$0xff]  }
 0x315   : > { %v5852_v54 = vrot.slane %v5850_v46, 5  ;;  %v20538_v4 = vld [vmem:[%s25062_s4 + $0xc4] sm:$0xf] }
 0x316   : > { %23106 = vmatmul.mubr.msk.bf16.gmra.mrb[80].mxu0 %vm2122_vm1, %v24639_v63  ;;  %v19312_v63 = vld [vmem:[%s25062_s4 + $0x28] sm:$0xf]  ;;  %v14647_v16 = vrot.slane %v14646_v6, 4  ;;  %v14704_v46 = vshrl.u32 %v20538_v4, 16 }
 0x317   : > { %23109 = vmatprep.mubr.msk.bf16.mxu0 %vm2122_vm1, %v24641_v5  ;;  %22522 = vmatmul.mubr.msk.bf16.gmra.mrb[80].mxu1 %vm2122_vm1, %v24644_v13  ;;  %v19313_v5 = vld [vmem:[%s25062_s4 + $0x2c] sm:$0xf]  ;;  %v20534_v13 = vld [vmem:[%s25062_s4 + $0x98] sm:$0xf]  ;;  %v5830_v15 = vshll.u32 %v19312_v63, 16  ;;  %v5834_v17 = vshrl.u32 %v19312_v63, 16 }
 0x318   : > { %22525 = vmatprep.mubr.msk.bf16.mxu1 %vm2122_vm1, %v24646_v14  ;;  %v5828_v14 = vrot.slane %v5827_v60, 4  ;;  %v5840_v18 = vshll.u32 %v19313_v5, 16  ;;  %v14669_v19 = vshll.u32 %v20534_v13, 16  ;;  %v14673_v25 = vshrl.u32 %v20534_v13, 16 }
 0x319   : > { %v5832_v22 = vrot.slane %v5830_v15, 5  ;;  %v14652_v27 = vsel %vm25095_vm4, %v14647_v16, %v14651_v7  ;;  %v5836_v28 = vrot.slane %v5834_v17, 4  ;;  %v5844_v41 = vshrl.u32 %v19313_v5, 16  ;;  %v24651_v5 = vld [vmem:[%s25062_s4 + $0x3ac] sm:$0xff]  }
 0x31a   : > { %v5842_v30 = vrot.slane %v5840_v18, 5  ;;  %v14671_v31 = vrot.slane %v14669_v19, 5  ;;  %v14675_v36 = vrot.slane %v14673_v25, 4  ;;  %v26772_v47 = vcombine.low %v14652_v27, %v14662_v42  ;;  %v24658_v19 = vld [vmem:[%s25062_s4 + $0x39c] sm:$0xff]  }
 0x31b   : > { %v5833_v34 = vsel %vm25095_vm4, %v5828_v14, %v5832_v22  ;;  %v5837_v38 = vor.u32 %v5836_v28, %v5832_v22  ;;  %v5846_v50 = vrot.slane %v5844_v41, 4  ;;  %v14686_v7 = vor.u32 %v14685_v62, %v14681_v49  ;;  %v19319_v62 = vld [vmem:[%s25062_s4 + $0x60] sm:$0xf] }
 0x31c   : > { %v14676_v44 = vor.u32 %v14675_v36, %v14671_v31  ;;  %v5857_v15 = vor.u32 %v5856_v1, %v5852_v54  ;;  %v14699_v18 = vshll.u32 %v20537_v61, 16  ;;  %v5868_v25 = vshll.u32 %v19316_v3, 16 }
 0x31d   : > { %v5838_v48 = vrot.slane %v5837_v38, 4  ;;  %v14687_v22 = vrot.slane %v14686_v7, 4  ;;  %v20539_v38 = vld [vmem:[%s25062_s4 + $0xc8] sm:$0xf]  ;;  %v5888_v42 = vshrl.u32 %v19318_v23, 16 }
 0x31e   : > { %23110 = vmatmul.mubr.msk.bf16.gmra.mrb[84].mxu0 %vm2122_vm1, %v24643_v45  ;;  %v19315_v45 = vld [vmem:[%s25062_s4 + $0x34] sm:$0x1]  ;;  %v14677_v53 = vrot.slane %v14676_v44, 4  ;;  %v14701_v28 = vrot.slane %v14699_v18, 5 }
 0x31f   : > { %23113 = vmatprep.mubr.msk.bf16.mxu0 %vm2122_vm1, %v24645_v51  ;;  %22526 = vmatmul.mubr.msk.bf16.gmra.mrb[84].mxu1 %vm2122_vm1, %v24648_v52  ;;  %v20536_v51 = vld [vmem:[%s25062_s4 + $0xa0] sm:$0xf]  ;;  %v14672_v52 = vsel %vm25095_vm4, %v14667_v43, %v14671_v31  ;;  %v5843_v56 = vsel %vm25095_vm4, %v5838_v48, %v5842_v30  ;;  %v5860_v60 = vshll.u32 %v19315_v45, 16  ;;  %v20540_v43 = vld [vmem:[%s25062_s4 + $0xcc] sm:$0xf]  ;;  %v14707_v48 = vshll.u32 %v20538_v4, 16 }
 0x320   : > { %22529 = vmatprep.mubr.msk.bf16.mxu1 %vm2122_vm1, %v24650_v57  ;;  %v5847_v57 = vor.u32 %v5846_v50, %v5842_v30  ;;  %v26783_v63 = vcombine.low %v5833_v34, %v5843_v56  ;;  %v14682_v0 = vsel %vm25095_vm4, %v14677_v53, %v14681_v49  ;;  %v14689_v2 = vshll.u32 %v20536_v51, 16  ;;  %v24655_v49 = vld [vmem:[%s25062_s4 + $0x3dc] sm:$0xff]   ;;  %v24657_v50 = vld [vmem:[%s25062_s4 + $0x3e4] sm:$0xff]   ;;  %v24661_v4 = vld [vmem:[%s25062_s4 + $0x414] sm:$0xff]  }
 0x321   : > { %v26789_v13 = vcombine.low %v14672_v52, %v14682_v0  ;;  %v5862_v6 = vrot.slane %v5860_v60, 5  ;;  %v14693_v17 = vshrl.u32 %v20536_v51, 16  ;;  %v5874_v30 = vshll.u32 %v19317_v8, 16  ;;  %v24662_v0 = vld [vmem:[%s25062_s4 + $0x3ac] sm:$0xff]  }
 0x322   : > { %v5848_v14 = vrot.slane %v5847_v57, 4  ;;  %v14691_v16 = vrot.slane %v14689_v2, 5  ;;  %v14713_v53 = vshll.u32 %v20539_v38, 16  ;;  %v14706_v57 = vrot.slane %v14704_v46, 4  ;;  %v24666_v46 = vld [vmem:[%s25062_s4 + $0x3dc] sm:$0xff]  }
 0x323   : > { %v14695_v27 = vrot.slane %v14693_v17, 4  ;;  %v5876_v36 = vrot.slane %v5874_v30, 5  ;;  %v14709_v60 = vrot.slane %v14707_v48, 5  ;;  %v14723_v61 = vshll.u32 %v20540_v43, 16 }
 0x324   : > { %v5853_v20 = vsel %vm25095_vm4, %v5848_v14, %v5852_v54  ;;  %v14692_v31 = vsel %vm25095_vm4, %v14687_v22, %v14691_v16  ;;  %v14717_v54 = vshrl.u32 %v20539_v38, 16  ;;  %v19320_v14 = vld [vmem:[%s25062_s4 + $0x64] sm:$0xf]  ;;  %v5898_v17 = vshrl.u32 %v19319_v62, 16 }
 0x325   : > { %v14696_v35 = vor.u32 %v14695_v27, %v14691_v16  ;;  %v5894_v16 = vshll.u32 %v19319_v62, 16  ;;  %v5904_v22 = vshll.u32 %v19320_v14, 16  ;;  %v5908_v27 = vshrl.u32 %v19320_v14, 16  ;;  %v20543_v62 = vld [vmem:[%s25062_s4 + $0xd8] sm:$0xf] }
 0x326   : > { %23114 = vmatmul.mubr.msk.bf16.gmra.mrb[88].mxu0 %vm2122_vm1, %v24647_v26  ;;  %v5858_v26 = vrot.slane %v5857_v15, 4  ;;  %v14719_v7 = vrot.slane %v14717_v54, 4  ;;  %v5890_v15 = vrot.slane %v5888_v42, 4 }
 0x327   : > { %23117 = vmatprep.mubr.msk.bf16.mxu0 %vm2122_vm1, %v24649_v58  ;;  %22530 = vmatmul.mubr.msk.bf16.gmra.mrb[88].mxu1 %vm2122_vm1, %v24652_v33  ;;  %v5870_v58 = vrot.slane %v5868_v25, 5  ;;  %v5878_v33 = vshrl.u32 %v19317_v8, 16  ;;  %v14697_v44 = vrot.slane %v14696_v35, 4  ;;  %v14725_v8 = vrot.slane %v14723_v61, 5 }
 0x328   : > { %22533 = vmatprep.mubr.msk.bf16.mxu1 %vm2122_vm1, %v24654_v10  ;;  %v5863_v34 = vsel %vm25095_vm4, %v5858_v26, %v5862_v6  ;;  %v5884_v10 = vshll.u32 %v19318_v23, 16  ;;  %v14710_v6 = vor.u32 %v14709_v60, %v14706_v57  ;;  %v20541_v23 = vld [vmem:[%s25062_s4 + $0xd0] sm:$0xf]  ;;  %v5896_v25 = vrot.slane %v5894_v16, 5 }
 0x329   : > { %v26808_v39 = vcombine.low %v5853_v20, %v5863_v34  ;;  %v5871_v40 = vor.u32 %v5870_v58, %v5867_v32  ;;  %v5880_v41 = vrot.slane %v5878_v33, 4  ;;  %v14702_v56 = vsel %vm25095_vm4, %v14697_v44, %v14701_v28  ;;  %v20542_v28 = vld [vmem:[%s25062_s4 + $0xd4] sm:$0xf]  ;;  %v24659_v33 = vld [vmem:[%s25062_s4 + $0x40c] sm:$0xff]   ;;  %v19321_v44 = vld [vmem:[%s25062_s4 + $0x68] sm:$0xf] }
 0x32a   : > { %v5886_v45 = vrot.slane %v5884_v10, 5  ;;  %v26818_v1 = vcombine.low %v14692_v31, %v14702_v56  ;;  %v5900_v26 = vrot.slane %v5898_v17, 4  ;;  %v5906_v32 = vrot.slane %v5904_v22, 5  ;;  %v24664_v34 = vld [vmem:[%s25062_s4 + $0x3d4] sm:$0xff]   ;;  %v24665_v22 = vld [vmem:[%s25062_s4 + $0x444] sm:$0xff]  }
 0x32b   : > { %v5872_v51 = vrot.slane %v5871_v40, 4  ;;  %v5881_v52 = vor.u32 %v5880_v41, %v5876_v36  ;;  %v14733_v10 = vshll.u32 %v20541_v23, 16  ;;  %v14737_v38 = vshrl.u32 %v20541_v23, 16 }
 0x32c   : > { %v5891_v24 = vor.u32 %v5890_v15, %v5886_v45  ;;  %v14743_v42 = vshll.u32 %v20542_v28, 16  ;;  %v5914_v57 = vshll.u32 %v19321_v44, 16  ;;  %v5918_v60 = vshrl.u32 %v19321_v44, 16  ;;  %v24663_v15 = vld [vmem:[%s25062_s4 + $0x41c] sm:$0xff]  }
 0x32d   : > { %v5877_v2 = vsel %vm25095_vm4, %v5872_v51, %v5876_v36  ;;  %v5882_v3 = vrot.slane %v5881_v52, 4  ;;  %v5901_v36 = vor.u32 %v5900_v26, %v5896_v25  ;;  %v14735_v51 = vrot.slane %v14733_v10, 5  ;;  %v19324_v26 = vld [vmem:[%s25062_s4 + $0x90] sm:$0xf] }
 0x32e   : > { %23118 = vmatmul.mubr.msk.bf16.gmra.mrb[92].mxu0 %vm2122_vm1, %v24651_v5  ;;  %v14715_v5 = vrot.slane %v14713_v53, 5  ;;  %v5892_v35 = vrot.slane %v5891_v24, 4  ;;  %v14739_v53 = vrot.slane %v14737_v38, 4  ;;  %v14745_v54 = vrot.slane %v14743_v42, 5 }
 0x32f   : > { %23121 = vmatprep.mubr.msk.bf16.mxu0 %vm2122_vm1, %v24653_v11  ;;  %22534 = vmatmul.mubr.msk.bf16.gmra.mrb[92].mxu1 %vm2122_vm1, %v24656_v12  ;;  %v14727_v11 = vshrl.u32 %v20540_v43, 16  ;;  %v5887_v12 = vsel %vm25095_vm4, %v5882_v3, %v5886_v45  ;;  %v14747_v43 = vshrl.u32 %v20542_v28, 16  ;;  %v19322_v45 = vld [vmem:[%s25062_s4 + $0x6c] sm:$0x1]  ;;  %v24668_v28 = vld [vmem:[%s25062_s4 + $0x3e4] sm:$0xff]  }
 0x330   : > { %22537 = vmatprep.mubr.msk.bf16.mxu1 %vm2122_vm1, %v24658_v19  ;;  %v26828_v18 = vcombine.low %v5877_v2, %v5887_v12  ;;  %v14711_v19 = vrot.slane %v14710_v6, 4  ;;  %v14720_v20 = vor.u32 %v14719_v7, %v14715_v5  ;;  %v5924_v61 = vshll.u32 %v19322_v45, 16  ;;  %v19323_v6 = vld [vmem:[%s25062_s4 + $0x8c] sm:$0xf] }
 0x331   : > { %v14729_v58 = vrot.slane %v14727_v11, 4  ;;  %v14740_v3 = vor.u32 %v14739_v53, %v14735_v51  ;;  %v14749_v14 = vrot.slane %v14747_v43, 4  ;;  %v5920_v11 = vrot.slane %v5918_v60, 4  ;;  %v20545_v43 = vld [vmem:[%s25062_s4 + $0xfc] sm:$0xf] }
 0x332   : > { %v14716_v30 = vsel %vm25095_vm4, %v14711_v19, %v14715_v5  ;;  %v14721_v31 = vrot.slane %v14720_v20, 4  ;;  %v20544_v5 = vld [vmem:[%s25062_s4 + $0xdc] sm:$0x1]  ;;  %v5926_v12 = vrot.slane %v5924_v61, 5  ;;  %v14753_v19 = vshll.u32 %v20543_v62, 16 }
 0x333   : > { %v14730_v41 = vor.u32 %v14729_v58, %v14725_v8  ;;  %v14741_v16 = vrot.slane %v14740_v3, 4  ;;  %v14750_v17 = vor.u32 %v14749_v14, %v14745_v54  ;;  %v14757_v20 = vshrl.u32 %v20543_v62, 16  ;;  %v20547_v60 = vld [vmem:[%s25062_s4 + $0x104] sm:$0xf]  ;;  %v24667_v14 = vld [vmem:[%s25062_s4 + $0x44c] sm:$0xff]  }
 0x334   : > { %v14726_v40 = vsel %vm25095_vm4, %v14721_v31, %v14725_v8  ;;  %v5916_v8 = vrot.slane %v5914_v57, 5  ;;  %v5932_v42 = vshll.u32 %v19323_v6, 16  ;;  %v5938_v45 = vshll.u32 %v19324_v26, 16 }
 0x335   : > { %v26843_v48 = vcombine.low %v14716_v30, %v14726_v40  ;;  %v14731_v52 = vrot.slane %v14730_v41, 4  ;;  %v14746_v30 = vsel %vm25095_vm4, %v14741_v16, %v14745_v54  ;;  %v14751_v31 = vrot.slane %v14750_v17, 4  ;;  %v24672_v16 = vld [vmem:[%s25062_s4 + $0x414] sm:$0xff]   ;;  %v24674_v17 = vld [vmem:[%s25062_s4 + $0x41c] sm:$0xff]  }
 0x336   : > { %23122 = vmatmul.mubr.msk.bf16.gmra.mrb[96].mxu0 %vm2122_vm1, %v24655_v49  ;;  %v5897_v49 = vsel %vm25095_vm4, %v5892_v35, %v5896_v25  ;;  %v5921_v24 = vor.u32 %v5920_v11, %v5916_v8  ;;  %v14763_v25 = vshll.u32 %v20544_v5, 16  ;;  %v14759_v58 = vrot.slane %v14757_v20, 4 }
 0x337   : > { %23125 = vmatprep.mubr.msk.bf16.mxu0 %vm2122_vm1, %v24657_v50  ;;  %22538 = vmatmul.mubr.msk.bf16.gmra.mrb[96].mxu1 %vm2122_vm1, %v24660_v55  ;;  %v5902_v50 = vrot.slane %v5901_v36, 4  ;;  %v5910_v55 = vrot.slane %v5908_v27, 4  ;;  %v14736_v2 = vsel %vm25095_vm4, %v14731_v52, %v14735_v51  ;;  %v5929_v27 = vshrl.u32 %v19323_v6, 16  ;;  %v24669_v6 = vld [vmem:[%s25062_s4 + $0x454] sm:$0xff]  }
 0x338   : > { %22541 = vmatprep.mubr.msk.bf16.mxu1 %vm2122_vm1, %v24662_v0  ;;  %v5922_v36 = vrot.slane %v5921_v24, 4  ;;  %v14765_v10 = vrot.slane %v14763_v25, 5  ;;  %v5934_v53 = vrot.slane %v5932_v42, 5  ;;  %v14768_v61 = vshrl.u32 %v20545_v43, 16 }
 0x339   : > { %v5907_v56 = vsel %vm25095_vm4, %v5902_v50, %v5906_v32  ;;  %v5911_v7 = vor.u32 %v5910_v55, %v5906_v32  ;;  %v14755_v32 = vrot.slane %v14753_v19, 5  ;;  %v5931_v41 = vrot.slane %v5929_v27, 4  ;;  %v20546_v50 = vld [vmem:[%s25062_s4 + $0x100] sm:$0xf]  ;;  %v19327_v27 = vld [vmem:[%s25062_s4 + $0x9c] sm:$0xf] }
 0x33a   : > { %v26853_v0 = vcombine.low %v5897_v49, %v5907_v56  ;;  %v5927_v44 = vsel %vm25095_vm4, %v5922_v36, %v5926_v12  ;;  %v5940_v55 = vrot.slane %v5938_v45, 5  ;;  %v14771_v3 = vshll.u32 %v20545_v43, 16 }
 0x33b   : > { %v5912_v23 = vrot.slane %v5911_v7, 4  ;;  %v14756_v38 = vsel %vm25095_vm4, %v14751_v31, %v14755_v32  ;;  %v14760_v40 = vor.u32 %v14759_v58, %v14755_v32  ;;  %v14777_v5 = vshll.u32 %v20546_v50, 16 }
 0x33c   : > { %v14770_v11 = vrot.slane %v14768_v61, 4  ;;  %v14781_v12 = vshrl.u32 %v20546_v50, 16  ;;  %v14773_v20 = vrot.slane %v14771_v3, 5  ;;  %v5968_v42 = vshll.u32 %v19327_v27, 16  ;;  %v24676_v3 = vld [vmem:[%s25062_s4 + $0x444] sm:$0xff]  }
 0x33d   : > { %v5917_v35 = vsel %vm25095_vm4, %v5912_v23, %v5916_v8  ;;  %v14761_v52 = vrot.slane %v14760_v40, 4  ;;  %v14787_v23 = vshll.u32 %v20547_v60, 16 }
 0x33e   : > { %23126 = vmatmul.mubr.msk.bf16.gmra.mrb[100].mxu0 %vm2122_vm1, %v24659_v33  ;;  %v19325_v33 = vld [vmem:[%s25062_s4 + $0x94] sm:$0xf]  ;;  %v26881_v51 = vcombine.low %v5917_v35, %v5927_v44  ;;  %v14783_v25 = vrot.slane %v14781_v12, 4  ;;  %v14774_v31 = vor.u32 %v14773_v20, %v14770_v11  ;;  %v19329_v11 = vld [vmem:[%s25062_s4 + $0xa4] sm:$0x1]  ;;  %v24678_v12 = vld [vmem:[%s25062_s4 + $0x44c] sm:$0xff]  }
 0x33f   : > { %23129 = vmatprep.mubr.msk.bf16.mxu0 %vm2122_vm1, %v24661_v4  ;;  %22542 = vmatmul.mubr.msk.bf16.gmra.mrb[100].mxu1 %vm2122_vm1, %v24664_v34  ;;  %v24670_v4 = vld [vmem:[%s25062_s4 + $0x40c] sm:$0xff]   ;;  %v26868_v34 = vcombine.low %v14736_v2, %v14746_v30  ;;  %v5948_v49 = vshll.u32 %v19325_v33, 16  ;;  %v5952_v54 = vshrl.u32 %v19325_v33, 16  ;;  %v14766_v62 = vsel %vm25095_vm4, %v14761_v52, %v14765_v10  ;;  %v20548_v10 = vld [vmem:[%s25062_s4 + $0x108] sm:$0xf] }
 0x340   : > { %22545 = vmatprep.mubr.msk.bf16.mxu1 %vm2122_vm1, %v24666_v46  ;;  %v5942_v46 = vshrl.u32 %v19324_v26, 16  ;;  %v5935_v2 = vor.u32 %v5934_v53, %v5931_v41  ;;  %v26889_v7 = vcombine.low %v14756_v38, %v14766_v62  ;;  %v14791_v26 = vshrl.u32 %v20547_v60, 16  ;;  %v19328_v62 = vld [vmem:[%s25062_s4 + $0xa0] sm:$0xf] }
 0x341   : > { %v5950_v57 = vrot.slane %v5948_v49, 5  ;;  %v14789_v32 = vrot.slane %v14787_v23, 5  ;;  %v14775_v40 = vrot.slane %v14774_v31, 4  ;;  %v20549_v49 = vld [vmem:[%s25062_s4 + $0x10c] sm:$0xf]  ;;  %v5970_v52 = vrot.slane %v5968_v42, 5 }
 0x342   : > { %v5944_v56 = vrot.slane %v5942_v46, 4  ;;  %v5936_v19 = vrot.slane %v5935_v2, 4  ;;  %v5972_v46 = vshrl.u32 %v19327_v27, 16  ;;  %v14793_v53 = vrot.slane %v14791_v26, 4  ;;  %v24673_v2 = vld [vmem:[%s25062_s4 + $0x484] sm:$0xff]  }
 0x343   : > { %v14801_v61 = vshrl.u32 %v20548_v10, 16  ;;  %v5978_v23 = vshll.u32 %v19328_v62, 16  ;;  %v20551_v31 = vld [vmem:[%s25062_s4 + $0x114] sm:$0x1] }
 0x344   : > { %v5945_v8 = vor.u32 %v5944_v56, %v5940_v55  ;;  %v5941_v30 = vsel %vm25095_vm4, %v5936_v19, %v5940_v55  ;;  %v24671_v55 = vld [vmem:[%s25062_s4 + $0x47c] sm:$0xff]   ;;  %v5974_v19 = vrot.slane %v5972_v46, 4  ;;  %v24675_v46 = vld [vmem:[%s25062_s4 + $0x48c] sm:$0xff]  }
 0x346   : > { %23130 = vmatmul.mubr.msk.bf16.gmra.mrb[104].mxu0 %vm2122_vm1, %v24663_v15  ;;  %v19326_v15 = vld [vmem:[%s25062_s4 + $0x98] sm:$0xf]  ;;  %v5946_v24 = vrot.slane %v5945_v8, 4  ;;  %v14807_v8 = vshll.u32 %v20549_v49, 16  ;;  %v5975_v27 = vor.u32 %v5974_v19, %v5970_v52  ;;  %v20552_v19 = vld [vmem:[%s25062_s4 + $0x134] sm:$0xf] }
 0x347   : > { %23133 = vmatprep.mubr.msk.bf16.mxu0 %vm2122_vm1, %v24665_v22  ;;  %22546 = vmatmul.mubr.msk.bf16.gmra.mrb[104].mxu1 %vm2122_vm1, %v24668_v28  ;;  %v14779_v22 = vrot.slane %v14777_v5, 5  ;;  %v5954_v28 = vrot.slane %v5952_v54, 4  ;;  %v5958_v58 = vshll.u32 %v19326_v15, 16  ;;  %v5962_v36 = vshrl.u32 %v19326_v15, 16 }
 0x348   : > { %22549 = vmatprep.mubr.msk.bf16.mxu1 %vm2122_vm1, %v24670_v4  ;;  %v5951_v33 = vsel %vm25095_vm4, %v5946_v24, %v5950_v57  ;;  %v14797_v54 = vshll.u32 %v20548_v10, 16  ;;  %v5982_v24 = vshrl.u32 %v19328_v62, 16  ;;  %v5976_v10 = vrot.slane %v5975_v27, 4 }
 0x349   : > { %v14784_v4 = vor.u32 %v14783_v25, %v14779_v22  ;;  %v5955_v35 = vor.u32 %v5954_v28, %v5950_v57  ;;  %v26903_v38 = vcombine.low %v5941_v30, %v5951_v33  ;;  %v5960_v41 = vrot.slane %v5958_v58, 5  ;;  %v20550_v30 = vld [vmem:[%s25062_s4 + $0x110] sm:$0xf] }
 0x34a   : > { %v5964_v45 = vrot.slane %v5962_v36, 4  ;;  %v14780_v50 = vsel %vm25095_vm4, %v14775_v40, %v14779_v22  ;;  %v14809_v22 = vrot.slane %v14807_v8, 5  ;;  %v5988_v28 = vshll.u32 %v19329_v11, 16 }
 0x34b   : > { %v14785_v43 = vrot.slane %v14784_v4, 4  ;;  %v5956_v44 = vrot.slane %v5955_v35, 4  ;;  %v5980_v33 = vrot.slane %v5978_v23, 5  ;;  %v5984_v4 = vrot.slane %v5982_v24, 4  ;;  %v19330_v35 = vld [vmem:[%s25062_s4 + $0xc4] sm:$0xf] }
 0x34c   : > { %v5965_v60 = vor.u32 %v5964_v45, %v5960_v41  ;;  %v5990_v40 = vrot.slane %v5988_v28, 5  ;;  %v14827_v45 = vshll.u32 %v20551_v31, 16  ;;  %v5996_v11 = vshll.u32 %v19330_v35, 16 }
 0x34d   : > { %v14790_v56 = vsel %vm25095_vm4, %v14785_v43, %v14789_v32  ;;  %v5961_v57 = vsel %vm25095_vm4, %v5956_v44, %v5960_v41  ;;  %v5985_v42 = vor.u32 %v5984_v4, %v5980_v33  ;;  %v14817_v43 = vshll.u32 %v20550_v30, 16 }
 0x34e   : > { %23134 = vmatmul.mubr.msk.bf16.gmra.mrb[108].mxu0 %vm2122_vm1, %v24667_v14  ;;  %v26917_v5 = vcombine.low %v14780_v50, %v14790_v56  ;;  %v14794_v14 = vor.u32 %v14793_v53, %v14789_v32  ;;  %v5966_v15 = vrot.slane %v5965_v60, 4  ;;  %v14821_v44 = vshrl.u32 %v20550_v30, 16  ;;  %v24680_v56 = vld [vmem:[%s25062_s4 + $0x454] sm:$0xff]  }
 0x34f   : > { %23137 = vmatprep.mubr.msk.bf16.mxu0 %vm2122_vm1, %v24669_v6  ;;  %22550 = vmatmul.mubr.msk.bf16.gmra.mrb[108].mxu1 %vm2122_vm1, %v24672_v16  ;;  %v14799_v6 = vrot.slane %v14797_v54, 5  ;;  %v14803_v16 = vrot.slane %v14801_v61, 4  ;;  %v19331_v54 = vld [vmem:[%s25062_s4 + $0xc8] sm:$0xf]  ;;  %v5986_v60 = vrot.slane %v5985_v42, 4  ;;  %v14819_v61 = vrot.slane %v14817_v43, 5 }
 0x350   : > { %22553 = vmatprep.mubr.msk.bf16.mxu1 %vm2122_vm1, %v24674_v17  ;;  %v14811_v17 = vshrl.u32 %v20549_v49, 16  ;;  %v14795_v20 = vrot.slane %v14794_v14, 4  ;;  %v5971_v25 = vsel %vm25095_vm4, %v5966_v15, %v5970_v52  ;;  %v24677_v49 = vld [vmem:[%s25062_s4 + $0x4b4] sm:$0xff]   ;;  %v5981_v52 = vsel %vm25095_vm4, %v5976_v10, %v5980_v33  ;;  %v20554_v33 = vld [vmem:[%s25062_s4 + $0x13c] sm:$0xf] }
 0x351   : > { %v14804_v26 = vor.u32 %v14803_v16, %v14799_v6  ;;  %v26928_v32 = vcombine.low %v5961_v57, %v5971_v25  ;;  %v14823_v62 = vrot.slane %v14821_v44, 4  ;;  %v6002_v16 = vshll.u32 %v19331_v54, 16  ;;  %v20553_v25 = vld [vmem:[%s25062_s4 + $0x138] sm:$0xf]  ;;  %v24679_v42 = vld [vmem:[%s25062_s4 + $0x4bc] sm:$0xff]  }
 0x352   : > { %v14800_v58 = vsel %vm25095_vm4, %v14795_v20, %v14799_v6  ;;  %v14813_v41 = vrot.slane %v14811_v17, 4  ;;  %v14829_v6 = vrot.slane %v14827_v45, 5  ;;  %v6006_v17 = vshrl.u32 %v19331_v54, 16 }
 0x353   : > { %v14805_v36 = vrot.slane %v14804_v26, 4  ;;  %v14824_v15 = vor.u32 %v14823_v62, %v14819_v61  ;;  %v5998_v23 = vrot.slane %v5996_v11, 5  ;;  %v6004_v27 = vrot.slane %v6002_v16, 5 }
 0x354   : > { %v14814_v53 = vor.u32 %v14813_v41, %v14809_v22  ;;  %v6008_v28 = vrot.slane %v6006_v17, 4  ;;  %v14832_v4 = vshrl.u32 %v20552_v19, 16  ;;  %v14845_v41 = vshrl.u32 %v20553_v25, 16 }
 0x355   : > { %v14810_v50 = vsel %vm25095_vm4, %v14805_v36, %v14809_v22  ;;  %v14825_v26 = vrot.slane %v14824_v15, 4 }
 0x356   : > { %23138 = vmatmul.mubr.msk.bf16.gmra.mrb[112].mxu0 %vm2122_vm1, %v24671_v55  ;;  %v5993_v55 = vshrl.u32 %v19330_v35, 16  ;;  %v26942_v57 = vcombine.low %v14800_v58, %v14810_v50  ;;  %v14815_v14 = vrot.slane %v14814_v53, 4  ;;  %v14835_v35 = vshll.u32 %v20552_v19, 16  ;;  %v24681_v50 = vld [vmem:[%s25062_s4 + $0x4c4] sm:$0xff]  }
 0x357   : > { %23141 = vmatprep.mubr.msk.bf16.mxu0 %vm2122_vm1, %v24673_v2  ;;  %22554 = vmatmul.mubr.msk.bf16.gmra.mrb[112].mxu1 %vm2122_vm1, %v24676_v3  ;;  %v19332_v2 = vld [vmem:[%s25062_s4 + $0xcc] sm:$0xf]  ;;  %v24682_v3 = vld [vmem:[%s25062_s4 + $0x47c] sm:$0xff]   ;;  %v14830_v36 = vsel %vm25095_vm4, %v14825_v26, %v14829_v6  ;;  %v6009_v10 = vor.u32 %v6008_v28, %v6004_v27  ;;  %v14834_v45 = vrot.slane %v14832_v4, 4 }
 0x358   : > { %22557 = vmatprep.mubr.msk.bf16.mxu1 %vm2122_vm1, %v24678_v12  ;;  %v5995_v8 = vrot.slane %v5993_v55, 4  ;;  %v5991_v12 = vsel %vm25095_vm4, %v5986_v60, %v5990_v40  ;;  %v14820_v22 = vsel %vm25095_vm4, %v14815_v14, %v14819_v61  ;;  %v6012_v24 = vshll.u32 %v19332_v2, 16  ;;  %v24686_v60 = vld [vmem:[%s25062_s4 + $0x48c] sm:$0xff]  }
 0x359   : > { %v26950_v20 = vcombine.low %v5981_v52, %v5991_v12  ;;  %v6016_v30 = vshrl.u32 %v19332_v2, 16  ;;  %v14841_v40 = vshll.u32 %v20553_v25, 16  ;;  %v26962_v43 = vcombine.low %v14820_v22, %v14830_v36  ;;  %v24684_v52 = vld [vmem:[%s25062_s4 + $0x484] sm:$0xff]   ;;  %v20555_v22 = vld [vmem:[%s25062_s4 + $0x140] sm:$0xf] }
 0x35a   : > { %v5999_v31 = vor.u32 %v5998_v23, %v5995_v8  ;;  %v6014_v58 = vrot.slane %v6012_v24, 5  ;;  %v6010_v53 = vrot.slane %v6009_v10, 4  ;;  %v14847_v55 = vrot.slane %v14845_v41, 4  ;;  %v19335_v10 = vld [vmem:[%s25062_s4 + $0xd8] sm:$0xf] }
 0x35b   : > { %v14843_v54 = vrot.slane %v14841_v40, 5  ;;  %v14855_v2 = vshrl.u32 %v20554_v33, 16  ;;  %v6018_v14 = vrot.slane %v6016_v30, 4  ;;  %v14865_v36 = vshrl.u32 %v20555_v22, 16  ;;  %v24683_v40 = vld [vmem:[%s25062_s4 + $0x4ec] sm:$0xff]  }
 0x35c   : > { %v6000_v44 = vrot.slane %v5999_v31, 4  ;;  %v6015_v6 = vsel %vm25095_vm4, %v6010_v53, %v6014_v58  ;;  %v20556_v31 = vld [vmem:[%s25062_s4 + $0x144] sm:$0xf] }
 0x35d   : > { %v14848_v8 = vor.u32 %v14847_v55, %v14843_v54  ;;  %v6019_v17 = vor.u32 %v6018_v14, %v6014_v58  ;;  %v14857_v58 = vrot.slane %v14855_v2, 4  ;;  %v14867_v53 = vrot.slane %v14865_v36, 4  ;;  %v19338_v36 = vld [vmem:[%s25062_s4 + $0x100] sm:$0xf] }
 0x35e   : > { %23142 = vmatmul.mubr.msk.bf16.gmra.mrb[116].mxu0 %vm2122_vm1, %v24675_v46  ;;  %v14837_v46 = vrot.slane %v14835_v35, 5  ;;  %v6005_v61 = vsel %vm25095_vm4, %v6000_v44, %v6004_v27  ;;  %v14861_v35 = vshll.u32 %v20555_v22, 16  ;;  %v14875_v55 = vshrl.u32 %v20556_v31, 16  ;;  %v20558_v22 = vld [vmem:[%s25062_s4 + $0x14c] sm:$0x1] }
 0x35f   : > { %23145 = vmatprep.mubr.msk.bf16.mxu0 %vm2122_vm1, %v24677_v49  ;;  %22558 = vmatmul.mubr.msk.bf16.gmra.mrb[116].mxu1 %vm2122_vm1, %v24680_v56  ;;  %v19333_v49 = vld [vmem:[%s25062_s4 + $0xd0] sm:$0xf]  ;;  %v14851_v56 = vshll.u32 %v20554_v33, 16  ;;  %v26974_v15 = vcombine.low %v6005_v61, %v6015_v6  ;;  %v14849_v23 = vrot.slane %v14848_v8, 4  ;;  %v6020_v28 = vrot.slane %v6019_v17, 4 }
 0x360   : > { %22561 = vmatprep.mubr.msk.bf16.mxu1 %vm2122_vm1, %v24682_v3  ;;  %v14838_v62 = vor.u32 %v14837_v46, %v14834_v45  ;;  %v19334_v3 = vld [vmem:[%s25062_s4 + $0xd4] sm:$0xf]  ;;  %v6022_v12 = vshll.u32 %v19333_v49, 16  ;;  %v6026_v19 = vshrl.u32 %v19333_v49, 16  ;;  %v19336_v46 = vld [vmem:[%s25062_s4 + $0xdc] sm:$0x1] }
 0x361   : > { %v14853_v11 = vrot.slane %v14851_v56, 5  ;;  %v6032_v25 = vshll.u32 %v19334_v3, 16  ;;  %v6036_v26 = vshrl.u32 %v19334_v3, 16  ;;  %v24685_v49 = vld [vmem:[%s25062_s4 + $0x4f4] sm:$0xff]   ;;  %v24690_v56 = vld [vmem:[%s25062_s4 + $0x4bc] sm:$0xff]   ;;  %v6042_v2 = vshll.u32 %v19335_v10, 16 }
 0x362   : > { %v14839_v16 = vrot.slane %v14838_v62, 4  ;;  %v6024_v24 = vrot.slane %v6022_v12, 5  ;;  %v6028_v30 = vrot.slane %v6026_v19, 4  ;;  %v6046_v6 = vshrl.u32 %v19335_v10, 16 }
 0x363   : > { %v14854_v33 = vsel %vm25095_vm4, %v14849_v23, %v14853_v11  ;;  %v6034_v4 = vrot.slane %v6032_v25, 5  ;;  %v14858_v45 = vor.u32 %v14857_v58, %v14853_v11  ;;  %v6038_v62 = vrot.slane %v6036_v26, 4  ;;  %v20557_v11 = vld [vmem:[%s25062_s4 + $0x148] sm:$0xf]  ;;  %v19337_v23 = vld [vmem:[%s25062_s4 + $0xfc] sm:$0xf] }
 0x364   : > { %v14844_v27 = vsel %vm25095_vm4, %v14839_v16, %v14843_v54  ;;  %v6029_v44 = vor.u32 %v6028_v30, %v6024_v24  ;;  %v14871_v54 = vshll.u32 %v20556_v31, 16  ;;  %v6052_v8 = vshll.u32 %v19336_v46, 16 }
 0x365   : > { %v26987_v41 = vcombine.low %v14844_v27, %v14854_v33  ;;  %v14859_v61 = vrot.slane %v14858_v45, 4  ;;  %v6039_v17 = vor.u32 %v6038_v62, %v6034_v4  ;;  %v6044_v19 = vrot.slane %v6042_v2, 5 }
 0x366   : > { %23146 = vmatmul.mubr.msk.bf16.gmra.mrb[120].mxu0 %vm2122_vm1, %v24679_v42  ;;  %v6025_v42 = vsel %vm25095_vm4, %v6020_v28, %v6024_v24  ;;  %v14873_v14 = vrot.slane %v14871_v54, 5  ;;  %v6048_v26 = vrot.slane %v6046_v6, 4  ;;  %v6054_v27 = vrot.slane %v6052_v8, 5  ;;  %v20559_v6 = vld [vmem:[%s25062_s4 + $0x16c] sm:$0xf] }
 0x367   : > { %23149 = vmatprep.mubr.msk.bf16.mxu0 %vm2122_vm1, %v24681_v50  ;;  %22562 = vmatmul.mubr.msk.bf16.gmra.mrb[120].mxu1 %vm2122_vm1, %v24684_v52  ;;  %v24688_v50 = vld [vmem:[%s25062_s4 + $0x4b4] sm:$0xff]   ;;  %v14863_v52 = vrot.slane %v14861_v35, 5  ;;  %v6040_v28 = vrot.slane %v6039_v17, 4  ;;  %v14877_v30 = vrot.slane %v14875_v55, 4  ;;  %v14881_v31 = vshll.u32 %v20557_v11, 16 }
 0x368   : > { %22565 = vmatprep.mubr.msk.bf16.mxu1 %vm2122_vm1, %v24686_v60  ;;  %v6030_v60 = vrot.slane %v6029_v44, 4  ;;  %v14885_v58 = vshrl.u32 %v20557_v11, 16  ;;  %v14891_v35 = vshll.u32 %v20558_v22, 16  ;;  %v6057_v10 = vshrl.u32 %v19337_v23, 16 }
 0x369   : > { %v14868_v3 = vor.u32 %v14867_v53, %v14863_v52  ;;  %v14864_v16 = vsel %vm25095_vm4, %v14859_v61, %v14863_v52  ;;  %v6045_v45 = vsel %vm25095_vm4, %v6040_v28, %v6044_v19  ;;  %v14878_v46 = vor.u32 %v14877_v30, %v14873_v14  ;;  %v24692_v52 = vld [vmem:[%s25062_s4 + $0x4c4] sm:$0xff]   ;;  %v24694_v53 = vld [vmem:[%s25062_s4 + $0x4ec] sm:$0xff]  }
 0x36a   : > { %v6035_v12 = vsel %vm25095_vm4, %v6030_v60, %v6034_v4  ;;  %v6049_v4 = vor.u32 %v6048_v26, %v6044_v19  ;;  %v14887_v55 = vrot.slane %v14885_v58, 4  ;;  %v6059_v60 = vrot.slane %v6057_v10, 4 }
 0x36b   : > { %v27005_v24 = vcombine.low %v6025_v42, %v6035_v12  ;;  %v14869_v25 = vrot.slane %v14868_v3, 4  ;;  %v24689_v42 = vld [vmem:[%s25062_s4 + $0x524] sm:$0xff]   ;;  %v14879_v61 = vrot.slane %v14878_v46, 4  ;;  %v6060_v62 = vshll.u32 %v19337_v23, 16  ;;  %v20561_v23 = vld [vmem:[%s25062_s4 + $0x174] sm:$0xf] }
 0x36c   : > { %v6050_v54 = vrot.slane %v6049_v4, 4  ;;  %v6066_v2 = vshll.u32 %v19338_v36, 16  ;;  %v6070_v3 = vshrl.u32 %v19338_v36, 16  ;;  %v14896_v30 = vshrl.u32 %v20559_v6, 16 }
 0x36d   : > { %v14874_v33 = vsel %vm25095_vm4, %v14869_v25, %v14873_v14  ;;  %v6062_v22 = vrot.slane %v6060_v62, 5  ;;  %v14899_v58 = vshll.u32 %v20559_v6, 16 }
 0x36e   : > { %23150 = vmatmul.mubr.msk.bf16.gmra.mrb[124].mxu0 %vm2122_vm1, %v24683_v40  ;;  %v24687_v40 = vld [vmem:[%s25062_s4 + $0x4fc] sm:$0xff]   ;;  %v27013_v44 = vcombine.low %v14864_v16, %v14874_v33  ;;  %v6055_v8 = vsel %vm25095_vm4, %v6050_v54, %v6054_v27  ;;  %v20560_v16 = vld [vmem:[%s25062_s4 + $0x170] sm:$0xf]  ;;  %v6068_v25 = vrot.slane %v6066_v2, 5  ;;  %v6072_v27 = vrot.slane %v6070_v3, 4  ;;  %v24693_v54 = vld [vmem:[%s25062_s4 + $0x534] sm:$0xff]  }
 0x36f   : > { %23153 = vmatprep.mubr.msk.bf16.mxu0 %vm2122_vm1, %v24685_v49  ;;  %22566 = vmatmul.mubr.msk.bf16.gmra.mrb[124].mxu1 %vm2122_vm1, %v24688_v50  ;;  %v14883_v49 = vrot.slane %v14881_v31, 5  ;;  %v19339_v50 = vld [vmem:[%s25062_s4 + $0x104] sm:$0xf]  ;;  %v27025_v17 = vcombine.low %v6045_v45, %v6055_v8  ;;  %v6063_v31 = vor.u32 %v6062_v22, %v6059_v60  ;;  %v14905_v33 = vshll.u32 %v20560_v16, 16  ;;  %v24691_v45 = vld [vmem:[%s25062_s4 + $0x52c] sm:$0xff]  }
 0x370   : > { %22569 = vmatprep.mubr.msk.bf16.mxu1 %vm2122_vm1, %v24690_v56  ;;  %v14893_v56 = vrot.slane %v14891_v35, 5  ;;  %v6076_v14 = vshll.u32 %v19339_v50, 16  ;;  %v6080_v12 = vshrl.u32 %v19339_v50, 16  ;;  %v14909_v4 = vshrl.u32 %v20560_v16, 16 }
 0x371   : > { %v14888_v11 = vor.u32 %v14887_v55, %v14883_v49  ;;  %v14884_v19 = vsel %vm25095_vm4, %v14879_v61, %v14883_v49  ;;  %v6073_v36 = vor.u32 %v6072_v27, %v6068_v25  ;;  %v14898_v10 = vrot.slane %v14896_v30, 4  ;;  %v24696_v55 = vld [vmem:[%s25062_s4 + $0x4f4] sm:$0xff]  }
 0x372   : > { %v6078_v28 = vrot.slane %v6076_v14, 5  ;;  %v6064_v49 = vrot.slane %v6063_v31, 4  ;;  %v14901_v50 = vrot.slane %v14899_v58, 5  ;;  %v14911_v61 = vrot.slane %v14909_v4, 4  ;;  %v20563_v58 = vld [vmem:[%s25062_s4 + $0x17c] sm:$0xf] }
 0x373   : > { %v14889_v26 = vrot.slane %v14888_v11, 4  ;;  %v6074_v60 = vrot.slane %v6073_v36, 4  ;;  %v14919_v2 = vshrl.u32 %v20561_v23, 16  ;;  %v6082_v8 = vrot.slane %v6080_v12, 4 }
 0x374   : > { %v6069_v3 = vsel %vm25095_vm4, %v6064_v49, %v6068_v25  ;;  %v14902_v6 = vor.u32 %v14901_v50, %v14898_v10  ;;  %v14935_v49 = vshll.u32 %v20563_v58, 16  ;;  %v19342_v50 = vld [vmem:[%s25062_s4 + $0x110] sm:$0xf] }
 0x375   : > { %v14894_v35 = vsel %vm25095_vm4, %v14889_v26, %v14893_v56  ;;  %v24698_v56 = vld [vmem:[%s25062_s4 + $0x4fc] sm:$0xff]   ;;  %v6079_v14 = vsel %vm25095_vm4, %v6074_v60, %v6078_v28  ;;  %v20562_v26 = vld [vmem:[%s25062_s4 + $0x178] sm:$0xf]  ;;  %v6083_v30 = vor.u32 %v6082_v8, %v6078_v28  ;;  %v14921_v36 = vrot.slane %v14919_v2, 4  ;;  %v24697_v2 = vld [vmem:[%s25062_s4 + $0x564] sm:$0xff]  }
 0x376   : > { %23154 = vmatmul.mubr.msk.bf16.gmra.mrb[128].mxu0 %vm2122_vm1, %v24687_v40  ;;  %v14915_v40 = vshll.u32 %v20561_v23, 16  ;;  %v27037_v46 = vcombine.low %v14884_v19, %v14894_v35  ;;  %v27049_v27 = vcombine.low %v6069_v3, %v6079_v14  ;;  %v14903_v23 = vrot.slane %v14902_v6, 4  ;;  %v24701_v14 = vld [vmem:[%s25062_s4 + $0x52c] sm:$0xff]  }
 0x377   : > { %23157 = vmatprep.mubr.msk.bf16.mxu0 %vm2122_vm1, %v24689_v42  ;;  %22570 = vmatmul.mubr.msk.bf16.gmra.mrb[128].mxu1 %vm2122_vm1, %v24692_v52  ;;  %v19340_v42 = vld [vmem:[%s25062_s4 + $0x108] sm:$0xf]  ;;  %v14907_v52 = vrot.slane %v14905_v33, 5  ;;  %v6084_v28 = vrot.slane %v6083_v30, 4  ;;  %v14925_v10 = vshll.u32 %v20562_v26, 16  ;;  %v14937_v8 = vrot.slane %v14935_v49, 5 }
 0x378   : > { %22573 = vmatprep.mubr.msk.bf16.mxu1 %vm2122_vm1, %v24694_v53  ;;  %v19341_v53 = vld [vmem:[%s25062_s4 + $0x10c] sm:$0xf]  ;;  %v14917_v62 = vrot.slane %v14915_v40, 5  ;;  %v6086_v11 = vshll.u32 %v19340_v42, 16  ;;  %v6090_v19 = vshrl.u32 %v19340_v42, 16 }
 0x379   : > { %v14912_v16 = vor.u32 %v14911_v61, %v14907_v52  ;;  %v6096_v22 = vshll.u32 %v19341_v53, 16  ;;  %v6100_v4 = vshrl.u32 %v19341_v53, 16  ;;  %v14908_v35 = vsel %vm25095_vm4, %v14903_v23, %v14907_v52  ;;  %v24695_v53 = vld [vmem:[%s25062_s4 + $0x55c] sm:$0xff]   ;;  %v19343_v61 = vld [vmem:[%s25062_s4 + $0x114] sm:$0x1] }
 0x37a   : > { %v6088_v31 = vrot.slane %v6086_v11, 5  ;;  %v6092_v25 = vrot.slane %v6090_v19, 4  ;;  %v14922_v60 = vor.u32 %v14921_v36, %v14917_v62  ;;  %v14927_v52 = vrot.slane %v14925_v10, 5 }
 0x37b   : > { %v14913_v12 = vrot.slane %v14912_v16, 4  ;;  %v6098_v33 = vrot.slane %v6096_v22, 5  ;;  %v14939_v11 = vshrl.u32 %v20563_v58, 16  ;;  %v6102_v19 = vrot.slane %v6100_v4, 4  ;;  %v19344_v4 = vld [vmem:[%s25062_s4 + $0x134] sm:$0xf] }
 0x37c   : > { %v6093_v42 = vor.u32 %v6092_v25, %v6088_v31  ;;  %v14923_v16 = vrot.slane %v14922_v60, 4  ;;  %v6106_v22 = vshll.u32 %v19342_v50, 16  ;;  %v6116_v30 = vshll.u32 %v19343_v61, 16  ;;  %v19345_v61 = vld [vmem:[%s25062_s4 + $0x138] sm:$0xf] }
 0x37d   : > { %v14918_v40 = vsel %vm25095_vm4, %v14913_v12, %v14917_v62  ;;  %v20565_v12 = vld [vmem:[%s25062_s4 + $0x184] sm:$0x1]  ;;  %v14941_v25 = vrot.slane %v14939_v11, 4 }
 0x37e   : > { %23158 = vmatmul.mubr.msk.bf16.gmra.mrb[132].mxu0 %vm2122_vm1, %v24691_v45  ;;  %v14929_v45 = vshrl.u32 %v20562_v26, 16  ;;  %v6094_v3 = vrot.slane %v6093_v42, 4  ;;  %v6110_v26 = vshrl.u32 %v19342_v50, 16  ;;  %v14928_v58 = vsel %vm25095_vm4, %v14923_v16, %v14927_v52  ;;  %v19346_v16 = vld [vmem:[%s25062_s4 + $0x13c] sm:$0xf] }
 0x37f   : > { %23161 = vmatprep.mubr.msk.bf16.mxu0 %vm2122_vm1, %v24693_v54  ;;  %22574 = vmatmul.mubr.msk.bf16.gmra.mrb[132].mxu1 %vm2122_vm1, %v24696_v55  ;;  %v27061_v54 = vcombine.low %v14908_v35, %v14918_v40  ;;  %v6089_v55 = vsel %vm25095_vm4, %v6084_v28, %v6088_v31  ;;  %v20564_v31 = vld [vmem:[%s25062_s4 + $0x180] sm:$0xf]  ;;  %v6103_v28 = vor.u32 %v6102_v19, %v6098_v33  ;;  %v6108_v36 = vrot.slane %v6106_v22, 5  ;;  %v24702_v19 = vld [vmem:[%s25062_s4 + $0x534] sm:$0xff]  }
 0x380   : > { %22577 = vmatprep.mubr.msk.bf16.mxu1 %vm2122_vm1, %v24698_v56  ;;  %v24700_v56 = vld [vmem:[%s25062_s4 + $0x524] sm:$0xff]   ;;  %v14931_v6 = vrot.slane %v14929_v45, 4  ;;  %v6099_v23 = vsel %vm25095_vm4, %v6094_v3, %v6098_v33  ;;  %v6112_v40 = vrot.slane %v6110_v26, 4  ;;  %v6118_v42 = vrot.slane %v6116_v30, 5 }
 0x381   : > { %v27074_v35 = vcombine.low %v6089_v55, %v6099_v23  ;;  %v14942_v45 = vor.u32 %v14941_v25, %v14937_v8  ;;  %v6104_v49 = vrot.slane %v6103_v28, 4  ;;  %v14945_v50 = vshll.u32 %v20564_v31, 16  ;;  %v20566_v25 = vld [vmem:[%s25062_s4 + $0x1a4] sm:$0xf] }
 0x382   : > { %v14932_v62 = vor.u32 %v14931_v6, %v14927_v52  ;;  %v14955_v33 = vshll.u32 %v20565_v12, 16  ;;  %v6113_v60 = vor.u32 %v6112_v40, %v6108_v36  ;;  %v6134_v12 = vshrl.u32 %v19345_v61, 16  ;;  %v20567_v40 = vld [vmem:[%s25062_s4 + $0x1a8] sm:$0xf] }
 0x383   : > { %v14943_v52 = vrot.slane %v14942_v45, 4  ;;  %v6109_v6 = vsel %vm25095_vm4, %v6104_v49, %v6108_v36  ;;  %v14947_v11 = vrot.slane %v14945_v50, 5  ;;  %v6140_v36 = vshll.u32 %v19346_v16, 16 }
 0x384   : > { %v14933_v10 = vrot.slane %v14932_v62, 4  ;;  %v6114_v22 = vrot.slane %v6113_v60, 4  ;;  %v14957_v26 = vrot.slane %v14955_v33, 5  ;;  %v6136_v50 = vrot.slane %v6134_v12, 4 }
 0x385   : > { %v14948_v62 = vsel %vm25095_vm4, %v14943_v52, %v14947_v11  ;;  %v6142_v33 = vrot.slane %v6140_v36, 5  ;;  %v14963_v60 = vshll.u32 %v20566_v25, 16 }
 0x386   : > { %23162 = vmatmul.mubr.msk.bf16.gmra.mrb[136].mxu0 %vm2122_vm1, %v24695_v53  ;;  %v14949_v53 = vshrl.u32 %v20564_v31, 16  ;;  %v14938_v55 = vsel %vm25095_vm4, %v14933_v10, %v14937_v8  ;;  %v6124_v8 = vshll.u32 %v19344_v4, 16  ;;  %v6130_v31 = vshll.u32 %v19345_v61, 16 }
 0x387   : > { %23165 = vmatprep.mubr.msk.bf16.mxu0 %vm2122_vm1, %v24697_v2  ;;  %22578 = vmatmul.mubr.msk.bf16.gmra.mrb[136].mxu1 %vm2122_vm1, %v24700_v56  ;;  %v6121_v2 = vshrl.u32 %v19344_v4, 16  ;;  %v24699_v56 = vld [vmem:[%s25062_s4 + $0x56c] sm:$0xff]   ;;  %v27086_v3 = vcombine.low %v14928_v58, %v14938_v55  ;;  %v6119_v58 = vsel %vm25095_vm4, %v6114_v22, %v6118_v42  ;;  %v6144_v10 = vshrl.u32 %v19346_v16, 16  ;;  %v19347_v16 = vld [vmem:[%s25062_s4 + $0x140] sm:$0xf] }
 0x388   : > { %22581 = vmatprep.mubr.msk.bf16.mxu1 %vm2122_vm1, %v24701_v14  ;;  %v14951_v14 = vrot.slane %v14949_v53, 4  ;;  %v6126_v28 = vrot.slane %v6124_v8, 5  ;;  %v27099_v45 = vcombine.low %v6109_v6, %v6119_v58  ;;  %v6132_v49 = vrot.slane %v6130_v31, 5  ;;  %v20568_v42 = vld [vmem:[%s25062_s4 + $0x1ac] sm:$0xf] }
 0x389   : > { %v6123_v23 = vrot.slane %v6121_v2, 4  ;;  %v14960_v55 = vshrl.u32 %v20566_v25, 16  ;;  %v14969_v2 = vshll.u32 %v20567_v40, 16  ;;  %v14979_v8 = vshll.u32 %v20568_v42, 16  ;;  %v19348_v31 = vld [vmem:[%s25062_s4 + $0x144] sm:$0xf] }
 0x38a   : > { %v14952_v30 = vor.u32 %v14951_v14, %v14947_v11  ;;  %v6137_v61 = vor.u32 %v6136_v50, %v6132_v49  ;;  %v14965_v14 = vrot.slane %v14963_v60, 5  ;;  %v6146_v12 = vrot.slane %v6144_v10, 4 }
 0x38b   : > { %v6127_v53 = vor.u32 %v6126_v28, %v6123_v23  ;;  %v14962_v11 = vrot.slane %v14960_v55, 4  ;;  %v14971_v22 = vrot.slane %v14969_v2, 5  ;;  %v14981_v58 = vrot.slane %v14979_v8, 5 }
 0x38c   : > { %v14953_v4 = vrot.slane %v14952_v30, 4  ;;  %v6150_v28 = vshll.u32 %v19347_v16, 16  ;;  %v6154_v50 = vshrl.u32 %v19347_v16, 16  ;;  %v6160_v10 = vshll.u32 %v19348_v31, 16 }
 0x38d   : > { %v14966_v30 = vor.u32 %v14965_v14, %v14962_v11  ;;  %v6164_v55 = vshrl.u32 %v19348_v31, 16  ;;  %v19349_v11 = vld [vmem:[%s25062_s4 + $0x148] sm:$0xf] }
 0x38e   : > { %23166 = vmatmul.mubr.msk.bf16.gmra.mrb[140].mxu0 %vm2122_vm1, %v24699_v56  ;;  %v14958_v52 = vsel %vm25095_vm4, %v14953_v4, %v14957_v26  ;;  %v14973_v56 = vshrl.u32 %v20567_v40, 16  ;;  %v14983_v26 = vshrl.u32 %v20568_v42, 16  ;;  %v6147_v4 = vor.u32 %v6146_v12, %v6142_v33 }
 0x38f   : > { %23171 = vmatprep.mubr.msk.bf16.mxu0 %vm2122_vm1, %v26716_v9  ;;  %22582 = vmatmul.mubr.msk.bf16.gmra.mrb[140].mxu1 %vm2122_vm1, %v24702_v19  ;;  %v27109_v6 = vcombine.low %v14948_v62, %v14958_v52  ;;  %v6128_v9 = vrot.slane %v6127_v53, 4  ;;  %v6138_v19 = vrot.slane %v6137_v61, 4  ;;  %v14967_v40 = vrot.slane %v14966_v30, 4  ;;  %v20569_v53 = vld [vmem:[%s25062_s4 + $0x1b0] sm:$0xf] }
 0x390   : > { %22587 = vmatprep.mubr.msk.bf16.mxu1 %vm2122_vm1, %v26753_v21  ;;  %v14975_v23 = vrot.slane %v14973_v56, 4  ;;  %v6152_v42 = vrot.slane %v6150_v28, 5  ;;  %v6148_v60 = vrot.slane %v6147_v4, 4  ;;  %v6156_v52 = vrot.slane %v6154_v50, 4  ;;  %v20570_v61 = vld [vmem:[%s25062_s4 + $0x1b4] sm:$0xf] }
 0x391   : > { %v6133_v21 = vsel %vm25095_vm4, %v6128_v9, %v6132_v49  ;;  %v6143_v62 = vsel %vm25095_vm4, %v6138_v19, %v6142_v33  ;;  %v14972_v33 = vsel %vm25095_vm4, %v14967_v40, %v14971_v22  ;;  %v14985_v2 = vrot.slane %v14983_v26, 4  ;;  %v20571_v4 = vld [vmem:[%s25062_s4 + $0x1b8] sm:$0xf] }
 0x392   : > { %v14976_v25 = vor.u32 %v14975_v23, %v14971_v22  ;;  %v27117_v36 = vcombine.low %v6133_v21, %v6143_v62  ;;  %v6162_v56 = vrot.slane %v6160_v10, 5  ;;  %v14989_v9 = vshll.u32 %v20569_v53, 16  ;;  %v19350_v22 = vld [vmem:[%s25062_s4 + $0x14c] sm:$0x1] }
 0x393   : > { %v6157_v16 = vor.u32 %v6156_v52, %v6152_v42  ;;  %v14986_v19 = vor.u32 %v14985_v2, %v14981_v58  ;;  %v15003_v21 = vshrl.u32 %v20570_v61, 16  ;;  %v6166_v31 = vrot.slane %v6164_v55, 4  ;;  %v19351_v10 = vld [vmem:[%s25062_s4 + $0x16c] sm:$0xf] }
 0x394   : > { %v14977_v49 = vrot.slane %v14976_v25, 4  ;;  %v14991_v23 = vrot.slane %v14989_v9, 5  ;;  %v6170_v12 = vshll.u32 %v19349_v11, 16  ;;  %v6174_v28 = vshrl.u32 %v19349_v11, 16  ;;  %v19352_v11 = vld [vmem:[%s25062_s4 + $0x170] sm:$0xf] }
 0x395   : > { %v6158_v30 = vrot.slane %v6157_v16, 4  ;;  %v14987_v26 = vrot.slane %v14986_v19, 4  ;;  %v6180_v40 = vshll.u32 %v19350_v22, 16  ;;  %v15005_v2 = vrot.slane %v15003_v21, 4  ;;  %v19353_v22 = vld [vmem:[%s25062_s4 + $0x174] sm:$0xf] }
 0x396   : > { %23172 = vmatmul.mubr.msk.bf16.vlgmr.msra.gmra.mrb[0].mxu0 %vm2122_vm1, %v26727_v29  ;;  %v14982_v29 = vsel %vm25095_vm4, %v14977_v49, %v14981_v58  ;;  %v6172_v49 = vrot.slane %v6170_v12, 5  ;;  %v20573_v12 = vld [vmem:[%s25062_s4 + $0x1dc] sm:$0xf] }
 0x397   : > { %23175 = vmatprep.mubr.msk.bf16.mxu0 %vm2122_vm1, %v26743_v59  ;;  %22588 = vmatmul.mubr.msk.bf16.vlgmr.msra.gmra.mrb[0].mxu1 %vm2122_vm1, %v26783_v63  ;;  %v14993_v59 = vshrl.u32 %v20569_v53, 16  ;;  %v27134_v14 = vcombine.low %v14972_v33, %v14982_v29  ;;  %v6153_v63 = vsel %vm25095_vm4, %v6148_v60, %v6152_v42  ;;  %v6163_v50 = vsel %vm25095_vm4, %v6158_v30, %v6162_v56  ;;  %v20572_v42 = vld [vmem:[%s25062_s4 + $0x1bc] sm:$0x1] }
 0x398   : > { %22591 = vmatprep.mubr.msk.bf16.mxu1 %vm2122_vm1, %v26808_v39  ;;  %v14999_v39 = vshll.u32 %v20570_v61, 16  ;;  %v14992_v58 = vsel %vm25095_vm4, %v14987_v26, %v14991_v23  ;;  %v6167_v53 = vor.u32 %v6166_v31, %v6162_v56  ;;  %v27148_v55 = vcombine.low %v6153_v63, %v6163_v50 }
 0x399   : > { %v14995_v8 = vrot.slane %v14993_v59, 4  ;;  %v6176_v60 = vrot.slane %v6174_v28, 4  ;;  %v6182_v52 = vrot.slane %v6180_v40, 5  ;;  %v15009_v29 = vshll.u32 %v20571_v4, 16 }
 0x39a   : > { %v15001_v25 = vrot.slane %v14999_v39, 5  ;;  %v6168_v61 = vrot.slane %v6167_v53, 4  ;;  %v15013_v56 = vshrl.u32 %v20571_v4, 16  ;;  %v15019_v59 = vshll.u32 %v20572_v42, 16  ;;  %v20575_v42 = vld [vmem:[%s25062_s4 + $0x1e4] sm:$0xf] }
 0x39b   : > { %v14996_v62 = vor.u32 %v14995_v8, %v14991_v23  ;;  %v6177_v9 = vor.u32 %v6176_v60, %v6172_v49  ;;  %v6185_v63 = vshrl.u32 %v19351_v10, 16  ;;  %v15011_v19 = vrot.slane %v15009_v29, 5 }
 0x39c   : > { %v15006_v16 = vor.u32 %v15005_v2, %v15001_v25  ;;  %v15015_v8 = vrot.slane %v15013_v56, 4  ;;  %v6188_v30 = vshll.u32 %v19351_v10, 16  ;;  %v6194_v26 = vshll.u32 %v19352_v11, 16 }
 0x39d   : > { %v14997_v33 = vrot.slane %v14996_v62, 4  ;;  %v6178_v23 = vrot.slane %v6177_v9, 4  ;;  %v6187_v39 = vrot.slane %v6185_v63, 4  ;;  %v6198_v31 = vshrl.u32 %v19352_v11, 16  ;;  %v19354_v11 = vld [vmem:[%s25062_s4 + $0x178] sm:$0xf] }
 0x39e   : > { %23176 = vmatmul.mubr.msk.bf16.gmra.mrb[4].mxu0 %vm2122_vm1, %v26772_v47  ;;  %v15007_v21 = vrot.slane %v15006_v16, 4  ;;  %v15016_v28 = vor.u32 %v15015_v8, %v15011_v19  ;;  %v6204_v40 = vshll.u32 %v19353_v22, 16  ;;  %v6208_v4 = vshrl.u32 %v19353_v22, 16  ;;  %v19355_v16 = vld [vmem:[%s25062_s4 + $0x17c] sm:$0xf] }
 0x39f   : > { %23179 = vmatprep.mubr.msk.bf16.mxu0 %vm2122_vm1, %v26789_v13  ;;  %22592 = vmatmul.mubr.msk.bf16.gmra.mrb[4].mxu1 %vm2122_vm1, %v26828_v18  ;;  %v15002_v47 = vsel %vm25095_vm4, %v14997_v33, %v15001_v25  ;;  %v6173_v18 = vsel %vm25095_vm4, %v6168_v61, %v6172_v49  ;;  %v6183_v62 = vsel %vm25095_vm4, %v6178_v23, %v6182_v52  ;;  %v20574_v25 = vld [vmem:[%s25062_s4 + $0x1e0] sm:$0xf]  ;;  %v6190_v53 = vrot.slane %v6188_v30, 5 }
 0x3a0   : > { %22595 = vmatprep.mubr.msk.bf16.mxu1 %vm2122_vm1, %v26853_v0  ;;  %v27159_v13 = vcombine.low %v14992_v58, %v15002_v47  ;;  %v15021_v0 = vrot.slane %v15019_v59, 5  ;;  %v27168_v50 = vcombine.low %v6173_v18, %v6183_v62  ;;  %v15012_v58 = vsel %vm25095_vm4, %v15007_v21, %v15011_v19  ;;  %v20576_v62 = vld [vmem:[%s25062_s4 + $0x1e8] sm:$0xf] }
 0x3a1   : > { %v6196_v49 = vrot.slane %v6194_v26, 5  ;;  %v15017_v10 = vrot.slane %v15016_v28, 4  ;;  %v6200_v33 = vrot.slane %v6198_v31, 4  ;;  %v6206_v60 = vrot.slane %v6204_v40, 5 }
 0x3a2   : > { %v15024_v52 = vshrl.u32 %v20573_v12, 16  ;;  %v6191_v61 = vor.u32 %v6190_v53, %v6187_v39  ;;  %v15027_v2 = vshll.u32 %v20573_v12, 16  ;;  %v15033_v29 = vshll.u32 %v20574_v25, 16  ;;  %v20577_v53 = vld [vmem:[%s25062_s4 + $0x1ec] sm:$0xf] }
 0x3a3   : > { %v15037_v56 = vshrl.u32 %v20574_v25, 16  ;;  %v6201_v47 = vor.u32 %v6200_v33, %v6196_v49  ;;  %v15043_v59 = vshll.u32 %v20575_v42, 16  ;;  %v15047_v8 = vshrl.u32 %v20575_v42, 16 }
 0x3a4   : > { %v15026_v9 = vrot.slane %v15024_v52, 4  ;;  %v15029_v18 = vrot.slane %v15027_v2, 5  ;;  %v6210_v39 = vrot.slane %v6208_v4, 4  ;;  %v6214_v21 = vshll.u32 %v19354_v11, 16 }
 0x3a5   : > { %v6202_v19 = vrot.slane %v6201_v47, 4  ;;  %v15039_v22 = vrot.slane %v15037_v56, 4  ;;  %v15045_v23 = vrot.slane %v15043_v59, 5  ;;  %v6218_v31 = vshrl.u32 %v19354_v11, 16  ;;  %v19357_v59 = vld [vmem:[%s25062_s4 + $0x184] sm:$0x1] }
 0x3a6   : > { %23180 = vmatmul.mubr.msk.bf16.gmra.mrb[8].mxu0 %vm2122_vm1, %v26818_v1  ;;  %v15022_v1 = vsel %vm25095_vm4, %v15017_v10, %v15021_v0  ;;  %v15030_v0 = vor.u32 %v15029_v18, %v15026_v9  ;;  %v6224_v12 = vshll.u32 %v19355_v16, 16  ;;  %v6211_v25 = vor.u32 %v6210_v39, %v6206_v60  ;;  %v20578_v39 = vld [vmem:[%s25062_s4 + $0x1f0] sm:$0xf] }
 0x3a7   : > { %23183 = vmatprep.mubr.msk.bf16.mxu0 %vm2122_vm1, %v26843_v48  ;;  %22596 = vmatmul.mubr.msk.bf16.gmra.mrb[8].mxu1 %vm2122_vm1, %v26881_v51  ;;  %v27184_v63 = vcombine.low %v15012_v58, %v15022_v1  ;;  %v6192_v48 = vrot.slane %v6191_v61, 4  ;;  %v15035_v51 = vrot.slane %v15033_v29, 5  ;;  %v6207_v30 = vsel %vm25095_vm4, %v6202_v19, %v6206_v60 }
 0x3a8   : > { %22599 = vmatprep.mubr.msk.bf16.mxu1 %vm2122_vm1, %v26903_v38  ;;  %v15031_v40 = vrot.slane %v15030_v0, 4  ;;  %v6216_v58 = vrot.slane %v6214_v21, 5  ;;  %v6220_v4 = vrot.slane %v6218_v31, 4  ;;  %v6226_v42 = vrot.slane %v6224_v12, 5  ;;  %v20579_v21 = vld [vmem:[%s25062_s4 + $0x1f4] sm:$0x1] }
 0x3a9   : > { %v6197_v38 = vsel %vm25095_vm4, %v6192_v48, %v6196_v49  ;;  %v15040_v26 = vor.u32 %v15039_v22, %v15035_v51  ;;  %v6228_v10 = vshrl.u32 %v19355_v16, 16  ;;  %v6212_v60 = vrot.slane %v6211_v25, 4 }
 0x3aa   : > { %v27192_v28 = vcombine.low %v6197_v38, %v6207_v30  ;;  %v15036_v33 = vsel %vm25095_vm4, %v15031_v40, %v15035_v51  ;;  %v15049_v52 = vrot.slane %v15047_v8, 4  ;;  %v15053_v61 = vshll.u32 %v20576_v62, 16 }
 0x3ab   : > { %v15041_v49 = vrot.slane %v15040_v26, 4  ;;  %v6221_v2 = vor.u32 %v6220_v4, %v6216_v58  ;;  %v15057_v29 = vshrl.u32 %v20576_v62, 16  ;;  %v15063_v56 = vshll.u32 %v20577_v53, 16  ;;  %v19358_v62 = vld [vmem:[%s25062_s4 + $0x1a4] sm:$0xf] }
 0x3ac   : > { %v15050_v47 = vor.u32 %v15049_v52, %v15045_v23  ;;  %v15055_v9 = vrot.slane %v15053_v61, 5  ;;  %v15067_v18 = vshrl.u32 %v20577_v53, 16  ;;  %v6230_v16 = vrot.slane %v6228_v10, 4  ;;  %v19359_v52 = vld [vmem:[%s25062_s4 + $0x1a8] sm:$0xf] }
 0x3ad   : > { %v6222_v11 = vrot.slane %v6221_v2, 4  ;;  %v15059_v48 = vrot.slane %v15057_v29, 4  ;;  %v6244_v0 = vshll.u32 %v19357_v59, 16  ;;  %v15073_v4 = vshll.u32 %v20578_v39, 16  ;;  %v19360_v29 = vld [vmem:[%s25062_s4 + $0x1ac] sm:$0xf] }
 0x3ae   : > { %23184 = vmatmul.mubr.msk.bf16.gmra.mrb[12].mxu0 %vm2122_vm1, %v26868_v34  ;;  %v15046_v34 = vsel %vm25095_vm4, %v15041_v49, %v15045_v23  ;;  %v15051_v51 = vrot.slane %v15050_v47, 4  ;;  %v15069_v30 = vrot.slane %v15067_v18, 4  ;;  %v6231_v31 = vor.u32 %v6230_v16, %v6226_v42 }
 0x3af   : > { %23187 = vmatprep.mubr.msk.bf16.mxu0 %vm2122_vm1, %v26889_v7  ;;  %22600 = vmatmul.mubr.msk.bf16.gmra.mrb[12].mxu1 %vm2122_vm1, %v26928_v32  ;;  %v19356_v7 = vld [vmem:[%s25062_s4 + $0x180] sm:$0xf]  ;;  %v27208_v1 = vcombine.low %v15036_v33, %v15046_v34  ;;  %v6217_v32 = vsel %vm25095_vm4, %v6212_v60, %v6216_v58  ;;  %v6227_v8 = vsel %vm25095_vm4, %v6222_v11, %v6226_v42  ;;  %v6246_v58 = vrot.slane %v6244_v0, 5 }
 0x3b0   : > { %22603 = vmatprep.mubr.msk.bf16.mxu1 %vm2122_vm1, %v26950_v20  ;;  %v15065_v20 = vrot.slane %v15063_v56, 5  ;;  %v6234_v19 = vshll.u32 %v19356_v7, 16  ;;  %v6238_v22 = vshrl.u32 %v19356_v7, 16  ;;  %v15060_v38 = vor.u32 %v15059_v48, %v15055_v9  ;;  %v20580_v48 = vld [vmem:[%s25062_s4 + $0x214] sm:$0xf] }
 0x3b1   : > { %v27217_v23 = vcombine.low %v6217_v32, %v6227_v8  ;;  %v15056_v26 = vsel %vm25095_vm4, %v15051_v51, %v15055_v9  ;;  %v6232_v49 = vrot.slane %v6231_v31, 4  ;;  %v15077_v42 = vshrl.u32 %v20578_v39, 16 }
 0x3b2   : > { %v6236_v12 = vrot.slane %v6234_v19, 5  ;;  %v15061_v40 = vrot.slane %v15060_v38, 4  ;;  %v6240_v25 = vrot.slane %v6238_v22, 4  ;;  %v15070_v53 = vor.u32 %v15069_v30, %v15065_v20  ;;  %v20581_v19 = vld [vmem:[%s25062_s4 + $0x218] sm:$0xf] }
 0x3b3   : > { %v15083_v10 = vshll.u32 %v20579_v21, 16  ;;  %v6249_v61 = vshrl.u32 %v19358_v62, 16  ;;  %v15075_v34 = vrot.slane %v15073_v4, 5  ;;  %v15079_v2 = vrot.slane %v15077_v42, 4  ;;  %v20582_v30 = vld [vmem:[%s25062_s4 + $0x21c] sm:$0xf] }
 0x3b4   : > { %v6241_v33 = vor.u32 %v6240_v25, %v6236_v12  ;;  %v15071_v60 = vrot.slane %v15070_v53, 4  ;;  %v6252_v32 = vshll.u32 %v19358_v62, 16  ;;  %v6258_v59 = vshll.u32 %v19359_v52, 16  ;;  %v19361_v4 = vld [vmem:[%s25062_s4 + $0x1b0] sm:$0xf] }
 0x3b5   : > { %v15085_v7 = vrot.slane %v15083_v10, 5  ;;  %v15080_v9 = vor.u32 %v15079_v2, %v15075_v34  ;;  %v6262_v11 = vshrl.u32 %v19359_v52, 16  ;;  %v6268_v51 = vshll.u32 %v19360_v29, 16  ;;  %v19362_v52 = vld [vmem:[%s25062_s4 + $0x1b4] sm:$0xf] }
 0x3b6   : > { %23188 = vmatmul.mubr.msk.bf16.gmra.mrb[16].mxu0 %vm2122_vm1, %v26917_v5  ;;  %v15066_v5 = vsel %vm25095_vm4, %v15061_v40, %v15065_v20  ;;  %v6242_v56 = vrot.slane %v6241_v33, 4  ;;  %v15076_v47 = vsel %vm25095_vm4, %v15071_v60, %v15075_v34  ;;  %v6254_v18 = vrot.slane %v6252_v32, 5  ;;  %v20583_v32 = vld [vmem:[%s25062_s4 + $0x220] sm:$0xf] }
 0x3b7   : > { %23191 = vmatprep.mubr.msk.bf16.mxu0 %vm2122_vm1, %v26942_v57  ;;  %22604 = vmatmul.mubr.msk.bf16.gmra.mrb[16].mxu1 %vm2122_vm1, %v26974_v15  ;;  %v27233_v57 = vcombine.low %v15056_v26, %v15066_v5  ;;  %v6237_v15 = vsel %vm25095_vm4, %v6232_v49, %v6236_v12  ;;  %v6272_v16 = vshrl.u32 %v19360_v29, 16  ;;  %v15081_v8 = vrot.slane %v15080_v9, 4 }
 0x3b8   : > { %22607 = vmatprep.mubr.msk.bf16.mxu1 %vm2122_vm1, %v27005_v24  ;;  %v6251_v24 = vrot.slane %v6249_v61, 4  ;;  %v6247_v20 = vsel %vm25095_vm4, %v6242_v56, %v6246_v58  ;;  %v6260_v38 = vrot.slane %v6258_v59, 5  ;;  %v6264_v0 = vrot.slane %v6262_v11, 4 }
 0x3b9   : > { %v27244_v22 = vcombine.low %v6237_v15, %v6247_v20  ;;  %v6270_v21 = vrot.slane %v6268_v51, 5  ;;  %v15088_v26 = vshrl.u32 %v20580_v48, 16  ;;  %v15091_v31 = vshll.u32 %v20580_v48, 16  ;;  %v20584_v51 = vld [vmem:[%s25062_s4 + $0x224] sm:$0xf] }
 0x3ba   : > { %v6255_v39 = vor.u32 %v6254_v18, %v6251_v24  ;;  %v15086_v12 = vsel %vm25095_vm4, %v15081_v8, %v15085_v7  ;;  %v6265_v62 = vor.u32 %v6264_v0, %v6260_v38  ;;  %v15097_v40 = vshll.u32 %v20581_v19, 16  ;;  %v19363_v0 = vld [vmem:[%s25062_s4 + $0x1b8] sm:$0xf] }
 0x3bb   : > { %v15101_v25 = vshrl.u32 %v20581_v19, 16  ;;  %v15090_v53 = vrot.slane %v15088_v26, 4  ;;  %v15093_v49 = vrot.slane %v15091_v31, 5  ;;  %v15107_v10 = vshll.u32 %v20582_v30, 16  ;;  %v19364_v26 = vld [vmem:[%s25062_s4 + $0x1bc] sm:$0x1] }
 0x3bc   : > { %v6256_v58 = vrot.slane %v6255_v39, 4  ;;  %v15099_v42 = vrot.slane %v15097_v40, 5  ;;  %v15111_v60 = vshrl.u32 %v20582_v30, 16  ;;  %v6274_v61 = vrot.slane %v6272_v16, 4 }
 0x3bd   : > { %v15094_v33 = vor.u32 %v15093_v49, %v15090_v53  ;;  %v15109_v34 = vrot.slane %v15107_v10, 5  ;;  %v6278_v2 = vshll.u32 %v19361_v4, 16  ;;  %v6282_v24 = vshrl.u32 %v19361_v4, 16 }
 0x3be   : > { %23192 = vmatmul.mubr.msk.bf16.gmra.mrb[20].mxu0 %vm2122_vm1, %v26962_v43  ;;  %v27257_v43 = vcombine.low %v15076_v47, %v15086_v12  ;;  %v6261_v5 = vsel %vm25095_vm4, %v6256_v58, %v6260_v38  ;;  %v6275_v7 = vor.u32 %v6274_v61, %v6270_v21  ;;  %v6288_v59 = vshll.u32 %v19362_v52, 16 }
 0x3bf   : > { %23195 = vmatprep.mubr.msk.bf16.mxu0 %vm2122_vm1, %v26987_v41  ;;  %22608 = vmatmul.mubr.msk.bf16.gmra.mrb[20].mxu1 %vm2122_vm1, %v27025_v17  ;;  %v6266_v41 = vrot.slane %v6265_v62, 4  ;;  %v15103_v17 = vrot.slane %v15101_v25, 4  ;;  %v15095_v56 = vrot.slane %v15094_v33, 4  ;;  %v6280_v9 = vrot.slane %v6278_v2, 5 }
 0x3c0   : > { %22611 = vmatprep.mubr.msk.bf16.mxu1 %vm2122_vm1, %v27049_v27  ;;  %v6292_v11 = vshrl.u32 %v19362_v52, 16  ;;  %v6276_v20 = vrot.slane %v6275_v7, 4  ;;  %v6284_v18 = vrot.slane %v6282_v24, 4  ;;  %v15113_v16 = vrot.slane %v15111_v60, 4  ;;  %v20586_v60 = vld [vmem:[%s25062_s4 + $0x22c] sm:$0x1] }
 0x3c1   : > { %v6271_v27 = vsel %vm25095_vm4, %v6266_v41, %v6270_v21  ;;  %v15104_v15 = vor.u32 %v15103_v17, %v15099_v42  ;;  %v15100_v48 = vsel %vm25095_vm4, %v15095_v56, %v15099_v42  ;;  %v6290_v8 = vrot.slane %v6288_v59, 5  ;;  %v20585_v42 = vld [vmem:[%s25062_s4 + $0x228] sm:$0xf]  ;;  %v19365_v52 = vld [vmem:[%s25062_s4 + $0x1dc] sm:$0xf] }
 0x3c2   : > { %v27265_v29 = vcombine.low %v6261_v5, %v6271_v27  ;;  %v15117_v38 = vshll.u32 %v20583_v32, 16  ;;  %v6281_v21 = vsel %vm25095_vm4, %v6276_v20, %v6280_v9  ;;  %v15114_v30 = vor.u32 %v15113_v16, %v15109_v34  ;;  %v19366_v59 = vld [vmem:[%s25062_s4 + $0x1e0] sm:$0xf] }
 0x3c3   : > { %v15105_v47 = vrot.slane %v15104_v15, 4  ;;  %v15127_v12 = vshll.u32 %v20584_v51, 16  ;;  %v15131_v62 = vshrl.u32 %v20584_v51, 16  ;;  %v6294_v58 = vrot.slane %v6292_v11, 4 }
 0x3c4   : > { %v15115_v25 = vrot.slane %v15114_v30, 4  ;;  %v6298_v53 = vshll.u32 %v19363_v0, 16  ;;  %v6302_v4 = vshrl.u32 %v19363_v0, 16  ;;  %v6308_v41 = vshll.u32 %v19364_v26, 16 }
 0x3c5   : > { %v15110_v19 = vsel %vm25095_vm4, %v15105_v47, %v15109_v34  ;;  %v15129_v49 = vrot.slane %v15127_v12, 5  ;;  %v6295_v5 = vor.u32 %v6294_v58, %v6290_v8  ;;  %v15133_v56 = vrot.slane %v15131_v62, 4 }
 0x3c6   : > { %23196 = vmatmul.mubr.msk.bf16.gmra.mrb[24].mxu0 %vm2122_vm1, %v27013_v44  ;;  %v15121_v44 = vshrl.u32 %v20583_v32, 16  ;;  %v27282_v39 = vcombine.low %v15100_v48, %v15110_v19  ;;  %v6300_v33 = vrot.slane %v6298_v53, 5  ;;  %v6304_v15 = vrot.slane %v6302_v4, 4 }
 0x3c7   : > { %23199 = vmatprep.mubr.msk.bf16.mxu0 %vm2122_vm1, %v27037_v46  ;;  %22612 = vmatmul.mubr.msk.bf16.gmra.mrb[24].mxu1 %vm2122_vm1, %v27074_v35  ;;  %v6285_v46 = vor.u32 %v6284_v18, %v6280_v9  ;;  %v15119_v35 = vrot.slane %v15117_v38, 5  ;;  %v6310_v34 = vrot.slane %v6308_v41, 5  ;;  %v6296_v2 = vrot.slane %v6295_v5, 4 }
 0x3c8   : > { %22615 = vmatprep.mubr.msk.bf16.mxu1 %vm2122_vm1, %v27099_v45  ;;  %v15123_v31 = vrot.slane %v15121_v44, 4  ;;  %v15137_v7 = vshll.u32 %v20585_v42, 16  ;;  %v15141_v24 = vshrl.u32 %v20585_v42, 16  ;;  %v6305_v47 = vor.u32 %v6304_v15, %v6300_v33 }
 0x3c9   : > { %v6286_v40 = vrot.slane %v6285_v46, 4  ;;  %v15120_v10 = vsel %vm25095_vm4, %v15115_v25, %v15119_v35  ;;  %v15147_v9 = vshll.u32 %v20586_v60, 16  ;;  %v6313_v11 = vshrl.u32 %v19365_v52, 16  ;;  %v20589_v25 = vld [vmem:[%s25062_s4 + $0x254] sm:$0xf] }
 0x3ca   : > { %v15124_v45 = vor.u32 %v15123_v31, %v15119_v35  ;;  %v6301_v48 = vsel %vm25095_vm4, %v6296_v2, %v6300_v33  ;;  %v15139_v20 = vrot.slane %v15137_v7, 5  ;;  %v6306_v18 = vrot.slane %v6305_v47, 4  ;;  %v20588_v35 = vld [vmem:[%s25062_s4 + $0x250] sm:$0xf] }
 0x3cb   : > { %v6291_v17 = vsel %vm25095_vm4, %v6286_v40, %v6290_v8  ;;  %v15143_v51 = vrot.slane %v15141_v24, 4  ;;  %v15149_v16 = vrot.slane %v15147_v9, 5  ;;  %v6315_v19 = vrot.slane %v6313_v11, 4 }
 0x3cc   : > { %v27294_v61 = vcombine.low %v6281_v21, %v6291_v17  ;;  %v15125_v27 = vrot.slane %v15124_v45, 4  ;;  %v6316_v38 = vshll.u32 %v19365_v52, 16  ;;  %v6322_v44 = vshll.u32 %v19366_v59, 16  ;;  %v20587_v21 = vld [vmem:[%s25062_s4 + $0x24c] sm:$0xf] }
 0x3cd   : > { %v6326_v0 = vshrl.u32 %v19366_v59, 16  ;;  %v15144_v46 = vor.u32 %v15143_v51, %v15139_v20  ;;  %v15155_v41 = vshll.u32 %v20587_v21, 16  ;;  %v15161_v42 = vshll.u32 %v20588_v35, 16  ;;  %v19368_v52 = vld [vmem:[%s25062_s4 + $0x1e8] sm:$0xf] }
 0x3ce   : > { %23200 = vmatmul.mubr.msk.bf16.gmra.mrb[28].mxu0 %vm2122_vm1, %v27061_v54  ;;  %v15130_v32 = vsel %vm25095_vm4, %v15125_v27, %v15129_v49  ;;  %v6318_v62 = vrot.slane %v6316_v38, 5  ;;  %v6324_v40 = vrot.slane %v6322_v44, 5  ;;  %v15165_v17 = vshrl.u32 %v20588_v35, 16 }
 0x3cf   : > { %23203 = vmatprep.mubr.msk.bf16.mxu0 %vm2122_vm1, %v27086_v3  ;;  %22616 = vmatmul.mubr.msk.bf16.gmra.mrb[28].mxu1 %vm2122_vm1, %v27117_v36  ;;  %v27307_v54 = vcombine.low %v15120_v10, %v15130_v32  ;;  %v15134_v3 = vor.u32 %v15133_v56, %v15129_v49  ;;  %v19367_v36 = vld [vmem:[%s25062_s4 + $0x1e4] sm:$0xf]  ;;  %v15145_v58 = vrot.slane %v15144_v46, 4  ;;  %v6328_v53 = vrot.slane %v6326_v0, 4 }
 0x3d0   : > { %22619 = vmatprep.mubr.msk.bf16.mxu1 %vm2122_vm1, %v27148_v55  ;;  %v6311_v55 = vsel %vm25095_vm4, %v6306_v18, %v6310_v34  ;;  %v6332_v30 = vshll.u32 %v19367_v36, 16  ;;  %v6336_v26 = vshrl.u32 %v19367_v36, 16  ;;  %v15152_v49 = vshrl.u32 %v20587_v21, 16 }
 0x3d1   : > { %v15135_v8 = vrot.slane %v15134_v3, 4  ;;  %v27316_v31 = vcombine.low %v6301_v48, %v6311_v55  ;;  %v6319_v4 = vor.u32 %v6318_v62, %v6315_v19  ;;  %v15150_v10 = vsel %vm25095_vm4, %v15145_v58, %v15149_v16  ;;  %v20590_v3 = vld [vmem:[%s25062_s4 + $0x258] sm:$0xf]  ;;  %v20591_v16 = vld [vmem:[%s25062_s4 + $0x25c] sm:$0xf] }
 0x3d2   : > { %v6334_v45 = vrot.slane %v6332_v30, 5  ;;  %v6329_v5 = vor.u32 %v6328_v53, %v6324_v40  ;;  %v15154_v33 = vrot.slane %v15152_v49, 4  ;;  %v15171_v60 = vshll.u32 %v20589_v25, 16 }
 0x3d3   : > { %v15140_v12 = vsel %vm25095_vm4, %v15135_v8, %v15139_v20  ;;  %v6320_v27 = vrot.slane %v6319_v4, 4  ;;  %v15157_v15 = vrot.slane %v15155_v41, 5  ;;  %v15163_v34 = vrot.slane %v15161_v42, 5 }
 0x3d4   : > { %v6330_v2 = vrot.slane %v6329_v5, 4  ;;  %v15167_v56 = vrot.slane %v15165_v17, 4  ;;  %v15175_v7 = vshrl.u32 %v20589_v25, 16  ;;  %v6338_v47 = vrot.slane %v6336_v26, 4 }
 0x3d5   : > { %v6325_v24 = vsel %vm25095_vm4, %v6320_v27, %v6324_v40  ;;  %v15158_v32 = vor.u32 %v15157_v15, %v15154_v33  ;;  %v6342_v9 = vshll.u32 %v19368_v52, 16  ;;  %v6346_v11 = vshrl.u32 %v19368_v52, 16  ;;  %v20592_v33 = vld [vmem:[%s25062_s4 + $0x260] sm:$0xf] }
 0x3d6   : > { %23204 = vmatmul.mubr.msk.bf16.gmra.mrb[32].mxu0 %vm2122_vm1, %v27109_v6  ;;  %v27332_v6 = vcombine.low %v15140_v12, %v15150_v10  ;;  %v15168_v59 = vor.u32 %v15167_v56, %v15163_v34  ;;  %v6339_v18 = vor.u32 %v6338_v47, %v6334_v45  ;;  %v15177_v55 = vrot.slane %v15175_v7, 4 }
 0x3d7   : > { %23207 = vmatprep.mubr.msk.bf16.mxu0 %vm2122_vm1, %v27134_v14  ;;  %22620 = vmatmul.mubr.msk.bf16.gmra.mrb[32].mxu1 %vm2122_vm1, %v27168_v50  ;;  %v19369_v14 = vld [vmem:[%s25062_s4 + $0x1ec] sm:$0xf]  ;;  %v15173_v50 = vrot.slane %v15171_v60, 5  ;;  %v15159_v36 = vrot.slane %v15158_v32, 4  ;;  %v6344_v51 = vrot.slane %v6342_v9, 5  ;;  %v6348_v8 = vrot.slane %v6346_v11, 4 }
 0x3d8   : > { %22623 = vmatprep.mubr.msk.bf16.mxu1 %vm2122_vm1, %v27192_v28  ;;  %v6335_v28 = vsel %vm25095_vm4, %v6330_v2, %v6334_v45  ;;  %v6352_v48 = vshll.u32 %v19369_v14, 16  ;;  %v15169_v19 = vrot.slane %v15168_v59, 4  ;;  %v6356_v44 = vshrl.u32 %v19369_v14, 16  ;;  %v20593_v60 = vld [vmem:[%s25062_s4 + $0x264] sm:$0x1] }
 0x3d9   : > { %v27340_v20 = vcombine.low %v6325_v24, %v6335_v28  ;;  %v15164_v0 = vsel %vm25095_vm4, %v15159_v36, %v15163_v34  ;;  %v6340_v21 = vrot.slane %v6339_v18, 4  ;;  %v15181_v46 = vshll.u32 %v20590_v3, 16  ;;  %v19372_v2 = vld [vmem:[%s25062_s4 + $0x214] sm:$0xf] }
 0x3da   : > { %v6354_v38 = vrot.slane %v6352_v48, 5  ;;  %v15174_v30 = vsel %vm25095_vm4, %v15169_v19, %v15173_v50  ;;  %v6349_v26 = vor.u32 %v6348_v8, %v6344_v51  ;;  %v15185_v35 = vshrl.u32 %v20590_v3, 16  ;;  %v19373_v3 = vld [vmem:[%s25062_s4 + $0x218] sm:$0xf] }
 0x3db   : > { %v15191_v12 = vshll.u32 %v20591_v16, 16  ;;  %v27356_v62 = vcombine.low %v15164_v0, %v15174_v30  ;;  %v6345_v40 = vsel %vm25095_vm4, %v6340_v21, %v6344_v51  ;;  %v15183_v25 = vrot.slane %v15181_v46, 5 }
 0x3dc   : > { %v6350_v58 = vrot.slane %v6349_v26, 4  ;;  %v15187_v53 = vrot.slane %v15185_v35, 4  ;;  %v15195_v49 = vshrl.u32 %v20591_v16, 16  ;;  %v6358_v41 = vrot.slane %v6356_v44, 4 }
 0x3dd   : > { %v15193_v45 = vrot.slane %v15191_v12, 5  ;;  %v15201_v47 = vshll.u32 %v20592_v33, 16  ;;  %v15205_v9 = vshrl.u32 %v20592_v33, 16  ;;  %v15211_v28 = vshll.u32 %v20593_v60, 16  ;;  %v20595_v12 = vld [vmem:[%s25062_s4 + $0x288] sm:$0xf] }
 0x3de   : > { %23208 = vmatmul.mubr.msk.bf16.gmra.mrb[36].mxu0 %vm2122_vm1, %v27159_v13  ;;  %v19370_v13 = vld [vmem:[%s25062_s4 + $0x1f0] sm:$0xf]  ;;  %v15188_v10 = vor.u32 %v15187_v53, %v15183_v25  ;;  %v15197_v52 = vrot.slane %v15195_v49, 4  ;;  %v6359_v34 = vor.u32 %v6358_v41, %v6354_v38  ;;  %v6377_v36 = vshrl.u32 %v19372_v2, 16  ;;  %v20596_v53 = vld [vmem:[%s25062_s4 + $0x28c] sm:$0xf] }
 0x3df   : > { %23211 = vmatprep.mubr.msk.bf16.mxu0 %vm2122_vm1, %v27184_v63  ;;  %22624 = vmatmul.mubr.msk.bf16.gmra.mrb[36].mxu1 %vm2122_vm1, %v27217_v23  ;;  %v15178_v63 = vor.u32 %v15177_v55, %v15173_v50  ;;  %v19371_v23 = vld [vmem:[%s25062_s4 + $0x1f4] sm:$0x1]  ;;  %v6362_v42 = vshll.u32 %v19370_v13, 16  ;;  %v6366_v17 = vshrl.u32 %v19370_v13, 16  ;;  %v15207_v51 = vrot.slane %v15205_v9, 4 }
 0x3e0   : > { %22627 = vmatprep.mubr.msk.bf16.mxu1 %vm2122_vm1, %v27244_v22  ;;  %v6355_v22 = vsel %vm25095_vm4, %v6350_v58, %v6354_v38  ;;  %v6372_v5 = vshll.u32 %v19371_v23, 16  ;;  %v15189_v56 = vrot.slane %v15188_v10, 4  ;;  %v15198_v24 = vor.u32 %v15197_v52, %v15193_v45  ;;  %v20594_v55 = vld [vmem:[%s25062_s4 + $0x284] sm:$0xf]  ;;  %v19375_v60 = vld [vmem:[%s25062_s4 + $0x220] sm:$0xf] }
 0x3e1   : > { %v15179_v4 = vrot.slane %v15178_v63, 4  ;;  %v27365_v27 = vcombine.low %v6345_v40, %v6355_v22  ;;  %v6364_v14 = vrot.slane %v6362_v42, 5  ;;  %v6368_v50 = vrot.slane %v6366_v17, 4 }
 0x3e2   : > { %v6374_v7 = vrot.slane %v6372_v5, 5  ;;  %v6360_v32 = vrot.slane %v6359_v34, 4  ;;  %v15194_v59 = vsel %vm25095_vm4, %v15189_v56, %v15193_v45  ;;  %v15199_v48 = vrot.slane %v15198_v24, 4 }
 0x3e3   : > { %v15184_v15 = vsel %vm25095_vm4, %v15179_v4, %v15183_v25  ;;  %v6369_v11 = vor.u32 %v6368_v50, %v6364_v14  ;;  %v15213_v19 = vrot.slane %v15211_v28, 5  ;;  %v6379_v8 = vrot.slane %v6377_v36, 4 }
 0x3e4   : > { %v6365_v18 = vsel %vm25095_vm4, %v6360_v32, %v6364_v14  ;;  %v6380_v38 = vshll.u32 %v19372_v2, 16  ;;  %v6386_v21 = vshll.u32 %v19373_v3, 16  ;;  %v15216_v45 = vshrl.u32 %v20594_v55, 16 }
 0x3e5   : > { %v6370_v16 = vrot.slane %v6369_v11, 4  ;;  %v15219_v49 = vshll.u32 %v20594_v55, 16  ;;  %v15225_v42 = vshll.u32 %v20595_v12, 16  ;;  %v15229_v17 = vshrl.u32 %v20595_v12, 16 }
 0x3e6   : > { %23212 = vmatmul.mubr.msk.bf16.gmra.mrb[40].mxu0 %vm2122_vm1, %v27208_v1  ;;  %v27381_v1 = vcombine.low %v15184_v15, %v15194_v59  ;;  %v6382_v30 = vrot.slane %v6380_v38, 5  ;;  %v6388_v63 = vrot.slane %v6386_v21, 5  ;;  %v15218_v5 = vrot.slane %v15216_v45, 4  ;;  %v20597_v59 = vld [vmem:[%s25062_s4 + $0x290] sm:$0xf] }
 0x3e7   : > { %23215 = vmatprep.mubr.msk.bf16.mxu0 %vm2122_vm1, %v27233_v57  ;;  %22628 = vmatmul.mubr.msk.bf16.gmra.mrb[40].mxu1 %vm2122_vm1, %v27265_v29  ;;  %v15203_v57 = vrot.slane %v15201_v47, 5  ;;  %v19374_v29 = vld [vmem:[%s25062_s4 + $0x21c] sm:$0xf]  ;;  %v6375_v46 = vsel %vm25095_vm4, %v6370_v16, %v6374_v7  ;;  %v15221_v33 = vrot.slane %v15219_v49, 5  ;;  %v15227_v52 = vrot.slane %v15225_v42, 5 }
 0x3e8   : > { %22631 = vmatprep.mubr.msk.bf16.mxu1 %vm2122_vm1, %v27294_v61  ;;  %v6390_v61 = vshrl.u32 %v19373_v3, 16  ;;  %v6396_v26 = vshll.u32 %v19374_v29, 16  ;;  %v6400_v35 = vshrl.u32 %v19374_v29, 16  ;;  %v19505_v13 = vcombine.low %v6365_v18, %v6375_v46  ;;  %v20598_v18 = vld [vmem:[%s25062_s4 + $0x294] sm:$0xf] }
 0x3e9   : > { %v15204_v44 = vsel %vm25095_vm4, %v15199_v48, %v15203_v57  ;;  %v15208_v0 = vor.u32 %v15207_v51, %v15203_v57  ;;  %v6383_v23 = vor.u32 %v6382_v30, %v6379_v8  ;;  %v15231_v15 = vrot.slane %v15229_v17, 4  ;;  %v19378_v46 = vld [vmem:[%s25062_s4 + $0x22c] sm:$0x1]  ;;  %v20599_v45 = vld [vmem:[%s25062_s4 + $0x298] sm:$0xf] }
 0x3ea   : > { %v6392_v25 = vrot.slane %v6390_v61, 4  ;;  %v6398_v58 = vrot.slane %v6396_v26, 5  ;;  %v15235_v34 = vshll.u32 %v20596_v53, 16  ;;  %v15222_v14 = vor.u32 %v15221_v33, %v15218_v5 }
 0x3eb   : > { %v15209_v40 = vrot.slane %v15208_v0, 4  ;;  %v6384_v10 = vrot.slane %v6383_v23, 4  ;;  %v15239_v2 = vshrl.u32 %v20596_v53, 16  ;;  %v6402_v56 = vrot.slane %v6400_v35, 4  ;;  %v19377_v0 = vld [vmem:[%s25062_s4 + $0x228] sm:$0xf] }
 0x3ec   : > { %v6393_v41 = vor.u32 %v6392_v25, %v6388_v63  ;;  %v15232_v7 = vor.u32 %v15231_v15, %v15227_v52  ;;  %v15237_v24 = vrot.slane %v15235_v34, 5  ;;  %v6406_v32 = vshll.u32 %v19375_v60, 16  ;;  %v19379_v34 = vld [vmem:[%s25062_s4 + $0x24c] sm:$0xf] }
 0x3ed   : > { %v15214_v4 = vsel %vm25095_vm4, %v15209_v40, %v15213_v19  ;;  %v15223_v47 = vrot.slane %v15222_v14, 4  ;;  %v6403_v9 = vor.u32 %v6402_v56, %v6398_v58  ;;  %v6410_v28 = vshrl.u32 %v19375_v60, 16  ;;  %v19380_v56 = vld [vmem:[%s25062_s4 + $0x250] sm:$0xf] }
 0x3ee   : > { %23216 = vmatmul.mubr.msk.bf16.gmra.mrb[44].mxu0 %vm2122_vm1, %v27257_v43  ;;  %v27401_v22 = vcombine.low %v15204_v44, %v15214_v4  ;;  %v6394_v43 = vrot.slane %v6393_v41, 4  ;;  %v15233_v11 = vrot.slane %v15232_v7, 4  ;;  %v6408_v48 = vrot.slane %v6406_v32, 5  ;;  %v20600_v41 = vld [vmem:[%s25062_s4 + $0x29c] sm:$0x1] }
 0x3ef   : > { %23219 = vmatprep.mubr.msk.bf16.mxu0 %vm2122_vm1, %v27282_v39  ;;  %22632 = vmatmul.mubr.msk.bf16.gmra.mrb[44].mxu1 %vm2122_vm1, %v27316_v31  ;;  %v6389_v39 = vsel %vm25095_vm4, %v6384_v10, %v6388_v63  ;;  %v19376_v31 = vld [vmem:[%s25062_s4 + $0x224] sm:$0xf]  ;;  %v15228_v57 = vsel %vm25095_vm4, %v15223_v47, %v15227_v52  ;;  %v6404_v51 = vrot.slane %v6403_v9, 4  ;;  %v6412_v29 = vrot.slane %v6410_v28, 4  ;;  %v19381_v32 = vld [vmem:[%s25062_s4 + $0x254] sm:$0xf] }
 0x3f0   : > { %22635 = vmatprep.mubr.msk.bf16.mxu1 %vm2122_vm1, %v27340_v20  ;;  %v6399_v50 = vsel %vm25095_vm4, %v6394_v43, %v6398_v58  ;;  %v6416_v3 = vshll.u32 %v19376_v31, 16  ;;  %v6420_v36 = vshrl.u32 %v19376_v31, 16  ;;  %v15241_v16 = vrot.slane %v15239_v2, 4 }
 0x3f1   : > { %v19506_v20 = vcombine.low %v6389_v39, %v6399_v50  ;;  %v15238_v19 = vsel %vm25095_vm4, %v15233_v11, %v15237_v24  ;;  %v15245_v38 = vshll.u32 %v20597_v59, 16  ;;  %v15249_v44 = vshrl.u32 %v20597_v59, 16 }
 0x3f2   : > { %v6418_v8 = vrot.slane %v6416_v3, 5  ;;  %v27424_v21 = vcombine.low %v15228_v57, %v15238_v19  ;;  %v6409_v61 = vsel %vm25095_vm4, %v6404_v51, %v6408_v48  ;;  %v6413_v55 = vor.u32 %v6412_v29, %v6408_v48  ;;  %v20601_v3 = vld [vmem:[%s25062_s4 + $0x2bc] sm:$0xf]  ;;  %v20602_v29 = vld [vmem:[%s25062_s4 + $0x2c0] sm:$0xf] }
 0x3f3   : > { %v15242_v30 = vor.u32 %v15241_v16, %v15237_v24  ;;  %v15247_v26 = vrot.slane %v15245_v38, 5  ;;  %v15251_v35 = vrot.slane %v15249_v44, 4  ;;  %v15259_v12 = vshrl.u32 %v20598_v18, 16  ;;  %v20603_v44 = vld [vmem:[%s25062_s4 + $0x2c4] sm:$0xf] }
 0x3f4   : > { %v6422_v63 = vrot.slane %v6420_v36, 4  ;;  %v6430_v58 = vshrl.u32 %v19377_v0, 16  ;;  %v6436_v53 = vshll.u32 %v19378_v46, 16  ;;  %v15265_v15 = vshll.u32 %v20599_v45, 16 }
 0x3f5   : > { %v15243_v25 = vrot.slane %v15242_v30, 4  ;;  %v15252_v23 = vor.u32 %v15251_v35, %v15247_v26  ;;  %v15261_v42 = vrot.slane %v15259_v12, 4  ;;  %v15269_v2 = vshrl.u32 %v20599_v45, 16 }
 0x3f6   : > { %23220 = vmatmul.mubr.msk.bf16.gmra.mrb[48].mxu0 %vm2122_vm1, %v27307_v54  ;;  %v15255_v54 = vshll.u32 %v20598_v18, 16  ;;  %v6423_v4 = vor.u32 %v6422_v63, %v6418_v8  ;;  %v6432_v33 = vrot.slane %v6430_v58, 4  ;;  %v6438_v43 = vrot.slane %v6436_v53, 5  ;;  %v19382_v53 = vld [vmem:[%s25062_s4 + $0x258] sm:$0xf] }
 0x3f7   : > { %23223 = vmatprep.mubr.msk.bf16.mxu0 %vm2122_vm1, %v27332_v6  ;;  %22636 = vmatmul.mubr.msk.bf16.gmra.mrb[48].mxu1 %vm2122_vm1, %v27365_v27  ;;  %v6414_v6 = vrot.slane %v6413_v55, 4  ;;  %v6426_v27 = vshll.u32 %v19377_v0, 16  ;;  %v15248_v10 = vsel %vm25095_vm4, %v15243_v25, %v15247_v26  ;;  %v15253_v5 = vrot.slane %v15252_v23, 4 }
 0x3f8   : > { %22639 = vmatprep.mubr.msk.bf16.mxu1 %vm2122_vm1, %v19505_v13  ;;  %v15257_v40 = vrot.slane %v15255_v54, 5  ;;  %v6424_v60 = vrot.slane %v6423_v4, 4  ;;  %v15275_v31 = vshll.u32 %v20600_v41, 16  ;;  %v15271_v9 = vrot.slane %v15269_v2, 4 }
 0x3f9   : > { %v6419_v49 = vsel %vm25095_vm4, %v6414_v6, %v6418_v8  ;;  %v6428_v13 = vrot.slane %v6426_v27, 5  ;;  %v6441_v59 = vshrl.u32 %v19379_v34, 16  ;;  %v6450_v11 = vshll.u32 %v19380_v56, 16 }
 0x3fa   : > { %v19507_v17 = vcombine.low %v6409_v61, %v6419_v49  ;;  %v15262_v52 = vor.u32 %v15261_v42, %v15257_v40  ;;  %v15258_v39 = vsel %vm25095_vm4, %v15253_v5, %v15257_v40  ;;  %v15277_v28 = vrot.slane %v15275_v31, 5 }
 0x3fb   : > { %v6433_v14 = vor.u32 %v6432_v33, %v6428_v13  ;;  %v27445_v50 = vcombine.low %v15248_v10, %v15258_v39  ;;  %v6429_v7 = vsel %vm25095_vm4, %v6424_v60, %v6428_v13  ;;  %v6454_v48 = vshrl.u32 %v19380_v56, 16  ;;  %v19383_v13 = vld [vmem:[%s25062_s4 + $0x25c] sm:$0xf]  ;;  %v20605_v56 = vld [vmem:[%s25062_s4 + $0x2cc] sm:$0xf] }
 0x3fc   : > { %v15263_v24 = vrot.slane %v15262_v52, 4  ;;  %v6443_v57 = vrot.slane %v6441_v59, 4  ;;  %v6460_v51 = vshll.u32 %v19381_v32, 16  ;;  %v6452_v8 = vrot.slane %v6450_v11, 5 }
 0x3fd   : > { %v6434_v47 = vrot.slane %v6433_v14, 4  ;;  %v6456_v38 = vrot.slane %v6454_v48, 4  ;;  %v6464_v55 = vshrl.u32 %v19381_v32, 16  ;;  %v15280_v54 = vshrl.u32 %v20601_v3, 16 }
 0x3fe   : > { %23224 = vmatmul.mubr.msk.bf16.gmra.mrb[52].mxu0 %vm2122_vm1, %v27356_v62  ;;  %v15267_v62 = vrot.slane %v15265_v15, 5  ;;  %v6462_v61 = vrot.slane %v6460_v51, 5  ;;  %v15283_v26 = vshll.u32 %v20601_v3, 16  ;;  %v15289_v35 = vshll.u32 %v20602_v29, 16 }
 0x3ff   : > { %23227 = vmatprep.mubr.msk.bf16.mxu0 %vm2122_vm1, %v27381_v1  ;;  %22640 = vmatmul.mubr.msk.bf16.gmra.mrb[52].mxu1 %vm2122_vm1, %v19506_v20  ;;  %v6444_v20 = vshll.u32 %v19379_v34, 16  ;;  %v6439_v36 = vsel %vm25095_vm4, %v6434_v47, %v6438_v43  ;;  %v6457_v30 = vor.u32 %v6456_v38, %v6452_v8  ;;  %v15282_v6 = vrot.slane %v15280_v54, 4  ;;  %v20604_v43 = vld [vmem:[%s25062_s4 + $0x2c8] sm:$0xf] }
 0x400   : > { %22643 = vmatprep.mubr.msk.bf16.mxu1 %vm2122_vm1, %v19507_v17  ;;  %v15268_v1 = vsel %vm25095_vm4, %v15263_v24, %v15267_v62  ;;  %v15272_v18 = vor.u32 %v15271_v9, %v15267_v62  ;;  %v19508_v16 = vcombine.low %v6429_v7, %v6439_v36  ;;  %v15293_v40 = vshrl.u32 %v20602_v29, 16 }
 0x401   : > { %v6446_v19 = vrot.slane %v6444_v20, 5  ;;  %v15299_v63 = vshll.u32 %v20603_v44, 16  ;;  %v6458_v23 = vrot.slane %v6457_v30, 4  ;;  %v15285_v58 = vrot.slane %v15283_v26, 5  ;;  %v19384_v20 = vld [vmem:[%s25062_s4 + $0x260] sm:$0xf] }
 0x402   : > { %v15273_v0 = vrot.slane %v15272_v18, 4  ;;  %v15291_v45 = vrot.slane %v15289_v35, 5  ;;  %v15303_v4 = vshrl.u32 %v20603_v44, 16  ;;  %v6466_v17 = vrot.slane %v6464_v55, 4  ;;  %v19385_v18 = vld [vmem:[%s25062_s4 + $0x264] sm:$0x1] }
 0x403   : > { %v6447_v46 = vor.u32 %v6446_v19, %v6443_v57  ;;  %v15301_v49 = vrot.slane %v15299_v63, 5  ;;  %v6463_v42 = vsel %vm25095_vm4, %v6458_v23, %v6462_v61  ;;  %v6470_v33 = vshll.u32 %v19382_v53, 16  ;;  %v20606_v44 = vld [vmem:[%s25062_s4 + $0x2d0] sm:$0xf] }
 0x404   : > { %v15278_v12 = vsel %vm25095_vm4, %v15273_v0, %v15277_v28  ;;  %v6474_v60 = vshrl.u32 %v19382_v53, 16  ;;  %v6467_v15 = vor.u32 %v6466_v17, %v6462_v61  ;;  %v6480_v34 = vshll.u32 %v19383_v13, 16 }
 0x405   : > { %v20726_v27 = vcombine.low %v15268_v1, %v15278_v12  ;;  %v6448_v25 = vrot.slane %v6447_v46, 4  ;;  %v6484_v39 = vshrl.u32 %v19383_v13, 16  ;;  %v6472_v2 = vrot.slane %v6470_v33, 5  ;;  %v20607_v46 = vld [vmem:[%s25062_s4 + $0x2d4] sm:$0x1] }
 0x406   : > { %23228 = vmatmul.mubr.msk.bf16.gmra.mrb[56].mxu0 %vm2122_vm1, %v27401_v22  ;;  %v15295_v22 = vrot.slane %v15293_v40, 4  ;;  %v6476_v31 = vrot.slane %v6474_v60, 4  ;;  %v15305_v7 = vrot.slane %v15303_v4, 4  ;;  %v6468_v62 = vrot.slane %v6467_v15, 4  ;;  %v19387_v13 = vld [vmem:[%s25062_s4 + $0x288] sm:$0xf] }
 0x407   : > { %23231 = vmatprep.mubr.msk.bf16.mxu0 %vm2122_vm1, %v27424_v21  ;;  %22644 = vmatmul.mubr.msk.bf16.gmra.mrb[56].mxu1 %vm2122_vm1, %v19508_v16  ;;  %v6453_v41 = vsel %vm25095_vm4, %v6448_v25, %v6452_v8  ;;  %v15286_v21 = vor.u32 %v15285_v58, %v15282_v6  ;;  %v6482_v32 = vrot.slane %v6480_v34, 5  ;;  %v15309_v47 = vshll.u32 %v20604_v43, 16  ;;  %v19386_v6 = vld [vmem:[%s25062_s4 + $0x284] sm:$0xf] }
 0x408   : > { %v19509_v10 = vcombine.low %v6453_v41, %v6463_v42  ;;  %v15296_v5 = vor.u32 %v15295_v22, %v15291_v45  ;;  %v6477_v28 = vor.u32 %v6476_v31, %v6472_v2  ;;  %v15306_v59 = vor.u32 %v15305_v7, %v15301_v49 }
 0x409   : > { %v15287_v52 = vrot.slane %v15286_v21, 4  ;;  %v15313_v1 = vshrl.u32 %v20604_v43, 16  ;;  %v6473_v48 = vsel %vm25095_vm4, %v6468_v62, %v6472_v2  ;;  %v15311_v3 = vrot.slane %v15309_v47, 5  ;;  %v20608_v2 = vld [vmem:[%s25062_s4 + $0x2f4] sm:$0xf] }
 0x40a   : > { %22647 = vmatprep.mubr.msk.bf16.mxu1 %vm2122_vm1, %v19509_v10  ;;  %v15297_v14 = vrot.slane %v15296_v5, 4  ;;  %v15319_v36 = vshll.u32 %v20605_v56, 16  ;;  %v6478_v57 = vrot.slane %v6477_v28, 4  ;;  %v15323_v29 = vshrl.u32 %v20605_v56, 16  ;;  %v19388_v5 = vld [vmem:[%s25062_s4 + $0x28c] sm:$0xf] }
 0x40b   : > { %v15292_v24 = vsel %vm25095_vm4, %v15287_v52, %v15291_v45  ;;  %v15315_v51 = vrot.slane %v15313_v1, 4  ;;  %v6486_v19 = vrot.slane %v6484_v39, 4  ;;  %v6490_v8 = vshll.u32 %v19384_v20, 16  ;;  %v20609_v62 = vld [vmem:[%s25062_s4 + $0x2f8] sm:$0xf] }
 0x40c   : > { %v15302_v9 = vsel %vm25095_vm4, %v15297_v14, %v15301_v49  ;;  %v15321_v16 = vrot.slane %v15319_v36, 5  ;;  %v6494_v38 = vshrl.u32 %v19384_v20, 16  ;;  %v6483_v0 = vsel %vm25095_vm4, %v6478_v57, %v6482_v32  ;;  %v20610_v20 = vld [vmem:[%s25062_s4 + $0x2fc] sm:$0xf] }
 0x40d   : > { %v20727_v11 = vcombine.low %v15292_v24, %v15302_v9  ;;  %v15316_v55 = vor.u32 %v15315_v51, %v15311_v3  ;;  %v6500_v54 = vshll.u32 %v19385_v18, 16  ;;  %v19510_v30 = vcombine.low %v6473_v48, %v6483_v0 }
 0x40e   : > { %23232 = vmatmul.mubr.msk.bf16.gmra.mrb[60].mxu0 %vm2122_vm1, %v27445_v50  ;;  %v15307_v50 = vrot.slane %v15306_v59, 4  ;;  %v6487_v26 = vor.u32 %v6486_v19, %v6482_v32  ;;  %v6492_v35 = vrot.slane %v6490_v8, 5  ;;  %v6496_v12 = vrot.slane %v6494_v38, 4  ;;  %v19389_v19 = vld [vmem:[%s25062_s4 + $0x290] sm:$0xf] }
 0x40f   : > { %23235 = vmatprep.mubr.msk.bf16.mxu0 %vm2122_vm1, %v20726_v27  ;;  %v15317_v40 = vrot.slane %v15316_v55, 4  ;;  %v6502_v63 = vrot.slane %v6500_v54, 5  ;;  %v15325_v27 = vrot.slane %v15323_v29, 4  ;;  %v15329_v25 = vshll.u32 %v20606_v44, 16  ;;  %22648 = vmatmul.mubr.msk.bf16.gmra.mrb[60].mxu1 %vm2122_vm1, %v19510_v30 }
 0x410   : > { %v15312_v61 = vsel %vm25095_vm4, %v15307_v50, %v15311_v3  ;;  %v6488_v23 = vrot.slane %v6487_v26, 4  ;;  %v6497_v58 = vor.u32 %v6496_v12, %v6492_v35  ;;  %v15333_v53 = vshrl.u32 %v20606_v44, 16 }
 0x411   : > { %v15339_v45 = vshll.u32 %v20607_v46, 16  ;;  %v15322_v22 = vsel %vm25095_vm4, %v15317_v40, %v15321_v16  ;;  %v15326_v49 = vor.u32 %v15325_v27, %v15321_v16  ;;  %v15331_v4 = vrot.slane %v15329_v25, 5  ;;  %v19390_v46 = vld [vmem:[%s25062_s4 + $0x294] sm:$0xf] }
 0x412   : > { %v6505_v41 = vshrl.u32 %v19386_v6, 16  ;;  %v20728_v42 = vcombine.low %v15312_v61, %v15322_v22  ;;  %v6493_v21 = vsel %vm25095_vm4, %v6488_v23, %v6492_v35  ;;  %v6498_v17 = vrot.slane %v6497_v58, 4  ;;  %v20611_v23 = vld [vmem:[%s25062_s4 + $0x300] sm:$0xf] }
 0x413   : > { %v15335_v10 = vrot.slane %v15333_v53, 4  ;;  %v15327_v33 = vrot.slane %v15326_v49, 4  ;;  %v15341_v60 = vrot.slane %v15339_v45, 5  ;;  %v6508_v52 = vshll.u32 %v19386_v6, 16 }
 0x414   : > { %v6507_v43 = vrot.slane %v6505_v41, 4  ;;  %v6503_v15 = vsel %vm25095_vm4, %v6498_v17, %v6502_v63  ;;  %v6514_v39 = vshll.u32 %v19387_v13, 16  ;;  %v6518_v14 = vshrl.u32 %v19387_v13, 16  ;;  %v20612_v41 = vld [vmem:[%s25062_s4 + $0x304] sm:$0xf] }
 0x415   : > { %v15336_v34 = vor.u32 %v15335_v10, %v15331_v4  ;;  %v19511_v31 = vcombine.low %v6493_v21, %v6503_v15  ;;  %v15332_v56 = vsel %vm25095_vm4, %v15327_v33, %v15331_v4  ;;  %v6510_v7 = vrot.slane %v6508_v52, 5  ;;  %v19391_v33 = vld [vmem:[%s25062_s4 + $0x298] sm:$0xf] }
 0x416   : > { %23236 = vmatmul.mubr.msk.bf16.gmra.mrb[64].mxu0 %vm2122_vm1, %v20727_v11  ;;  %v6524_v24 = vshll.u32 %v19388_v5, 16  ;;  %v6516_v47 = vrot.slane %v6514_v39, 5  ;;  %v6520_v9 = vrot.slane %v6518_v14, 4  ;;  %v6528_v28 = vshrl.u32 %v19388_v5, 16 }
 0x417   : > { %23239 = vmatprep.mubr.msk.bf16.mxu0 %vm2122_vm1, %v20728_v42  ;;  %v15337_v32 = vrot.slane %v15336_v34, 4  ;;  %22651 = vmatprep.mubr.msk.bf16.mxu1 %vm2122_vm1, %v19511_v31  ;;  %v6511_v59 = vor.u32 %v6510_v7, %v6507_v43  ;;  %v15344_v11 = vshrl.u32 %v20608_v2, 16  ;;  %v15347_v48 = vshll.u32 %v20608_v2, 16  ;;  %v19392_v34 = vld [vmem:[%s25062_s4 + $0x29c] sm:$0x1] }
 0x418   : > { %v6526_v1 = vrot.slane %v6524_v24, 5  ;;  %v6521_v36 = vor.u32 %v6520_v9, %v6516_v47  ;;  %v15353_v18 = vshll.u32 %v20609_v62, 16  ;;  %v15357_v57 = vshrl.u32 %v20609_v62, 16 }
 0x419   : > { %v15342_v3 = vsel %vm25095_vm4, %v15337_v32, %v15341_v60  ;;  %v6512_v51 = vrot.slane %v6511_v59, 4  ;;  %v15346_v29 = vrot.slane %v15344_v11, 4  ;;  %v15349_v16 = vrot.slane %v15347_v48, 5  ;;  %v20613_v59 = vld [vmem:[%s25062_s4 + $0x308] sm:$0xf] }
 0x41a   : > { %v20729_v50 = vcombine.low %v15332_v56, %v15342_v3  ;;  %v6522_v8 = vrot.slane %v6521_v36, 4  ;;  %v15355_v38 = vrot.slane %v15353_v18, 5  ;;  %v15359_v44 = vrot.slane %v15357_v57, 4  ;;  %v20614_v3 = vld [vmem:[%s25062_s4 + $0x30c] sm:$0x1] }
 0x41b   : > { %v15363_v0 = vshll.u32 %v20610_v20, 16  ;;  %v6517_v61 = vsel %vm25095_vm4, %v6512_v51, %v6516_v47  ;;  %v15350_v55 = vor.u32 %v15349_v16, %v15346_v29  ;;  %v15367_v54 = vshrl.u32 %v20610_v20, 16  ;;  %v19393_v36 = vld [vmem:[%s25062_s4 + $0x2bc] sm:$0xf] }
 0x41c   : > { %v6530_v30 = vrot.slane %v6528_v28, 4  ;;  %v6527_v26 = vsel %vm25095_vm4, %v6522_v8, %v6526_v1  ;;  %v15360_v35 = vor.u32 %v15359_v44, %v15355_v38  ;;  %v6534_v6 = vshll.u32 %v19389_v19, 16 }
 0x41d   : > { %v15365_v12 = vrot.slane %v15363_v0, 5  ;;  %v19512_v40 = vcombine.low %v6517_v61, %v6527_v26  ;;  %v15351_v63 = vrot.slane %v15350_v55, 4  ;;  %v6538_v25 = vshrl.u32 %v19389_v19, 16  ;;  %v19394_v61 = vld [vmem:[%s25062_s4 + $0x2c0] sm:$0xf] }
 0x41e   : > { %23240 = vmatmul.mubr.msk.bf16.gmra.mrb[68].mxu0 %vm2122_vm1, %v20729_v50  ;;  %v6531_v27 = vor.u32 %v6530_v30, %v6526_v1  ;;  %v15361_v58 = vrot.slane %v15360_v35, 4  ;;  %v6536_v53 = vrot.slane %v6534_v6, 5  ;;  %v6544_v45 = vshll.u32 %v19390_v46, 16  ;;  %v19395_v35 = vld [vmem:[%s25062_s4 + $0x2c4] sm:$0xf] }
 0x41f   : > { %v6548_v22 = vshrl.u32 %v19390_v46, 16  ;;  %22652 = vmatmul.mubr.msk.bf16.gmra.mrb[64].mxu1 %vm2122_vm1, %v19512_v40  ;;  %v15356_v49 = vsel %vm25095_vm4, %v15351_v63, %v15355_v38  ;;  %v6540_v13 = vrot.slane %v6538_v25, 4  ;;  %v15369_v42 = vrot.slane %v15367_v54, 4 }
 0x420   : > { %v6532_v4 = vrot.slane %v6531_v27, 4  ;;  %v15366_v21 = vsel %vm25095_vm4, %v15361_v58, %v15365_v12  ;;  %v6546_v17 = vrot.slane %v6544_v45, 5  ;;  %v15373_v10 = vshll.u32 %v20611_v23, 16 }
 0x421   : > { %v15377_v5 = vshrl.u32 %v20611_v23, 16  ;;  %v20730_v60 = vcombine.low %v15356_v49, %v15366_v21  ;;  %v6541_v52 = vor.u32 %v6540_v13, %v6536_v53  ;;  %v15370_v15 = vor.u32 %v15369_v42, %v15365_v12  ;;  %v20616_v13 = vld [vmem:[%s25062_s4 + $0x330] sm:$0xf] }
 0x422   : > { %v6537_v43 = vsel %vm25095_vm4, %v6532_v4, %v6536_v53  ;;  %v15375_v39 = vrot.slane %v15373_v10, 5  ;;  %v15383_v2 = vshll.u32 %v20612_v41, 16  ;;  %v15387_v31 = vshrl.u32 %v20612_v41, 16  ;;  %v20615_v53 = vld [vmem:[%s25062_s4 + $0x32c] sm:$0xf] }
 0x423   : > { %v15379_v14 = vrot.slane %v15377_v5, 4  ;;  %23243 = vmatprep.mubr.msk.bf16.mxu0 %vm2122_vm1, %v20730_v60  ;;  %v6542_v56 = vrot.slane %v6541_v52, 4  ;;  %v15371_v7 = vrot.slane %v15370_v15, 4  ;;  %v6550_v24 = vrot.slane %v6548_v22, 4  ;;  %v20617_v10 = vld [vmem:[%s25062_s4 + $0x334] sm:$0xf] }
 0x424   : > { %v6554_v62 = vshll.u32 %v19391_v33, 16  ;;  %v15385_v47 = vrot.slane %v15383_v2, 5  ;;  %v6558_v9 = vshrl.u32 %v19391_v33, 16  ;;  %v6564_v28 = vshll.u32 %v19392_v34, 16 }
 0x425   : > { %v15380_v32 = vor.u32 %v15379_v14, %v15375_v39  ;;  %v6547_v1 = vsel %vm25095_vm4, %v6542_v56, %v6546_v17  ;;  %v15376_v20 = vsel %vm25095_vm4, %v15371_v7, %v15375_v39  ;;  %v6551_v11 = vor.u32 %v6550_v24, %v6546_v17  ;;  %v19396_v7 = vld [vmem:[%s25062_s4 + $0x2c8] sm:$0xf] }
 0x426   : > { %v6556_v48 = vrot.slane %v6554_v62, 5  ;;  %v19513_v18 = vcombine.low %v6537_v43, %v6547_v1  ;;  %v6560_v50 = vrot.slane %v6558_v9, 4  ;;  %v6566_v51 = vrot.slane %v6564_v28, 5  ;;  %v19397_v9 = vld [vmem:[%s25062_s4 + $0x2cc] sm:$0xf] }
 0x427   : > { %v15381_v57 = vrot.slane %v15380_v32, 4  ;;  %v6552_v29 = vrot.slane %v6551_v11, 4  ;;  %v15389_v16 = vrot.slane %v15387_v31, 4  ;;  %v15393_v19 = vshll.u32 %v20613_v59, 16 }
 0x428   : > { %v15397_v8 = vshrl.u32 %v20613_v59, 16  ;;  %22655 = vmatprep.mubr.msk.bf16.mxu1 %vm2122_vm1, %v19513_v18  ;;  %v6561_v44 = vor.u32 %v6560_v50, %v6556_v48  ;;  %v15403_v0 = vshll.u32 %v20614_v3, 16  ;;  %v6569_v55 = vshrl.u32 %v19393_v36, 16 }
 0x429   : > { %v15386_v38 = vsel %vm25095_vm4, %v15381_v57, %v15385_v47  ;;  %v6557_v46 = vsel %vm25095_vm4, %v6552_v29, %v6556_v48  ;;  %v15390_v30 = vor.u32 %v15389_v16, %v15385_v47  ;;  %v15395_v26 = vrot.slane %v15393_v19, 5  ;;  %v20618_v29 = vld [vmem:[%s25062_s4 + $0x338] sm:$0xf] }
 0x42a   : > { %v20731_v54 = vcombine.low %v15376_v20, %v15386_v38  ;;  %v6562_v12 = vrot.slane %v6561_v44, 4  ;;  %v15399_v6 = vrot.slane %v15397_v8, 4  ;;  %v15405_v40 = vrot.slane %v15403_v0, 5  ;;  %v20619_v44 = vld [vmem:[%s25062_s4 + $0x33c] sm:$0xf] }
 0x42b   : > { %v6571_v63 = vrot.slane %v6569_v55, 4  ;;  %v15391_v27 = vrot.slane %v15390_v30, 4  ;;  %v6572_v25 = vshll.u32 %v19393_v36, 16  ;;  %v6578_v23 = vshll.u32 %v19394_v61, 16 }
 0x42c   : > { %23244 = vmatmul.mubr.msk.bf16.gmra.mrb[72].mxu0 %vm2122_vm1, %v20731_v54  ;;  %v6582_v58 = vshrl.u32 %v19394_v61, 16  ;;  %v6567_v45 = vsel %vm25095_vm4, %v6562_v12, %v6566_v51  ;;  %v15400_v22 = vor.u32 %v15399_v6, %v15395_v26  ;;  %v6588_v49 = vshll.u32 %v19395_v35, 16 }
 0x42d   : > { %v6592_v4 = vshrl.u32 %v19395_v35, 16  ;;  %v19514_v41 = vcombine.low %v6557_v46, %v6567_v45  ;;  %v15396_v42 = vsel %vm25095_vm4, %v15391_v27, %v15395_v26  ;;  %v6574_v21 = vrot.slane %v6572_v25, 5  ;;  %v19398_v27 = vld [vmem:[%s25062_s4 + $0x2d0] sm:$0xf]  ;;  %v19399_v45 = vld [vmem:[%s25062_s4 + $0x2d4] sm:$0x1] }
 0x42e   : > { %v6580_v17 = vrot.slane %v6578_v23, 5  ;;  %v15401_v5 = vrot.slane %v15400_v22, 4  ;;  %v6584_v33 = vrot.slane %v6582_v58, 4  ;;  %v6590_v60 = vrot.slane %v6588_v49, 5 }
 0x42f   : > { %v15408_v43 = vshrl.u32 %v20615_v53, 16  ;;  %22656 = vmatmul.mubr.msk.bf16.gmra.mrb[68].mxu1 %vm2122_vm1, %v19514_v41  ;;  %v6575_v52 = vor.u32 %v6574_v21, %v6571_v63  ;;  %v15411_v15 = vshll.u32 %v20615_v53, 16  ;;  %v15417_v34 = vshll.u32 %v20616_v13, 16 }
 0x430   : > { %v15421_v39 = vshrl.u32 %v20616_v13, 16  ;;  %v15406_v14 = vsel %vm25095_vm4, %v15401_v5, %v15405_v40  ;;  %v6585_v2 = vor.u32 %v6584_v33, %v6580_v17  ;;  %v15427_v56 = vshll.u32 %v20617_v10, 16 }
 0x431   : > { %v15410_v31 = vrot.slane %v15408_v43, 4  ;;  %v20732_v24 = vcombine.low %v15396_v42, %v15406_v14  ;;  %v6576_v62 = vrot.slane %v6575_v52, 4  ;;  %v15413_v32 = vrot.slane %v15411_v15, 5  ;;  %v20621_v43 = vld [vmem:[%s25062_s4 + $0x344] sm:$0x1] }
 0x432   : > { %v15419_v47 = vrot.slane %v15417_v34, 5  ;;  %v6586_v28 = vrot.slane %v6585_v2, 4  ;;  %v15423_v59 = vrot.slane %v15421_v39, 4  ;;  %v15429_v1 = vrot.slane %v15427_v56, 5  ;;  %v19400_v2 = vld [vmem:[%s25062_s4 + $0x2f4] sm:$0xf] }
 0x433   : > { %v15431_v20 = vshrl.u32 %v20617_v10, 16  ;;  %23247 = vmatprep.mubr.msk.bf16.mxu0 %vm2122_vm1, %v20732_v24  ;;  %v6581_v11 = vsel %vm25095_vm4, %v6576_v62, %v6580_v17  ;;  %v15414_v48 = vor.u32 %v15413_v32, %v15410_v31  ;;  %v6594_v3 = vrot.slane %v6592_v4, 4 }
 0x434   : > { %v6598_v36 = vshll.u32 %v19396_v7, 16  ;;  %v6591_v18 = vsel %vm25095_vm4, %v6586_v28, %v6590_v60  ;;  %v15424_v57 = vor.u32 %v15423_v59, %v15419_v47  ;;  %v6602_v50 = vshrl.u32 %v19396_v7, 16 }
 0x435   : > { %v6608_v51 = vshll.u32 %v19397_v9, 16  ;;  %v19515_v16 = vcombine.low %v6581_v11, %v6591_v18  ;;  %v15415_v19 = vrot.slane %v15414_v48, 4  ;;  %v6595_v8 = vor.u32 %v6594_v3, %v6590_v60  ;;  %v20620_v60 = vld [vmem:[%s25062_s4 + $0x340] sm:$0xf] }
 0x436   : > { %v6600_v38 = vrot.slane %v6598_v36, 5  ;;  %v15425_v0 = vrot.slane %v15424_v57, 4  ;;  %v6604_v61 = vrot.slane %v6602_v50, 4  ;;  %v6612_v54 = vshrl.u32 %v19397_v9, 16  ;;  %v19402_v57 = vld [vmem:[%s25062_s4 + $0x2fc] sm:$0xf] }
 0x437   : > { %v6610_v55 = vrot.slane %v6608_v51, 5  ;;  %22659 = vmatprep.mubr.msk.bf16.mxu1 %vm2122_vm1, %v19515_v16  ;;  %v15420_v46 = vsel %vm25095_vm4, %v15415_v19, %v15419_v47  ;;  %v6596_v30 = vrot.slane %v6595_v8, 4  ;;  %v15433_v26 = vrot.slane %v15431_v20, 4  ;;  %v19401_v20 = vld [vmem:[%s25062_s4 + $0x2f8] sm:$0xf] }
 0x438   : > { %v15437_v35 = vshll.u32 %v20618_v29, 16  ;;  %v15430_v12 = vsel %vm25095_vm4, %v15425_v0, %v15429_v1  ;;  %v6605_v6 = vor.u32 %v6604_v61, %v6600_v38  ;;  %v15441_v40 = vshrl.u32 %v20618_v29, 16  ;;  %v20622_v0 = vld [vmem:[%s25062_s4 + $0x364] sm:$0xf] }
 0x439   : > { %v15447_v63 = vshll.u32 %v20619_v44, 16  ;;  %v20733_v25 = vcombine.low %v15420_v46, %v15430_v12  ;;  %v6601_v23 = vsel %vm25095_vm4, %v6596_v30, %v6600_v38  ;;  %v15434_v58 = vor.u32 %v15433_v26, %v15429_v1  ;;  %v20623_v30 = vld [vmem:[%s25062_s4 + $0x368] sm:$0xf] }
 0x43a   : > { %v15439_v53 = vrot.slane %v15437_v35, 5  ;;  %v6606_v22 = vrot.slane %v6605_v6, 4  ;;  %v15443_v49 = vrot.slane %v15441_v40, 4  ;;  %v15451_v13 = vshrl.u32 %v20619_v44, 16 }
 0x43b   : > { %v15449_v4 = vrot.slane %v15447_v63, 5  ;;  %23248 = vmatmul.mubr.msk.bf16.gmra.mrb[76].mxu0 %vm2122_vm1, %v20733_v25  ;;  %v15435_v41 = vrot.slane %v15434_v58, 4  ;;  %v6614_v42 = vrot.slane %v6612_v54, 4  ;;  %v6618_v21 = vshll.u32 %v19398_v27, 16 }
 0x43c   : > { %v6622_v17 = vshrl.u32 %v19398_v27, 16  ;;  %v6611_v10 = vsel %vm25095_vm4, %v6606_v22, %v6610_v55  ;;  %v15444_v5 = vor.u32 %v15443_v49, %v15439_v53  ;;  %v6628_v33 = vshll.u32 %v19399_v45, 16  ;;  %v20624_v27 = vld [vmem:[%s25062_s4 + $0x36c] sm:$0xf] }
 0x43d   : > { %v15453_v52 = vrot.slane %v15451_v13, 4  ;;  %v19516_v15 = vcombine.low %v6601_v23, %v6611_v10  ;;  %v15440_v34 = vsel %vm25095_vm4, %v15435_v41, %v15439_v53  ;;  %v6615_v39 = vor.u32 %v6614_v42, %v6610_v55  ;;  %v19403_v42 = vld [vmem:[%s25062_s4 + $0x300] sm:$0xf] }
 0x43e   : > { %v6620_v14 = vrot.slane %v6618_v21, 5  ;;  %v15445_v31 = vrot.slane %v15444_v5, 4  ;;  %v6624_v56 = vrot.slane %v6622_v17, 4  ;;  %v6630_v7 = vrot.slane %v6628_v33, 5 }
 0x43f   : > { %v15454_v24 = vor.u32 %v15453_v52, %v15449_v4  ;;  %22660 = vmatmul.mubr.msk.bf16.gmra.mrb[72].mxu1 %vm2122_vm1, %v19516_v15  ;;  %v6616_v62 = vrot.slane %v6615_v39, 4  ;;  %v15457_v32 = vshll.u32 %v20620_v60, 16  ;;  %v15461_v47 = vshrl.u32 %v20620_v60, 16  ;;  %v19404_v52 = vld [vmem:[%s25062_s4 + $0x304] sm:$0xf] }
 0x440   : > { %v15467_v9 = vshll.u32 %v20621_v43, 16  ;;  %v15450_v28 = vsel %vm25095_vm4, %v15445_v31, %v15449_v4  ;;  %v6625_v59 = vor.u32 %v6624_v56, %v6620_v14  ;;  %v6633_v11 = vshrl.u32 %v19400_v2, 16 }
 0x441   : > { %v15455_v1 = vrot.slane %v15454_v24, 4  ;;  %v20734_v48 = vcombine.low %v15440_v34, %v15450_v28  ;;  %v6621_v3 = vsel %vm25095_vm4, %v6616_v62, %v6620_v14  ;;  %v15459_v36 = vrot.slane %v15457_v32, 5  ;;  %v20625_v62 = vld [vmem:[%s25062_s4 + $0x370] sm:$0xf] }
 0x442   : > { %v15463_v18 = vrot.slane %v15461_v47, 4  ;;  %v6626_v50 = vrot.slane %v6625_v59, 4  ;;  %v15469_v51 = vrot.slane %v15467_v9, 5  ;;  %v6635_v29 = vrot.slane %v6633_v11, 4  ;;  %v20626_v11 = vld [vmem:[%s25062_s4 + $0x374] sm:$0xf] }
 0x443   : > { %v6636_v16 = vshll.u32 %v19400_v2, 16  ;;  %23251 = vmatprep.mubr.msk.bf16.mxu0 %vm2122_vm1, %v20734_v48  ;;  %v15460_v19 = vsel %vm25095_vm4, %v15455_v1, %v15459_v36  ;;  %v6642_v38 = vshll.u32 %v19401_v20, 16  ;;  %v6646_v44 = vshrl.u32 %v19401_v20, 16 }
 0x444   : > { %v15464_v8 = vor.u32 %v15463_v18, %v15459_v36  ;;  %v6631_v61 = vsel %vm25095_vm4, %v6626_v50, %v6630_v7  ;;  %v6652_v54 = vshll.u32 %v19402_v57, 16  ;;  %v6656_v46 = vshrl.u32 %v19402_v57, 16  ;;  %v19405_v50 = vld [vmem:[%s25062_s4 + $0x308] sm:$0xf] }
 0x445   : > { %v6638_v55 = vrot.slane %v6636_v16, 5  ;;  %v19517_v26 = vcombine.low %v6621_v3, %v6631_v61  ;;  %v6644_v12 = vrot.slane %v6642_v38, 5  ;;  %v6648_v6 = vrot.slane %v6646_v44, 4 }
 0x446   : > { %v15465_v35 = vrot.slane %v15464_v8, 4  ;;  %v6654_v63 = vrot.slane %v6652_v54, 5  ;;  %v15472_v25 = vshrl.u32 %v20622_v0, 16  ;;  %v15475_v23 = vshll.u32 %v20622_v0, 16  ;;  %v19406_v8 = vld [vmem:[%s25062_s4 + $0x30c] sm:$0x1] }
 0x447   : > { %v6639_v40 = vor.u32 %v6638_v55, %v6635_v29  ;;  %22663 = vmatprep.mubr.msk.bf16.mxu1 %vm2122_vm1, %v19517_v26  ;;  %v6649_v53 = vor.u32 %v6648_v6, %v6644_v12  ;;  %v15481_v45 = vshll.u32 %v20623_v30, 16  ;;  %v15485_v22 = vshrl.u32 %v20623_v30, 16 }
 0x448   : > { %v15470_v58 = vsel %vm25095_vm4, %v15465_v35, %v15469_v51  ;;  %v15474_v13 = vrot.slane %v15472_v25, 4  ;;  %v15477_v41 = vrot.slane %v15475_v23, 5  ;;  %v15491_v5 = vshll.u32 %v20624_v27, 16 }
 0x449   : > { %v20735_v49 = vcombine.low %v15460_v19, %v15470_v58  ;;  %v6640_v4 = vrot.slane %v6639_v40, 4  ;;  %v6650_v21 = vrot.slane %v6649_v53, 4  ;;  %v15483_v17 = vrot.slane %v15481_v45, 5  ;;  %v20627_v40 = vld [vmem:[%s25062_s4 + $0x378] sm:$0xf] }
 0x44a   : > { %v15487_v10 = vrot.slane %v15485_v22, 4  ;;  %v15478_v60 = vor.u32 %v15477_v41, %v15474_v13  ;;  %v15495_v43 = vshrl.u32 %v20624_v27, 16  ;;  %v6658_v15 = vrot.slane %v6656_v46, 4  ;;  %v20628_v58 = vld [vmem:[%s25062_s4 + $0x37c] sm:$0x1] }
 0x44b   : > { %23252 = vmatmul.mubr.msk.bf16.gmra.mrb[80].mxu0 %vm2122_vm1, %v20735_v49  ;;  %v6645_v33 = vsel %vm25095_vm4, %v6640_v4, %v6644_v12  ;;  %v6655_v34 = vsel %vm25095_vm4, %v6650_v21, %v6654_v63  ;;  %v15493_v14 = vrot.slane %v15491_v5, 5  ;;  %v6662_v2 = vshll.u32 %v19403_v42, 16  ;;  %v19407_v53 = vld [vmem:[%s25062_s4 + $0x32c] sm:$0xf] }
 0x44c   : > { %v15488_v39 = vor.u32 %v15487_v10, %v15483_v17  ;;  %v19518_v31 = vcombine.low %v6645_v33, %v6655_v34  ;;  %v15479_v56 = vrot.slane %v15478_v60, 4  ;;  %v6659_v7 = vor.u32 %v6658_v15, %v6654_v63  ;;  %v19408_v33 = vld [vmem:[%s25062_s4 + $0x330] sm:$0xf] }
 0x44d   : > { %v6666_v24 = vshrl.u32 %v19403_v42, 16  ;;  %v6664_v47 = vrot.slane %v6662_v2, 5  ;;  %v6672_v9 = vshll.u32 %v19404_v52, 16  ;;  %v6676_v28 = vshrl.u32 %v19404_v52, 16 }
 0x44e   : > { %v15489_v32 = vrot.slane %v15488_v39, 4  ;;  %22664 = vmatmul.mubr.msk.bf16.gmra.mrb[76].mxu1 %vm2122_vm1, %v19518_v31  ;;  %v15484_v59 = vsel %vm25095_vm4, %v15479_v56, %v15483_v17  ;;  %v6660_v1 = vrot.slane %v6659_v7, 4  ;;  %v15497_v48 = vrot.slane %v15495_v43, 4  ;;  %v19409_v39 = vld [vmem:[%s25062_s4 + $0x334] sm:$0xf] }
 0x44f   : > { %v6668_v20 = vrot.slane %v6666_v24, 4  ;;  %v6674_v36 = vrot.slane %v6672_v9, 5  ;;  %v15501_v18 = vshll.u32 %v20625_v62, 16  ;;  %v15505_v57 = vshrl.u32 %v20625_v62, 16 }
 0x450   : > { %v15494_v3 = vsel %vm25095_vm4, %v15489_v32, %v15493_v14  ;;  %v6665_v29 = vsel %vm25095_vm4, %v6660_v1, %v6664_v47  ;;  %v15498_v19 = vor.u32 %v15497_v48, %v15493_v14  ;;  %v15511_v0 = vshll.u32 %v20626_v11, 16 }
 0x451   : > { %v20736_v51 = vcombine.low %v15484_v59, %v15494_v3  ;;  %v6669_v16 = vor.u32 %v6668_v20, %v6664_v47  ;;  %v15503_v38 = vrot.slane %v15501_v18, 5  ;;  %v15507_v44 = vrot.slane %v15505_v57, 4  ;;  %v20629_v47 = vld [vmem:[%s25062_s4 + $0x39c] sm:$0xf]  ;;  %v20630_v20 = vld [vmem:[%s25062_s4 + $0x3a0] sm:$0xf] }
 0x452   : > { %v15515_v61 = vshrl.u32 %v20626_v11, 16  ;;  %v15499_v54 = vrot.slane %v15498_v19, 4  ;;  %v6678_v46 = vrot.slane %v6676_v28, 4  ;;  %v6682_v30 = vshll.u32 %v19405_v50, 16  ;;  %v20631_v18 = vld [vmem:[%s25062_s4 + $0x3a4] sm:$0xf] }
 0x453   : > { %23255 = vmatprep.mubr.msk.bf16.mxu0 %vm2122_vm1, %v20736_v51  ;;  %v6670_v55 = vrot.slane %v6669_v16, 4  ;;  %v15508_v26 = vor.u32 %v15507_v44, %v15503_v38  ;;  %v15513_v35 = vrot.slane %v15511_v0, 5  ;;  %v6686_v12 = vshrl.u32 %v19405_v50, 16 }
 0x454   : > { %v6692_v6 = vshll.u32 %v19406_v8, 16  ;;  %v15504_v27 = vsel %vm25095_vm4, %v15499_v54, %v15503_v38  ;;  %v6679_v25 = vor.u32 %v6678_v46, %v6674_v36  ;;  %v6684_v23 = vrot.slane %v6682_v30, 5  ;;  %v19410_v54 = vld [vmem:[%s25062_s4 + $0x338] sm:$0xf] }
 0x455   : > { %v6675_v63 = vsel %vm25095_vm4, %v6670_v55, %v6674_v36  ;;  %v15509_v22 = vrot.slane %v15508_v26, 4  ;;  %v6688_v49 = vrot.slane %v6686_v12, 4  ;;  %v15517_v41 = vrot.slane %v15515_v61, 4  ;;  %v19411_v12 = vld [vmem:[%s25062_s4 + $0x33c] sm:$0xf] }
 0x456   : > { %v19519_v45 = vcombine.low %v6665_v29, %v6675_v63  ;;  %v6694_v4 = vrot.slane %v6692_v6, 5  ;;  %v6680_v13 = vrot.slane %v6679_v25, 4  ;;  %v15521_v42 = vshll.u32 %v20627_v40, 16 }
 0x457   : > { %v15525_v21 = vshrl.u32 %v20627_v40, 16  ;;  %v15514_v17 = vsel %vm25095_vm4, %v15509_v22, %v15513_v35  ;;  %v6689_v10 = vor.u32 %v6688_v49, %v6684_v23  ;;  %v15531_v5 = vshll.u32 %v20628_v58, 16 }
 0x458   : > { %22667 = vmatprep.mubr.msk.bf16.mxu1 %vm2122_vm1, %v19519_v45  ;;  %v6697_v60 = vshrl.u32 %v19407_v53, 16  ;;  %v20737_v43 = vcombine.low %v15504_v27, %v15514_v17  ;;  %v6685_v52 = vsel %vm25095_vm4, %v6680_v13, %v6684_v23  ;;  %v15518_v15 = vor.u32 %v15517_v41, %v15513_v35  ;;  %v20632_v13 = vld [vmem:[%s25062_s4 + $0x3a8] sm:$0xf] }
 0x459   : > { %v15523_v34 = vrot.slane %v15521_v42, 5  ;;  %v6690_v14 = vrot.slane %v6689_v10, 4  ;;  %v15527_v2 = vrot.slane %v15525_v21, 4  ;;  %v15533_v31 = vrot.slane %v15531_v5, 5  ;;  %v20633_v10 = vld [vmem:[%s25062_s4 + $0x3ac] sm:$0xf] }
 0x45a   : > { %v6699_v56 = vrot.slane %v6697_v60, 4  ;;  %23256 = vmatmul.mubr.msk.bf16.gmra.mrb[84].mxu0 %vm2122_vm1, %v20737_v43  ;;  %v15519_v7 = vrot.slane %v15518_v15, 4  ;;  %v6700_v24 = vshll.u32 %v19407_v53, 16  ;;  %v6706_v62 = vshll.u32 %v19408_v33, 16 }
 0x45b   : > { %v6710_v32 = vshrl.u32 %v19408_v33, 16  ;;  %v6695_v9 = vsel %vm25095_vm4, %v6690_v14, %v6694_v4  ;;  %v15528_v28 = vor.u32 %v15527_v2, %v15523_v34  ;;  %v6716_v59 = vshll.u32 %v19409_v39, 16 }
 0x45c   : > { %v6720_v1 = vshrl.u32 %v19409_v39, 16  ;;  %v19520_v11 = vcombine.low %v6685_v52, %v6695_v9  ;;  %v15524_v48 = vsel %vm25095_vm4, %v15519_v7, %v15523_v34  ;;  %v6702_v3 = vrot.slane %v6700_v24, 5  ;;  %v19412_v9 = vld [vmem:[%s25062_s4 + $0x340] sm:$0xf] }
 0x45d   : > { %v6708_v36 = vrot.slane %v6706_v62, 5  ;;  %v15529_v57 = vrot.slane %v15528_v28, 4  ;;  %v6712_v50 = vrot.slane %v6710_v32, 4  ;;  %v6718_v51 = vrot.slane %v6716_v59, 5 }
 0x45e   : > { %v15536_v29 = vshrl.u32 %v20629_v47, 16  ;;  %22668 = vmatmul.mubr.msk.bf16.gmra.mrb[80].mxu1 %vm2122_vm1, %v19520_v11  ;;  %v6703_v16 = vor.u32 %v6702_v3, %v6699_v56  ;;  %v15539_v19 = vshll.u32 %v20629_v47, 16  ;;  %v15545_v8 = vshll.u32 %v20630_v20, 16  ;;  %v19413_v3 = vld [vmem:[%s25062_s4 + $0x344] sm:$0x1] }
 0x45f   : > { %v15549_v38 = vshrl.u32 %v20630_v20, 16  ;;  %v15534_v44 = vsel %vm25095_vm4, %v15529_v57, %v15533_v31  ;;  %v6713_v0 = vor.u32 %v6712_v50, %v6708_v36  ;;  %v15555_v55 = vshll.u32 %v20631_v18, 16 }
 0x460   : > { %v15538_v61 = vrot.slane %v15536_v29, 4  ;;  %v20738_v46 = vcombine.low %v15524_v48, %v15534_v44  ;;  %v6704_v30 = vrot.slane %v6703_v16, 4  ;;  %v15541_v26 = vrot.slane %v15539_v19, 5 }
 0x461   : > { %v15547_v35 = vrot.slane %v15545_v8, 5  ;;  %v6714_v6 = vrot.slane %v6713_v0, 4  ;;  %v15551_v40 = vrot.slane %v15549_v38, 4  ;;  %v15557_v63 = vrot.slane %v15555_v55, 5  ;;  %v20635_v55 = vld [vmem:[%s25062_s4 + $0x3b4] sm:$0x1] }
 0x462   : > { %v15559_v27 = vshrl.u32 %v20631_v18, 16  ;;  %23259 = vmatprep.mubr.msk.bf16.mxu0 %vm2122_vm1, %v20738_v46  ;;  %v6709_v25 = vsel %vm25095_vm4, %v6704_v30, %v6708_v36  ;;  %v15542_v23 = vor.u32 %v15541_v26, %v15538_v61  ;;  %v6722_v58 = vrot.slane %v6720_v1, 4  ;;  %v20634_v61 = vld [vmem:[%s25062_s4 + $0x3b0] sm:$0xf] }
 0x463   : > { %v6726_v53 = vshll.u32 %v19410_v54, 16  ;;  %v6719_v45 = vsel %vm25095_vm4, %v6714_v6, %v6718_v51  ;;  %v15552_v22 = vor.u32 %v15551_v40, %v15547_v35  ;;  %v6730_v49 = vshrl.u32 %v19410_v54, 16 }
 0x464   : > { %v6736_v4 = vshll.u32 %v19411_v12, 16  ;;  %v19521_v41 = vcombine.low %v6709_v25, %v6719_v45  ;;  %v15543_v42 = vrot.slane %v15542_v23, 4  ;;  %v6723_v21 = vor.u32 %v6722_v58, %v6718_v51 }
 0x465   : > { %v6728_v17 = vrot.slane %v6726_v53, 5  ;;  %v15553_v33 = vrot.slane %v15552_v22, 4  ;;  %v6732_v60 = vrot.slane %v6730_v49, 4  ;;  %v6740_v52 = vshrl.u32 %v19411_v12, 16  ;;  %v19414_v12 = vld [vmem:[%s25062_s4 + $0x364] sm:$0xf] }
 0x466   : > { %v6738_v43 = vrot.slane %v6736_v4, 5  ;;  %22671 = vmatprep.mubr.msk.bf16.mxu1 %vm2122_vm1, %v19521_v41  ;;  %v15548_v39 = vsel %vm25095_vm4, %v15543_v42, %v15547_v35  ;;  %v6724_v14 = vrot.slane %v6723_v21, 4  ;;  %v15561_v2 = vrot.slane %v15559_v27, 4 }
 0x467   : > { %v15565_v31 = vshll.u32 %v20632_v13, 16  ;;  %v15558_v24 = vsel %vm25095_vm4, %v15553_v33, %v15557_v63  ;;  %v6733_v62 = vor.u32 %v6732_v60, %v6728_v17  ;;  %v15569_v32 = vshrl.u32 %v20632_v13, 16 }
 0x468   : > { %v15575_v47 = vshll.u32 %v20633_v10, 16  ;;  %v20739_v1 = vcombine.low %v15548_v39, %v15558_v24  ;;  %v6729_v20 = vsel %vm25095_vm4, %v6724_v14, %v6728_v17  ;;  %v15562_v11 = vor.u32 %v15561_v2, %v15557_v63  ;;  %v19415_v17 = vld [vmem:[%s25062_s4 + $0x368] sm:$0xf]  ;;  %v19416_v2 = vld [vmem:[%s25062_s4 + $0x36c] sm:$0xf] }
 0x469   : > { %v27652_v5 = vpop.f32.mrb[0].mxu0  ;;  %v15567_v48 = vrot.slane %v15565_v31, 5  ;;  %v6734_v18 = vrot.slane %v6733_v62, 4  ;;  %v15571_v57 = vrot.slane %v15569_v32, 4  ;;  %v15579_v51 = vshrl.u32 %v20633_v10, 16 }
 0x46a   : > { %v27654_v15 = vpop.f32.mrb[1].mxu0  ;;  %v27656_v34 = vpop.f32.mrb[0].mxu1  ;;  %v15577_v50 = vrot.slane %v15575_v47, 5  ;;  %23260 = vmatmul.mubr.msk.bf16.gmra.mrb[88].mxu0 %vm2122_vm1, %v20739_v1  ;;  %v15563_v29 = vrot.slane %v15562_v11, 4  ;;  %v6742_v16 = vrot.slane %v6740_v52, 4  ;;  %v6746_v19 = vshll.u32 %v19412_v9, 16 }
 0x46b   : > { %v27661_v56 = vpop.f32.mrb[2].mxu0  ;;  %v27663_v7 = vpop.f32.mrb[1].mxu1  ;;  %v6750_v8 = vshrl.u32 %v19412_v9, 16  ;;  %v6739_v38 = vsel %vm25095_vm4, %v6734_v18, %v6738_v43  ;;  %v15572_v44 = vor.u32 %v15571_v57, %v15567_v48  ;;  %v6756_v0 = vshll.u32 %v19413_v3, 16 }
 0x46c   : > { %v27668_v28 = vpop.f32.mrb[3].mxu0  ;;  %v27670_v59 = vpop.f32.mrb[2].mxu1  ;;  %v15581_v54 = vrot.slane %v15579_v51, 4  ;;  %v19522_v46 = vcombine.low %v6729_v20, %v6739_v38  ;;  %v15568_v30 = vsel %vm25095_vm4, %v15563_v29, %v15567_v48  ;;  %v6743_v26 = vor.u32 %v6742_v16, %v6738_v43  ;;  %v20636_v48 = vld [vmem:[%s25062_s4 + $0x3d4] sm:$0xf] }
 0x46d   : > { %v27675_v36 = vpop.f32.mrb[3].mxu1  ;;  %v6748_v35 = vrot.slane %v6746_v19, 5  ;;  %v15573_v40 = vrot.slane %v15572_v44, 4  ;;  %v6752_v63 = vrot.slane %v6750_v8, 4  ;;  %v6758_v27 = vrot.slane %v6756_v0, 5 }
 0x46e   : > { %v15582_v25 = vor.u32 %v15581_v54, %v15577_v50  ;;  %22672 = vmatmul.mubr.msk.bf16.gmra.mrb[84].mxu1 %vm2122_vm1, %v19522_v46  ;;  %v6744_v53 = vrot.slane %v6743_v26, 4  ;;  %v15585_v45 = vshll.u32 %v20634_v61, 16  ;;  %v15589_v22 = vshrl.u32 %v20634_v61, 16  ;;  %v20637_v51 = vld [vmem:[%s25062_s4 + $0x3d8] sm:$0xf] }
 0x46f   : > { %v15595_v49 = vshll.u32 %v20635_v55, 16  ;;  %v15578_v41 = vsel %vm25095_vm4, %v15573_v40, %v15577_v50  ;;  %v6753_v42 = vor.u32 %v6752_v63, %v6748_v35  ;;  %v6761_v10 = vshrl.u32 %v19414_v12, 16  ;;  %v20638_v38 = vld [vmem:[%s25062_s4 + $0x3dc] sm:$0xf]  ;;  %v19417_v63 = vld [vmem:[%s25062_s4 + $0x370] sm:$0xf] }
 0x470   : > { %v15583_v21 = vrot.slane %v15582_v25, 4  ;;  %v20740_v43 = vcombine.low %v15568_v30, %v15578_v41  ;;  %v6749_v52 = vsel %vm25095_vm4, %v6744_v53, %v6748_v35  ;;  %v15587_v39 = vrot.slane %v15585_v45, 5 }
 0x471   : > { %v27685_v6 = vpop.f32.mrb[4].mxu0  ;;  %v15591_v14 = vrot.slane %v15589_v22, 4  ;;  %v6754_v24 = vrot.slane %v6753_v42, 4  ;;  %v15597_v62 = vrot.slane %v15595_v49, 5  ;;  %v6763_v32 = vrot.slane %v6761_v10, 4 }
 0x472   : > { %v27687_v23 = vpop.f32.mrb[5].mxu0  ;;  %v27689_v58 = vpop.f32.mrb[4].mxu1  ;;  %v6764_v47 = vshll.u32 %v19414_v12, 16  ;;  %23263 = vmatprep.mubr.msk.bf16.mxu0 %vm2122_vm1, %v20740_v43  ;;  %v15588_v9 = vsel %vm25095_vm4, %v15583_v21, %v15587_v39  ;;  %v6770_v20 = vshll.u32 %v19415_v17, 16  ;;  %v6774_v11 = vshrl.u32 %v19415_v17, 16 }
 0x473   : > { %v27692_v4 = vpop.f32.mrb[6].mxu0  ;;  %v27694_v13 = vpop.f32.mrb[5].mxu1  ;;  %v15592_v1 = vor.u32 %v15591_v14, %v15587_v39  ;;  %v6759_v3 = vsel %vm25095_vm4, %v6754_v24, %v6758_v27  ;;  %v6780_v57 = vshll.u32 %v19416_v2, 16  ;;  %v6784_v50 = vshrl.u32 %v19416_v2, 16  ;;  %v19418_v24 = vld [vmem:[%s25062_s4 + $0x374] sm:$0xf] }
 0x474   : > { %v27699_v33 = vpop.f32.mrb[7].mxu0  ;;  %v27701_v60 = vpop.f32.mrb[6].mxu1  ;;  %v6766_v18 = vrot.slane %v6764_v47, 5  ;;  %v19523_v29 = vcombine.low %v6749_v52, %v6759_v3  ;;  %v6772_v19 = vrot.slane %v6770_v20, 5  ;;  %v6776_v8 = vrot.slane %v6774_v11, 4 }
 0x475   : > { %v27706_v31 = vpop.f32.mrb[7].mxu1  ;;  %v15593_v16 = vrot.slane %v15592_v1, 4  ;;  %v6782_v61 = vrot.slane %v6780_v57, 5  ;;  %v15600_v55 = vshrl.u32 %v20636_v48, 16  ;;  %v15603_v54 = vshll.u32 %v20636_v48, 16 }
 0x476   : > { %v6767_v0 = vor.u32 %v6766_v18, %v6763_v32  ;;  %22675 = vmatprep.mubr.msk.bf16.mxu1 %vm2122_vm1, %v19523_v29  ;;  %v6777_v35 = vor.u32 %v6776_v8, %v6772_v19  ;;  %v15609_v12 = vshll.u32 %v20637_v51, 16  ;;  %v15613_v40 = vshrl.u32 %v20637_v51, 16  ;;  %v20639_v18 = vld [vmem:[%s25062_s4 + $0x3e0] sm:$0xf]  ;;  %v20640_v57 = vld [vmem:[%s25062_s4 + $0x3e4] sm:$0xf] }
 0x477   : > { %v15598_v26 = vsel %vm25095_vm4, %v15593_v16, %v15597_v62  ;;  %v15602_v22 = vrot.slane %v15600_v55, 4  ;;  %v15605_v49 = vrot.slane %v15603_v54, 5  ;;  %v15619_v43 = vshll.u32 %v20638_v38, 16  ;;  %v19419_v8 = vld [vmem:[%s25062_s4 + $0x378] sm:$0xf] }
 0x478   : > { %v20741_v53 = vcombine.low %v15588_v9, %v15598_v26  ;;  %v6768_v45 = vrot.slane %v6767_v0, 4  ;;  %v6778_v21 = vrot.slane %v6777_v35, 4  ;;  %v15611_v17 = vrot.slane %v15609_v12, 5 }
 0x479   : > { %v27716_v44 = vpop.f32.mrb[8].mxu0  ;;  %v15615_v10 = vrot.slane %v15613_v40, 4  ;;  %v15606_v14 = vor.u32 %v15605_v49, %v15602_v22  ;;  %v15623_v2 = vshrl.u32 %v20638_v38, 16  ;;  %v6786_v62 = vrot.slane %v6784_v50, 4 }
 0x47a   : > { %v27718_v46 = vpop.f32.mrb[9].mxu0  ;;  %v27720_v30 = vpop.f32.mrb[8].mxu1  ;;  %23264 = vmatmul.mubr.msk.bf16.gmra.mrb[92].mxu0 %vm2122_vm1, %v20741_v53  ;;  %v6773_v39 = vsel %vm25095_vm4, %v6768_v45, %v6772_v19  ;;  %v6783_v32 = vsel %vm25095_vm4, %v6778_v21, %v6782_v61  ;;  %v15621_v9 = vrot.slane %v15619_v43, 5  ;;  %v6790_v1 = vshll.u32 %v19417_v63, 16 }
 0x47b   : > { %v27726_v27 = vpop.f32.mrb[10].mxu0  ;;  %v27728_v25 = vpop.f32.mrb[9].mxu1  ;;  %v15616_v47 = vor.u32 %v15615_v10, %v15611_v17  ;;  %v19524_v20 = vcombine.low %v6773_v39, %v6783_v32  ;;  %v15607_v11 = vrot.slane %v15606_v14, 4  ;;  %v6787_v48 = vor.u32 %v6786_v62, %v6782_v61  ;;  %v19420_v10 = vld [vmem:[%s25062_s4 + $0x37c] sm:$0x1] }
 0x47c   : > { %v27730_v41 = vpop.f32.mrb[11].mxu0  ;;  %v27732_v42 = vpop.f32.mrb[10].mxu1  ;;  %v6794_v3 = vshrl.u32 %v19417_v63, 16  ;;  %v6792_v29 = vrot.slane %v6790_v1, 5  ;;  %v6800_v16 = vshll.u32 %v19418_v24, 16  ;;  %v6804_v19 = vshrl.u32 %v19418_v24, 16 }
 0x47d   : > { %v27734_v52 = vpop.f32.mrb[11].mxu1  ;;  %v15617_v51 = vrot.slane %v15616_v47, 4  ;;  %22676 = vmatmul.mubr.msk.bf16.gmra.mrb[88].mxu1 %vm2122_vm1, %v19524_v20  ;;  %v15612_v50 = vsel %vm25095_vm4, %v15607_v11, %v15611_v17  ;;  %v6788_v0 = vrot.slane %v6787_v48, 4  ;;  %v15625_v54 = vrot.slane %v15623_v2, 4 }
 0x47e   : > { %v6796_v55 = vrot.slane %v6794_v3, 4  ;;  %v6802_v12 = vrot.slane %v6800_v16, 5  ;;  %v15629_v40 = vshll.u32 %v20639_v18, 16  ;;  %v15633_v63 = vshrl.u32 %v20639_v18, 16 }
 0x47f   : > { %v15622_v35 = vsel %vm25095_vm4, %v15617_v51, %v15621_v9  ;;  %v6793_v49 = vsel %vm25095_vm4, %v6788_v0, %v6792_v29  ;;  %v15626_v17 = vor.u32 %v15625_v54, %v15621_v9  ;;  %v15639_v24 = vshll.u32 %v20640_v57, 16  ;;  %v20641_v51 = vld [vmem:[%s25062_s4 + $0x3e8] sm:$0xf]  ;;  %v20642_v0 = vld [vmem:[%s25062_s4 + $0x3ec] sm:$0x1] }
 0x480   : > { %v20742_v22 = vcombine.low %v15612_v50, %v15622_v35  ;;  %v6797_v21 = vor.u32 %v6796_v55, %v6792_v29  ;;  %v15631_v14 = vrot.slane %v15629_v40, 5  ;;  %v15635_v2 = vrot.slane %v15633_v63, 4  ;;  %v19421_v55 = vld [vmem:[%s25062_s4 + $0x39c] sm:$0xf] }
 0x481   : > { %v27745_v38 = vpop.f32.mrb[12].mxu0  ;;  %v15643_v62 = vshrl.u32 %v20640_v57, 16  ;;  %v15627_v1 = vrot.slane %v15626_v17, 4  ;;  %v6806_v20 = vrot.slane %v6804_v19, 4  ;;  %v6810_v9 = vshll.u32 %v19419_v8, 16 }
 0x482   : > { %v27750_v61 = vpop.f32.mrb[13].mxu0  ;;  %v27752_v26 = vpop.f32.mrb[12].mxu1  ;;  %23267 = vmatprep.mubr.msk.bf16.mxu0 %vm2122_vm1, %v20742_v22  ;;  %v6798_v47 = vrot.slane %v6797_v21, 4  ;;  %v15636_v11 = vor.u32 %v15635_v2, %v15631_v14  ;;  %v15641_v48 = vrot.slane %v15639_v24, 5  ;;  %v6814_v3 = vshrl.u32 %v19419_v8, 16 }
 0x483   : > { %v27756_v53 = vpop.f32.mrb[14].mxu0  ;;  %v27758_v45 = vpop.f32.mrb[13].mxu1  ;;  %v6820_v18 = vshll.u32 %v19420_v10, 16  ;;  %v15632_v57 = vsel %vm25095_vm4, %v15627_v1, %v15631_v14  ;;  %v6807_v16 = vor.u32 %v6806_v20, %v6802_v12  ;;  %v6812_v50 = vrot.slane %v6810_v9, 5 }
 0x484   : > { %v27763_v43 = vpop.f32.mrb[15].mxu0  ;;  %v27765_v39 = vpop.f32.mrb[14].mxu1  ;;  %v6803_v29 = vsel %vm25095_vm4, %v6798_v47, %v6802_v12  ;;  %v15637_v35 = vrot.slane %v15636_v11, 4  ;;  %v6816_v19 = vrot.slane %v6814_v3, 4  ;;  %v15645_v22 = vrot.slane %v15643_v62, 4 }
 0x485   : > { %v27767_v32 = vpop.f32.mrb[15].mxu1  ;;  %v19525_v54 = vcombine.low %v6793_v49, %v6803_v29  ;;  %v6822_v40 = vrot.slane %v6820_v18, 5  ;;  %v6808_v8 = vrot.slane %v6807_v16, 4  ;;  %v15649_v21 = vshll.u32 %v20641_v51, 16  ;;  %v19422_v49 = vld [vmem:[%s25062_s4 + $0x3a0] sm:$0xf] }
 0x486   : > { %v15653_v17 = vshrl.u32 %v20641_v51, 16  ;;  %v15642_v12 = vsel %vm25095_vm4, %v15637_v35, %v15641_v48  ;;  %v6817_v14 = vor.u32 %v6816_v19, %v6812_v50  ;;  %v15659_v2 = vshll.u32 %v20642_v0, 16  ;;  %v19423_v11 = vld [vmem:[%s25062_s4 + $0x3a4] sm:$0xf]  ;;  %v20643_v19 = vld [vmem:[%s25062_s4 + $0x40c] sm:$0xf] }
 0x487   : > { %22679 = vmatprep.mubr.msk.bf16.mxu1 %vm2122_vm1, %v19525_v54  ;;  %v6825_v24 = vshrl.u32 %v19421_v55, 16  ;;  %v20743_v1 = vcombine.low %v15632_v57, %v15642_v12  ;;  %v6813_v62 = vsel %vm25095_vm4, %v6808_v8, %v6812_v50  ;;  %v15646_v20 = vor.u32 %v15645_v22, %v15641_v48 }
 0x488   : > { %v15651_v9 = vrot.slane %v15649_v21, 5  ;;  %v6818_v18 = vrot.slane %v6817_v14, 4  ;;  %v15655_v51 = vrot.slane %v15653_v17, 4  ;;  %v15661_v29 = vrot.slane %v15659_v2, 5  ;;  %v20644_v21 = vld [vmem:[%s25062_s4 + $0x410] sm:$0xf] }
 0x489   : > { %v27777_v63 = vpop.f32.mrb[16].mxu0  ;;  %v6827_v16 = vrot.slane %v6825_v24, 4  ;;  %23268 = vmatmul.mubr.msk.bf16.gmra.mrb[96].mxu0 %vm2122_vm1, %v20743_v1  ;;  %v15647_v0 = vrot.slane %v15646_v20, 4  ;;  %v6828_v54 = vshll.u32 %v19421_v55, 16  ;;  %v6834_v35 = vshll.u32 %v19422_v49, 16 }
 0x48a   : > { %v27779_v10 = vpop.f32.mrb[17].mxu0  ;;  %v6838_v57 = vshrl.u32 %v19422_v49, 16  ;;  %v6823_v48 = vsel %vm25095_vm4, %v6818_v18, %v6822_v40  ;;  %v15656_v50 = vor.u32 %v15655_v51, %v15651_v9  ;;  %v6844_v8 = vshll.u32 %v19423_v11, 16  ;;  %v20645_v24 = vld [vmem:[%s25062_s4 + $0x414] sm:$0xf] }
 0x48b   : > { %29178 = vst [vmem:[#allocation5_spill] sm:$0xff] %v27779_v10  ;;  %v27785_v47 = vpop.f32.mrb[18].mxu0  ;;  %v6848_v22 = vshrl.u32 %v19423_v11, 16  ;;  %v19526_v12 = vcombine.low %v6813_v62, %v6823_v48  ;;  %v15652_v17 = vsel %vm25095_vm4, %v15647_v0, %v15651_v9  ;;  %v6830_v14 = vrot.slane %v6828_v54, 5  ;;  %v19424_v54 = vld [vmem:[%s25062_s4 + $0x3a8] sm:$0xf] }
 0x48c   : > { %29179 = vst [vmem:[#allocation6_spill] sm:$0xff] %v27785_v47  ;;  %v27790_v3 = vpop.f32.mrb[19].mxu0  ;;  %v6836_v2 = vrot.slane %v6834_v35, 5  ;;  %v15657_v1 = vrot.slane %v15656_v50, 4  ;;  %v6840_v55 = vrot.slane %v6838_v57, 4  ;;  %v6846_v20 = vrot.slane %v6844_v8, 5 }
 0x48d   : > { %29180 = vst [vmem:[#allocation7_spill] sm:$0xff] %v27790_v3  ;;  %v15664_v49 = vshrl.u32 %v20643_v19, 16  ;;  %22680 = vmatmul.mubr.msk.bf16.gmra.mrb[92].mxu1 %vm2122_vm1, %v19526_v12  ;;  %v6831_v40 = vor.u32 %v6830_v14, %v6827_v16  ;;  %v15667_v18 = vshll.u32 %v20643_v19, 16  ;;  %v15673_v51 = vshll.u32 %v20644_v21, 16  ;;  %v19425_v8 = vld [vmem:[%s25062_s4 + $0x3ac] sm:$0xf] }
 0x48e   : > { %v15677_v11 = vshrl.u32 %v20644_v21, 16  ;;  %v15662_v62 = vsel %vm25095_vm4, %v15657_v1, %v15661_v29  ;;  %v6841_v48 = vor.u32 %v6840_v55, %v6836_v2  ;;  %v15683_v0 = vshll.u32 %v20645_v24, 16 }
 0x48f   : > { %v15666_v9 = vrot.slane %v15664_v49, 4  ;;  %v20744_v35 = vcombine.low %v15652_v17, %v15662_v62  ;;  %v6832_v3 = vrot.slane %v6831_v40, 4  ;;  %v15669_v50 = vrot.slane %v15667_v18, 5  ;;  %v27810_v17 = vpop.f32.mrb[16].mxu1 }
 0x490   : > { %v15675_v57 = vrot.slane %v15673_v51, 5  ;;  %v6842_v47 = vrot.slane %v6841_v48, 4  ;;  %v15679_v10 = vrot.slane %v15677_v11, 4  ;;  %v15685_v12 = vrot.slane %v15683_v0, 5  ;;  %v27817_v11 = vpop.f32.mrb[17].mxu1 }
 0x491   : > { %v15687_v16 = vshrl.u32 %v20645_v24, 16  ;;  %23271 = vmatprep.mubr.msk.bf16.mxu0 %vm2122_vm1, %v20744_v35  ;;  %v6837_v19 = vsel %vm25095_vm4, %v6832_v3, %v6836_v2  ;;  %v15670_v29 = vor.u32 %v15669_v50, %v15666_v9  ;;  %v6850_v21 = vrot.slane %v6848_v22, 4  ;;  %v27808_v1 = vpop.f32.mrb[20].mxu0  ;;  %v20646_v24 = vld [vmem:[%s25062_s4 + $0x418] sm:$0xf]  ;;  %v27822_v0 = vpop.f32.mrb[18].mxu1 }
 0x492   : > { %v6854_v14 = vshll.u32 %v19424_v54, 16  ;;  %29181 = vst [vmem:[#allocation8_spill] sm:$0xff] %v27808_v1  ;;  %v6847_v55 = vsel %vm25095_vm4, %v6842_v47, %v6846_v20  ;;  %v15680_v49 = vor.u32 %v15679_v10, %v15675_v57  ;;  %v6858_v40 = vshrl.u32 %v19424_v54, 16  ;;  %v27815_v51 = vpop.f32.mrb[21].mxu0  ;;  %v20647_v48 = vld [vmem:[%s25062_s4 + $0x41c] sm:$0xf] }
 0x493   : > { %v6864_v18 = vshll.u32 %v19425_v8, 16  ;;  %29182 = vst [vmem:[#allocation9_spill] sm:$0xff] %v27815_v51  ;;  %v19527_v3 = vcombine.low %v6837_v19, %v6847_v55  ;;  %v15671_v2 = vrot.slane %v15670_v29, 4  ;;  %v6851_v62 = vor.u32 %v6850_v21, %v6846_v20  ;;  %v27820_v9 = vpop.f32.mrb[22].mxu0  ;;  %29184 = vst [vmem:[#allocation11_spill] sm:$0xff] %v27822_v0  ;;  %v27826_v51 = vpop.f32.mrb[19].mxu1 }
 0x494   : > { %v6856_v22 = vrot.slane %v6854_v14, 5  ;;  %29183 = vst [vmem:[#allocation10_spill] sm:$0xff] %v27820_v9  ;;  %v15681_v35 = vrot.slane %v15680_v49, 4  ;;  %v6860_v47 = vrot.slane %v6858_v40, 4  ;;  %v6868_v54 = vshrl.u32 %v19425_v8, 16  ;;  %v27824_v50 = vpop.f32.mrb[23].mxu0 }
 0x495   : > { %v6866_v10 = vrot.slane %v6864_v18, 5  ;;  %29185 = vst [vmem:[#allocation12_spill] sm:$0xff] %v27824_v50  ;;  %29186 = vst [vmem:[#allocation13_spill] sm:$0xff] %v27826_v51  ;;  %22683 = vmatprep.mubr.msk.bf16.mxu1 %vm2122_vm1, %v19527_v3  ;;  %v15676_v20 = vsel %vm25095_vm4, %v15671_v2, %v15675_v57  ;;  %v6852_v19 = vrot.slane %v6851_v62, 4  ;;  %v15689_v29 = vrot.slane %v15687_v16, 4 }
 0x496   : > { %v15693_v21 = vshll.u32 %v20646_v24, 16  ;;  %v15686_v14 = vsel %vm25095_vm4, %v15681_v35, %v15685_v12  ;;  %v6861_v55 = vor.u32 %v6860_v47, %v6856_v22  ;;  %v15697_v49 = vshrl.u32 %v20646_v24, 16  ;;  %v19426_v8 = vld [vmem:[%s25062_s4 + $0x3b0] sm:$0xf]  ;;  %v19427_v1 = vld [vmem:[%s25062_s4 + $0x3b4] sm:$0x1] }
 0x497   : > { %v15703_v40 = vshll.u32 %v20647_v48, 16  ;;  %v20745_v18 = vcombine.low %v15676_v20, %v15686_v14  ;;  %v6857_v50 = vsel %vm25095_vm4, %v6852_v19, %v6856_v22  ;;  %v15690_v9 = vor.u32 %v15689_v29, %v15685_v12  ;;  %v20648_v12 = vld [vmem:[%s25062_s4 + $0x420] sm:$0xf]  ;;  %v20649_v29 = vld [vmem:[%s25062_s4 + $0x424] sm:$0x1] }
 0x498   : > { %v15695_v3 = vrot.slane %v15693_v21, 5  ;;  %v6862_v57 = vrot.slane %v6861_v55, 4  ;;  %v15699_v2 = vrot.slane %v15697_v49, 4  ;;  %v15707_v62 = vshrl.u32 %v20647_v48, 16 }
 0x499   : > { %v15705_v16 = vrot.slane %v15703_v40, 5  ;;  %23272 = vmatmul.mubr.msk.bf16.gmra.mrb[100].mxu0 %vm2122_vm1, %v20745_v18  ;;  %v15691_v35 = vrot.slane %v15690_v9, 4  ;;  %v6870_v24 = vrot.slane %v6868_v54, 4  ;;  %v6874_v47 = vshll.u32 %v19426_v8, 16  ;;  %v19428_v40 = vld [vmem:[%s25062_s4 + $0x3d4] sm:$0xf] }
 0x49a   : > { %v6878_v51 = vshrl.u32 %v19426_v8, 16  ;;  %v6867_v20 = vsel %vm25095_vm4, %v6862_v57, %v6866_v10  ;;  %v15700_v22 = vor.u32 %v15699_v2, %v15695_v3  ;;  %v6884_v19 = vshll.u32 %v19427_v1, 16 }
 0x49b   : > { %v15709_v21 = vrot.slane %v15707_v62, 4  ;;  %v19528_v14 = vcombine.low %v6857_v50, %v6867_v20  ;;  %v15696_v55 = vsel %vm25095_vm4, %v15691_v35, %v15695_v3  ;;  %v6871_v48 = vor.u32 %v6870_v24, %v6866_v10  ;;  %v19429_v35 = vld [vmem:[%s25062_s4 + $0x3d8] sm:$0xf] }
 0x49c   : > { %v6876_v49 = vrot.slane %v6874_v47, 5  ;;  %v15701_v9 = vrot.slane %v15700_v22, 4  ;;  %v6880_v54 = vrot.slane %v6878_v51, 4  ;;  %v6886_v18 = vrot.slane %v6884_v19, 5  ;;  %v19430_v22 = vld [vmem:[%s25062_s4 + $0x3dc] sm:$0xf] }
 0x49d   : > { %v15710_v8 = vor.u32 %v15709_v21, %v15705_v16  ;;  %22684 = vmatmul.mubr.msk.bf16.gmra.mrb[96].mxu1 %vm2122_vm1, %v19528_v14  ;;  %v6872_v57 = vrot.slane %v6871_v48, 4  ;;  %v15713_v1 = vshll.u32 %v20648_v12, 16  ;;  %v15717_v2 = vshrl.u32 %v20648_v12, 16 }
 0x49e   : > { %v15723_v0 = vshll.u32 %v20649_v29, 16  ;;  %v15706_v50 = vsel %vm25095_vm4, %v15701_v9, %v15705_v16  ;;  %v6881_v62 = vor.u32 %v6880_v54, %v6876_v49  ;;  %v6889_v10 = vshrl.u32 %v19428_v40, 16  ;;  %v20650_v9 = vld [vmem:[%s25062_s4 + $0x444] sm:$0xf] }
 0x49f   : > { %v15711_v3 = vrot.slane %v15710_v8, 4  ;;  %v20746_v24 = vcombine.low %v15696_v55, %v15706_v50  ;;  %v6877_v51 = vsel %vm25095_vm4, %v6872_v57, %v6876_v49  ;;  %v15715_v47 = vrot.slane %v15713_v1, 5  ;;  %v20651_v1 = vld [vmem:[%s25062_s4 + $0x448] sm:$0xf] }
 0x4a0   : > { %v15719_v20 = vrot.slane %v15717_v2, 4  ;;  %v6882_v19 = vrot.slane %v6881_v62, 4  ;;  %v15725_v21 = vrot.slane %v15723_v0, 5  ;;  %v6891_v12 = vrot.slane %v6889_v10, 4 }
 0x4a1   : > { %v6892_v29 = vshll.u32 %v19428_v40, 16  ;;  %23275 = vmatprep.mubr.msk.bf16.mxu0 %vm2122_vm1, %v20746_v24  ;;  %v15716_v16 = vsel %vm25095_vm4, %v15711_v3, %v15715_v47  ;;  %v6898_v48 = vshll.u32 %v19429_v35, 16  ;;  %v6902_v55 = vshrl.u32 %v19429_v35, 16  ;;  %v20652_v3 = vld [vmem:[%s25062_s4 + $0x44c] sm:$0xf] }
 0x4a2   : > { %v15720_v14 = vor.u32 %v15719_v20, %v15715_v47  ;;  %v6887_v49 = vsel %vm25095_vm4, %v6882_v19, %v6886_v18  ;;  %v6908_v8 = vshll.u32 %v19430_v22, 16  ;;  %v6912_v57 = vshrl.u32 %v19430_v22, 16 }
 0x4a3   : > { %v6894_v54 = vrot.slane %v6892_v29, 5  ;;  %v19529_v0 = vcombine.low %v6877_v51, %v6887_v49  ;;  %v6900_v40 = vrot.slane %v6898_v48, 5  ;;  %v6904_v50 = vrot.slane %v6902_v55, 4  ;;  %v19431_v48 = vld [vmem:[%s25062_s4 + $0x3e0] sm:$0xf] }
 0x4a4   : > { %v15721_v2 = vrot.slane %v15720_v14, 4  ;;  %v6910_v10 = vrot.slane %v6908_v8, 5  ;;  %v15728_v24 = vshrl.u32 %v20650_v9, 16  ;;  %v15731_v47 = vshll.u32 %v20650_v9, 16  ;;  %v27864_v8 = vpop.f32.mrb[24].mxu0  ;;  %v27866_v9 = vpop.f32.mrb[20].mxu1 }
 0x4a5   : > { %v6895_v62 = vor.u32 %v6894_v54, %v6891_v12  ;;  %22687 = vmatprep.mubr.msk.bf16.mxu1 %vm2122_vm1, %v19529_v0  ;;  %v6905_v18 = vor.u32 %v6904_v50, %v6900_v40  ;;  %v15737_v20 = vshll.u32 %v20651_v1, 16  ;;  %v15741_v19 = vshrl.u32 %v20651_v1, 16  ;;  %29187 = vst [vmem:[#allocation14_spill] sm:$0xff] %v27864_v8  ;;  %29188 = vst [vmem:[#allocation15_spill] sm:$0xff] %v27866_v9  ;;  %v19432_v0 = vld [vmem:[%s25062_s4 + $0x3e4] sm:$0xf] }
 0x4a6   : > { %v15726_v35 = vsel %vm25095_vm4, %v15721_v2, %v15725_v21  ;;  %v15730_v29 = vrot.slane %v15728_v24, 4  ;;  %v15733_v14 = vrot.slane %v15731_v47, 5  ;;  %v15747_v54 = vshll.u32 %v20652_v3, 16  ;;  %v27872_v50 = vpop.f32.mrb[25].mxu0 }
 0x4a7   : > { %v20747_v22 = vcombine.low %v15716_v16, %v15726_v35  ;;  %v6896_v51 = vrot.slane %v6895_v62, 4  ;;  %v6906_v55 = vrot.slane %v6905_v18, 4  ;;  %v15739_v12 = vrot.slane %v15737_v20, 5  ;;  %29189 = vst [vmem:[#allocation16_spill] sm:$0xff] %v27872_v50  ;;  %v27874_v62 = vpop.f32.mrb[21].mxu1  ;;  %v27878_v20 = vpop.f32.mrb[26].mxu0 }
 0x4a8   : > { %v15743_v49 = vrot.slane %v15741_v19, 4  ;;  %v15734_v1 = vor.u32 %v15733_v14, %v15730_v29  ;;  %v15751_v16 = vshrl.u32 %v20652_v3, 16  ;;  %v6914_v2 = vrot.slane %v6912_v57, 4  ;;  %29190 = vst [vmem:[#allocation17_spill] sm:$0xff] %v27874_v62  ;;  %29191 = vst [vmem:[#allocation18_spill] sm:$0xff] %v27878_v20  ;;  %v27880_v19 = vpop.f32.mrb[22].mxu1 }
 0x4a9   : > { %23276 = vmatmul.mubr.msk.bf16.gmra.mrb[104].mxu0 %vm2122_vm1, %v20747_v22  ;;  %v6901_v21 = vsel %vm25095_vm4, %v6896_v51, %v6900_v40  ;;  %v6911_v24 = vsel %vm25095_vm4, %v6906_v55, %v6910_v10  ;;  %v15749_v35 = vrot.slane %v15747_v54, 5  ;;  %v6918_v18 = vshll.u32 %v19431_v48, 16  ;;  %29192 = vst [vmem:[#allocation19_spill] sm:$0xff] %v27880_v19  ;;  %v20653_v57 = vld [vmem:[%s25062_s4 + $0x450] sm:$0xf]  ;;  %v27883_v29 = vpop.f32.mrb[27].mxu0 }
 0x4aa   : > { %v15744_v47 = vor.u32 %v15743_v49, %v15739_v12  ;;  %v19530_v40 = vcombine.low %v6901_v21, %v6911_v24  ;;  %v15735_v22 = vrot.slane %v15734_v1, 4  ;;  %v6915_v3 = vor.u32 %v6914_v2, %v6910_v10  ;;  %29193 = vst [vmem:[#allocation20_spill] sm:$0xff] %v27883_v29  ;;  %v27885_v14 = vpop.f32.mrb[23].mxu1  ;;  %v20654_v10 = vld [vmem:[%s25062_s4 + $0x454] sm:$0xf] }
 0x4ab   : > { %v6922_v51 = vshrl.u32 %v19431_v48, 16  ;;  %29194 = vst [vmem:[#allocation21_spill] sm:$0xff] %v27885_v14  ;;  %v6920_v55 = vrot.slane %v6918_v18, 5  ;;  %v6928_v49 = vshll.u32 %v19432_v0, 16  ;;  %v6932_v54 = vshrl.u32 %v19432_v0, 16 }
 0x4ac   : > { %v15745_v50 = vrot.slane %v15744_v47, 4  ;;  %22688 = vmatmul.mubr.msk.bf16.gmra.mrb[100].mxu1 %vm2122_vm1, %v19530_v40  ;;  %v15740_v20 = vsel %vm25095_vm4, %v15735_v22, %v15739_v12  ;;  %v6916_v21 = vrot.slane %v6915_v3, 4  ;;  %v15753_v48 = vrot.slane %v15751_v16, 4  ;;  %v19433_v47 = vld [vmem:[%s25062_s4 + $0x3e8] sm:$0xf] }
 0x4ad   : > { %v6924_v1 = vrot.slane %v6922_v51, 4  ;;  %v6930_v24 = vrot.slane %v6928_v49, 5  ;;  %v15757_v29 = vshll.u32 %v20653_v57, 16  ;;  %v15761_v8 = vshrl.u32 %v20653_v57, 16  ;;  %v19434_v19 = vld [vmem:[%s25062_s4 + $0x3ec] sm:$0x1] }
 0x4ae   : > { %v15750_v2 = vsel %vm25095_vm4, %v15745_v50, %v15749_v35  ;;  %v6921_v0 = vsel %vm25095_vm4, %v6916_v21, %v6920_v55  ;;  %v15754_v40 = vor.u32 %v15753_v48, %v15749_v35  ;;  %v15767_v22 = vshll.u32 %v20654_v10, 16 }
 0x4af   : > { %v20748_v18 = vcombine.low %v15740_v20, %v15750_v2  ;;  %v6925_v14 = vor.u32 %v6924_v1, %v6920_v55  ;;  %v15759_v62 = vrot.slane %v15757_v29, 5  ;;  %v15763_v12 = vrot.slane %v15761_v8, 4 }
 0x4b0   : > { %v15771_v3 = vshrl.u32 %v20654_v10, 16  ;;  %v15755_v51 = vrot.slane %v15754_v40, 4  ;;  %v6934_v50 = vrot.slane %v6932_v54, 4  ;;  %v6938_v49 = vshll.u32 %v19433_v47, 16  ;;  %v27905_v54 = vld [vmem:[%s29172_s2] ss:$0 sm:$0xff] }
 0x4b1   : > { %23279 = vmatprep.mubr.msk.bf16.mxu0 %vm2122_vm1, %v20748_v18  ;;  %v6926_v16 = vrot.slane %v6925_v14, 4  ;;  %v15764_v9 = vor.u32 %v15763_v12, %v15759_v62  ;;  %v15769_v57 = vrot.slane %v15767_v22, 5  ;;  %v6942_v20 = vshrl.u32 %v19433_v47, 16  ;;  %v20655_v12 = vld [vmem:[%s25062_s4 + $0x458] sm:$0xf] }
 0x4b2   : > { %v6948_v2 = vshll.u32 %v19434_v19, 16  ;;  %v15760_v35 = vsel %vm25095_vm4, %v15755_v51, %v15759_v62  ;;  %v6935_v8 = vor.u32 %v6934_v50, %v6930_v24  ;;  %v6940_v29 = vrot.slane %v6938_v49, 5  ;;  %v19435_v50 = vld [vmem:[%s25062_s4 + $0x40c] sm:$0xf] }
 0x4b3   : > { %v6931_v55 = vsel %vm25095_vm4, %v6926_v16, %v6930_v24  ;;  %v15765_v1 = vrot.slane %v15764_v9, 4  ;;  %v6944_v10 = vrot.slane %v6942_v20, 4  ;;  %v23315_v19 = vadd.f32 %v27652_v5, %v27656_v34 }
 0x4b4   : > { %v19531_v21 = vcombine.low %v6921_v0, %v6931_v55  ;;  %v6950_v14 = vrot.slane %v6948_v2, 5  ;;  %v6936_v48 = vrot.slane %v6935_v8, 4  ;;  %v23316_v47 = vadd.f32 %v27654_v15, %v27663_v7 }
 0x4b5   : > { %v23317_v9 = vadd.f32 %v27661_v56, %v27670_v59  ;;  %v15770_v62 = vsel %vm25095_vm4, %v15765_v1, %v15769_v57  ;;  %v6945_v24 = vor.u32 %v6944_v10, %v6940_v29  ;;  %v23318_v18 = vadd.f32 %v27668_v28, %v27675_v36  ;;  %v20656_v28 = vld [vmem:[%s25062_s4 + $0x45c] sm:$0x1]  ;;  %v27939_v10 = vpop.f32.mrb[28].mxu0 }
 0x4b6   : > { %22691 = vmatprep.mubr.msk.bf16.mxu1 %vm2122_vm1, %v19531_v21  ;;  %v15773_v0 = vrot.slane %v15771_v3, 4  ;;  %v20749_v5 = vcombine.low %v15760_v35, %v15770_v62  ;;  %v6941_v15 = vsel %vm25095_vm4, %v6936_v48, %v6940_v29  ;;  %v17316_v34 = vadd.f32 %v23315_v19, %v27905_v54  ;;  %v27937_v35 = vld [vmem:[%s25062_s4 + $0x414] sm:$0xf]  ;;  %v20657_v62 = vld [vmem:[%s25062_s4 + $0x47c] sm:$0xf] }
 0x4b7   : > { %v17314_v7 = vadd.f32 %v23316_v47, %v27905_v54  ;;  %v6946_v40 = vrot.slane %v6945_v24, 4  ;;  %v17317_v56 = vadd.f32 %v23317_v9, %v27905_v54  ;;  %v17315_v59 = vadd.f32 %v23318_v18, %v27905_v54  ;;  %v27946_v24 = vpop.f32.mrb[29].mxu0 }
 0x4b8   : > { %v15774_v36 = vor.u32 %v15773_v0, %v15769_v57  ;;  %23280 = vmatmul.mubr.msk.bf16.gmra.mrb[108].mxu0 %vm2122_vm1, %v20749_v5  ;;  %vm17460_vm5 = vcmp.ge.f32.partialorder %v17316_v34, 0.0  ;;  %v17604_v22 = vmul.f32 0.2, %v17316_v34  ;;  %v19436_v57 = vld [vmem:[%s25062_s4 + $0x410] sm:$0xf]  ;;  %v15777_v21 = vshll.u32 %v20655_v12, 16 }
 0x4b9   : > { %vm17458_vm6 = vcmp.ge.f32.partialorder %v17314_v7, 0.0  ;;  %v17602_v3 = vmul.f32 0.2, %v17314_v7  ;;  %v6951_v16 = vsel %vm25095_vm4, %v6946_v40, %v6950_v14  ;;  %vm17461_vm7 = vcmp.ge.f32.partialorder %v17317_v56, 0.0  ;;  %v27941_v14 = vpop.f32.mrb[24].mxu1  ;;  %29195 = vst [vmem:[#allocation22_spill] sm:$0xff] %v27946_v24 }
 0x4ba   : > { %v17605_v51 = vmul.f32 0.2, %v17317_v56  ;;  %vm17459_vm8 = vcmp.ge.f32.partialorder %v17315_v59, 0.0  ;;  %v19532_v49 = vcombine.low %v6941_v15, %v6951_v16  ;;  %v17748_v20 = vsel %vm17460_vm5, %v17316_v34, %v17604_v22  ;;  %v27948_v18 = vpop.f32.mrb[25].mxu1 }
 0x4bb   : > { %v17746_v2 = vsel %vm17458_vm6, %v17314_v7, %v17602_v3  ;;  %v17603_v55 = vmul.f32 0.2, %v17315_v59  ;;  %v15775_v29 = vrot.slane %v15774_v36, 4  ;;  %v15781_v1 = vshrl.u32 %v20655_v12, 16  ;;  %v27950_v7 = vpop.f32.mrb[30].mxu0  ;;  %v27952_v40 = vpop.f32.mrb[26].mxu1 }
 0x4bc   : > { %v17749_v8 = vsel %vm17461_vm7, %v17317_v56, %v17605_v51  ;;  %22692 = vmatmul.mubr.msk.bf16.gmra.mrb[104].mxu1 %vm2122_vm1, %v19532_v49  ;;  %v15787_v47 = vshll.u32 %v20656_v28, 16  ;;  %v6953_v9 = vshrl.u32 %v19435_v50, 16  ;;  %v15779_v5 = vrot.slane %v15777_v21, 5  ;;  %29196 = vst [vmem:[#allocation23_spill] sm:$0xff] %v27950_v7  ;;  %v27958_v36 = vpop.f32.mrb[31].mxu0  ;;  %v27960_v22 = vpop.f32.mrb[27].mxu1 }
 0x4bd   : > { %v21140_v48 = vpack.c.bf16 %v17749_v8, %v17748_v20  ;;  %v17747_v19 = vsel %vm17459_vm8, %v17315_v59, %v17603_v55  ;;  %v15783_v15 = vrot.slane %v15781_v1, 4  ;;  %v6956_v34 = vshll.u32 %v19435_v50, 16  ;;  %29197 = vst [vmem:[#allocation24_spill] sm:$0xff] %v27958_v36  ;;  %v20658_v49 = vld [vmem:[%s25062_s4 + $0x480] sm:$0xf] }
 0x4be   : > { %v21135_v0 = vpack.c.bf16 %v17747_v19, %v17746_v2  ;;  %v15789_v56 = vrot.slane %v15787_v47, 5  ;;  %v6955_v59 = vrot.slane %v6953_v9, 4  ;;  %v6962_v12 = vshll.u32 %v19436_v57, 16  ;;  %v20659_v8 = vld [vmem:[%s25062_s4 + $0x484] sm:$0xf] }
 0x4bf   : > { %21492 = vst [vmem:[%s27955_s8 + $0x8] sm:$0xff] %v21140_v48   ;;  %v6966_v28 = vshrl.u32 %v19436_v57, 16  ;;  %v15780_v3 = vsel %vm25095_vm4, %v15775_v29, %v15779_v5  ;;  %v15784_v16 = vor.u32 %v15783_v15, %v15779_v5  ;;  %v6958_v51 = vrot.slane %v6956_v34, 5 }
 0x4c0   : > { %21136 = vst [vmem:[%s27955_s8] sm:$0xff] %v21135_v0   ;;  %v6972_v50 = vshll.u32 %v27937_v35, 16  ;;  %v6964_v20 = vrot.slane %v6962_v12, 5  ;;  %v6976_v55 = vshrl.u32 %v27937_v35, 16  ;;  %v15792_v57 = vshrl.u32 %v20657_v62, 16 }
 0x4c1   : > { %v6968_v2 = vrot.slane %v6966_v28, 4  ;;  %v15785_v21 = vrot.slane %v15784_v16, 4  ;;  %v6959_v1 = vor.u32 %v6958_v51, %v6955_v59  ;;  %v15795_v19 = vshll.u32 %v20657_v62, 16  ;;  %v19438_v28 = vld [vmem:[%s25062_s4 + $0x418] sm:$0xf] }
 0x4c2   : > { %v6974_v48 = vrot.slane %v6972_v50, 5  ;;  %v15794_v9 = vrot.slane %v15792_v57, 4  ;;  %v15801_v29 = vshll.u32 %v20658_v49, 16  ;;  %v15805_v0 = vshrl.u32 %v20658_v49, 16  ;;  %v27973_v16 = vld [vmem:[%s25062_s4 + $0x41c] sm:$0xf] }
 0x4c3   : > { %v6969_v47 = vor.u32 %v6968_v2, %v6964_v20  ;;  %v15790_v5 = vsel %vm25095_vm4, %v15785_v21, %v15789_v56  ;;  %v6960_v15 = vrot.slane %v6959_v1, 4  ;;  %v15797_v34 = vrot.slane %v15795_v19, 5 }
 0x4c4   : > { %v15811_v12 = vshll.u32 %v20659_v8, 16  ;;  %v20750_v36 = vcombine.low %v15780_v3, %v15790_v5  ;;  %v15803_v7 = vrot.slane %v15801_v29, 5  ;;  %v15807_v24 = vrot.slane %v15805_v0, 4 }
 0x4c5   : > { %v6970_v35 = vrot.slane %v6969_v47, 4  ;;  %v6965_v62 = vsel %vm25095_vm4, %v6960_v15, %v6964_v20  ;;  %v15798_v59 = vor.u32 %v15797_v34, %v15794_v9  ;;  %v15815_v50 = vshrl.u32 %v20659_v8, 16 }
 0x4c6   : > { %v27977_v51 = vrot.slane %v15811_v12, 5  ;;  %23283 = vmatprep.mubr.msk.bf16.mxu0 %vm2122_vm1, %v20750_v36  ;;  %v15808_v49 = vor.u32 %v15807_v24, %v15803_v7  ;;  %v6978_v2 = vrot.slane %v6976_v55, 4  ;;  %v6982_v3 = vshll.u32 %v19438_v28, 16 }
 0x4c7   : > { %v6975_v56 = vsel %vm25095_vm4, %v6970_v35, %v6974_v48  ;;  %v15799_v21 = vrot.slane %v15798_v59, 4  ;;  %v6986_v1 = vshrl.u32 %v19438_v28, 16  ;;  %v6992_v19 = vshll.u32 %v27973_v16, 16 }
 0x4c8   : > { %v19533_v57 = vcombine.low %v6965_v62, %v6975_v56  ;;  %v15809_v47 = vrot.slane %v15808_v49, 4  ;;  %v6979_v29 = vor.u32 %v6978_v2, %v6974_v48  ;;  %v6984_v20 = vrot.slane %v6982_v3, 5  ;;  %v20661_v56 = vld [vmem:[%s25062_s4 + $0x48c] sm:$0xf] }
 0x4c9   : > { %v6996_v9 = vshrl.u32 %v27973_v16, 16  ;;  %v15804_v36 = vsel %vm25095_vm4, %v15799_v21, %v15803_v7  ;;  %v6988_v8 = vrot.slane %v6986_v1, 4  ;;  %v27987_v0 = vrot.slane %v6992_v19, 5  ;;  %v19440_v21 = vld [vmem:[%s25062_s4 + $0x420] sm:$0xf]  ;;  %v28014_v1 = vpop.f32.mrb[32].mxu0 }
 0x4ca   : > { %22695 = vmatprep.mubr.msk.bf16.mxu1 %vm2122_vm1, %v19533_v57  ;;  %v23319_v24 = vadd.f32 %v27685_v6, %v27689_v58  ;;  %v15814_v55 = vsel %vm25095_vm4, %v15809_v47, %v27977_v51  ;;  %v6980_v5 = vrot.slane %v6979_v29, 4  ;;  %v23320_v48 = vadd.f32 %v27687_v23, %v27694_v13  ;;  %v28016_v19 = vpop.f32.mrb[28].mxu1 }
 0x4cb   : > { %v23321_v15 = vadd.f32 %v27692_v4, %v27701_v60  ;;  %v20751_v34 = vcombine.low %v15804_v36, %v15814_v55  ;;  %v6989_v7 = vor.u32 %v6988_v8, %v6984_v20  ;;  %v23322_v28 = vadd.f32 %v27699_v33, %v27706_v31  ;;  %v20660_v60 = vld [vmem:[%s25062_s4 + $0x488] sm:$0xf]  ;;  %v19441_v8 = vld [vmem:[%s25062_s4 + $0x424] sm:$0x1]  ;;  %v28020_v55 = vpop.f32.mrb[33].mxu0 }
 0x4cc   : > { %v17320_v12 = vadd.f32 %v23319_v24, %v27905_v54  ;;  %v6985_v6 = vsel %vm25095_vm4, %v6980_v5, %v6984_v20  ;;  %v17318_v58 = vadd.f32 %v23320_v48, %v27905_v54  ;;  %v15817_v16 = vrot.slane %v15815_v50, 4  ;;  %v20662_v24 = vld [vmem:[%s25062_s4 + $0x490] sm:$0xf]  ;;  %v28022_v5 = vpop.f32.mrb[29].mxu1 }
 0x4cd   : > { %v17321_v35 = vadd.f32 %v23321_v15, %v27905_v54  ;;  %23284 = vmatmul.mubr.msk.bf16.gmra.mrb[112].mxu0 %vm2122_vm1, %v20751_v34  ;;  %v6990_v23 = vrot.slane %v6989_v7, 4  ;;  %v17319_v13 = vadd.f32 %v23322_v28, %v27905_v54  ;;  %v15821_v20 = vshll.u32 %v20660_v60, 16  ;;  %v28025_v7 = vpop.f32.mrb[34].mxu0 }
 0x4ce   : > { %vm17464_vm9 = vcmp.ge.f32.partialorder %v17320_v12, 0.0  ;;  %v17608_v4 = vmul.f32 0.2, %v17320_v12  ;;  %vm17462_vm10 = vcmp.ge.f32.partialorder %v17318_v58, 0.0  ;;  %v17606_v33 = vmul.f32 0.2, %v17318_v58 }
 0x4cf   : > { %vm17465_vm11 = vcmp.ge.f32.partialorder %v17321_v35, 0.0  ;;  %v17609_v31 = vmul.f32 0.2, %v17321_v35  ;;  %v6995_v62 = vsel %vm25095_vm4, %v6990_v23, %v27987_v0  ;;  %vm17463_vm12 = vcmp.ge.f32.partialorder %v17319_v13, 0.0 }
 0x4d0   : > { %v17752_v59 = vsel %vm17464_vm9, %v17320_v12, %v17608_v4  ;;  %v17607_v50 = vmul.f32 0.2, %v17319_v13  ;;  %v19534_v49 = vcombine.low %v6985_v6, %v6995_v62  ;;  %v17750_v2 = vsel %vm17462_vm10, %v17318_v58, %v17606_v33  ;;  %v28027_v12 = vpop.f32.mrb[30].mxu1  ;;  %v20663_v33 = vld [vmem:[%s25062_s4 + $0x494] sm:$0x1] }
 0x4d1   : > { %v17753_v3 = vsel %vm17465_vm11, %v17321_v35, %v17609_v31  ;;  %v15818_v57 = vor.u32 %v15817_v16, %v27977_v51  ;;  %v15825_v36 = vshrl.u32 %v20660_v60, 16  ;;  %v15831_v15 = vshll.u32 %v20661_v56, 16  ;;  %v28030_v16 = vpop.f32.mrb[35].mxu0  ;;  %v28032_v23 = vpop.f32.mrb[31].mxu1 }
 0x4d2   : > { %v21150_v47 = vpack.c.bf16 %v17753_v3, %v17752_v59  ;;  %v17751_v29 = vsel %vm17463_vm12, %v17319_v13, %v17607_v50  ;;  %22696 = vmatmul.mubr.msk.bf16.gmra.mrb[108].mxu1 %vm2122_vm1, %v19534_v49  ;;  %v15835_v34 = vshrl.u32 %v20661_v56, 16  ;;  %v15823_v28 = vrot.slane %v15821_v20, 5 }
 0x4d3   : > { %v21145_v51 = vpack.c.bf16 %v17751_v29, %v17750_v2  ;;  %v15819_v48 = vrot.slane %v15818_v57, 4  ;;  %v15827_v6 = vrot.slane %v15825_v36, 4  ;;  %v6998_v58 = vrot.slane %v6996_v9, 4  ;;  %v19442_v9 = vld [vmem:[%s25062_s4 + $0x444] sm:$0xf] }
 0x4d4   : > { %21494 = vst [vmem:[%s27955_s8 + $0x18] sm:$0xff] %v21150_v47   ;;  %v7002_v35 = vshll.u32 %v19440_v21, 16  ;;  %v15833_v4 = vrot.slane %v15831_v15, 5  ;;  %v7006_v13 = vshrl.u32 %v19440_v21, 16  ;;  %v7012_v60 = vshll.u32 %v19441_v8, 16 }
 0x4d5   : > { %21493 = vst [vmem:[%s27955_s8 + $0x10] sm:$0xff] %v21145_v51   ;;  %v15837_v31 = vrot.slane %v15835_v34, 4  ;;  %v15824_v62 = vsel %vm25095_vm4, %v15819_v48, %v15823_v28  ;;  %v15828_v59 = vor.u32 %v15827_v6, %v15823_v28  ;;  %v6999_v50 = vor.u32 %v6998_v58, %v27987_v0  ;;  %v19443_v15 = vld [vmem:[%s25062_s4 + $0x448] sm:$0xf]  ;;  %v28046_v58 = vld [vmem:[%s25062_s4 + $0x44c] sm:$0xf] }
 0x4d6   : > { %v7004_v56 = vrot.slane %v7002_v35, 5  ;;  %v7008_v49 = vrot.slane %v7006_v13, 4  ;;  %v7014_v2 = vrot.slane %v7012_v60, 5  ;;  %v15841_v57 = vshll.u32 %v20662_v24, 16 }
 0x4d7   : > { %v15838_v3 = vor.u32 %v15837_v31, %v15833_v4  ;;  %v15829_v47 = vrot.slane %v15828_v59, 4  ;;  %v7000_v29 = vrot.slane %v6999_v50, 4  ;;  %v15845_v21 = vshrl.u32 %v20662_v24, 16 }
 0x4d8   : > { %v15851_v20 = vshll.u32 %v20663_v33, 16  ;;  %v7009_v36 = vor.u32 %v7008_v49, %v7004_v56  ;;  %v15843_v51 = vrot.slane %v15841_v57, 5  ;;  %v7017_v48 = vshrl.u32 %v19442_v9, 16 }
 0x4d9   : > { %v15839_v8 = vrot.slane %v15838_v3, 4  ;;  %v15834_v34 = vsel %vm25095_vm4, %v15829_v47, %v15833_v4  ;;  %v7005_v0 = vsel %vm25095_vm4, %v7000_v29, %v7004_v56  ;;  %v15847_v28 = vrot.slane %v15845_v21, 4 }
 0x4da   : > { %v15853_v6 = vrot.slane %v15851_v20, 5  ;;  %v20752_v35 = vcombine.low %v15824_v62, %v15834_v34  ;;  %v7010_v13 = vrot.slane %v7009_v36, 4  ;;  %v7019_v60 = vrot.slane %v7017_v48, 4 }
 0x4db   : > { %v15844_v24 = vsel %vm25095_vm4, %v15839_v8, %v15843_v51  ;;  %v15848_v33 = vor.u32 %v15847_v28, %v15843_v51  ;;  %v7020_v31 = vshll.u32 %v19442_v9, 16  ;;  %v7026_v59 = vshll.u32 %v19443_v15, 16  ;;  %v20664_v51 = vld [vmem:[%s25062_s4 + $0x4b4] sm:$0xf] }
 0x4dc   : > { %v7030_v50 = vshrl.u32 %v19443_v15, 16  ;;  %23287 = vmatprep.mubr.msk.bf16.mxu0 %vm2122_vm1, %v20752_v35  ;;  %v7015_v4 = vsel %vm25095_vm4, %v7010_v13, %v7014_v2  ;;  %v7036_v56 = vshll.u32 %v28046_v58, 16  ;;  %v7040_v49 = vshrl.u32 %v28046_v58, 16  ;;  %v20666_v13 = vld [vmem:[%s25062_s4 + $0x4bc] sm:$0xf] }
 0x4dd   : > { %v23323_v62 = vadd.f32 %v27716_v44, %v27720_v30  ;;  %v19535_v3 = vcombine.low %v7005_v0, %v7015_v4  ;;  %v15849_v57 = vrot.slane %v15848_v33, 4  ;;  %v7022_v47 = vrot.slane %v7020_v31, 5 }
 0x4de   : > { %v7028_v29 = vrot.slane %v7026_v59, 5  ;;  %v7032_v9 = vrot.slane %v7030_v50, 4  ;;  %v28057_v21 = vrot.slane %v7036_v56, 5  ;;  %v23324_v2 = vadd.f32 %v27718_v46, %v27728_v25 }
 0x4df   : > { %v17324_v20 = vadd.f32 %v23323_v62, %v27905_v54  ;;  %22699 = vmatprep.mubr.msk.bf16.mxu1 %vm2122_vm1, %v19535_v3  ;;  %v15854_v36 = vsel %vm25095_vm4, %v15849_v57, %v15853_v6  ;;  %v7023_v8 = vor.u32 %v7022_v47, %v7019_v60  ;;  %v23325_v44 = vadd.f32 %v27726_v27, %v27732_v42  ;;  %v20665_v42 = vld [vmem:[%s25062_s4 + $0x4b8] sm:$0xf]  ;;  %v19445_v47 = vld [vmem:[%s25062_s4 + $0x450] sm:$0xf] }
 0x4e0   : > { %v23326_v30 = vadd.f32 %v27730_v41, %v27734_v52  ;;  %v20753_v15 = vcombine.low %v15844_v24, %v15854_v36  ;;  %v7033_v48 = vor.u32 %v7032_v9, %v7028_v29  ;;  %v17322_v25 = vadd.f32 %v23324_v2, %v27905_v54  ;;  %v28084_v9 = vpop.f32.mrb[32].mxu1 }
 0x4e1   : > { %vm17468_vm13 = vcmp.ge.f32.partialorder %v17324_v20, 0.0  ;;  %v17612_v34 = vmul.f32 0.2, %v17324_v20  ;;  %v7024_v46 = vrot.slane %v7023_v8, 4  ;;  %v17325_v0 = vadd.f32 %v23325_v44, %v27905_v54  ;;  %v19446_v44 = vld [vmem:[%s25062_s4 + $0x454] sm:$0xf] }
 0x4e2   : > { %v17323_v28 = vadd.f32 %v23326_v30, %v27905_v54  ;;  %23288 = vmatmul.mubr.msk.bf16.gmra.mrb[116].mxu0 %vm2122_vm1, %v20753_v15  ;;  %v7034_v6 = vrot.slane %v7033_v48, 4  ;;  %v15856_v58 = vshrl.u32 %v20664_v51, 16  ;;  %v15859_v41 = vshll.u32 %v20664_v51, 16  ;;  %v20667_v30 = vld [vmem:[%s25062_s4 + $0x4c0] sm:$0xf]  ;;  %v28091_v15 = vpop.f32.mrb[33].mxu1 }
 0x4e3   : > { %v17756_v27 = vsel %vm17468_vm13, %v17324_v20, %v17612_v34  ;;  %v7029_v52 = vsel %vm25095_vm4, %v7024_v46, %v7028_v29  ;;  %vm17466_vm14 = vcmp.ge.f32.partialorder %v17322_v25, 0.0  ;;  %v17610_v35 = vmul.f32 0.2, %v17322_v25  ;;  %v28082_v29 = vpop.f32.mrb[36].mxu0 }
 0x4e4   : > { %vm17469_vm15 = vcmp.ge.f32.partialorder %v17325_v0, 0.0  ;;  %v7039_v24 = vsel %vm25095_vm4, %v7034_v6, %v28057_v21  ;;  %v17613_v60 = vmul.f32 0.2, %v17325_v0  ;;  %vm17467_vm0 = vcmp.ge.f32.partialorder %v17323_v28, 0.0  ;;  %v28089_v51 = vpop.f32.mrb[37].mxu0 }
 0x4e5   : > { %v17611_v33 = vmul.f32 0.2, %v17323_v28  ;;  %v19536_v31 = vcombine.low %v7029_v52, %v7039_v24  ;;  %v17754_v59 = vsel %vm17466_vm14, %v17322_v25, %v17610_v35  ;;  %v15858_v50 = vrot.slane %v15856_v58, 4 }
 0x4e6   : > { %v15861_v4 = vrot.slane %v15859_v41, 5  ;;  %v17757_v56 = vsel %vm17469_vm15, %v17325_v0, %v17613_v60  ;;  %v15865_v3 = vshll.u32 %v20665_v42, 16  ;;  %v15869_v57 = vshrl.u32 %v20665_v42, 16  ;;  %v28093_v0 = vpop.f32.mrb[38].mxu0  ;;  %v20668_v60 = vld [vmem:[%s25062_s4 + $0x4c4] sm:$0xf] }
 0x4e7   : > { %v17755_v62 = vsel %vm17467_vm0, %v17323_v28, %v17611_v33  ;;  %22700 = vmatmul.mubr.msk.bf16.gmra.mrb[112].mxu1 %vm2122_vm1, %v19536_v31  ;;  %v21160_v20 = vpack.c.bf16 %v17757_v56, %v17756_v27  ;;  %v15875_v8 = vshll.u32 %v20666_v13, 16  ;;  %v15879_v46 = vshrl.u32 %v20666_v13, 16  ;;  %v28095_v28 = vpop.f32.mrb[34].mxu1  ;;  %v28099_v41 = vpop.f32.mrb[39].mxu0 }
 0x4e8   : > { %v21155_v2 = vpack.c.bf16 %v17755_v62, %v17754_v59  ;;  %v15862_v36 = vor.u32 %v15861_v4, %v15858_v50  ;;  %v15867_v48 = vrot.slane %v15865_v3, 5  ;;  %v15871_v34 = vrot.slane %v15869_v57, 4  ;;  %v28101_v52 = vpop.f32.mrb[35].mxu1 }
 0x4e9   : > { %v7042_v25 = vrot.slane %v7040_v49, 4  ;;  %21496 = vst [vmem:[%s27955_s8 + $0x28] sm:$0xff] %v21160_v20   ;;  %v15877_v27 = vrot.slane %v15875_v8, 5  ;;  %v7046_v42 = vshll.u32 %v19445_v47, 16  ;;  %v7050_v58 = vshrl.u32 %v19445_v47, 16 }
 0x4ea   : > { %21495 = vst [vmem:[%s27955_s8 + $0x20] sm:$0xff] %v21155_v2   ;;  %v15863_v6 = vrot.slane %v15862_v36, 4  ;;  %v15872_v35 = vor.u32 %v15871_v34, %v15867_v48  ;;  %v7056_v13 = vshll.u32 %v19446_v44, 16  ;;  %v7060_v49 = vshrl.u32 %v19446_v44, 16  ;;  %v19448_v34 = vld [vmem:[%s25062_s4 + $0x45c] sm:$0x1] }
 0x4eb   : > { %v7043_v24 = vor.u32 %v7042_v25, %v28057_v21  ;;  %v7048_v31 = vrot.slane %v7046_v42, 5  ;;  %v7052_v59 = vrot.slane %v7050_v58, 4  ;;  %v15881_v50 = vrot.slane %v15879_v46, 4  ;;  %v19447_v21 = vld [vmem:[%s25062_s4 + $0x458] sm:$0xf] }
 0x4ec   : > { %v15868_v33 = vsel %vm25095_vm4, %v15863_v6, %v15867_v48  ;;  %v15873_v4 = vrot.slane %v15872_v35, 4  ;;  %v7058_v62 = vrot.slane %v7056_v13, 5  ;;  %v15885_v3 = vshll.u32 %v20667_v30, 16 }
 0x4ed   : > { %v7044_v56 = vrot.slane %v7043_v24, 4  ;;  %v7053_v57 = vor.u32 %v7052_v59, %v7048_v31  ;;  %v15882_v47 = vor.u32 %v15881_v50, %v15877_v27  ;;  %v15889_v20 = vshrl.u32 %v20667_v30, 16 }
 0x4ee   : > { %v15895_v2 = vshll.u32 %v20668_v60, 16  ;;  %v15878_v36 = vsel %vm25095_vm4, %v15873_v4, %v15877_v27  ;;  %v15887_v44 = vrot.slane %v15885_v3, 5  ;;  %v15899_v48 = vshrl.u32 %v20668_v60, 16  ;;  %v28122_v3 = vpop.f32.mrb[36].mxu1 }
 0x4ef   : > { %v7049_v8 = vsel %vm25095_vm4, %v7044_v56, %v7048_v31  ;;  %v20754_v25 = vcombine.low %v15868_v33, %v15878_v36  ;;  %v7054_v46 = vrot.slane %v7053_v57, 4  ;;  %v15883_v6 = vrot.slane %v15882_v47, 4  ;;  %v28120_v56 = vpop.f32.mrb[40].mxu0 }
 0x4f0   : > { %v15891_v42 = vrot.slane %v15889_v20, 4  ;;  %v28113_v58 = vrot.slane %v15895_v2, 5  ;;  %v7062_v35 = vrot.slane %v7060_v49, 4  ;;  %v7066_v24 = vshll.u32 %v19447_v21, 16  ;;  %v28128_v2 = vpop.f32.mrb[41].mxu0 }
 0x4f1   : > { %v7070_v30 = vshrl.u32 %v19447_v21, 16  ;;  %23291 = vmatprep.mubr.msk.bf16.mxu0 %vm2122_vm1, %v20754_v25  ;;  %v7059_v27 = vsel %vm25095_vm4, %v7054_v46, %v7058_v62  ;;  %v15888_v13 = vsel %vm25095_vm4, %v15883_v6, %v15887_v44  ;;  %v7076_v60 = vshll.u32 %v19448_v34, 16  ;;  %v28130_v21 = vpop.f32.mrb[37].mxu1  ;;  %v28137_v34 = vpop.f32.mrb[42].mxu0  ;;  %v20669_v25 = vld [vmem:[%s25062_s4 + $0x4c8] sm:$0xf] }
 0x4f2   : > { %v15892_v31 = vor.u32 %v15891_v42, %v15887_v44  ;;  %v19537_v59 = vcombine.low %v7049_v8, %v7059_v27  ;;  %v7063_v33 = vor.u32 %v7062_v35, %v7058_v62  ;;  %v7068_v50 = vrot.slane %v7066_v24, 5  ;;  %v28147_v6 = vpop.f32.mrb[43].mxu0  ;;  %v20670_v35 = vld [vmem:[%s25062_s4 + $0x4cc] sm:$0x1] }
 0x4f3   : > { %v7072_v4 = vrot.slane %v7070_v30, 4  ;;  %v7078_v57 = vrot.slane %v7076_v60, 5  ;;  %v23327_v47 = vadd.f32 %v27745_v38, %v27752_v26  ;;  %v23328_v20 = vadd.f32 %v27750_v61, %v27758_v45  ;;  %v28139_v38 = vpop.f32.mrb[38].mxu1  ;;  %29198 = vst [vmem:[#allocation25_spill] sm:$0xff] %v28147_v6  ;;  %v28155_v24 = vpop.f32.mrb[44].mxu0 }
 0x4f4   : > { %v15893_v49 = vrot.slane %v15892_v31, 4  ;;  %22703 = vmatprep.mubr.msk.bf16.mxu1 %vm2122_vm1, %v19537_v59  ;;  %v7064_v62 = vrot.slane %v7063_v33, 4  ;;  %v23329_v8 = vadd.f32 %v27756_v53, %v27765_v39  ;;  %v23330_v44 = vadd.f32 %v27763_v43, %v27767_v32  ;;  %v28149_v53 = vpop.f32.mrb[39].mxu1  ;;  %29199 = vst [vmem:[#allocation26_spill] sm:$0xff] %v28155_v24  ;;  %v28163_v59 = vpop.f32.mrb[45].mxu0 }
 0x4f5   : > { %v7073_v36 = vor.u32 %v7072_v4, %v7068_v50  ;;  %v17328_v26 = vadd.f32 %v23327_v47, %v27905_v54  ;;  %v17326_v45 = vadd.f32 %v23328_v20, %v27905_v54  ;;  %v15901_v46 = vrot.slane %v15899_v48, 4  ;;  %v28157_v30 = vpop.f32.mrb[40].mxu1  ;;  %29200 = vst [vmem:[#allocation27_spill] sm:$0xff] %v28163_v59  ;;  %v19449_v20 = vld [vmem:[%s25062_s4 + $0x47c] sm:$0xf] }
 0x4f6   : > { %v15898_v61 = vsel %vm25095_vm4, %v15893_v49, %v28113_v58  ;;  %v7069_v43 = vsel %vm25095_vm4, %v7064_v62, %v7068_v50  ;;  %v17329_v42 = vadd.f32 %v23329_v8, %v27905_v54  ;;  %v17327_v60 = vadd.f32 %v23330_v44, %v27905_v54  ;;  %v28165_v33 = vpop.f32.mrb[41].mxu1  ;;  %v19450_v62 = vld [vmem:[%s25062_s4 + $0x480] sm:$0xf] }
 0x4f7   : > { %v20755_v39 = vcombine.low %v15888_v13, %v15898_v61  ;;  %v7074_v32 = vrot.slane %v7073_v36, 4  ;;  %vm17472_vm2 = vcmp.ge.f32.partialorder %v17328_v26, 0.0  ;;  %v17616_v48 = vmul.f32 0.2, %v17328_v26  ;;  %v28170_v36 = vpop.f32.mrb[46].mxu0 }
 0x4f8   : > { %vm17470_vm3 = vcmp.ge.f32.partialorder %v17326_v45, 0.0  ;;  %v17614_v27 = vmul.f32 0.2, %v17326_v45  ;;  %vm17473_vm5 = vcmp.ge.f32.partialorder %v17329_v42, 0.0  ;;  %v17617_v31 = vmul.f32 0.2, %v17329_v42 }
 0x4f9   : > { %23292 = vmatmul.mubr.msk.bf16.gmra.mrb[120].mxu0 %vm2122_vm1, %v20755_v39  ;;  %v7079_v13 = vsel %vm25095_vm4, %v7074_v32, %v7078_v57  ;;  %v17760_v4 = vsel %vm17472_vm2, %v17328_v26, %v17616_v48  ;;  %v15902_v47 = vor.u32 %v15901_v46, %v28113_v58  ;;  %29201 = vst [vmem:[#allocation28_spill] sm:$0xff] %v28170_v36  ;;  %v28172_v57 = vpop.f32.mrb[42].mxu1  ;;  %vm17471_vm6 = vcmp.ge.f32.partialorder %v17327_v60, 0.0  ;;  %v28175_v39 = vld [vmem:[%s25062_s4 + $0x484] sm:$0xf] }
 0x4fa   : > { %v19538_v50 = vcombine.low %v7069_v43, %v7079_v13  ;;  %v17758_v49 = vsel %vm17470_vm3, %v17326_v45, %v17614_v27  ;;  %v17761_v8 = vsel %vm17473_vm5, %v17329_v42, %v17617_v31  ;;  %v17615_v44 = vmul.f32 0.2, %v17327_v60  ;;  %v28177_v43 = vpop.f32.mrb[47].mxu0  ;;  %v28179_v26 = vpop.f32.mrb[43].mxu1  ;;  %v20671_v48 = vld [vmem:[%s25062_s4 + $0x4ec] sm:$0xf] }
 0x4fb   : > { %v15905_v61 = vshll.u32 %v20669_v25, 16  ;;  %29202 = vst [vmem:[#allocation29_spill] sm:$0xff] %v28177_v43  ;;  %29203 = vst [vmem:[#allocation30_spill] sm:$0xff] %v28179_v26  ;;  %v21170_v58 = vpack.c.bf16 %v17761_v8, %v17760_v4  ;;  %v15903_v45 = vrot.slane %v15902_v47, 4  ;;  %v15909_v46 = vshrl.u32 %v20669_v25, 16  ;;  %v28185_v26 = vpop.f32.mrb[48].mxu0 }
 0x4fc   : > { %22704 = vmatmul.mubr.msk.bf16.gmra.mrb[116].mxu1 %vm2122_vm1, %v19538_v50  ;;  %v15915_v32 = vshll.u32 %v20670_v35, 16  ;;  %v17759_v27 = vsel %vm17471_vm6, %v17327_v60, %v17615_v44  ;;  %v7081_v13 = vshrl.u32 %v19449_v20, 16  ;;  %v7084_v31 = vshll.u32 %v19449_v20, 16  ;;  %v20672_v36 = vld [vmem:[%s25062_s4 + $0x4f0] sm:$0xf]  ;;  %29204 = vst [vmem:[#allocation31_spill] sm:$0xff] %v28185_v26 }
 0x4fd   : > { %v15907_v42 = vrot.slane %v15905_v61, 5  ;;  %21498 = vst [vmem:[%s27955_s8 + $0x38] sm:$0xff] %v21170_v58   ;;  %v21165_v59 = vpack.c.bf16 %v17759_v27, %v17758_v49  ;;  %v15911_v24 = vrot.slane %v15909_v46, 4  ;;  %v7090_v6 = vshll.u32 %v19450_v62, 16  ;;  %v28187_v50 = vpop.f32.mrb[44].mxu1  ;;  %v28194_v20 = vpop.f32.mrb[49].mxu0 }
 0x4fe   : > { %v15917_v43 = vrot.slane %v15915_v32, 5  ;;  %v7083_v35 = vrot.slane %v7081_v13, 4  ;;  %v7086_v60 = vrot.slane %v7084_v31, 5  ;;  %v7094_v4 = vshrl.u32 %v19450_v62, 16  ;;  %v28192_v47 = vld [vmem:[%s25062_s4 + $0x4f4] sm:$0xf] }
 0x4ff   : > { %v15908_v25 = vsel %vm25095_vm4, %v15903_v45, %v15907_v42  ;;  %29205 = vst [vmem:[#allocation32_spill] sm:$0xff] %v28194_v20  ;;  %v28196_v8 = vpop.f32.mrb[45].mxu1  ;;  %21497 = vst [vmem:[%s27955_s8 + $0x30] sm:$0xff] %v21165_v59   ;;  %v15912_v49 = vor.u32 %v15911_v24, %v15907_v42  ;;  %v7092_v44 = vrot.slane %v7090_v6, 5  ;;  %v7100_v61 = vshll.u32 %v28175_v39, 16  ;;  %v28201_v46 = vpop.f32.mrb[50].mxu0 }
 0x500   : > { %29206 = vst [vmem:[#allocation33_spill] sm:$0xff] %v28196_v8  ;;  %v7104_v58 = vshrl.u32 %v28175_v39, 16  ;;  %29207 = vst [vmem:[#allocation34_spill] sm:$0xff] %v28201_v46  ;;  %v28203_v45 = vpop.f32.mrb[46].mxu1  ;;  %v7087_v32 = vor.u32 %v7086_v60, %v7083_v35  ;;  %v7096_v62 = vrot.slane %v7094_v4, 4  ;;  %v15920_v27 = vshrl.u32 %v20671_v48, 16 }
 0x501   : > { %29208 = vst [vmem:[#allocation35_spill] sm:$0xff] %v28203_v45  ;;  %v15923_v13 = vshll.u32 %v20671_v48, 16  ;;  %v28205_v31 = vpop.f32.mrb[51].mxu0  ;;  %v28207_v20 = vpop.f32.mrb[47].mxu1  ;;  %v15913_v59 = vrot.slane %v15912_v49, 4  ;;  %v7102_v24 = vrot.slane %v7100_v61, 5  ;;  %v23356_v37 = vadd.f32 %v28128_v2, %v28165_v33 }
 0x502   : > { %29209 = vst [vmem:[#allocation36_spill] sm:$0xff] %v28205_v31  ;;  %29210 = vst [vmem:[#allocation37_spill] sm:$0xff] %v28207_v20  ;;  %v15929_v42 = vshll.u32 %v20672_v36, 16  ;;  %v15933_v6 = vshrl.u32 %v20672_v36, 16  ;;  %v19452_v26 = vld [vmem:[%s25062_s4 + $0x488] sm:$0xf]  ;;  %v7097_v45 = vor.u32 %v7096_v62, %v7092_v44 }
 0x503   : > { %v28210_v8 = vpop.f32.mrb[52].mxu0  ;;  %v28212_v39 = vpop.f32.mrb[48].mxu1  ;;  %v7088_v46 = vrot.slane %v7087_v32, 4  ;;  %v15922_v35 = vrot.slane %v15920_v27, 4  ;;  %v15925_v60 = vrot.slane %v15923_v13, 5  ;;  %v15918_v49 = vsel %vm25095_vm4, %v15913_v59, %v15917_v43  ;;  %v29310_v2 = vld [vmem:[#allocation30_spill] sm:$0xff] }
 0x504   : > { %29211 = vst [vmem:[#allocation38_spill] sm:$0xff] %v28210_v8  ;;  %29212 = vst [vmem:[#allocation39_spill] sm:$0xff] %v28212_v39  ;;  %v28214_v4 = vpop.f32.mrb[53].mxu0  ;;  %v28216_v48 = vpop.f32.mrb[49].mxu1  ;;  %v15931_v61 = vrot.slane %v15929_v42, 5  ;;  %v15935_v31 = vrot.slane %v15933_v6, 4  ;;  %v20756_v32 = vcombine.low %v15908_v25, %v15918_v49 }
 0x505   : > { %29213 = vst [vmem:[#allocation40_spill] sm:$0xff] %v28214_v4  ;;  %29214 = vst [vmem:[#allocation41_spill] sm:$0xff] %v28216_v48  ;;  %v15939_v36 = vshll.u32 %v28192_v47, 16  ;;  %v28221_v20 = vpop.f32.mrb[54].mxu0  ;;  %v28223_v8 = vpop.f32.mrb[50].mxu1  ;;  %v7093_v62 = vsel %vm25095_vm4, %v7088_v46, %v7092_v44  ;;  %v7098_v27 = vrot.slane %v7097_v45, 4  ;;  %v15926_v13 = vor.u32 %v15925_v60, %v15922_v35 }
 0x506   : > { %29215 = vst [vmem:[#allocation42_spill] sm:$0xff] %v28221_v20  ;;  %29216 = vst [vmem:[#allocation43_spill] sm:$0xff] %v28223_v8  ;;  %v28228_v4 = vld [vmem:[%s25062_s4 + $0x48c] sm:$0xf]  ;;  %v15936_v48 = vor.u32 %v15935_v31, %v15931_v61  ;;  %v15943_v43 = vshrl.u32 %v28192_v47, 16  ;;  %v7106_v59 = vrot.slane %v7104_v58, 4  ;;  %23295 = vmatprep.mubr.msk.bf16.mxu0 %vm2122_vm1, %v20756_v32 }
 0x507   : > { %v28230_v39 = vrot.slane %v15939_v36, 5  ;;  %v7103_v42 = vsel %vm25095_vm4, %v7098_v27, %v7102_v24  ;;  %v15927_v6 = vrot.slane %v15926_v13, 4  ;;  %v7110_v25 = vshll.u32 %v19452_v26, 16  ;;  %v28237_v31 = vpop.f32.mrb[55].mxu0  ;;  %v28239_v35 = vpop.f32.mrb[51].mxu1  ;;  %v29225_v36 = vld [vmem:[#allocation6_spill] sm:$0xff] }
 0x508   : > { %v7114_v49 = vshrl.u32 %v19452_v26, 16  ;;  %v19539_v20 = vcombine.low %v7093_v62, %v7103_v42  ;;  %v15937_v44 = vrot.slane %v15936_v48, 4  ;;  %v7107_v46 = vor.u32 %v7106_v59, %v7102_v24  ;;  %29217 = vst [vmem:[#allocation44_spill] sm:$0xff] %v28237_v31  ;;  %29218 = vst [vmem:[#allocation45_spill] sm:$0xff] %v28239_v35  ;;  %v28244_v32 = vpop.f32.mrb[56].mxu0  ;;  %v28246_v26 = vpop.f32.mrb[52].mxu1 }
 0x509   : > { %v7120_v45 = vshll.u32 %v28228_v4, 16  ;;  %v15932_v47 = vsel %vm25095_vm4, %v15927_v6, %v15931_v61  ;;  %v7112_v58 = vrot.slane %v7110_v25, 5  ;;  %29219 = vst [vmem:[#allocation46_spill] sm:$0xff] %v28244_v32  ;;  %29220 = vst [vmem:[#allocation47_spill] sm:$0xff] %v28246_v26  ;;  %v23331_v61 = vadd.f32 %v27777_v63, %v27810_v17  ;;  %v20674_v27 = vld [vmem:[%s25062_s4 + $0x4f8] sm:$0xf] }
 0x50a   : > { %v7116_v60 = vrot.slane %v7114_v49, 4  ;;  %22707 = vmatprep.mubr.msk.bf16.mxu1 %vm2122_vm1, %v19539_v20  ;;  %v15942_v24 = vsel %vm25095_vm4, %v15937_v44, %v28230_v39  ;;  %v7108_v48 = vrot.slane %v7107_v46, 4  ;;  %v28257_v13 = vpop.f32.mrb[57].mxu0  ;;  %v28259_v59 = vpop.f32.mrb[53].mxu1  ;;  %v29223_v20 = vld [vmem:[#allocation5_spill] sm:$0xff]  ;;  %v29224_v49 = vld [vmem:[#allocation11_spill] sm:$0xff] }
 0x50b   : > { %v28252_v62 = vrot.slane %v7120_v45, 5  ;;  %29221 = vst [vmem:[#allocation48_spill] sm:$0xff] %v28257_v13  ;;  %29222 = vst [vmem:[#allocation49_spill] sm:$0xff] %v28259_v59  ;;  %v20757_v42 = vcombine.low %v15932_v47, %v15942_v24  ;;  %v23332_v25 = vadd.f32 %v29223_v20, %v27817_v11  ;;  %v23333_v44 = vadd.f32 %v29225_v36, %v29224_v49  ;;  %v28265_v46 = vpop.f32.mrb[58].mxu0  ;;  %v28267_v45 = vpop.f32.mrb[54].mxu1  ;;  %v29228_v13 = vld [vmem:[#allocation13_spill] sm:$0xff] }
 0x50c   : > { %v7117_v6 = vor.u32 %v7116_v60, %v7112_v58  ;;  %29226 = vst [vmem:[#allocation5_spill] sm:$0xff] %v28265_v46  ;;  %29227 = vst [vmem:[#allocation11_spill] sm:$0xff] %v28267_v45  ;;  %v7113_v63 = vsel %vm25095_vm4, %v7108_v48, %v7112_v58  ;;  %v17332_v17 = vadd.f32 %v23331_v61, %v27905_v54  ;;  %v29229_v32 = vld [vmem:[#allocation7_spill] sm:$0xff]  ;;  %v15945_v24 = vrot.slane %v15943_v43, 4  ;;  %v28274_v60 = vpop.f32.mrb[59].mxu0  ;;  %v28276_v31 = vpop.f32.mrb[55].mxu1 }
 0x50d   : > { %v23334_v47 = vadd.f32 %v29229_v32, %v29228_v13  ;;  %29230 = vst [vmem:[#allocation6_spill] sm:$0xff] %v28274_v60  ;;  %29231 = vst [vmem:[#allocation13_spill] sm:$0xff] %v28276_v31  ;;  %23296 = vmatmul.mubr.msk.bf16.gmra.mrb[124].mxu0 %vm2122_vm1, %v20757_v42  ;;  %v17330_v36 = vadd.f32 %v23332_v25, %v27905_v54  ;;  %v17333_v20 = vadd.f32 %v23333_v44, %v27905_v54  ;;  %v20675_v49 = vld [vmem:[%s25062_s4 + $0x4fc] sm:$0xf]  ;;  %v28282_v58 = vpop.f32.mrb[60].mxu0  ;;  %v28284_v48 = vpop.f32.mrb[56].mxu1 }
 0x50e   : > { %v7118_v11 = vrot.slane %v7117_v6, 4  ;;  %v15949_v46 = vshll.u32 %v20674_v27, 16  ;;  %29232 = vst [vmem:[#allocation7_spill] sm:$0xff] %v28282_v58  ;;  %29233 = vst [vmem:[#allocation50_spill] sm:$0xff] %v28284_v48  ;;  %vm17476_vm7 = vcmp.ge.f32.partialorder %v17332_v17, 0.0  ;;  %v15946_v61 = vor.u32 %v15945_v24, %v28230_v39  ;;  %v28288_v13 = vpop.f32.mrb[61].mxu0 }
 0x50f   : > { %v17620_v43 = vmul.f32 0.2, %v17332_v17  ;;  %v17331_v32 = vadd.f32 %v23334_v47, %v27905_v54  ;;  %29234 = vst [vmem:[#allocation51_spill] sm:$0xff] %v28288_v13  ;;  %v28290_v42 = vpop.f32.mrb[57].mxu1  ;;  %vm17474_vm8 = vcmp.ge.f32.partialorder %v17330_v36, 0.0  ;;  %vm17477_vm9 = vcmp.ge.f32.partialorder %v17333_v20, 0.0 }
 0x510   : > { %29235 = vst [vmem:[#allocation52_spill] sm:$0xff] %v28290_v42  ;;  %v7123_v6 = vsel %vm25095_vm4, %v7118_v11, %v28252_v62  ;;  %v17618_v25 = vmul.f32 0.2, %v17330_v36  ;;  %v28295_v44 = vpop.f32.mrb[62].mxu0  ;;  %v28297_v58 = vpop.f32.mrb[58].mxu1  ;;  %v28300_v42 = vrot.slane %v15946_v61, 4 }
 0x511   : > { %29236 = vst [vmem:[#allocation53_spill] sm:$0xff] %v28295_v44  ;;  %29237 = vst [vmem:[#allocation54_spill] sm:$0xff] %v28297_v58  ;;  %v19540_v54 = vcombine.low %v7113_v63, %v7123_v6  ;;  %v17764_v47 = vsel %vm17476_vm7, %v17332_v17, %v17620_v43  ;;  %v17621_v39 = vmul.f32 0.2, %v17333_v20  ;;  %vm17475_vm10 = vcmp.ge.f32.partialorder %v17331_v32, 0.0  ;;  %v28307_v63 = vpop.f32.mrb[63].mxu0 }
 0x512   : > { %v19454_v24 = vld [vmem:[%s25062_s4 + $0x490] sm:$0xf]  ;;  %v17762_v13 = vsel %vm17474_vm8, %v17330_v36, %v17618_v25  ;;  %v17619_v60 = vmul.f32 0.2, %v17331_v32  ;;  %v28302_v48 = vrot.slane %v15949_v46, 5  ;;  %v15953_v44 = vshrl.u32 %v20674_v27, 16 }
 0x513   : > { %v19455_v11 = vld [vmem:[%s25062_s4 + $0x494] sm:$0x1]  ;;  %v20676_v31 = vld [vmem:[%s25062_s4 + $0x500] sm:$0xf]  ;;  %22708 = vmatmul.mubr.msk.bf16.gmra.mrb[120].mxu1 %vm2122_vm1, %v19540_v54  ;;  %v17765_v45 = vsel %vm17477_vm9, %v17333_v20, %v17621_v39  ;;  %v15959_v59 = vshll.u32 %v20675_v49, 16  ;;  %v15963_v58 = vshrl.u32 %v20675_v49, 16 }
 0x514   : > { %29238 = vst [vmem:[#allocation55_spill] sm:$0xff] %v28307_v63  ;;  %v28309_v17 = vpop.f32.mrb[59].mxu1  ;;  %v21180_v36 = vpack.c.bf16 %v17765_v45, %v17764_v47  ;;  %v17763_v43 = vsel %vm17475_vm10, %v17331_v32, %v17619_v60  ;;  %v15952_v46 = vsel %vm25095_vm4, %v28300_v42, %v28302_v48  ;;  %v29240_v61 = vshrl.u32 %v28228_v4, 16  ;;  %v20677_v20 = vld [vmem:[%s25062_s4 + $0x504] sm:$0x1]  ;;  %v28319_v27 = vpop.f32.mrb[64].mxu0 }
 0x515   : > { %29239 = vst [vmem:[#allocation56_spill] sm:$0xff] %v28309_v17  ;;  %29241 = vst [vmem:[#allocation57_spill] sm:$0xff] %v28319_v27  ;;  %v28321_v49 = vpop.f32.mrb[60].mxu1  ;;  %v21175_v25 = vpack.c.bf16 %v17763_v43, %v17762_v13  ;;  %v15955_v54 = vrot.slane %v15953_v44, 4  ;;  %v15961_v39 = vrot.slane %v15959_v59, 5  ;;  %v7130_v45 = vshll.u32 %v19454_v24, 16 }
 0x516   : > { %v7126_v6 = vrot.slane %v29240_v61, 4  ;;  %29242 = vst [vmem:[#allocation58_spill] sm:$0xff] %v28321_v49  ;;  %v28323_v60 = vpop.f32.mrb[65].mxu0  ;;  %v28325_v32 = vpop.f32.mrb[61].mxu1  ;;  %21500 = vst [vmem:[%s27955_s8 + $0x48] sm:$0xff] %v21180_v36   ;;  %v7134_v4 = vshrl.u32 %v19454_v24, 16 }
 0x517   : > { %29243 = vst [vmem:[#allocation59_spill] sm:$0xff] %v28323_v60  ;;  %29244 = vst [vmem:[#allocation60_spill] sm:$0xff] %v28325_v32  ;;  %v7140_v47 = vshll.u32 %v19455_v11, 16  ;;  %v15965_v61 = vrot.slane %v15963_v58, 4  ;;  %v28329_v63 = vpop.f32.mrb[66].mxu0  ;;  %v28331_v27 = vpop.f32.mrb[62].mxu1  ;;  %v15956_v13 = vor.u32 %v15955_v54, %v28302_v48 }
 0x518   : > { %v7127_v42 = vor.u32 %v7126_v6, %v28252_v62  ;;  %29245 = vst [vmem:[#allocation61_spill] sm:$0xff] %v28329_v63  ;;  %29246 = vst [vmem:[#allocation62_spill] sm:$0xff] %v28331_v27  ;;  %v7132_v59 = vrot.slane %v7130_v45, 5  ;;  %v15969_v44 = vshll.u32 %v20676_v31, 16  ;;  %v15973_v43 = vshrl.u32 %v20676_v31, 16  ;;  %v28336_v62 = vpop.f32.mrb[67].mxu0 }
 0x519   : > { %21499 = vst [vmem:[%s27955_s8 + $0x40] sm:$0xff] %v21175_v25   ;;  %v19456_v49 = vld [vmem:[%s25062_s4 + $0x4b4] sm:$0xf]  ;;  %v7136_v32 = vrot.slane %v7134_v4, 4  ;;  %v7142_v36 = vrot.slane %v7140_v47, 5  ;;  %v15966_v17 = vor.u32 %v15965_v61, %v15961_v39  ;;  %29247 = vst [vmem:[#allocation63_spill] sm:$0xff] %v28336_v62 }
 0x51a   : > { %v7128_v60 = vrot.slane %v7127_v42, 4  ;;  %v28338_v24 = vpop.f32.mrb[63].mxu1  ;;  %v15957_v58 = vrot.slane %v15956_v13, 4  ;;  %v15971_v11 = vrot.slane %v15969_v44, 5  ;;  %v15975_v6 = vrot.slane %v15973_v43, 4  ;;  %v28340_v63 = vpop.f32.mrb[68].mxu0 }
 0x51b   : > { %29248 = vst [vmem:[#allocation64_spill] sm:$0xff] %v28338_v24  ;;  %v15979_v25 = vshll.u32 %v20677_v20, 16  ;;  %29249 = vst [vmem:[#allocation65_spill] sm:$0xff] %v28340_v63  ;;  %v28342_v48 = vpop.f32.mrb[64].mxu1  ;;  %v7137_v54 = vor.u32 %v7136_v32, %v7132_v59  ;;  %v15967_v45 = vrot.slane %v15966_v17, 4  ;;  %v7145_v4 = vshrl.u32 %v19456_v49, 16 }
 0x51c   : > { %29250 = vst [vmem:[#allocation66_spill] sm:$0xff] %v28342_v48  ;;  %v7133_v31 = vsel %vm25095_vm4, %v7128_v60, %v7132_v59  ;;  %v19457_v42 = vld [vmem:[%s25062_s4 + $0x4b8] sm:$0xf]  ;;  %v28347_v47 = vpop.f32.mrb[69].mxu0  ;;  %v28349_v61 = vpop.f32.mrb[65].mxu1  ;;  %v15962_v13 = vsel %vm25095_vm4, %v15957_v58, %v15961_v39  ;;  %v15976_v44 = vor.u32 %v15975_v6, %v15971_v11  ;;  %v7148_v63 = vshll.u32 %v19456_v49, 16 }
 0x51d   : > { %29251 = vst [vmem:[#allocation67_spill] sm:$0xff] %v28347_v47  ;;  %29252 = vst [vmem:[#allocation68_spill] sm:$0xff] %v28349_v61  ;;  %v15981_v20 = vrot.slane %v15979_v25, 5  ;;  %v28354_v43 = vld [vmem:[%s25062_s4 + $0x4bc] sm:$0xf]  ;;  %v28356_v62 = vpop.f32.mrb[70].mxu0  ;;  %v20758_v60 = vcombine.low %v15952_v46, %v15962_v13  ;;  %v15972_v32 = vsel %vm25095_vm4, %v15967_v45, %v15971_v11 }
 0x51e   : > { %29253 = vst [vmem:[#allocation69_spill] sm:$0xff] %v28356_v62  ;;  %v28358_v48 = vpop.f32.mrb[66].mxu1  ;;  %v7138_v17 = vrot.slane %v7137_v54, 4  ;;  %v7147_v59 = vrot.slane %v7145_v4, 4  ;;  %v15977_v47 = vrot.slane %v15976_v44, 4  ;;  %v7150_v61 = vrot.slane %v7148_v63, 5 }
 0x51f   : > { %29254 = vst [vmem:[#allocation70_spill] sm:$0xff] %v28358_v48  ;;  %v7154_v24 = vshll.u32 %v19457_v42, 16  ;;  %v7158_v39 = vshrl.u32 %v19457_v42, 16  ;;  %v28362_v58 = vpop.f32.mrb[71].mxu0  ;;  %v28364_v6 = vpop.f32.mrb[67].mxu1  ;;  %23299 = vmatprep.mubr.msk.bf16.mxu0 %vm2122_vm1, %v20758_v60  ;;  %v7164_v46 = vshll.u32 %v28354_v43, 16 }
 0x520   : > { %29255 = vst [vmem:[#allocation71_spill] sm:$0xff] %v28362_v58  ;;  %29256 = vst [vmem:[#allocation72_spill] sm:$0xff] %v28364_v6  ;;  %v7143_v49 = vsel %vm25095_vm4, %v7138_v17, %v7142_v36  ;;  %v29257_v11 = vld [vmem:[#allocation15_spill] sm:$0xff]  ;;  %v29258_v54 = vld [vmem:[#allocation8_spill] sm:$0xff]  ;;  %v15982_v63 = vsel %vm25095_vm4, %v15977_v47, %v15981_v20  ;;  %v7151_v42 = vor.u32 %v7150_v61, %v7147_v59  ;;  %v28376_v58 = vpop.f32.mrb[72].mxu0  ;;  %v28378_v60 = vpop.f32.mrb[68].mxu1 }
 0x521   : > { %v23335_v45 = vadd.f32 %v29258_v54, %v29257_v11  ;;  %v19541_v4 = vcombine.low %v7133_v31, %v7143_v49  ;;  %v7156_v13 = vrot.slane %v7154_v24, 5  ;;  %v20678_v44 = vld [vmem:[%s25062_s4 + $0x524] sm:$0xf]  ;;  %29259 = vst [vmem:[#allocation15_spill] sm:$0xff] %v28376_v58  ;;  %29260 = vst [vmem:[#allocation8_spill] sm:$0xff] %v28378_v60  ;;  %v20759_v62 = vcombine.low %v15972_v32, %v15982_v63  ;;  %v28388_v49 = vpop.f32.mrb[73].mxu0 }
 0x522   : > { %v7160_v36 = vrot.slane %v7158_v39, 4  ;;  %v28380_v17 = vrot.slane %v7164_v46, 5  ;;  %v28385_v25 = vld [vmem:[%s29172_s2] ss:$0 sm:$0xff]  ;;  %29261 = vst [vmem:[#allocation73_spill] sm:$0xff] %v28388_v49  ;;  %v28390_v47 = vpop.f32.mrb[69].mxu1 }
 0x523   : > { %v17336_v31 = vadd.f32 %v28385_v25, %v23335_v45  ;;  %29262 = vst [vmem:[#allocation74_spill] sm:$0xff] %v28390_v47  ;;  %22711 = vmatprep.mubr.msk.bf16.mxu1 %vm2122_vm1, %v19541_v4  ;;  %v7152_v24 = vrot.slane %v7151_v42, 4  ;;  %v29263_v61 = vld [vmem:[#allocation17_spill] sm:$0xff]  ;;  %v29265_v59 = vld [vmem:[#allocation19_spill] sm:$0xff]  ;;  %v29266_v39 = vld [vmem:[#allocation10_spill] sm:$0xff]  ;;  %v28399_v58 = vpop.f32.mrb[74].mxu0  ;;  %23300 = vmatmul.mubr.msk.bf16.gmra.mrb[128].mxu0 %vm2122_vm1, %v20759_v62 }
 0x524   : > { %v29264_v20 = vld [vmem:[#allocation9_spill] sm:$0xff]  ;;  %v23337_v46 = vadd.f32 %v29266_v39, %v29265_v59  ;;  %v29268_v54 = vld [vmem:[#allocation12_spill] sm:$0xff]  ;;  %29269 = vst [vmem:[#allocation17_spill] sm:$0xff] %v28399_v58  ;;  %v28401_v45 = vpop.f32.mrb[70].mxu1  ;;  %v7161_v49 = vor.u32 %v7160_v36, %v7156_v13  ;;  %v15984_v42 = vshrl.u32 %v20678_v44, 16  ;;  %v15987_v60 = vshll.u32 %v20678_v44, 16 }
 0x525   : > { %v23336_v32 = vadd.f32 %v29264_v20, %v29263_v61  ;;  %v29267_v11 = vld [vmem:[#allocation21_spill] sm:$0xff]  ;;  %29270 = vst [vmem:[#allocation9_spill] sm:$0xff] %v28401_v45  ;;  %vm17480_vm11 = vcmp.ge.f32.partialorder %v17336_v31, 0.0  ;;  %v17624_v4 = vmul.f32 0.2, %v17336_v31  ;;  %v7157_v61 = vsel %vm25095_vm4, %v7152_v24, %v7156_v13  ;;  %v28412_v58 = vpop.f32.mrb[71].mxu1 }
 0x526   : > { %v23338_v63 = vadd.f32 %v29268_v54, %v29267_v11  ;;  %v17337_v59 = vadd.f32 %v28385_v25, %v23337_v46  ;;  %v20679_v11 = vld [vmem:[%s25062_s4 + $0x528] sm:$0xf]  ;;  %v28410_v54 = vpop.f32.mrb[75].mxu0  ;;  %29272 = vst [vmem:[#allocation10_spill] sm:$0xff] %v28412_v58  ;;  %v7162_v45 = vrot.slane %v7161_v49, 4  ;;  %v15986_v47 = vrot.slane %v15984_v42, 4 }
 0x527   : > { %v17334_v20 = vadd.f32 %v28385_v25, %v23336_v32  ;;  %29271 = vst [vmem:[#allocation19_spill] sm:$0xff] %v28410_v54  ;;  %v17768_v62 = vsel %vm17480_vm11, %v17336_v31, %v17624_v4  ;;  %v20680_v36 = vld [vmem:[%s25062_s4 + $0x52c] sm:$0xf]  ;;  %v28415_v6 = vpop.f32.mrb[76].mxu0  ;;  %v28417_v13 = vpop.f32.mrb[72].mxu1  ;;  %v15989_v31 = vrot.slane %v15987_v60, 5 }
 0x528   : > { %v17335_v39 = vadd.f32 %v28385_v25, %v23338_v63  ;;  %29273 = vst [vmem:[#allocation21_spill] sm:$0xff] %v28415_v6  ;;  %29274 = vst [vmem:[#allocation12_spill] sm:$0xff] %v28417_v13  ;;  %vm17481_vm13 = vcmp.ge.f32.partialorder %v17337_v59, 0.0  ;;  %v17625_v32 = vmul.f32 0.2, %v17337_v59  ;;  %v7167_v46 = vsel %vm25095_vm4, %v7162_v45, %v28380_v17  ;;  %v28422_v63 = vpop.f32.mrb[77].mxu0 }
 0x529   : > { %vm17478_vm12 = vcmp.ge.f32.partialorder %v17334_v20, 0.0  ;;  %v17622_v24 = vmul.f32 0.2, %v17334_v20  ;;  %29275 = vst [vmem:[#allocation75_spill] sm:$0xff] %v28422_v63  ;;  %v28424_v44 = vpop.f32.mrb[73].mxu1  ;;  %v19542_v4 = vcombine.low %v7157_v61, %v7167_v46  ;;  %v15993_v54 = vshll.u32 %v20679_v11, 16 }
 0x52a   : > { %vm17479_vm14 = vcmp.ge.f32.partialorder %v17335_v39, 0.0  ;;  %v17623_v49 = vmul.f32 0.2, %v17335_v39  ;;  %29276 = vst [vmem:[#allocation76_spill] sm:$0xff] %v28424_v44  ;;  %v17769_v6 = vsel %vm17481_vm13, %v17337_v59, %v17625_v32  ;;  %v19459_v13 = vld [vmem:[%s25062_s4 + $0x4c0] sm:$0xf]  ;;  %v15990_v26 = vor.u32 %v15989_v31, %v15986_v47 }
 0x52b   : > { %v17766_v42 = vsel %vm17478_vm12, %v17334_v20, %v17622_v24  ;;  %v28427_v58 = vpop.f32.mrb[78].mxu0  ;;  %v28429_v48 = vpop.f32.mrb[74].mxu1  ;;  %v21190_v45 = vpack.c.bf16 %v17769_v6, %v17768_v62  ;;  %v15997_v35 = vshrl.u32 %v20679_v11, 16  ;;  %v19460_v60 = vld [vmem:[%s25062_s4 + $0x4c4] sm:$0xf]  ;;  %22712 = vmatmul.mubr.msk.bf16.gmra.mrb[124].mxu1 %vm2122_vm1, %v19542_v4  ;;  %v15995_v20 = vrot.slane %v15993_v54, 5 }
 0x52c   : > { %29277 = vst [vmem:[#allocation77_spill] sm:$0xff] %v28427_v58  ;;  %29278 = vst [vmem:[#allocation78_spill] sm:$0xff] %v28429_v48  ;;  %v17767_v27 = vsel %vm17479_vm14, %v17335_v39, %v17623_v49  ;;  %v20681_v8 = vld [vmem:[%s25062_s4 + $0x530] sm:$0xf]  ;;  %v16003_v59 = vshll.u32 %v20680_v36, 16  ;;  %v16007_v24 = vshrl.u32 %v20680_v36, 16 }
 0x52d   : > { %v21185_v61 = vpack.c.bf16 %v17767_v27, %v17766_v42  ;;  %v28435_v32 = vld [vmem:[%s25062_s4 + $0x534] sm:$0xf]  ;;  %v28437_v46 = vpop.f32.mrb[79].mxu0  ;;  %v28439_v58 = vpop.f32.mrb[75].mxu1  ;;  %21502 = vst [vmem:[%s27955_s8 + $0x58] sm:$0xff] %v21190_v45   ;;  %v15991_v6 = vrot.slane %v15990_v26, 4 }
 0x52e   : > { %29279 = vst [vmem:[#allocation79_spill] sm:$0xff] %v28437_v46  ;;  %29280 = vst [vmem:[#allocation80_spill] sm:$0xff] %v28439_v58  ;;  %v15999_v39 = vrot.slane %v15997_v35, 4  ;;  %v29281_v47 = vshrl.u32 %v28354_v43, 16  ;;  %v7174_v62 = vshll.u32 %v19459_v13, 16  ;;  %v28444_v49 = vpop.f32.mrb[80].mxu0 }
 0x52f   : > { %29282 = vst [vmem:[#allocation81_spill] sm:$0xff] %v28444_v49  ;;  %v28446_v31 = vpop.f32.mrb[76].mxu1  ;;  %21501 = vst [vmem:[%s27955_s8 + $0x50] sm:$0xff] %v21185_v61   ;;  %v16005_v27 = vrot.slane %v16003_v59, 5  ;;  %v7178_v54 = vshrl.u32 %v19459_v13, 16  ;;  %v7184_v36 = vshll.u32 %v19460_v60, 16  ;;  %v15996_v35 = vsel %vm25095_vm4, %v15991_v6, %v15995_v20 }
 0x530   : > { %v7170_v11 = vrot.slane %v29281_v47, 4  ;;  %29283 = vst [vmem:[#allocation82_spill] sm:$0xff] %v28446_v31  ;;  %v7188_v4 = vshrl.u32 %v19460_v60, 16  ;;  %v28449_v42 = vpop.f32.mrb[81].mxu0  ;;  %v28451_v46 = vpop.f32.mrb[77].mxu1  ;;  %v16000_v26 = vor.u32 %v15999_v39, %v15995_v20  ;;  %v7176_v45 = vrot.slane %v7174_v62, 5 }
 0x531   : > { %29284 = vst [vmem:[#allocation83_spill] sm:$0xff] %v28449_v42  ;;  %29285 = vst [vmem:[#allocation84_spill] sm:$0xff] %v28451_v46  ;;  %v28456_v47 = vpop.f32.mrb[82].mxu0  ;;  %v28458_v49 = vpop.f32.mrb[78].mxu1  ;;  %v7180_v13 = vrot.slane %v7178_v54, 4  ;;  %v7186_v61 = vrot.slane %v7184_v36, 5 }
 0x532   : > { %v7171_v43 = vor.u32 %v7170_v11, %v28380_v17  ;;  %29286 = vst [vmem:[#allocation85_spill] sm:$0xff] %v28456_v47  ;;  %29287 = vst [vmem:[#allocation86_spill] sm:$0xff] %v28458_v49  ;;  %v16009_v60 = vrot.slane %v16007_v24, 4  ;;  %v16013_v59 = vshll.u32 %v20681_v8, 16  ;;  %v28460_v42 = vpop.f32.mrb[83].mxu0  ;;  %v28462_v63 = vpop.f32.mrb[79].mxu1 }
 0x533   : > { %29288 = vst [vmem:[#allocation87_spill] sm:$0xff] %v28460_v42  ;;  %29289 = vst [vmem:[#allocation88_spill] sm:$0xff] %v28462_v63  ;;  %v16001_v46 = vrot.slane %v16000_v26, 4  ;;  %v16017_v20 = vshrl.u32 %v20681_v8, 16  ;;  %v16023_v17 = vshll.u32 %v28435_v32, 16  ;;  %v7181_v39 = vor.u32 %v7180_v13, %v7176_v45  ;;  %v28474_v26 = vpop.f32.mrb[84].mxu0 }
 0x534   : > { %v7172_v6 = vrot.slane %v7171_v43, 4  ;;  %v16010_v11 = vor.u32 %v16009_v60, %v16005_v27  ;;  %v16015_v62 = vrot.slane %v16013_v59, 5  ;;  %v16027_v47 = vshrl.u32 %v28435_v32, 16  ;;  %v19461_v49 = vld [vmem:[%s25062_s4 + $0x4c8] sm:$0xf]  ;;  %29290 = vst [vmem:[#allocation89_spill] sm:$0xff] %v28474_v26 }
 0x535   : > { %v19462_v31 = vld [vmem:[%s25062_s4 + $0x4cc] sm:$0x1]  ;;  %v16006_v24 = vsel %vm25095_vm4, %v16001_v46, %v16005_v27  ;;  %v16019_v36 = vrot.slane %v16017_v20, 4  ;;  %v28472_v42 = vrot.slane %v16023_v17, 5  ;;  %v7182_v43 = vrot.slane %v7181_v39, 4  ;;  %v28476_v59 = vpop.f32.mrb[85].mxu0 }
 0x536   : > { %v7177_v54 = vsel %vm25095_vm4, %v7172_v6, %v7176_v45  ;;  %v20760_v8 = vcombine.low %v15996_v35, %v16006_v24  ;;  %v16011_v13 = vrot.slane %v16010_v11, 4  ;;  %v7190_v60 = vrot.slane %v7188_v4, 4  ;;  %29291 = vst [vmem:[#allocation90_spill] sm:$0xff] %v28476_v59  ;;  %v28478_v44 = vpop.f32.mrb[86].mxu0  ;;  %v29293_v45 = vld [vmem:[#allocation14_spill] sm:$0xff]  ;;  %v28487_v6 = vpop.f32.mrb[80].mxu1 }
 0x537   : > { %v16020_v32 = vor.u32 %v16019_v36, %v16015_v62  ;;  %v7194_v63 = vshll.u32 %v19461_v49, 16  ;;  %v7198_v58 = vshrl.u32 %v19461_v49, 16  ;;  %v7204_v48 = vshll.u32 %v19462_v31, 16  ;;  %29292 = vst [vmem:[#allocation91_spill] sm:$0xff] %v28478_v44  ;;  %v28489_v39 = vpop.f32.mrb[81].mxu1  ;;  %v28491_v11 = vpop.f32.mrb[87].mxu0 }
 0x538   : > { %23303 = vmatprep.mubr.msk.bf16.mxu0 %vm2122_vm1, %v20760_v8  ;;  %v7187_v46 = vsel %vm25095_vm4, %v7182_v43, %v7186_v61  ;;  %v16016_v27 = vsel %vm25095_vm4, %v16011_v13, %v16015_v62  ;;  %v7191_v35 = vor.u32 %v7190_v60, %v7186_v61  ;;  %v23339_v4 = vadd.f32 %v29293_v45, %v27941_v14  ;;  %v29295_v61 = vld [vmem:[#allocation16_spill] sm:$0xff]  ;;  %v28496_v43 = vpop.f32.mrb[82].mxu1  ;;  %v20686_v44 = vld [vmem:[%s25062_s4 + $0x560] sm:$0xf] }
 0x539   : > { %v19543_v20 = vcombine.low %v7177_v54, %v7187_v46  ;;  %v16021_v49 = vrot.slane %v16020_v32, 4  ;;  %v7196_v31 = vrot.slane %v7194_v63, 5  ;;  %v7200_v17 = vrot.slane %v7198_v58, 4  ;;  %29294 = vst [vmem:[#allocation14_spill] sm:$0xff] %v28491_v11  ;;  %v29296_v63 = vld [vmem:[#allocation18_spill] sm:$0xff]  ;;  %v28507_v32 = vpop.f32.mrb[83].mxu1 }
 0x53a   : > { %v7192_v24 = vrot.slane %v7191_v35, 4  ;;  %v7206_v36 = vrot.slane %v7204_v48, 5  ;;  %v17340_v8 = vadd.f32 %v28385_v25, %v23339_v4  ;;  %v23340_v62 = vadd.f32 %v29295_v61, %v27948_v18  ;;  %v29297_v48 = vld [vmem:[#allocation20_spill] sm:$0xff]  ;;  %v29311_v33 = vld [vmem:[#allocation25_spill] sm:$0xff] }
 0x53b   : > { %22715 = vmatprep.mubr.msk.bf16.mxu1 %vm2122_vm1, %v19543_v20  ;;  %v16026_v14 = vsel %vm25095_vm4, %v16021_v49, %v28472_v42  ;;  %v7201_v58 = vor.u32 %v7200_v17, %v7196_v31  ;;  %v23341_v54 = vadd.f32 %v29296_v63, %v27952_v40  ;;  %v23342_v13 = vadd.f32 %v29297_v48, %v27960_v22  ;;  %v20683_v60 = vld [vmem:[%s25062_s4 + $0x538] sm:$0xf]  ;;  %v20684_v49 = vld [vmem:[%s25062_s4 + $0x53c] sm:$0x1] }
 0x53c   : > { %v20761_v18 = vcombine.low %v16016_v27, %v16026_v14  ;;  %v7197_v46 = vsel %vm25095_vm4, %v7192_v24, %v7196_v31  ;;  %vm17484_vm15 = vcmp.ge.f32.partialorder %v17340_v8, 0.0  ;;  %v17628_v35 = vmul.f32 0.2, %v17340_v8 }
 0x53d   : > { %v7202_v45 = vrot.slane %v7201_v58, 4  ;;  %v17338_v4 = vadd.f32 %v28385_v25, %v23340_v62  ;;  %v17341_v20 = vadd.f32 %v28385_v25, %v23341_v54  ;;  %v17339_v40 = vadd.f32 %v28385_v25, %v23342_v13  ;;  %v19463_v62 = vld [vmem:[%s25062_s4 + $0x4ec] sm:$0xf]  ;;  %v19464_v13 = vld [vmem:[%s25062_s4 + $0x4f0] sm:$0xf]  ;;  %v28525_v59 = vpop.f32.mrb[88].mxu0 }
 0x53e   : > { %23304 = vmatmul.mubr.msk.bf16.gmra.mrb[132].mxu0 %vm2122_vm1, %v20761_v18  ;;  %v17772_v22 = vsel %vm17484_vm15, %v17340_v8, %v17628_v35  ;;  %v16029_v17 = vrot.slane %v16027_v47, 4  ;;  %v16033_v27 = vshll.u32 %v20683_v60, 16  ;;  %v16037_v61 = vshrl.u32 %v20683_v60, 16  ;;  %v19465_v35 = vld [vmem:[%s25062_s4 + $0x4f4] sm:$0xf]  ;;  %29298 = vst [vmem:[#allocation16_spill] sm:$0xff] %v28525_v59 }
 0x53f   : > { %v7207_v31 = vsel %vm25095_vm4, %v7202_v45, %v7206_v36  ;;  %vm17482_vm0 = vcmp.ge.f32.partialorder %v17338_v4, 0.0  ;;  %v17626_v24 = vmul.f32 0.2, %v17338_v4  ;;  %vm17485_vm2 = vcmp.ge.f32.partialorder %v17341_v20, 0.0  ;;  %v28544_v59 = vld [vmem:[%s25062_s4 + $0x4fc] sm:$0xf] }
 0x540   : > { %v19544_v14 = vcombine.low %v7197_v46, %v7207_v31  ;;  %v17629_v58 = vmul.f32 0.2, %v17341_v20  ;;  %vm17483_vm3 = vcmp.ge.f32.partialorder %v17339_v40, 0.0  ;;  %v17627_v63 = vmul.f32 0.2, %v17339_v40 }
 0x541   : > { %v17770_v54 = vsel %vm17482_vm0, %v17338_v4, %v17626_v24  ;;  %v16030_v47 = vor.u32 %v16029_v17, %v28472_v42  ;;  %v16035_v8 = vrot.slane %v16033_v27, 5  ;;  %v16039_v48 = vrot.slane %v16037_v61, 4  ;;  %v20685_v24 = vld [vmem:[%s25062_s4 + $0x55c] sm:$0xf] }
 0x542   : > { %22716 = vmatmul.mubr.msk.bf16.gmra.mrb[128].mxu1 %vm2122_vm1, %v19544_v14  ;;  %v17773_v36 = vsel %vm17485_vm2, %v17341_v20, %v17629_v58  ;;  %v17771_v60 = vsel %vm17483_vm3, %v17339_v40, %v17627_v63  ;;  %v16043_v18 = vshll.u32 %v20684_v49, 16  ;;  %v7209_v46 = vshrl.u32 %v19463_v62, 16  ;;  %v20687_v14 = vld [vmem:[%s25062_s4 + $0x564] sm:$0xf]  ;;  %v28532_v58 = vpop.f32.mrb[89].mxu0 }
 0x543   : > { %v21200_v45 = vpack.c.bf16 %v17773_v36, %v17772_v22  ;;  %v21195_v31 = vpack.c.bf16 %v17771_v60, %v17770_v54  ;;  %v16031_v11 = vrot.slane %v16030_v47, 4  ;;  %v16040_v4 = vor.u32 %v16039_v48, %v16035_v8  ;;  %29299 = vst [vmem:[#allocation18_spill] sm:$0xff] %v28532_v58 }
 0x544   : > { %v16045_v42 = vrot.slane %v16043_v18, 5  ;;  %v7211_v17 = vrot.slane %v7209_v46, 4  ;;  %v7212_v27 = vshll.u32 %v19463_v62, 16  ;;  %v7218_v61 = vshll.u32 %v19464_v13, 16  ;;  %v28534_v62 = vpop.f32.mrb[90].mxu0 }
 0x545   : > { %21504 = vst [vmem:[%s27955_s8 + $0x68] sm:$0xff] %v21200_v45   ;;  %21503 = vst [vmem:[%s27955_s8 + $0x60] sm:$0xff] %v21195_v31   ;;  %v16036_v20 = vsel %vm25095_vm4, %v16031_v11, %v16035_v8  ;;  %v16041_v40 = vrot.slane %v16040_v4, 4  ;;  %v7222_v49 = vshrl.u32 %v19464_v13, 16  ;;  %v7228_v22 = vshll.u32 %v19465_v35, 16  ;;  %v28538_v8 = vpop.f32.mrb[91].mxu0 }
 0x546   : > { %v7214_v63 = vrot.slane %v7212_v27, 5  ;;  %v7220_v54 = vrot.slane %v7218_v61, 5  ;;  %v7232_v47 = vshrl.u32 %v19465_v35, 16  ;;  %v16048_v48 = vshrl.u32 %v20685_v24, 16  ;;  %29300 = vst [vmem:[#allocation20_spill] sm:$0xff] %v28534_v62  ;;  %29301 = vst [vmem:[#allocation92_spill] sm:$0xff] %v28538_v8 }
 0x547   : > { %v16046_v36 = vsel %vm25095_vm4, %v16041_v40, %v16045_v42  ;;  %v7224_v60 = vrot.slane %v7222_v49, 4  ;;  %v7230_v18 = vrot.slane %v7228_v22, 5  ;;  %v16051_v11 = vshll.u32 %v20685_v24, 16  ;;  %v19466_v4 = vld [vmem:[%s25062_s4 + $0x4f8] sm:$0xf]  ;;  %v28541_v27 = vpop.f32.mrb[84].mxu1 }
 0x548   : > { %v20762_v13 = vcombine.low %v16036_v20, %v16046_v36  ;;  %v7215_v46 = vor.u32 %v7214_v63, %v7211_v17  ;;  %v16050_v45 = vrot.slane %v16048_v48, 4  ;;  %v16057_v31 = vshll.u32 %v20686_v44, 16  ;;  %v28546_v26 = vpop.f32.mrb[85].mxu1 }
 0x549   : > { %v7225_v35 = vor.u32 %v7224_v60, %v7220_v54  ;;  %v16053_v61 = vrot.slane %v16051_v11, 5  ;;  %v16061_v58 = vshrl.u32 %v20686_v44, 16  ;;  %v16067_v62 = vshll.u32 %v20687_v14, 16  ;;  %v28549_v17 = vpop.f32.mrb[86].mxu1 }
 0x54a   : > { %23307 = vmatprep.mubr.msk.bf16.mxu0 %vm2122_vm1, %v20762_v13  ;;  %v7216_v24 = vrot.slane %v7215_v46, 4  ;;  %v16059_v42 = vrot.slane %v16057_v31, 5  ;;  %v16071_v40 = vshrl.u32 %v20687_v14, 16  ;;  %v7234_v20 = vrot.slane %v7232_v47, 4  ;;  %v28551_v36 = vpop.f32.mrb[87].mxu1 }
 0x54b   : > { %v7226_v49 = vrot.slane %v7225_v35, 4  ;;  %v16054_v22 = vor.u32 %v16053_v61, %v16050_v45  ;;  %v16063_v63 = vrot.slane %v16061_v58, 4  ;;  %v16069_v48 = vrot.slane %v16067_v62, 5 }
 0x54c   : > { %v7221_v44 = vsel %vm25095_vm4, %v7216_v24, %v7220_v54  ;;  %v7235_v60 = vor.u32 %v7234_v20, %v7230_v18  ;;  %v7238_v11 = vshll.u32 %v19466_v4, 16  ;;  %v7242_v8 = vshrl.u32 %v19466_v4, 16 }
 0x54d   : > { %v7231_v13 = vsel %vm25095_vm4, %v7226_v49, %v7230_v18  ;;  %v16055_v46 = vrot.slane %v16054_v22, 4  ;;  %v16064_v14 = vor.u32 %v16063_v63, %v16059_v42  ;;  %v7248_v47 = vshll.u32 %v28544_v59, 16  ;;  %v20688_v22 = vld [vmem:[%s25062_s4 + $0x568] sm:$0xf]  ;;  %v29303_v63 = vld [vmem:[#allocation23_spill] sm:$0xff] }
 0x54e   : > { %v19545_v31 = vcombine.low %v7221_v44, %v7231_v13  ;;  %v7236_v45 = vrot.slane %v7235_v60, 4  ;;  %v7240_v58 = vrot.slane %v7238_v11, 5  ;;  %v7244_v62 = vrot.slane %v7242_v8, 4  ;;  %v29302_v8 = vld [vmem:[#allocation22_spill] sm:$0xff]  ;;  %v29304_v44 = vld [vmem:[#allocation24_spill] sm:$0xff] }
 0x54f   : > { %v16060_v35 = vsel %vm25095_vm4, %v16055_v46, %v16059_v42  ;;  %v16065_v61 = vrot.slane %v16064_v14, 4  ;;  %v28560_v54 = vrot.slane %v7248_v47, 5  ;;  %v7252_v4 = vshrl.u32 %v28544_v59, 16  ;;  %v20689_v47 = vld [vmem:[%s25062_s4 + $0x56c] sm:$0xf] }
 0x550   : > { %22719 = vmatprep.mubr.msk.bf16.mxu1 %vm2122_vm1, %v19545_v31  ;;  %v7241_v18 = vsel %vm25095_vm4, %v7236_v45, %v7240_v58  ;;  %v7245_v24 = vor.u32 %v7244_v62, %v7240_v58  ;;  %v23343_v20 = vadd.f32 %v27939_v10, %v28016_v19  ;;  %v23344_v49 = vadd.f32 %v29302_v8, %v28022_v5  ;;  %v28582_v58 = vpop.f32.mrb[92].mxu0 }
 0x551   : > { %v16070_v42 = vsel %vm25095_vm4, %v16065_v61, %v16069_v48  ;;  %v23345_v59 = vadd.f32 %v29303_v63, %v28027_v12  ;;  %v23346_v60 = vadd.f32 %v29304_v44, %v28032_v23  ;;  %v16073_v11 = vrot.slane %v16071_v40, 4  ;;  %29305 = vst [vmem:[#allocation22_spill] sm:$0xff] %v28582_v58  ;;  %v28588_v40 = vpop.f32.mrb[93].mxu0 }
 0x552   : > { %v20763_v13 = vcombine.low %v16060_v35, %v16070_v42  ;;  %v7246_v46 = vrot.slane %v7245_v24, 4  ;;  %v17344_v14 = vadd.f32 %v28385_v25, %v23343_v20  ;;  %v17342_v10 = vadd.f32 %v28385_v25, %v23344_v49  ;;  %29306 = vst [vmem:[#allocation23_spill] sm:$0xff] %v28588_v40  ;;  %v28591_v24 = vpop.f32.mrb[94].mxu0 }
 0x553   : > { %v17345_v19 = vadd.f32 %v28385_v25, %v23345_v59  ;;  %v17343_v5 = vadd.f32 %v28385_v25, %v23346_v60  ;;  %v16074_v31 = vor.u32 %v16073_v11, %v16069_v48  ;;  %v16077_v45 = vshll.u32 %v20688_v22, 16  ;;  %v19468_v48 = vld [vmem:[%s25062_s4 + $0x500] sm:$0xf]  ;;  %29307 = vst [vmem:[#allocation24_spill] sm:$0xff] %v28591_v24  ;;  %v28593_v42 = vpop.f32.mrb[95].mxu0  ;;  %v28597_v11 = vpop.f32.mrb[88].mxu1 }
 0x554   : > { %23308 = vmatmul.mubr.msk.bf16.gmra.mrb[136].mxu0 %vm2122_vm1, %v20763_v13  ;;  %v7251_v12 = vsel %vm25095_vm4, %v7246_v46, %v28560_v54  ;;  %vm17488_vm5 = vcmp.ge.f32.partialorder %v17344_v14, 0.0  ;;  %v17632_v23 = vmul.f32 0.2, %v17344_v14  ;;  %vm17486_vm6 = vcmp.ge.f32.partialorder %v17342_v10, 0.0  ;;  %29308 = vst [vmem:[#allocation93_spill] sm:$0xff] %v28593_v42 }
 0x555   : > { %v19546_v62 = vcombine.low %v7241_v18, %v7251_v12  ;;  %v17630_v35 = vmul.f32 0.2, %v17342_v10  ;;  %vm17489_vm7 = vcmp.ge.f32.partialorder %v17345_v19, 0.0  ;;  %v17633_v61 = vmul.f32 0.2, %v17345_v19 }
 0x556   : > { %v17776_v20 = vsel %vm17488_vm5, %v17344_v14, %v17632_v23  ;;  %vm17487_vm8 = vcmp.ge.f32.partialorder %v17343_v5, 0.0  ;;  %v17631_v8 = vmul.f32 0.2, %v17343_v5  ;;  %v16075_v49 = vrot.slane %v16074_v31, 4  ;;  %v19469_v60 = vld [vmem:[%s25062_s4 + $0x504] sm:$0x1] }
 0x557   : > { %22720 = vmatmul.mubr.msk.bf16.gmra.mrb[132].mxu1 %vm2122_vm1, %v19546_v62  ;;  %v17774_v63 = vsel %vm17486_vm6, %v17342_v10, %v17630_v35  ;;  %v17777_v59 = vsel %vm17489_vm7, %v17345_v19, %v17633_v61  ;;  %v16079_v18 = vrot.slane %v16077_v45, 5  ;;  %v16081_v44 = vshrl.u32 %v20688_v22, 16  ;;  %v20690_v23 = vld [vmem:[%s25062_s4 + $0x570] sm:$0xf]  ;;  %v28600_v31 = vpop.f32.mrb[89].mxu1 }
 0x558   : > { %v21210_v13 = vpack.c.bf16 %v17777_v59, %v17776_v20  ;;  %v17775_v46 = vsel %vm17487_vm8, %v17343_v5, %v17631_v8  ;;  %v16087_v14 = vshll.u32 %v20689_v47, 16  ;;  %v16091_v12 = vshrl.u32 %v20689_v47, 16  ;;  %v28604_v22 = vpop.f32.mrb[90].mxu1 }
 0x559   : > { %v21205_v42 = vpack.c.bf16 %v17775_v46, %v17774_v63  ;;  %v16080_v10 = vsel %vm25095_vm4, %v16075_v49, %v16079_v18  ;;  %v16083_v19 = vrot.slane %v16081_v44, 4  ;;  %v7254_v45 = vrot.slane %v7252_v4, 4  ;;  %v28607_v20 = vpop.f32.mrb[91].mxu1  ;;  %v20691_v63 = vld [vmem:[%s25062_s4 + $0x574] sm:$0x1] }
 0x55a   : > { %21506 = vst [vmem:[%s27955_s8 + $0x78] sm:$0xff] %v21210_v13   ;;  %v16089_v62 = vrot.slane %v16087_v14, 5  ;;  %v7258_v35 = vshll.u32 %v19468_v48, 16  ;;  %v7262_v5 = vshrl.u32 %v19468_v48, 16  ;;  %v7268_v61 = vshll.u32 %v19469_v60, 16  ;;  %29309 = vst [vmem:[#allocation94_spill] sm:$0xff] %v28607_v20 }
 0x55b   : > { %21505 = vst [vmem:[%s27955_s8 + $0x70] sm:$0xff] %v21205_v42   ;;  %v16084_v47 = vor.u32 %v16083_v19, %v16079_v18  ;;  %v7255_v8 = vor.u32 %v7254_v45, %v28560_v54  ;;  %v16093_v59 = vrot.slane %v16091_v12, 4  ;;  %v16097_v49 = vshll.u32 %v20690_v23, 16  ;;  %v19470_v46 = vld [vmem:[%s25062_s4 + $0x524] sm:$0xf] }
 0x55c   : > { %v7260_v44 = vrot.slane %v7258_v35, 5  ;;  %v7264_v4 = vrot.slane %v7262_v5, 4  ;;  %v7270_v24 = vrot.slane %v7268_v61, 5  ;;  %v16101_v13 = vshrl.u32 %v20690_v23, 16  ;;  %v19471_v18 = vld [vmem:[%s25062_s4 + $0x528] sm:$0xf] }
 0x55d   : > { %v16085_v14 = vrot.slane %v16084_v47, 4  ;;  %v7256_v40 = vrot.slane %v7255_v8, 4  ;;  %v16094_v48 = vor.u32 %v16093_v59, %v16089_v62  ;;  %v16099_v60 = vrot.slane %v16097_v49, 5  ;;  %v19472_v35 = vld [vmem:[%s25062_s4 + $0x52c] sm:$0xf] }
 0x55e   : > { %v7265_v58 = vor.u32 %v7264_v4, %v7260_v44  ;;  %v16103_v20 = vrot.slane %v16101_v13, 4  ;;  %v16107_v42 = vshll.u32 %v20691_v63, 16  ;;  %v7273_v19 = vshrl.u32 %v19470_v46, 16 }
 0x55f   : > { %v16090_v54 = vsel %vm25095_vm4, %v16085_v14, %v16089_v62  ;;  %v7261_v12 = vsel %vm25095_vm4, %v7256_v40, %v7260_v44  ;;  %v16095_v45 = vrot.slane %v16094_v48, 4  ;;  %v7276_v5 = vshll.u32 %v19470_v46, 16  ;;  %v28624_v14 = vpop.f32.mrb[96].mxu0 }
 0x560   : > { %v20764_v61 = vcombine.low %v16080_v10, %v16090_v54  ;;  %v7266_v23 = vrot.slane %v7265_v58, 4  ;;  %v16104_v47 = vor.u32 %v16103_v20, %v16099_v60  ;;  %v16109_v8 = vrot.slane %v16107_v42, 5  ;;  %v19473_v54 = vld [vmem:[%s25062_s4 + $0x530] sm:$0xf] }
 0x561   : > { %v16100_v59 = vsel %vm25095_vm4, %v16095_v45, %v16099_v60  ;;  %v7275_v49 = vrot.slane %v7273_v19, 4  ;;  %v7278_v63 = vrot.slane %v7276_v5, 5  ;;  %v7282_v4 = vshll.u32 %v19471_v18, 16  ;;  %v28631_v45 = vpop.f32.mrb[97].mxu0 }
 0x562   : > { %23311 = vmatprep.mubr.msk.bf16.mxu0 %vm2122_vm1, %v20764_v61  ;;  %v7271_v62 = vsel %vm25095_vm4, %v7266_v23, %v7270_v24  ;;  %v16105_v40 = vrot.slane %v16104_v47, 4  ;;  %v7286_v44 = vshrl.u32 %v19471_v18, 16  ;;  %v7292_v13 = vshll.u32 %v19472_v35, 16  ;;  %v28638_v5 = vpop.f32.mrb[98].mxu0 }
 0x563   : > { %v19547_v46 = vcombine.low %v7261_v12, %v7271_v62  ;;  %v7279_v10 = vor.u32 %v7278_v63, %v7275_v49  ;;  %v7284_v58 = vrot.slane %v7282_v4, 5  ;;  %v7296_v20 = vshrl.u32 %v19472_v35, 16  ;;  %v28643_v47 = vpop.f32.mrb[99].mxu0 }
 0x564   : > { %v16110_v48 = vsel %vm25095_vm4, %v16105_v40, %v16109_v8  ;;  %v7288_v60 = vrot.slane %v7286_v44, 4  ;;  %v7294_v42 = vrot.slane %v7292_v13, 5  ;;  %v23347_v19 = vadd.f32 %v28014_v1, %v28084_v9  ;;  %v19474_v13 = vld [vmem:[%s25062_s4 + $0x534] sm:$0xf] }
 0x565   : > { %22723 = vmatprep.mubr.msk.bf16.mxu1 %vm2122_vm1, %v19547_v46  ;;  %v20765_v24 = vcombine.low %v16100_v59, %v16110_v48  ;;  %v7280_v18 = vrot.slane %v7279_v10, 4  ;;  %v23348_v12 = vadd.f32 %v28020_v55, %v28091_v15  ;;  %v23349_v35 = vadd.f32 %v28025_v7, %v28095_v28  ;;  %v28650_v28 = vpop.f32.mrb[92].mxu1 }
 0x566   : > { %v7289_v61 = vor.u32 %v7288_v60, %v7284_v58  ;;  %v17348_v23 = vadd.f32 %v28385_v25, %v23347_v19  ;;  %v23350_v1 = vadd.f32 %v28030_v16, %v28101_v52  ;;  %v7298_v9 = vrot.slane %v7296_v20, 4  ;;  %v28653_v52 = vpop.f32.mrb[93].mxu1  ;;  %v19475_v60 = vld [vmem:[%s25062_s4 + $0x538] sm:$0xf]  ;;  %v19476_v19 = vld [vmem:[%s25062_s4 + $0x53c] sm:$0x1] }
 0x567   : > { %23312 = vmatmul.mubr.msk.bf16.gmra.mrb[140].mxu0 %vm2122_vm1, %v20765_v24  ;;  %v7285_v8 = vsel %vm25095_vm4, %v7280_v18, %v7284_v58  ;;  %v17346_v55 = vadd.f32 %v28385_v25, %v23348_v12  ;;  %v17349_v7 = vadd.f32 %v28385_v25, %v23349_v35  ;;  %v7302_v15 = vshll.u32 %v19473_v54, 16  ;;  %v28658_v46 = vpop.f32.mrb[94].mxu1  ;;  %s24946_s4 = smov [#allocation2]  }
 0x568   : > { %v7290_v59 = vrot.slane %v7289_v61, 4  ;;  %vm17492_vm9 = vcmp.ge.f32.partialorder %v17348_v23, 0.0  ;;  %v17636_v49 = vmul.f32 0.2, %v17348_v23  ;;  %v17347_v16 = vadd.f32 %v28385_v25, %v23350_v1  ;;  %v28662_v24 = vpop.f32.mrb[95].mxu1  ;;  %s24854_s11 = sshll.u32 %s24946_s4, 4  ;;  %s24855_s11 = int_to_ptr.vmem [resolvable:$false] %s24854_s11 }
 0x569   : > { %vm17490_vm10 = vcmp.ge.f32.partialorder %v17346_v55, 0.0  ;;  %v17634_v63 = vmul.f32 0.2, %v17346_v55  ;;  %vm17493_vm11 = vcmp.ge.f32.partialorder %v17349_v7, 0.0  ;;  %v17637_v4 = vmul.f32 0.2, %v17349_v7  ;;  %p24857_p2 = scmp.lt.s32.totalorder %s29107_s15, %s24855_s11 }
 0x56a   : > { %v7295_v62 = vsel %vm25095_vm4, %v7290_v59, %v7294_v42  ;;  %v17780_v40 = vsel %vm17492_vm9, %v17348_v23, %v17636_v49  ;;  %vm17491_vm12 = vcmp.ge.f32.partialorder %v17347_v16, 0.0  ;;  %v17635_v44 = vmul.f32 0.2, %v17347_v16  ;;  %s24856_s20 = scalar_lea.vmem %s24855_s11, 18432 }
 0x56b   : > { %v19548_v10 = vcombine.low %v7285_v8, %v7295_v62  ;;  %v17778_v58 = vsel %vm17490_vm10, %v17346_v55, %v17634_v63  ;;  %v17781_v20 = vsel %vm17493_vm11, %v17349_v7, %v17637_v4  ;;  %v7299_v48 = vor.u32 %v7298_v9, %v7294_v42  ;;  %p24858_p4 = scmp.lt.s32.totalorder %s24856_s20, %s24850_s10 }
 0x56c   : > { %v21220_v18 = vpack.c.bf16 %v17781_v20, %v17780_v40  ;;  %v17779_v12 = vsel %vm17491_vm12, %v17347_v16, %v17635_v44  ;;  %v7304_v35 = vrot.slane %v7302_v15, 5  ;;  %v7306_v61 = vshrl.u32 %v19473_v54, 16 }
 0x56d   : > { %22724 = vmatmul.mubr.msk.bf16.gmra.mrb[136].mxu1 %vm2122_vm1, %v19548_v10  ;;  %v21215_v23 = vpack.c.bf16 %v17779_v12, %v17778_v58  ;;  %v7300_v1 = vrot.slane %v7299_v48, 4  ;;  %v7312_v59 = vshll.u32 %v19474_v13, 16  ;;  %v7316_v49 = vshrl.u32 %v19474_v13, 16  ;;  %v28681_v12 = vpop.f32.mrb[100].mxu0  ;;  %p24859_p5 = por %p24858_p4, %p24857_p2 }
 0x56e   : > { %21508 = vst [vmem:[%s27955_s8 + $0x88] sm:$0xff] %v21220_v18   ;;  %v7308_v8 = vrot.slane %v7306_v61, 4  ;;  %v7322_v55 = vshll.u32 %v19475_v60, 16  ;;  %v7326_v7 = vshrl.u32 %v19475_v60, 16  ;;  %v7332_v42 = vshll.u32 %v19476_v19, 16 }
 0x56f   : > { %21507 = vst [vmem:[%s27955_s8 + $0x80] sm:$0xff] %v21215_v23   ;;  %v7305_v9 = vsel %vm25095_vm4, %v7300_v1, %v7304_v35  ;;  %v7314_v63 = vrot.slane %v7312_v59, 5  ;;  %v7318_v4 = vrot.slane %v7316_v49, 4  ;;  %v23351_v54 = vadd.f32 %v28082_v29, %v28122_v3  ;;  %p24860_p6 = pnand %p24859_p5, %p24853_p1 }
 0x570   : > { %v7309_v15 = vor.u32 %v7308_v8, %v7304_v35  ;;  %v7324_v16 = vrot.slane %v7322_v55, 5  ;;  %v7328_v62 = vrot.slane %v7326_v7, 4  ;;  %v7334_v40 = vrot.slane %v7332_v42, 5  ;;  %v28687_v35 = vpop.f32.mrb[101].mxu0  ;;  %v28699_v7 = vpop.f32.mrb[96].mxu1 }
 0x571   : > { %v7319_v44 = vor.u32 %v7318_v4, %v7314_v63  ;;  %v17352_v13 = vadd.f32 %v28385_v25, %v23351_v54  ;;  %v23352_v10 = vadd.f32 %v28089_v51, %v28130_v21  ;;  %v23353_v58 = vadd.f32 %v28093_v0, %v28139_v38  ;;  %v28705_v4 = vpop.f32.mrb[97].mxu1 }
 0x572   : > { %v7310_v20 = vrot.slane %v7309_v15, 4  ;;  %v7329_v48 = vor.u32 %v7328_v62, %v7324_v16  ;;  %v23354_v60 = vadd.f32 %v28099_v41, %v28149_v53  ;;  %v23355_v29 = vadd.f32 %v28120_v56, %v28157_v30  ;;  %v28691_v30 = vpop.f32.mrb[102].mxu0  ;;  %v28708_v62 = vpop.f32.mrb[98].mxu1 }
 0x573   : > { %v7320_v3 = vrot.slane %v7319_v44, 4  ;;  %vm17496_vm13 = vcmp.ge.f32.partialorder %v17352_v13, 0.0  ;;  %v17640_v19 = vmul.f32 0.2, %v17352_v13  ;;  %v17350_v18 = vadd.f32 %v28385_v25, %v23352_v10  ;;  %v28695_v59 = vpop.f32.mrb[103].mxu0 }
 0x574   : > { %v7315_v51 = vsel %vm25095_vm4, %v7310_v20, %v7314_v63  ;;  %v7330_v21 = vrot.slane %v7329_v48, 4  ;;  %v17353_v0 = vadd.f32 %v28385_v25, %v23353_v58  ;;  %v17351_v38 = vadd.f32 %v28385_v25, %v23354_v60  ;;  %v29312_v58 = vld [vmem:[#allocation26_spill] sm:$0xff]  ;;  %v29313_v48 = vld [vmem:[#allocation33_spill] sm:$0xff]  ;;  %v29314_v60 = vld [vmem:[#allocation27_spill] sm:$0xff] }
 0x575   : > { %v19549_v41 = vcombine.low %v7305_v9, %v7315_v51  ;;  %v7325_v56 = vsel %vm25095_vm4, %v7320_v3, %v7324_v16  ;;  %v17784_v53 = vsel %vm17496_vm13, %v17352_v13, %v17640_v19  ;;  %vm17494_vm14 = vcmp.ge.f32.partialorder %v17350_v18, 0.0  ;;  %v29315_v3 = vld [vmem:[#allocation35_spill] sm:$0xff]  ;;  %v29316_v19 = vld [vmem:[#allocation28_spill] sm:$0xff] }
 0x576   : > { %v7335_v61 = vsel %vm25095_vm4, %v7330_v21, %v7334_v40  ;;  %v17638_v23 = vmul.f32 0.2, %v17350_v18  ;;  %vm17497_vm15 = vcmp.ge.f32.partialorder %v17353_v0, 0.0  ;;  %v17641_v1 = vmul.f32 0.2, %v17353_v0 }
 0x577   : > { %22727 = vmatprep.mubr.msk.bf16.mxu1 %vm2122_vm1, %v19549_v41  ;;  %v19550_v49 = vcombine.low %v7325_v56, %v7335_v61  ;;  %vm17495_vm0 = vcmp.ge.f32.partialorder %v17351_v38, 0.0  ;;  %v17639_v8 = vmul.f32 0.2, %v17351_v38  ;;  %v17356_v55 = vadd.f32 %v28385_v25, %v23355_v29  ;;  %v29317_v61 = vld [vmem:[#allocation37_spill] sm:$0xff] }
 0x578   : > { %v17782_v42 = vsel %vm17494_vm14, %v17350_v18, %v17638_v23  ;;  %v17785_v9 = vsel %vm17497_vm15, %v17353_v0, %v17641_v1  ;;  %v23357_v63 = vadd.f32 %v28137_v34, %v28172_v57  ;;  %v17354_v44 = vadd.f32 %v28385_v25, %v23356_v37  ;;  %v28714_v34 = vpop.f32.mrb[99].mxu1  ;;  %v29318_v23 = vld [vmem:[#allocation29_spill] sm:$0xff] }
 0x579   : > { %22728 = vmatmul.mubr.msk.bf16.gmra.mrb[140].mxu1 %vm2122_vm1, %v19550_v49  ;;  %v21230_v54 = vpack.c.bf16 %v17785_v9, %v17784_v53  ;;  %v17783_v15 = vsel %vm17495_vm0, %v17351_v38, %v17639_v8  ;;  %vm17500_vm4 = vcmp.ge.f32.partialorder %v17356_v55, 0.0  ;;  %v17644_v16 = vmul.f32 0.2, %v17356_v55  ;;  %v29319_v49 = vld [vmem:[#allocation39_spill] sm:$0xff] }
 0x57a   : > { %v21225_v40 = vpack.c.bf16 %v17783_v15, %v17782_v42  ;;  %v17357_v13 = vadd.f32 %v28385_v25, %v23357_v63  ;;  %v23358_v10 = vadd.f32 %v29311_v33, %v29310_v2  ;;  %v23359_v20 = vadd.f32 %v29312_v58, %v28187_v50  ;;  %v29320_v8 = vld [vmem:[#allocation31_spill] sm:$0xff]  ;;  %v29321_v33 = vld [vmem:[#allocation41_spill] sm:$0xff] }
 0x57b   : > { %21510 = vst [vmem:[%s27955_s8 + $0x98] sm:$0xff] %v21230_v54   ;;  %v17788_v57 = vsel %vm17500_vm4, %v17356_v55, %v17644_v16  ;;  %v23360_v29 = vadd.f32 %v29314_v60, %v29313_v48  ;;  %v23361_v18 = vadd.f32 %v29316_v19, %v29315_v3  ;;  %vm17498_vm1 = vcmp.ge.f32.partialorder %v17354_v44, 0.0 }
 0x57c   : > { %21509 = vst [vmem:[%s27955_s8 + $0x90] sm:$0xff] %v21225_v40   ;;  %v17642_v51 = vmul.f32 0.2, %v17354_v44  ;;  %vm17501_vm2 = vcmp.ge.f32.partialorder %v17357_v13, 0.0  ;;  %v17645_v21 = vmul.f32 0.2, %v17357_v13  ;;  %v17355_v0 = vadd.f32 %v28385_v25, %v23358_v10 }
 0x57d   : > { %v17360_v38 = vadd.f32 %v28385_v25, %v23359_v20  ;;  %v17358_v41 = vadd.f32 %v28385_v25, %v23360_v29  ;;  %v17361_v50 = vadd.f32 %v28385_v25, %v23361_v18  ;;  %v23362_v1 = vadd.f32 %v29318_v23, %v29317_v61  ;;  %v29322_v10 = vld [vmem:[#allocation32_spill] sm:$0xff]  ;;  %v28737_v58 = vpop.f32.mrb[104].mxu0  ;;  %v29323_v18 = vld [vmem:[#allocation43_spill] sm:$0xff]  ;;  %v29328_v61 = vld [vmem:[#allocation38_spill] sm:$0xff] }
 0x57e   : > { %v17786_v56 = vsel %vm17498_vm1, %v17354_v44, %v17642_v51  ;;  %v17789_v53 = vsel %vm17501_vm2, %v17357_v13, %v17645_v21  ;;  %v23363_v55 = vadd.f32 %v29320_v8, %v29319_v49  ;;  %vm17499_vm3 = vcmp.ge.f32.partialorder %v17355_v0, 0.0  ;;  %v28739_v60 = vpop.f32.mrb[105].mxu0  ;;  %v29324_v51 = vld [vmem:[#allocation34_spill] sm:$0xff]  ;;  %v29330_v49 = vld [vmem:[#allocation40_spill] sm:$0xff] }
 0x57f   : > { %v21240_v42 = vpack.c.bf16 %v17789_v53, %v17788_v57  ;;  %v17643_v9 = vmul.f32 0.2, %v17355_v0  ;;  %vm17504_vm5 = vcmp.ge.f32.partialorder %v17360_v38, 0.0  ;;  %v17648_v37 = vmul.f32 0.2, %v17360_v38  ;;  %v29327_v53 = vld [vmem:[#allocation47_spill] sm:$0xff] }
 0x580   : > { %vm17502_vm6 = vcmp.ge.f32.partialorder %v17358_v41, 0.0  ;;  %v17646_v63 = vmul.f32 0.2, %v17358_v41  ;;  %vm17505_vm7 = vcmp.ge.f32.partialorder %v17361_v50, 0.0  ;;  %v17649_v15 = vmul.f32 0.2, %v17361_v50 }
 0x581   : > { %21512 = vst [vmem:[%s27955_s8 + $0xa8] sm:$0xff] %v21240_v42   ;;  %v17787_v54 = vsel %vm17499_vm3, %v17355_v0, %v17643_v9  ;;  %v17359_v16 = vadd.f32 %v28385_v25, %v23362_v1  ;;  %v17364_v40 = vadd.f32 %v28385_v25, %v23363_v55  ;;  %v17792_v13 = vsel %vm17504_vm5, %v17360_v38, %v17648_v37  ;;  %v28745_v0 = vpop.f32.mrb[106].mxu0  ;;  %v29329_v1 = vld [vmem:[#allocation49_spill] sm:$0xff]  ;;  %v28756_v37 = vpop.f32.mrb[100].mxu1 }
 0x582   : > { %v21235_v44 = vpack.c.bf16 %v17787_v54, %v17786_v56  ;;  %v17790_v2 = vsel %vm17502_vm6, %v17358_v41, %v17646_v63  ;;  %v23364_v57 = vadd.f32 %v29322_v10, %v29321_v33  ;;  %v17793_v20 = vsel %vm17505_vm7, %v17361_v50, %v17649_v15  ;;  %v29325_v41 = vld [vmem:[#allocation45_spill] sm:$0xff]  ;;  %v29326_v56 = vld [vmem:[#allocation36_spill] sm:$0xff]  ;;  %v28753_v55 = vpop.f32.mrb[107].mxu0  ;;  %v29333_v33 = vld [vmem:[#allocation42_spill] sm:$0xff] }
 0x583   : > { %vm17503_vm8 = vcmp.ge.f32.partialorder %v17359_v16, 0.0  ;;  %v17647_v48 = vmul.f32 0.2, %v17359_v16  ;;  %vm17508_vm9 = vcmp.ge.f32.partialorder %v17364_v40, 0.0  ;;  %v21250_v29 = vpack.c.bf16 %v17793_v20, %v17792_v13  ;;  %29331 = vst [vmem:[#allocation30_spill] sm:$0xff] %v28753_v55  ;;  %v28767_v13 = vpop.f32.mrb[101].mxu1 }
 0x584   : > { %21511 = vst [vmem:[%s27955_s8 + $0xa0] sm:$0xff] %v21235_v44   ;;  %v17652_v3 = vmul.f32 0.2, %v17364_v40  ;;  %v17362_v19 = vadd.f32 %v28385_v25, %v23364_v57  ;;  %v23365_v21 = vadd.f32 %v29324_v51, %v29323_v18  ;;  %v23366_v50 = vadd.f32 %v29326_v56, %v29325_v41  ;;  %v28761_v63 = vld [vmem:[%s29172_s2] ss:$0 sm:$0xff]  ;;  %v29335_v20 = vld [vmem:[#allocation44_spill] sm:$0xff] }
 0x585   : > { %v17791_v38 = vsel %vm17503_vm8, %v17359_v16, %v17647_v48  ;;  %v23367_v23 = vadd.f32 %v29328_v61, %v29327_v53  ;;  %v23368_v8 = vadd.f32 %v29330_v49, %v29329_v1  ;;  %21514 = vst [vmem:[%s27955_s8 + $0xb8] sm:$0xff] %v21250_v29   ;;  %v29334_v57 = vld [vmem:[#allocation13_spill] sm:$0xff]  ;;  %v29336_v29 = vld [vmem:[#allocation50_spill] sm:$0xff]  ;;  %v28776_v51 = vpop.f32.mrb[102].mxu1 }
 0x586   : > { %v21245_v25 = vpack.c.bf16 %v17791_v38, %v17790_v2  ;;  %v17796_v42 = vsel %vm17508_vm9, %v17364_v40, %v17652_v3  ;;  %vm17506_vm10 = vcmp.ge.f32.partialorder %v17362_v19, 0.0  ;;  %v17650_v9 = vmul.f32 0.2, %v17362_v19  ;;  %v29332_v2 = vld [vmem:[#allocation11_spill] sm:$0xff]  ;;  %v29337_v3 = vld [vmem:[#allocation46_spill] sm:$0xff] }
 0x587   : > { %v17365_v54 = vadd.f32 %v28761_v63, %v23365_v21  ;;  %v17363_v15 = vadd.f32 %v28761_v63, %v23366_v50  ;;  %v17368_v16 = vadd.f32 %v28761_v63, %v23367_v23  ;;  %v17366_v44 = vadd.f32 %v28761_v63, %v23368_v8  ;;  %v28780_v23 = vpop.f32.mrb[103].mxu1 }
 0x588   : > { %21513 = vst [vmem:[%s27955_s8 + $0xb0] sm:$0xff] %v21245_v25   ;;  %v17794_v40 = vsel %vm17506_vm10, %v17362_v19, %v17650_v9  ;;  %v23369_v10 = vadd.f32 %v29333_v33, %v29332_v2  ;;  %v23370_v48 = vadd.f32 %v29335_v20, %v29334_v57  ;;  %v23371_v18 = vadd.f32 %v29337_v3, %v29336_v29  ;;  %v29340_v57 = vld [vmem:[#allocation54_spill] sm:$0xff]  ;;  %v29341_v20 = vld [vmem:[#allocation5_spill] sm:$0xff] }
 0x589   : > { %vm17509_vm11 = vcmp.ge.f32.partialorder %v17365_v54, 0.0  ;;  %v17653_v21 = vmul.f32 0.2, %v17365_v54  ;;  %vm17507_vm12 = vcmp.ge.f32.partialorder %v17363_v15, 0.0  ;;  %v17651_v38 = vmul.f32 0.2, %v17363_v15 }
 0x58a   : > { %vm17512_vm13 = vcmp.ge.f32.partialorder %v17368_v16, 0.0  ;;  %v17656_v41 = vmul.f32 0.2, %v17368_v16  ;;  %vm17510_vm14 = vcmp.ge.f32.partialorder %v17366_v44, 0.0  ;;  %v17654_v19 = vmul.f32 0.2, %v17366_v44 }
 0x58b   : > { %v17797_v56 = vsel %vm17509_vm11, %v17365_v54, %v17653_v21  ;;  %v17795_v50 = vsel %vm17507_vm12, %v17363_v15, %v17651_v38  ;;  %v17369_v53 = vadd.f32 %v28761_v63, %v23369_v10  ;;  %v17367_v61 = vadd.f32 %v28761_v63, %v23370_v48  ;;  %v29338_v54 = vld [vmem:[#allocation52_spill] sm:$0xff]  ;;  %v29344_v3 = vld [vmem:[#allocation58_spill] sm:$0xff]  ;;  %v29345_v21 = vld [vmem:[#allocation7_spill] sm:$0xff] }
 0x58c   : > { %v21260_v1 = vpack.c.bf16 %v17797_v56, %v17796_v42  ;;  %v21255_v49 = vpack.c.bf16 %v17795_v50, %v17794_v40  ;;  %v17800_v8 = vsel %vm17512_vm13, %v17368_v16, %v17656_v41  ;;  %v17798_v25 = vsel %vm17510_vm14, %v17366_v44, %v17654_v19  ;;  %v29339_v15 = vld [vmem:[#allocation48_spill] sm:$0xff]  ;;  %v29343_v40 = vld [vmem:[#allocation6_spill] sm:$0xff]  ;;  %v29347_v19 = vld [vmem:[#allocation51_spill] sm:$0xff] }
 0x58d   : > { %vm17513_vm15 = vcmp.ge.f32.partialorder %v17369_v53, 0.0  ;;  %v17657_v9 = vmul.f32 0.2, %v17369_v53  ;;  %vm17511_vm0 = vcmp.ge.f32.partialorder %v17367_v61, 0.0  ;;  %v17655_v2 = vmul.f32 0.2, %v17367_v61 }
 0x58e   : > { %21516 = vst [vmem:[%s27955_s8 + $0xc8] sm:$0xff] %v21260_v1   ;;  %21515 = vst [vmem:[%s27955_s8 + $0xc0] sm:$0xff] %v21255_v49   ;;  %v17372_v33 = vadd.f32 %v28761_v63, %v23371_v18  ;;  %v23372_v10 = vadd.f32 %v29339_v15, %v29338_v54  ;;  %v23373_v48 = vadd.f32 %v29341_v20, %v29340_v57  ;;  %v29342_v42 = vld [vmem:[#allocation56_spill] sm:$0xff] }
 0x58f   : > { %v23374_v16 = vadd.f32 %v29343_v40, %v29342_v42  ;;  %v17801_v44 = vsel %vm17513_vm15, %v17369_v53, %v17657_v9  ;;  %v17799_v29 = vsel %vm17511_vm0, %v17367_v61, %v17655_v2  ;;  %v23375_v38 = vadd.f32 %v29345_v21, %v29344_v3  ;;  %v29346_v41 = vld [vmem:[#allocation60_spill] sm:$0xff]  ;;  %v29348_v9 = vld [vmem:[#allocation62_spill] sm:$0xff]  ;;  %v29349_v2 = vld [vmem:[#allocation53_spill] sm:$0xff]  ;;  %v28806_v40 = vpop.f32.mrb[108].mxu0 }
 0x590   : > { %v23376_v56 = vadd.f32 %v29347_v19, %v29346_v41  ;;  %v21270_v18 = vpack.c.bf16 %v17801_v44, %v17800_v8  ;;  %v21265_v50 = vpack.c.bf16 %v17799_v29, %v17798_v25  ;;  %vm17516_vm4 = vcmp.ge.f32.partialorder %v17372_v33, 0.0  ;;  %v29350_v8 = vld [vmem:[#allocation64_spill] sm:$0xff]  ;;  %v29351_v25 = vld [vmem:[#allocation55_spill] sm:$0xff]  ;;  %29352 = vst [vmem:[#allocation25_spill] sm:$0xff] %v28806_v40  ;;  %v28808_v21 = vpop.f32.mrb[109].mxu0 }
 0x591   : > { %v17660_v1 = vmul.f32 0.2, %v17372_v33  ;;  %v17370_v49 = vadd.f32 %v28761_v63, %v23372_v10  ;;  %v17373_v54 = vadd.f32 %v28761_v63, %v23373_v48  ;;  %v17371_v15 = vadd.f32 %v28761_v63, %v23374_v16  ;;  %29353 = vst [vmem:[#allocation26_spill] sm:$0xff] %v28808_v21  ;;  %v29368_v40 = vld [vmem:[#allocation67_spill] sm:$0xff] }
 0x592   : > { %v17376_v57 = vadd.f32 %v28761_v63, %v23375_v38  ;;  %21518 = vst [vmem:[%s27955_s8 + $0xd8] sm:$0xff] %v21270_v18   ;;  %21517 = vst [vmem:[%s27955_s8 + $0xd0] sm:$0xff] %v21265_v50   ;;  %v17374_v61 = vadd.f32 %v28761_v63, %v23376_v56  ;;  %v23377_v20 = vadd.f32 %v29349_v2, %v29348_v9  ;;  %v28811_v18 = vpop.f32.mrb[104].mxu1  ;;  %v28813_v50 = vpop.f32.mrb[110].mxu0  ;;  %v29356_v2 = vld [vmem:[#allocation57_spill] sm:$0xff] }
 0x593   : > { %v17804_v53 = vsel %vm17516_vm4, %v17372_v33, %v17660_v1  ;;  %v23378_v42 = vadd.f32 %v29351_v25, %v29350_v8  ;;  %vm17514_vm1 = vcmp.ge.f32.partialorder %v17370_v49, 0.0  ;;  %v17658_v10 = vmul.f32 0.2, %v17370_v49  ;;  %29354 = vst [vmem:[#allocation33_spill] sm:$0xff] %v28813_v50  ;;  %v28818_v25 = vpop.f32.mrb[105].mxu1 }
 0x594   : > { %vm17517_vm2 = vcmp.ge.f32.partialorder %v17373_v54, 0.0  ;;  %v17661_v48 = vmul.f32 0.2, %v17373_v54  ;;  %vm17515_vm3 = vcmp.ge.f32.partialorder %v17371_v15, 0.0  ;;  %v17659_v16 = vmul.f32 0.2, %v17371_v15 }
 0x595   : > { %vm17520_vm5 = vcmp.ge.f32.partialorder %v17376_v57, 0.0  ;;  %v17664_v44 = vmul.f32 0.2, %v17376_v57  ;;  %v17802_v29 = vsel %vm17514_vm1, %v17370_v49, %v17658_v10  ;;  %vm17518_vm6 = vcmp.ge.f32.partialorder %v17374_v61, 0.0  ;;  %v28820_v10 = vpop.f32.mrb[111].mxu0 }
 0x596   : > { %v17805_v33 = vsel %vm17517_vm2, %v17373_v54, %v17661_v48  ;;  %v17662_v3 = vmul.f32 0.2, %v17374_v61  ;;  %v17803_v41 = vsel %vm17515_vm3, %v17371_v15, %v17659_v16  ;;  %v17377_v56 = vadd.f32 %v28761_v63, %v23377_v20  ;;  %v29355_v54 = vld [vmem:[#allocation66_spill] sm:$0xff]  ;;  %29357 = vst [vmem:[#allocation27_spill] sm:$0xff] %v28820_v10  ;;  %v29361_v16 = vld [vmem:[#allocation61_spill] sm:$0xff] }
 0x597   : > { %v21280_v38 = vpack.c.bf16 %v17805_v33, %v17804_v53  ;;  %v17808_v19 = vsel %vm17520_vm5, %v17376_v57, %v17664_v44  ;;  %v21275_v1 = vpack.c.bf16 %v17803_v41, %v17802_v29  ;;  %v17375_v49 = vadd.f32 %v28761_v63, %v23378_v42  ;;  %v29358_v57 = vld [vmem:[#allocation68_spill] sm:$0xff]  ;;  %v29359_v53 = vld [vmem:[#allocation59_spill] sm:$0xff]  ;;  %v29360_v48 = vld [vmem:[#allocation70_spill] sm:$0xff]  ;;  %v28827_v29 = vpop.f32.mrb[106].mxu1 }
 0x598   : > { %v17806_v9 = vsel %vm17518_vm6, %v17374_v61, %v17662_v3  ;;  %v23379_v8 = vadd.f32 %v29356_v2, %v29355_v54  ;;  %vm17521_vm7 = vcmp.ge.f32.partialorder %v17377_v56, 0.0  ;;  %v17665_v15 = vmul.f32 0.2, %v17377_v56  ;;  %v29362_v33 = vld [vmem:[#allocation72_spill] sm:$0xff]  ;;  %v29363_v3 = vld [vmem:[#allocation63_spill] sm:$0xff] }
 0x599   : > { %21520 = vst [vmem:[%s27955_s8 + $0xe8] sm:$0xff] %v21280_v38   ;;  %v23380_v20 = vadd.f32 %v29359_v53, %v29358_v57  ;;  %v23381_v44 = vadd.f32 %v29361_v16, %v29360_v48  ;;  %21519 = vst [vmem:[%s27955_s8 + $0xe0] sm:$0xff] %v21275_v1   ;;  %vm17519_vm8 = vcmp.ge.f32.partialorder %v17375_v49, 0.0  ;;  %v17663_v61 = vmul.f32 0.2, %v17375_v49  ;;  %v28833_v38 = vpop.f32.mrb[107].mxu1 }
 0x59a   : > { %v17380_v42 = vadd.f32 %v28761_v63, %v23379_v8  ;;  %v23382_v41 = vadd.f32 %v29363_v3, %v29362_v33  ;;  %29364 = vst [vmem:[#allocation35_spill] sm:$0xff] %v28833_v38  ;;  %v17809_v54 = vsel %vm17521_vm7, %v17377_v56, %v17665_v15  ;;  %v29365_v53 = vld [vmem:[#allocation8_spill] sm:$0xff]  ;;  %v29366_v48 = vld [vmem:[#allocation65_spill] sm:$0xff] }
 0x59b   : > { %v17378_v2 = vadd.f32 %v28761_v63, %v23380_v20  ;;  %v17381_v57 = vadd.f32 %v28761_v63, %v23381_v44  ;;  %v23383_v16 = vadd.f32 %v29366_v48, %v29365_v53  ;;  %v21290_v1 = vpack.c.bf16 %v17809_v54, %v17808_v19  ;;  %v29367_v44 = vld [vmem:[#allocation74_spill] sm:$0xff] }
 0x59c   : > { %v17807_v10 = vsel %vm17519_vm8, %v17375_v49, %v17663_v61  ;;  %vm17524_vm9 = vcmp.ge.f32.partialorder %v17380_v42, 0.0  ;;  %v17668_v50 = vmul.f32 0.2, %v17380_v42  ;;  %v17379_v56 = vadd.f32 %v28761_v63, %v23382_v41  ;;  %v29369_v49 = vld [vmem:[#allocation9_spill] sm:$0xff] }
 0x59d   : > { %v21285_v21 = vpack.c.bf16 %v17807_v10, %v17806_v9  ;;  %vm17522_vm10 = vcmp.ge.f32.partialorder %v17378_v2, 0.0  ;;  %v17666_v8 = vmul.f32 0.2, %v17378_v2  ;;  %vm17525_vm11 = vcmp.ge.f32.partialorder %v17381_v57, 0.0  ;;  %21522 = vst [vmem:[%s27955_s8 + $0xf8] sm:$0xff] %v21290_v1   ;;  %v29370_v61 = vld [vmem:[#allocation69_spill] sm:$0xff] }
 0x59e   : > { %v17812_v33 = vsel %vm17524_vm9, %v17380_v42, %v17668_v50  ;;  %v17669_v3 = vmul.f32 0.2, %v17381_v57  ;;  %v17384_v15 = vadd.f32 %v28761_v63, %v23383_v16  ;;  %v23384_v19 = vadd.f32 %v29368_v40, %v29367_v44  ;;  %v29371_v9 = vld [vmem:[#allocation10_spill] sm:$0xff]  ;;  %v29372_v10 = vld [vmem:[#allocation71_spill] sm:$0xff]  ;;  %v29373_v1 = vld [vmem:[#allocation12_spill] sm:$0xff] }
 0x59f   : > { %21521 = vst [vmem:[%s27955_s8 + $0xf0] sm:$0xff] %v21285_v21   ;;  %v17810_v20 = vsel %vm17522_vm10, %v17378_v2, %v17666_v8  ;;  %v23385_v54 = vadd.f32 %v29370_v61, %v29369_v49  ;;  %v23386_v53 = vadd.f32 %v29372_v10, %v29371_v9  ;;  %vm17523_vm12 = vcmp.ge.f32.partialorder %v17379_v56, 0.0  ;;  %v29374_v8 = vld [vmem:[#allocation15_spill] sm:$0xff]  ;;  %v29375_v49 = vld [vmem:[#allocation76_spill] sm:$0xff]  ;;  %v29376_v61 = vld [vmem:[#allocation73_spill] sm:$0xff] }
 0x5a0   : > { %v17813_v48 = vsel %vm17525_vm11, %v17381_v57, %v17669_v3  ;;  %v17667_v50 = vmul.f32 0.2, %v17379_v56  ;;  %vm17528_vm13 = vcmp.ge.f32.partialorder %v17384_v15, 0.0  ;;  %v17672_v41 = vmul.f32 0.2, %v17384_v15  ;;  %v28868_v38 = vpop.f32.mrb[112].mxu0 }
 0x5a1   : > { %v21300_v42 = vpack.c.bf16 %v17813_v48, %v17812_v33  ;;  %v17382_v21 = vadd.f32 %v28761_v63, %v23384_v19  ;;  %v17385_v2 = vadd.f32 %v28761_v63, %v23385_v54  ;;  %v17383_v40 = vadd.f32 %v28761_v63, %v23386_v53  ;;  %v29377_v48 = vld [vmem:[#allocation78_spill] sm:$0xff] }
 0x5a2   : > { %v17811_v16 = vsel %vm17523_vm12, %v17379_v56, %v17667_v50  ;;  %v23387_v44 = vadd.f32 %v29374_v8, %v29373_v1  ;;  %v23388_v9 = vadd.f32 %v29376_v61, %v29375_v49  ;;  %v17816_v3 = vsel %vm17528_vm13, %v17384_v15, %v17672_v41  ;;  %v29378_v50 = vld [vmem:[#allocation17_spill] sm:$0xff]  ;;  %v29379_v15 = vld [vmem:[#allocation80_spill] sm:$0xff]  ;;  %v29380_v41 = vld [vmem:[#allocation19_spill] sm:$0xff] }
 0x5a3   : > { %21524 = vst [vmem:[%s27955_s8 + $0x108] sm:$0xff] %v21300_v42   ;;  %v21295_v57 = vpack.c.bf16 %v17811_v16, %v17810_v20  ;;  %vm17526_vm14 = vcmp.ge.f32.partialorder %v17382_v21, 0.0  ;;  %v17670_v33 = vmul.f32 0.2, %v17382_v21  ;;  %vm17529_vm15 = vcmp.ge.f32.partialorder %v17385_v2, 0.0  ;;  %v29381_v8 = vld [vmem:[#allocation82_spill] sm:$0xff] }
 0x5a4   : > { %v17673_v10 = vmul.f32 0.2, %v17385_v2  ;;  %vm17527_vm0 = vcmp.ge.f32.partialorder %v17383_v40, 0.0  ;;  %v17671_v19 = vmul.f32 0.2, %v17383_v40  ;;  %v17388_v56 = vadd.f32 %v28761_v63, %v23387_v44  ;;  %v29382_v49 = vld [vmem:[#allocation21_spill] sm:$0xff] }
 0x5a5   : > { %21523 = vst [vmem:[%s27955_s8 + $0x100] sm:$0xff] %v21295_v57   ;;  %v17814_v54 = vsel %vm17526_vm14, %v17382_v21, %v17670_v33  ;;  %v17386_v53 = vadd.f32 %v28761_v63, %v23388_v9  ;;  %v23389_v1 = vadd.f32 %v29378_v50, %v29377_v48  ;;  %v23390_v16 = vadd.f32 %v29380_v41, %v29379_v15 }
 0x5a6   : > { %v17817_v42 = vsel %vm17529_vm15, %v17385_v2, %v17673_v10  ;;  %v17815_v20 = vsel %vm17527_vm0, %v17383_v40, %v17671_v19  ;;  %v23391_v61 = vadd.f32 %v29382_v49, %v29381_v8  ;;  %vm17532_vm4 = vcmp.ge.f32.partialorder %v17388_v56, 0.0  ;;  %v29383_v10 = vld [vmem:[#allocation84_spill] sm:$0xff]  ;;  %v29384_v19 = vld [vmem:[#allocation75_spill] sm:$0xff] }
 0x5a7   : > { %v21310_v55 = vpack.c.bf16 %v17817_v42, %v17816_v3  ;;  %v21305_v57 = vpack.c.bf16 %v17815_v20, %v17814_v54  ;;  %v17676_v21 = vmul.f32 0.2, %v17388_v56  ;;  %vm17530_vm1 = vcmp.ge.f32.partialorder %v17386_v53, 0.0  ;;  %v29385_v3 = vld [vmem:[#allocation86_spill] sm:$0xff]  ;;  %v29386_v54 = vld [vmem:[#allocation77_spill] sm:$0xff]  ;;  %v28877_v42 = vpop.f32.mrb[113].mxu0 }
 0x5a8   : > { %v17674_v44 = vmul.f32 0.2, %v17386_v53  ;;  %v17389_v9 = vadd.f32 %v28761_v63, %v23389_v1  ;;  %v17387_v33 = vadd.f32 %v28761_v63, %v23390_v16  ;;  %v17392_v40 = vadd.f32 %v28761_v63, %v23391_v61  ;;  %v28879_v15 = vpop.f32.mrb[114].mxu0  ;;  %v29389_v61 = vld [vmem:[#allocation88_spill] sm:$0xff] }
 0x5a9   : > { %21526 = vst [vmem:[%s27955_s8 + $0x118] sm:$0xff] %v21310_v55   ;;  %21525 = vst [vmem:[%s27955_s8 + $0x110] sm:$0xff] %v21305_v57   ;;  %v17820_v2 = vsel %vm17532_vm4, %v17388_v56, %v17676_v21  ;;  %v23392_v48 = vadd.f32 %v29384_v19, %v29383_v10  ;;  %v23393_v50 = vadd.f32 %v29386_v54, %v29385_v3  ;;  %v28882_v16 = vpop.f32.mrb[115].mxu0  ;;  %v29390_v57 = vld [vmem:[#allocation79_spill] sm:$0xff]  ;;  %v28889_v54 = vpop.f32.mrb[108].mxu1 }
 0x5aa   : > { %v17818_v20 = vsel %vm17530_vm1, %v17386_v53, %v17674_v44  ;;  %vm17533_vm2 = vcmp.ge.f32.partialorder %v17389_v9, 0.0  ;;  %v17677_v1 = vmul.f32 0.2, %v17389_v9  ;;  %vm17531_vm3 = vcmp.ge.f32.partialorder %v17387_v33, 0.0  ;;  %29387 = vst [vmem:[#allocation28_spill] sm:$0xff] %v28879_v15  ;;  %29388 = vst [vmem:[#allocation37_spill] sm:$0xff] %v28882_v16 }
 0x5ab   : > { %v17675_v41 = vmul.f32 0.2, %v17387_v33  ;;  %vm17536_vm5 = vcmp.ge.f32.partialorder %v17392_v40, 0.0  ;;  %v17680_v55 = vmul.f32 0.2, %v17392_v40  ;;  %v17390_v56 = vadd.f32 %v28761_v63, %v23392_v48  ;;  %v29391_v53 = vld [vmem:[#allocation81_spill] sm:$0xff] }
 0x5ac   : > { %v17821_v8 = vsel %vm17533_vm2, %v17389_v9, %v17677_v1  ;;  %v17393_v49 = vadd.f32 %v28761_v63, %v23393_v50  ;;  %v23394_v21 = vadd.f32 %v29390_v57, %v29389_v61  ;;  %v23395_v44 = vadd.f32 %v29391_v53, %v28487_v6  ;;  %v28891_v9 = vpop.f32.mrb[109].mxu1  ;;  %v29392_v6 = vld [vmem:[#allocation83_spill] sm:$0xff]  ;;  %v29395_v57 = vld [vmem:[#allocation89_spill] sm:$0xff] }
 0x5ad   : > { %v21320_v10 = vpack.c.bf16 %v17821_v8, %v17820_v2  ;;  %v17819_v19 = vsel %vm17531_vm3, %v17387_v33, %v17675_v41  ;;  %v17824_v3 = vsel %vm17536_vm5, %v17392_v40, %v17680_v55  ;;  %vm17534_vm6 = vcmp.ge.f32.partialorder %v17390_v56, 0.0  ;;  %v29393_v33 = vld [vmem:[#allocation85_spill] sm:$0xff]  ;;  %v28900_v41 = vpop.f32.mrb[110].mxu1  ;;  %v29394_v8 = vld [vmem:[#allocation87_spill] sm:$0xff] }
 0x5ae   : > { %v21315_v48 = vpack.c.bf16 %v17819_v19, %v17818_v20  ;;  %v17678_v15 = vmul.f32 0.2, %v17390_v56  ;;  %vm17537_vm7 = vcmp.ge.f32.partialorder %v17393_v49, 0.0  ;;  %v17681_v16 = vmul.f32 0.2, %v17393_v49  ;;  %v28907_v53 = vpop.f32.mrb[111].mxu1 }
 0x5af   : > { %21528 = vst [vmem:[%s27955_s8 + $0x128] sm:$0xff] %v21320_v10   ;;  %v17391_v50 = vadd.f32 %v28761_v63, %v23394_v21  ;;  %v17396_v1 = vadd.f32 %v28761_v63, %v23395_v44  ;;  %v23396_v2 = vadd.f32 %v29392_v6, %v28489_v39  ;;  %v23397_v40 = vadd.f32 %v29393_v33, %v28496_v43 }
 0x5b0   : > { %21527 = vst [vmem:[%s27955_s8 + $0x120] sm:$0xff] %v21315_v48   ;;  %v17822_v20 = vsel %vm17534_vm6, %v17390_v56, %v17678_v15  ;;  %v17825_v55 = vsel %vm17537_vm7, %v17393_v49, %v17681_v16  ;;  %v23398_v61 = vadd.f32 %v29394_v8, %v28507_v32  ;;  %v23399_v21 = vadd.f32 %v29395_v57, %v28541_v27  ;;  %v29396_v27 = vld [vmem:[#allocation90_spill] sm:$0xff]  ;;  %v29397_v49 = vld [vmem:[#allocation91_spill] sm:$0xff] }
 0x5b1   : > { %v21330_v44 = vpack.c.bf16 %v17825_v55, %v17824_v3  ;;  %vm17535_vm8 = vcmp.ge.f32.partialorder %v17391_v50, 0.0  ;;  %v17679_v39 = vmul.f32 0.2, %v17391_v50  ;;  %vm17540_vm9 = vcmp.ge.f32.partialorder %v17396_v1, 0.0 }
 0x5b2   : > { %v17684_v10 = vmul.f32 0.2, %v17396_v1  ;;  %v17394_v43 = vadd.f32 %v28761_v63, %v23396_v2  ;;  %v17397_v19 = vadd.f32 %v28761_v63, %v23397_v40  ;;  %v17395_v15 = vadd.f32 %v28761_v63, %v23398_v61 }
 0x5b3   : > { %21530 = vst [vmem:[%s27955_s8 + $0x138] sm:$0xff] %v21330_v44   ;;  %v17823_v56 = vsel %vm17535_vm8, %v17391_v50, %v17679_v39  ;;  %v17400_v32 = vadd.f32 %v28761_v63, %v23399_v21  ;;  %v23400_v16 = vadd.f32 %v29396_v27, %v28546_v26  ;;  %v23401_v3 = vadd.f32 %v29397_v49, %v28549_v17  ;;  %v29402_v49 = vld [vmem:[#allocation94_spill] sm:$0xff] }
 0x5b4   : > { %v21325_v48 = vpack.c.bf16 %v17823_v56, %v17822_v20  ;;  %v17828_v6 = vsel %vm17540_vm9, %v17396_v1, %v17684_v10  ;;  %vm17538_vm10 = vcmp.ge.f32.partialorder %v17394_v43, 0.0  ;;  %v17682_v33 = vmul.f32 0.2, %v17394_v43  ;;  %v29398_v1 = vld [vmem:[#allocation14_spill] sm:$0xff]  ;;  %v29399_v56 = vld [vmem:[#allocation16_spill] sm:$0xff] }
 0x5b5   : > { %vm17541_vm11 = vcmp.ge.f32.partialorder %v17397_v19, 0.0  ;;  %v17685_v2 = vmul.f32 0.2, %v17397_v19  ;;  %vm17539_vm12 = vcmp.ge.f32.partialorder %v17395_v15, 0.0  ;;  %v17683_v40 = vmul.f32 0.2, %v17395_v15 }
 0x5b6   : > { %21529 = vst [vmem:[%s27955_s8 + $0x130] sm:$0xff] %v21325_v48   ;;  %v17826_v55 = vsel %vm17538_vm10, %v17394_v43, %v17682_v33  ;;  %vm17544_vm13 = vcmp.ge.f32.partialorder %v17400_v32, 0.0  ;;  %v17688_v50 = vmul.f32 0.2, %v17400_v32  ;;  %v17398_v8 = vadd.f32 %v28761_v63, %v23400_v16  ;;  %v29401_v16 = vld [vmem:[#allocation20_spill] sm:$0xff] }
 0x5b7   : > { %v17829_v26 = vsel %vm17541_vm11, %v17397_v19, %v17685_v2  ;;  %v17827_v61 = vsel %vm17539_vm12, %v17395_v15, %v17683_v40  ;;  %v17401_v17 = vadd.f32 %v28761_v63, %v23401_v3  ;;  %v23402_v20 = vadd.f32 %v29398_v1, %v28551_v36  ;;  %v29400_v15 = vld [vmem:[#allocation18_spill] sm:$0xff] }
 0x5b8   : > { %v21340_v57 = vpack.c.bf16 %v17829_v26, %v17828_v6  ;;  %v21335_v21 = vpack.c.bf16 %v17827_v61, %v17826_v55  ;;  %v17832_v44 = vsel %vm17544_vm13, %v17400_v32, %v17688_v50  ;;  %vm17542_vm14 = vcmp.ge.f32.partialorder %v17398_v8, 0.0  ;;  %v29403_v32 = vld [vmem:[#allocation92_spill] sm:$0xff]  ;;  %v29405_v61 = vld [vmem:[#allocation23_spill] sm:$0xff] }
 0x5b9   : > { %v17686_v39 = vmul.f32 0.2, %v17398_v8  ;;  %vm17545_vm15 = vcmp.ge.f32.partialorder %v17401_v17, 0.0  ;;  %v17689_v10 = vmul.f32 0.2, %v17401_v17  ;;  %v17399_v43 = vadd.f32 %v28761_v63, %v23402_v20 }
 0x5ba   : > { %21532 = vst [vmem:[%s27955_s8 + $0x148] sm:$0xff] %v21340_v57   ;;  %21531 = vst [vmem:[%s27955_s8 + $0x140] sm:$0xff] %v21335_v21   ;;  %v23403_v19 = vadd.f32 %v29399_v56, %v28597_v11  ;;  %v23404_v27 = vadd.f32 %v29400_v15, %v28600_v31  ;;  %v23405_v36 = vadd.f32 %v29401_v16, %v28604_v22  ;;  %v29404_v22 = vld [vmem:[#allocation22_spill] sm:$0xff]  ;;  %v29406_v15 = vld [vmem:[#allocation24_spill] sm:$0xff] }
 0x5bb   : > { %v23406_v3 = vadd.f32 %v29403_v32, %v29402_v49  ;;  %v17830_v48 = vsel %vm17542_vm14, %v17398_v8, %v17686_v39  ;;  %v17833_v6 = vsel %vm17545_vm15, %v17401_v17, %v17689_v10  ;;  %vm17543_vm0 = vcmp.ge.f32.partialorder %v17399_v43, 0.0  ;;  %v28942_v17 = vpop.f32.mrb[116].mxu0  ;;  %v29407_v16 = vld [vmem:[#allocation93_spill] sm:$0xff] }
 0x5bc   : > { %v17687_v33 = vmul.f32 0.2, %v17399_v43  ;;  %v21350_v2 = vpack.c.bf16 %v17833_v6, %v17832_v44  ;;  %v17404_v40 = vadd.f32 %v28761_v63, %v23403_v19  ;;  %v17402_v55 = vadd.f32 %v28761_v63, %v23404_v27  ;;  %v28945_v57 = vpop.f32.mrb[117].mxu0  ;;  %v28958_v6 = vpop.f32.mrb[112].mxu1 }
 0x5bd   : > { %v17405_v11 = vadd.f32 %v28761_v63, %v23405_v36  ;;  %v17403_v50 = vadd.f32 %v28761_v63, %v23406_v3  ;;  %v23407_v26 = vadd.f32 %v29404_v22, %v28650_v28  ;;  %v23408_v8 = vadd.f32 %v29405_v61, %v28653_v52 }
 0x5be   : > { %v17831_v31 = vsel %vm17543_vm0, %v17399_v43, %v17687_v33  ;;  %21534 = vst [vmem:[%s27955_s8 + $0x158] sm:$0xff] %v21350_v2   ;;  %vm17548_vm4 = vcmp.ge.f32.partialorder %v17404_v40, 0.0  ;;  %v17692_v20 = vmul.f32 0.2, %v17404_v40  ;;  %vm17546_vm1 = vcmp.ge.f32.partialorder %v17402_v55, 0.0  ;;  %v28950_v43 = vpop.f32.mrb[118].mxu0 }
 0x5bf   : > { %v21345_v1 = vpack.c.bf16 %v17831_v31, %v17830_v48  ;;  %v17690_v21 = vmul.f32 0.2, %v17402_v55  ;;  %vm17549_vm2 = vcmp.ge.f32.partialorder %v17405_v11, 0.0  ;;  %v17693_v44 = vmul.f32 0.2, %v17405_v11  ;;  %v28956_v49 = vpop.f32.mrb[119].mxu0 }
 0x5c0   : > { %vm17547_vm3 = vcmp.ge.f32.partialorder %v17403_v50, 0.0  ;;  %v17836_v39 = vsel %vm17548_vm4, %v17404_v40, %v17692_v20  ;;  %v17691_v10 = vmul.f32 0.2, %v17403_v50  ;;  %v17408_v28 = vadd.f32 %v28761_v63, %v23407_v26 }
 0x5c1   : > { %21533 = vst [vmem:[%s27955_s8 + $0x150] sm:$0xff] %v21345_v1   ;;  %v17406_v52 = vadd.f32 %v28761_v63, %v23408_v8  ;;  %v17834_v56 = vsel %vm17546_vm1, %v17402_v55, %v17690_v21  ;;  %v17837_v19 = vsel %vm17549_vm2, %v17405_v11, %v17693_v44  ;;  %v23409_v27 = vadd.f32 %v29406_v15, %v28658_v46  ;;  %v28961_v55 = vpop.f32.mrb[113].mxu1 }
 0x5c2   : > { %v23410_v36 = vadd.f32 %v29407_v16, %v28662_v24  ;;  %v21360_v32 = vpack.c.bf16 %v17837_v19, %v17836_v39  ;;  %v17835_v3 = vsel %vm17547_vm3, %v17403_v50, %v17691_v10  ;;  %vm17552_vm5 = vcmp.ge.f32.partialorder %v17408_v28, 0.0  ;;  %v28969_v50 = vpop.f32.mrb[114].mxu1 }
 0x5c3   : > { %v17696_v48 = vmul.f32 0.2, %v17408_v28  ;;  %v21355_v33 = vpack.c.bf16 %v17835_v3, %v17834_v56  ;;  %vm17550_vm6 = vcmp.ge.f32.partialorder %v17406_v52, 0.0  ;;  %v17694_v2 = vmul.f32 0.2, %v17406_v52  ;;  %v28974_v8 = vpop.f32.mrb[115].mxu1 }
 0x5c4   : > { %v17409_v40 = vadd.f32 %v28761_v63, %v23409_v27  ;;  %21536 = vst [vmem:[%s27955_s8 + $0x168] sm:$0xff] %v21360_v32   ;;  %v17407_v24 = vadd.f32 %v28761_v63, %v23410_v36  ;;  %v23411_v11 = vadd.f32 %v28624_v14, %v28699_v7  ;;  %v23412_v31 = vadd.f32 %v28631_v45, %v28705_v4 }
 0x5c5   : > { %v17840_v46 = vsel %vm17552_vm5, %v17408_v28, %v17696_v48  ;;  %21535 = vst [vmem:[%s27955_s8 + $0x160] sm:$0xff] %v21355_v33   ;;  %v17838_v22 = vsel %vm17550_vm6, %v17406_v52, %v17694_v2  ;;  %v23413_v61 = vadd.f32 %v28638_v5, %v28708_v62  ;;  %v23414_v4 = vadd.f32 %v28643_v47, %v28714_v34 }
 0x5c6   : > { %vm17553_vm7 = vcmp.ge.f32.partialorder %v17409_v40, 0.0  ;;  %v17697_v26 = vmul.f32 0.2, %v17409_v40  ;;  %vm17551_vm8 = vcmp.ge.f32.partialorder %v17407_v24, 0.0  ;;  %v17695_v1 = vmul.f32 0.2, %v17407_v24 }
 0x5c7   : > { %v17412_v20 = vadd.f32 %v28761_v63, %v23411_v11  ;;  %v17410_v14 = vadd.f32 %v28761_v63, %v23412_v31  ;;  %v17413_v45 = vadd.f32 %v28761_v63, %v23413_v61  ;;  %v23415_v21 = vadd.f32 %v28681_v12, %v28756_v37  ;;  %v29409_v11 = vld [vmem:[#allocation30_spill] sm:$0xff] }
 0x5c8   : > { %v17841_v7 = vsel %vm17553_vm7, %v17409_v40, %v17697_v26  ;;  %v17839_v62 = vsel %vm17551_vm8, %v17407_v24, %v17695_v1  ;;  %v17411_v56 = vadd.f32 %v28761_v63, %v23414_v4  ;;  %v23416_v12 = vadd.f32 %v28687_v35, %v28767_v13 }
 0x5c9   : > { %v21370_v5 = vpack.c.bf16 %v17841_v7, %v17840_v46  ;;  %vm17556_vm9 = vcmp.ge.f32.partialorder %v17412_v20, 0.0  ;;  %v17700_v44 = vmul.f32 0.2, %v17412_v20  ;;  %v21365_v39 = vpack.c.bf16 %v17839_v62, %v17838_v22  ;;  %v29410_v22 = vld [vmem:[#allocation25_spill] sm:$0xff] }
 0x5ca   : > { %vm17554_vm10 = vcmp.ge.f32.partialorder %v17410_v14, 0.0  ;;  %v17698_v10 = vmul.f32 0.2, %v17410_v14  ;;  %vm17557_vm11 = vcmp.ge.f32.partialorder %v17413_v45, 0.0  ;;  %v17701_v52 = vmul.f32 0.2, %v17413_v45 }
 0x5cb   : > { %21538 = vst [vmem:[%s27955_s8 + $0x178] sm:$0xff] %v21370_v5   ;;  %v17844_v28 = vsel %vm17556_vm9, %v17412_v20, %v17700_v44  ;;  %v17416_v19 = vadd.f32 %v28761_v63, %v23415_v21  ;;  %21537 = vst [vmem:[%s27955_s8 + $0x170] sm:$0xff] %v21365_v39   ;;  %v23417_v34 = vadd.f32 %v28691_v30, %v28776_v51  ;;  %vm17555_vm12 = vcmp.ge.f32.partialorder %v17411_v56, 0.0  ;;  %v29412_v62 = vld [vmem:[#allocation33_spill] sm:$0xff] }
 0x5cc   : > { %v17842_v47 = vsel %vm17554_vm10, %v17410_v14, %v17698_v10  ;;  %v23418_v37 = vadd.f32 %v28695_v59, %v28780_v23  ;;  %v17845_v15 = vsel %vm17557_vm11, %v17413_v45, %v17701_v52  ;;  %v17699_v27 = vmul.f32 0.2, %v17411_v56  ;;  %v29010_v14 = vpop.f32.mrb[120].mxu0 }
 0x5cd   : > { %vm17560_vm13 = vcmp.ge.f32.partialorder %v17416_v19, 0.0  ;;  %v21380_v16 = vpack.c.bf16 %v17845_v15, %v17844_v28  ;;  %v17704_v36 = vmul.f32 0.2, %v17416_v19  ;;  %v17414_v32 = vadd.f32 %v28761_v63, %v23416_v12 }
 0x5ce   : > { %v17417_v3 = vadd.f32 %v28761_v63, %v23417_v34  ;;  %v17843_v48 = vsel %vm17555_vm12, %v17411_v56, %v17699_v27  ;;  %v17415_v35 = vadd.f32 %v28761_v63, %v23418_v37  ;;  %v23419_v30 = vadd.f32 %v28737_v58, %v28811_v18 }
 0x5cf   : > { %v23420_v59 = vadd.f32 %v28739_v60, %v28818_v25  ;;  %21540 = vst [vmem:[%s27955_s8 + $0x188] sm:$0xff] %v21380_v16   ;;  %v21375_v13 = vpack.c.bf16 %v17843_v48, %v17842_v47  ;;  %v17848_v51 = vsel %vm17560_vm13, %v17416_v19, %v17704_v36  ;;  %vm17558_vm14 = vcmp.ge.f32.partialorder %v17414_v32, 0.0  ;;  %v29408_v25 = vld [vmem:[#allocation35_spill] sm:$0xff]  ;;  %v22705_v52 = vpop.f32.mrb[116].mxu1 }
 0x5d0   : > { %v17702_v23 = vmul.f32 0.2, %v17414_v32  ;;  %vm17561_vm15 = vcmp.ge.f32.partialorder %v17417_v3, 0.0  ;;  %v17705_v33 = vmul.f32 0.2, %v17417_v3  ;;  %vm17559_vm0 = vcmp.ge.f32.partialorder %v17415_v35, 0.0 }
 0x5d1   : > { %v17703_v2 = vmul.f32 0.2, %v17415_v35  ;;  %21539 = vst [vmem:[%s27955_s8 + $0x180] sm:$0xff] %v21375_v13   ;;  %v17420_v46 = vadd.f32 %v28761_v63, %v23419_v30  ;;  %v17418_v24 = vadd.f32 %v28761_v63, %v23420_v59  ;;  %v23421_v58 = vadd.f32 %v28745_v0, %v28827_v29  ;;  %v29014_v29 = vpop.f32.mrb[121].mxu0  ;;  %v8277_v34 = vpop.f32.mrb[117].mxu1 }
 0x5d2   : > { %v17846_v40 = vsel %vm17558_vm14, %v17414_v32, %v17702_v23  ;;  %v17849_v60 = vsel %vm17561_vm15, %v17417_v3, %v17705_v33  ;;  %v23422_v31 = vadd.f32 %v29409_v11, %v29408_v25  ;;  %v23423_v26 = vadd.f32 %v29410_v22, %v28889_v54  ;;  %v29411_v54 = vld [vmem:[#allocation26_spill] sm:$0xff]  ;;  %v29023_v39 = vpop.f32.mrb[122].mxu0  ;;  %v22706_v16 = vpop.f32.mrb[118].mxu1 }
 0x5d3   : > { %v17847_v18 = vsel %vm17559_vm0, %v17415_v35, %v17703_v2  ;;  %v21390_v61 = vpack.c.bf16 %v17849_v60, %v17848_v51  ;;  %vm17564_vm4 = vcmp.ge.f32.partialorder %v17420_v46, 0.0  ;;  %v17708_v20 = vmul.f32 0.2, %v17420_v46  ;;  %v29025_v56 = vpop.f32.mrb[123].mxu0  ;;  %v8280_v48 = vpop.f32.mrb[119].mxu1  ;;  %v29415_v2 = vld [vmem:[#allocation37_spill] sm:$0xff] }
 0x5d4   : > { %v21385_v1 = vpack.c.bf16 %v17847_v18, %v17846_v40  ;;  %vm17562_vm1 = vcmp.ge.f32.partialorder %v17418_v24, 0.0  ;;  %v17706_v7 = vmul.f32 0.2, %v17418_v24  ;;  %v17421_v45 = vadd.f32 %v28761_v63, %v23421_v58 }
 0x5d5   : > { %v17419_v0 = vadd.f32 %v28761_v63, %v23422_v31  ;;  %21542 = vst [vmem:[%s27955_s8 + $0x198] sm:$0xff] %v21390_v61   ;;  %v17852_v4 = vsel %vm17564_vm4, %v17420_v46, %v17708_v20  ;;  %v17424_v21 = vadd.f32 %v28761_v63, %v23423_v26  ;;  %v23424_v5 = vadd.f32 %v29411_v54, %v28891_v9 }
 0x5d6   : > { %21541 = vst [vmem:[%s27955_s8 + $0x190] sm:$0xff] %v21385_v1   ;;  %v23425_v44 = vadd.f32 %v29412_v62, %v28900_v41  ;;  %v17850_v10 = vsel %vm17562_vm1, %v17418_v24, %v17706_v7  ;;  %vm17565_vm2 = vcmp.ge.f32.partialorder %v17421_v45, 0.0  ;;  %v17709_v28 = vmul.f32 0.2, %v17421_v45  ;;  %v29413_v41 = vld [vmem:[#allocation27_spill] sm:$0xff] }
 0x5d7   : > { %vm17563_vm3 = vcmp.ge.f32.partialorder %v17419_v0, 0.0  ;;  %v17707_v19 = vmul.f32 0.2, %v17419_v0  ;;  %vm17568_vm5 = vcmp.ge.f32.partialorder %v17424_v21, 0.0  ;;  %v17712_v47 = vmul.f32 0.2, %v17424_v21 }
 0x5d8   : > { %v17422_v12 = vadd.f32 %v28761_v63, %v23424_v5  ;;  %v17853_v9 = vsel %vm17565_vm2, %v17421_v45, %v17709_v28  ;;  %v17425_v37 = vadd.f32 %v28761_v63, %v23425_v44  ;;  %v23426_v15 = vadd.f32 %v29413_v41, %v28907_v53  ;;  %v29414_v53 = vld [vmem:[#allocation28_spill] sm:$0xff] }
 0x5d9   : > { %v23427_v27 = vadd.f32 %v28868_v38, %v28958_v6  ;;  %v21400_v36 = vpack.c.bf16 %v17853_v9, %v17852_v4  ;;  %v17851_v32 = vsel %vm17563_vm3, %v17419_v0, %v17707_v19  ;;  %v17856_v3 = vsel %vm17568_vm5, %v17424_v21, %v17712_v47 }
 0x5da   : > { %vm17566_vm6 = vcmp.ge.f32.partialorder %v17422_v12, 0.0  ;;  %v21395_v35 = vpack.c.bf16 %v17851_v32, %v17850_v10  ;;  %v17710_v30 = vmul.f32 0.2, %v17422_v12  ;;  %vm17569_vm7 = vcmp.ge.f32.partialorder %v17425_v37, 0.0 }
 0x5db   : > { %v17713_v59 = vmul.f32 0.2, %v17425_v37  ;;  %21544 = vst [vmem:[%s27955_s8 + $0x1a8] sm:$0xff] %v21400_v36   ;;  %v17423_v13 = vadd.f32 %v28761_v63, %v23426_v15  ;;  %v17428_v51 = vadd.f32 %v28761_v63, %v23427_v27  ;;  %v23428_v38 = vadd.f32 %v28877_v42, %v28961_v55 }
 0x5dc   : > { %v23429_v6 = vadd.f32 %v29414_v53, %v28969_v50  ;;  %21543 = vst [vmem:[%s27955_s8 + $0x1a0] sm:$0xff] %v21395_v35   ;;  %v17854_v23 = vsel %vm17566_vm6, %v17422_v12, %v17710_v30  ;;  %v23430_v40 = vadd.f32 %v29415_v2, %v28974_v8  ;;  %v23431_v46 = vadd.f32 %v28942_v17, %v22705_v52 }
 0x5dd   : > { %v17857_v33 = vsel %vm17569_vm7, %v17425_v37, %v17713_v59  ;;  %vm17567_vm8 = vcmp.ge.f32.partialorder %v17423_v13, 0.0  ;;  %v17711_v58 = vmul.f32 0.2, %v17423_v13  ;;  %vm17572_vm9 = vcmp.ge.f32.partialorder %v17428_v51, 0.0 }
 0x5de   : > { %v21410_v24 = vpack.c.bf16 %v17857_v33, %v17856_v3  ;;  %v17716_v60 = vmul.f32 0.2, %v17428_v51  ;;  %v17426_v18 = vadd.f32 %v28761_v63, %v23428_v38  ;;  %v17429_v42 = vadd.f32 %v28761_v63, %v23429_v6 }
 0x5df   : > { %v17427_v55 = vadd.f32 %v28761_v63, %v23430_v40  ;;  %v17855_v50 = vsel %vm17567_vm8, %v17423_v13, %v17711_v58  ;;  %v17432_v25 = vadd.f32 %v28761_v63, %v23431_v46  ;;  %v23432_v8 = vadd.f32 %v28945_v57, %v8277_v34 }
 0x5e0   : > { %21546 = vst [vmem:[%s27955_s8 + $0x1b8] sm:$0xff] %v21410_v24   ;;  %v23433_v17 = vadd.f32 %v28950_v43, %v22706_v16  ;;  %v21405_v11 = vpack.c.bf16 %v17855_v50, %v17854_v23  ;;  %vm17570_vm10 = vcmp.ge.f32.partialorder %v17426_v18, 0.0  ;;  %v17714_v31 = vmul.f32 0.2, %v17426_v18  ;;  %v23297_v52 = vpop.f32.mrb[124].mxu0 }
 0x5e1   : > { %vm17573_vm11 = vcmp.ge.f32.partialorder %v17429_v42, 0.0  ;;  %v17717_v22 = vmul.f32 0.2, %v17429_v42  ;;  %vm17571_vm12 = vcmp.ge.f32.partialorder %v17427_v55, 0.0  ;;  %v17715_v26 = vmul.f32 0.2, %v17427_v55 }
 0x5e2   : > { %21545 = vst [vmem:[%s27955_s8 + $0x1b0] sm:$0xff] %v21405_v11   ;;  %v17860_v61 = vsel %vm17572_vm9, %v17428_v51, %v17716_v60  ;;  %v17858_v1 = vsel %vm17570_vm10, %v17426_v18, %v17714_v31  ;;  %v17720_v20 = vmul.f32 0.2, %v17432_v25  ;;  %v17430_v7 = vadd.f32 %v28761_v63, %v23432_v8 }
 0x5e3   : > { %v17861_v45 = vsel %vm17573_vm11, %v17429_v42, %v17717_v22  ;;  %v17859_v57 = vsel %vm17571_vm12, %v17427_v55, %v17715_v26  ;;  %v17433_v43 = vadd.f32 %v28761_v63, %v23433_v17  ;;  %v23434_v0 = vadd.f32 %v28956_v49, %v8280_v48  ;;  %v17084_v49 = vpop.f32.mrb[125].mxu0 }
 0x5e4   : > { %v21420_v4 = vpack.c.bf16 %v17861_v45, %v17860_v61  ;;  %v21415_v21 = vpack.c.bf16 %v17859_v57, %v17858_v1  ;;  %vm17576_vm13 = vcmp.ge.f32.partialorder %v17432_v25, 0.0  ;;  %v17718_v54 = vmul.f32 0.2, %v17430_v7  ;;  %v23298_v34 = vpop.f32.mrb[126].mxu0 }
 0x5e5   : > { %vm17577_vm14 = vcmp.ge.f32.partialorder %v17433_v43, 0.0  ;;  %v17721_v5 = vmul.f32 0.2, %v17433_v43  ;;  %v17431_v62 = vadd.f32 %v28761_v63, %v23434_v0  ;;  %vm17574_vm15 = vcmp.ge.f32.partialorder %v17430_v7, 0.0  ;;  %v17087_v37 = vpop.f32.mrb[127].mxu0 }
 0x5e6   : > { %21548 = vst [vmem:[%s27955_s8 + $0x1c8] sm:$0xff] %v21420_v4   ;;  %21547 = vst [vmem:[%s27955_s8 + $0x1c0] sm:$0xff] %v21415_v21   ;;  %v17864_v44 = vsel %vm17576_vm13, %v17432_v25, %v17720_v20  ;;  %v17862_v47 = vsel %vm17574_vm15, %v17430_v7, %v17718_v54  ;;  %v22709_v41 = vpop.f32.mrb[120].mxu1 }
 0x5e7   : > { %v17865_v10 = vsel %vm17577_vm14, %v17433_v43, %v17721_v5  ;;  %vm17575_vm0 = vcmp.ge.f32.partialorder %v17431_v62, 0.0  ;;  %v17719_v28 = vmul.f32 0.2, %v17431_v62  ;;  %v23435_v15 = vadd.f32 %v29010_v14, %v22709_v41  ;;  %v8293_v27 = vpop.f32.mrb[121].mxu1 }
 0x5e8   : > { %v21430_v19 = vpack.c.bf16 %v17865_v10, %v17864_v44  ;;  %v23436_v16 = vadd.f32 %v29014_v29, %v8293_v27  ;;  %v22710_v36 = vpop.f32.mrb[122].mxu1 }
 0x5e9   : > { %v17863_v12 = vsel %vm17575_vm0, %v17431_v62, %v17719_v28  ;;  %v17436_v32 = vadd.f32 %v28761_v63, %v23435_v15  ;;  %v23437_v3 = vadd.f32 %v29023_v39, %v22710_v36  ;;  %v8296_v48 = vpop.f32.mrb[123].mxu1 }
 0x5ea   : > { %21550 = vst [vmem:[%s27955_s8 + $0x1d8] sm:$0xff] %v21430_v19   ;;  %v21425_v9 = vpack.c.bf16 %v17863_v12, %v17862_v47  ;;  %v17434_v35 = vadd.f32 %v28761_v63, %v23436_v16  ;;  %v23438_v30 = vadd.f32 %v29025_v56, %v8296_v48  ;;  %v29080_v19 = vld [vmem:[%s29172_s2] ss:$0 sm:$0xff] }
 0x5eb   : > { %v17724_v59 = vmul.f32 0.2, %v17436_v32  ;;  %v17437_v13 = vadd.f32 %v28761_v63, %v23437_v3  ;;  %vm17580_vm4 = vcmp.ge.f32.partialorder %v17436_v32, 0.0 }
 0x5ec   : > { %21549 = vst [vmem:[%s27955_s8 + $0x1d0] sm:$0xff] %v21425_v9   ;;  %v17722_v14 = vmul.f32 0.2, %v17434_v35  ;;  %v17435_v51 = vadd.f32 %v28761_v63, %v23438_v30  ;;  %vm17578_vm1 = vcmp.ge.f32.partialorder %v17434_v35, 0.0 }
 0x5ed   : > { %vm17581_vm2 = vcmp.ge.f32.partialorder %v17437_v13, 0.0  ;;  %v17725_v29 = vmul.f32 0.2, %v17437_v13  ;;  %v17868_v39 = vsel %vm17580_vm4, %v17436_v32, %v17724_v59 }
 0x5ee   : > { %vm17579_vm3 = vcmp.ge.f32.partialorder %v17435_v51, 0.0  ;;  %v17723_v38 = vmul.f32 0.2, %v17435_v51  ;;  %v17866_v6 = vsel %vm17578_vm1, %v17434_v35, %v17722_v14 }
 0x5ef   : > { %v17869_v53 = vsel %vm17581_vm2, %v17437_v13, %v17725_v29 }
 0x5f0   : > { %v21440_v23 = vpack.c.bf16 %v17869_v53, %v17868_v39  ;;  %v17867_v33 = vsel %vm17579_vm3, %v17435_v51, %v17723_v38 }
 0x5f1   : > { %v21435_v56 = vpack.c.bf16 %v17867_v33, %v17866_v6 }
 0x5f2   : > { %21552 = vst [vmem:[%s27955_s8 + $0x1e8] sm:$0xff] %v21440_v23  }
 0x5f3   : > { %21551 = vst [vmem:[%s27955_s8 + $0x1e0] sm:$0xff] %v21435_v56  }
 0x5f6   : > { %v23301_v2 = vpop.f32.mrb[128].mxu0 }
 0x5f7   : > { %v17100_v40 = vpop.f32.mrb[129].mxu0 }
 0x5f8   : > { %v23302_v46 = vpop.f32.mrb[130].mxu0 }
 0x5f9   : > { %v17103_v24 = vpop.f32.mrb[131].mxu0 }
 0x5fe   : > { %v22713_v58 = vpop.f32.mrb[124].mxu1 }
 0x5ff   : > { %v23439_v60 = vadd.f32 %v23297_v52, %v22713_v58  ;;  %v8309_v18 = vpop.f32.mrb[125].mxu1 }
 0x600   : > { %v23440_v42 = vadd.f32 %v17084_v49, %v8309_v18  ;;  %v22714_v55 = vpop.f32.mrb[126].mxu1 }
 0x601   : > { %v17440_v50 = vadd.f32 %v28761_v63, %v23439_v60  ;;  %v23441_v25 = vadd.f32 %v23298_v34, %v22714_v55  ;;  %v8312_v8 = vpop.f32.mrb[127].mxu1 }
 0x602   : > { %v17438_v17 = vadd.f32 %v28761_v63, %v23440_v42  ;;  %v23442_v11 = vadd.f32 %v17087_v37, %v8312_v8 }
 0x603   : > { %v17728_v31 = vmul.f32 0.2, %v17440_v50  ;;  %v17441_v22 = vadd.f32 %v28761_v63, %v23441_v25  ;;  %vm17584_vm5 = vcmp.ge.f32.partialorder %v17440_v50, 0.0 }
 0x604   : > { %v17726_v26 = vmul.f32 0.2, %v17438_v17  ;;  %v17439_v61 = vadd.f32 %v28761_v63, %v23442_v11  ;;  %vm17582_vm6 = vcmp.ge.f32.partialorder %v17438_v17, 0.0 }
 0x605   : > { %vm17585_vm7 = vcmp.ge.f32.partialorder %v17441_v22, 0.0  ;;  %v17729_v1 = vmul.f32 0.2, %v17441_v22  ;;  %v17872_v7 = vsel %vm17584_vm5, %v17440_v50, %v17728_v31 }
 0x606   : > { %vm17583_vm8 = vcmp.ge.f32.partialorder %v17439_v61, 0.0  ;;  %v17727_v20 = vmul.f32 0.2, %v17439_v61  ;;  %v17870_v57 = vsel %vm17582_vm6, %v17438_v17, %v17726_v26 }
 0x607   : > { %v17873_v45 = vsel %vm17585_vm7, %v17441_v22, %v17729_v1 }
 0x608   : > { %v21450_v43 = vpack.c.bf16 %v17873_v45, %v17872_v7  ;;  %v17871_v0 = vsel %vm17583_vm8, %v17439_v61, %v17727_v20 }
 0x609   : > { %v21445_v4 = vpack.c.bf16 %v17871_v0, %v17870_v57 }
 0x60a   : > { %21554 = vst [vmem:[%s27955_s8 + $0x1f8] sm:$0xff] %v21450_v43  }
 0x60b   : > { %21553 = vst [vmem:[%s27955_s8 + $0x1f0] sm:$0xff] %v21445_v4  }
 0x611   : > { %v23305_v21 = vpop.f32.mrb[132].mxu0 }
 0x612   : > { %v17116_v54 = vpop.f32.mrb[133].mxu0 }
 0x613   : > { %v23306_v5 = vpop.f32.mrb[134].mxu0 }
 0x614   : > { %v17119_v62 = vpop.f32.mrb[135].mxu0 }
 0x615   : > { %v22717_v44 = vpop.f32.mrb[128].mxu1 }
 0x616   : > { %v23443_v10 = vadd.f32 %v23301_v2, %v22717_v44  ;;  %v8325_v63 = vpop.f32.mrb[129].mxu1 }
 0x617   : > { %v23444_v28 = vadd.f32 %v17100_v40, %v8325_v63  ;;  %v22718_v52 = vpop.f32.mrb[130].mxu1 }
 0x618   : > { %v17444_v49 = vadd.f32 %v29080_v19, %v23443_v10  ;;  %v23445_v47 = vadd.f32 %v23302_v46, %v22718_v52  ;;  %v8328_v12 = vpop.f32.mrb[131].mxu1 }
 0x619   : > { %v17442_v34 = vadd.f32 %v29080_v19, %v23444_v28  ;;  %v23446_v9 = vadd.f32 %v17103_v24, %v8328_v12 }
 0x61a   : > { %v17732_v37 = vmul.f32 0.2, %v17444_v49  ;;  %v17445_v41 = vadd.f32 %v29080_v19, %v23445_v47  ;;  %vm17588_vm9 = vcmp.ge.f32.partialorder %v17444_v49, 0.0 }
 0x61b   : > { %v17730_v15 = vmul.f32 0.2, %v17442_v34  ;;  %v17443_v27 = vadd.f32 %v29080_v19, %v23446_v9  ;;  %vm17586_vm10 = vcmp.ge.f32.partialorder %v17442_v34, 0.0 }
 0x61c   : > { %vm17589_vm11 = vcmp.ge.f32.partialorder %v17445_v41, 0.0  ;;  %v17733_v16 = vmul.f32 0.2, %v17445_v41  ;;  %v17876_v32 = vsel %vm17588_vm9, %v17444_v49, %v17732_v37 }
 0x61d   : > { %vm17587_vm12 = vcmp.ge.f32.partialorder %v17443_v27, 0.0  ;;  %v17731_v36 = vmul.f32 0.2, %v17443_v27  ;;  %v17874_v48 = vsel %vm17586_vm10, %v17442_v34, %v17730_v15 }
 0x61e   : > { %v17877_v3 = vsel %vm17589_vm11, %v17445_v41, %v17733_v16 }
 0x61f   : > { %v21460_v35 = vpack.c.bf16 %v17877_v3, %v17876_v32  ;;  %v17875_v30 = vsel %vm17587_vm12, %v17443_v27, %v17731_v36 }
 0x620   : > { %v21455_v59 = vpack.c.bf16 %v17875_v30, %v17874_v48 }
 0x621   : > { %21556 = vst [vmem:[%s27955_s8 + $0x208] sm:$0xff] %v21460_v35  }
 0x622   : > { %21555 = vst [vmem:[%s27955_s8 + $0x200] sm:$0xff] %v21455_v59  }
 0x627   : > { %v23309_v13 = vpop.f32.mrb[136].mxu0 }
 0x628   : > { %v17132_v14 = vpop.f32.mrb[137].mxu0 }
 0x629   : > { %v23310_v51 = vpop.f32.mrb[138].mxu0 }
 0x62a   : > { %v22721_v29 = vpop.f32.mrb[132].mxu1  ;;  %v17135_v38 = vpop.f32.mrb[139].mxu0 }
 0x62b   : > { %v23447_v39 = vadd.f32 %v23305_v21, %v22721_v29  ;;  %v8341_v53 = vpop.f32.mrb[133].mxu1 }
 0x62c   : > { %v23448_v6 = vadd.f32 %v17116_v54, %v8341_v53  ;;  %v22722_v23 = vpop.f32.mrb[134].mxu1 }
 0x62d   : > { %v17448_v33 = vadd.f32 %v29080_v19, %v23447_v39  ;;  %v23449_v56 = vadd.f32 %v23306_v5, %v22722_v23  ;;  %v8344_v2 = vpop.f32.mrb[135].mxu1 }
 0x62e   : > { %v17446_v40 = vadd.f32 %v29080_v19, %v23448_v6  ;;  %v23450_v46 = vadd.f32 %v17119_v62, %v8344_v2 }
 0x62f   : > { %v17736_v24 = vmul.f32 0.2, %v17448_v33  ;;  %v17449_v58 = vadd.f32 %v29080_v19, %v23449_v56  ;;  %vm17592_vm13 = vcmp.ge.f32.partialorder %v17448_v33, 0.0 }
 0x630   : > { %v17734_v60 = vmul.f32 0.2, %v17446_v40  ;;  %v17447_v18 = vadd.f32 %v29080_v19, %v23450_v46  ;;  %vm17590_vm14 = vcmp.ge.f32.partialorder %v17446_v40, 0.0 }
 0x631   : > { %vm17593_vm15 = vcmp.ge.f32.partialorder %v17449_v58, 0.0  ;;  %v17737_v42 = vmul.f32 0.2, %v17449_v58  ;;  %v17880_v50 = vsel %vm17592_vm13, %v17448_v33, %v17736_v24 }
 0x632   : > { %vm17591_vm0 = vcmp.ge.f32.partialorder %v17447_v18, 0.0  ;;  %v17735_v55 = vmul.f32 0.2, %v17447_v18  ;;  %v17878_v8 = vsel %vm17590_vm14, %v17446_v40, %v17734_v60 }
 0x633   : > { %v17881_v25 = vsel %vm17593_vm15, %v17449_v58, %v17737_v42 }
 0x634   : > { %v21470_v17 = vpack.c.bf16 %v17881_v25, %v17880_v50  ;;  %v17879_v11 = vsel %vm17591_vm0, %v17447_v18, %v17735_v55 }
 0x635   : > { %v21465_v31 = vpack.c.bf16 %v17879_v11, %v17878_v8 }
 0x636   : > { %21558 = vst [vmem:[%s27955_s8 + $0x218] sm:$0xff] %v21470_v17  }
 0x637   : > { %21557 = vst [vmem:[%s27955_s8 + $0x210] sm:$0xff] %v21465_v31  }
 0x63a   : > { %v23313_v22 = vpop.f32.mrb[140].mxu0 }
 0x63b   : > { %v17148_v26 = vpop.f32.mrb[141].mxu0 }
 0x63c   : > { %v23314_v61 = vpop.f32.mrb[142].mxu0 }
 0x63d   : > { %v17151_v1 = vpop.f32.mrb[143].mxu0 }
 0x640   : > { %v22725_v20 = vpop.f32.mrb[136].mxu1 }
 0x641   : > { %v23451_v7 = vadd.f32 %v23309_v13, %v22725_v20  ;;  %v8357_v45 = vpop.f32.mrb[137].mxu1 }
 0x642   : > { %v23452_v57 = vadd.f32 %v17132_v14, %v8357_v45  ;;  %v22726_v43 = vpop.f32.mrb[138].mxu1 }
 0x643   : > { %v17452_v0 = vadd.f32 %v29080_v19, %v23451_v7  ;;  %v23453_v4 = vadd.f32 %v23310_v51, %v22726_v43  ;;  %v8360_v21 = vpop.f32.mrb[139].mxu1 }
 0x644   : > { %v17450_v54 = vadd.f32 %v29080_v19, %v23452_v57  ;;  %v23454_v5 = vadd.f32 %v17135_v38, %v8360_v21 }
 0x645   : > { %v17740_v62 = vmul.f32 0.2, %v17452_v0  ;;  %v17453_v44 = vadd.f32 %v29080_v19, %v23453_v4  ;;  %vm17596_vm4 = vcmp.ge.f32.partialorder %v17452_v0, 0.0 }
 0x646   : > { %v17738_v10 = vmul.f32 0.2, %v17450_v54  ;;  %v17451_v63 = vadd.f32 %v29080_v19, %v23454_v5  ;;  %vm17594_vm1 = vcmp.ge.f32.partialorder %v17450_v54, 0.0 }
 0x647   : > { %vm17597_vm2 = vcmp.ge.f32.partialorder %v17453_v44, 0.0  ;;  %v17741_v28 = vmul.f32 0.2, %v17453_v44  ;;  %v17884_v49 = vsel %vm17596_vm4, %v17452_v0, %v17740_v62 }
 0x648   : > { %vm17595_vm3 = vcmp.ge.f32.partialorder %v17451_v63, 0.0  ;;  %v17739_v52 = vmul.f32 0.2, %v17451_v63  ;;  %v17882_v12 = vsel %vm17594_vm1, %v17450_v54, %v17738_v10 }
 0x649   : > { %v17885_v47 = vsel %vm17597_vm2, %v17453_v44, %v17741_v28 }
 0x64a   : > { %v21480_v34 = vpack.c.bf16 %v17885_v47, %v17884_v49  ;;  %v17883_v9 = vsel %vm17595_vm3, %v17451_v63, %v17739_v52 }
 0x64b   : > { %v21475_v37 = vpack.c.bf16 %v17883_v9, %v17882_v12 }
 0x64c   : > { %21560 = vst [vmem:[%s27955_s8 + $0x228] sm:$0xff] %v21480_v34   ;;  %v22729_v41 = vpop.f32.mrb[140].mxu1 }
 0x64d   : > { %21559 = vst [vmem:[%s27955_s8 + $0x220] sm:$0xff] %v21475_v37   ;;  %v23455_v15 = vadd.f32 %v23313_v22, %v22729_v41  ;;  %v8373_v27 = vpop.f32.mrb[141].mxu1 }
 0x64e   : > { %v23456_v16 = vadd.f32 %v17148_v26, %v8373_v27  ;;  %v22730_v36 = vpop.f32.mrb[142].mxu1 }
 0x64f   : > { %v17456_v32 = vadd.f32 %v29080_v19, %v23455_v15  ;;  %v23457_v3 = vadd.f32 %v23314_v61, %v22730_v36  ;;  %v8376_v48 = vpop.f32.mrb[143].mxu1 }
 0x650   : > { %v17454_v35 = vadd.f32 %v29080_v19, %v23456_v16  ;;  %v23458_v30 = vadd.f32 %v17151_v1, %v8376_v48 }
 0x651   : > { %v17744_v59 = vmul.f32 0.2, %v17456_v32  ;;  %v17457_v13 = vadd.f32 %v29080_v19, %v23457_v3  ;;  %vm17600_vm5 = vcmp.ge.f32.partialorder %v17456_v32, 0.0 }
 0x652   : > { %v17742_v14 = vmul.f32 0.2, %v17454_v35  ;;  %v17455_v51 = vadd.f32 %v29080_v19, %v23458_v30  ;;  %vm17598_vm6 = vcmp.ge.f32.partialorder %v17454_v35, 0.0 }
 0x653   : > { %vm17601_vm7 = vcmp.ge.f32.partialorder %v17457_v13, 0.0  ;;  %v17745_v29 = vmul.f32 0.2, %v17457_v13  ;;  %v17888_v39 = vsel %vm17600_vm5, %v17456_v32, %v17744_v59 }
 0x654   : > { %vm17599_vm8 = vcmp.ge.f32.partialorder %v17455_v51, 0.0  ;;  %v17743_v38 = vmul.f32 0.2, %v17455_v51  ;;  %v17886_v6 = vsel %vm17598_vm6, %v17454_v35, %v17742_v14 }
 0x655   : > { %v17889_v53 = vsel %vm17601_vm7, %v17457_v13, %v17745_v29 }
 0x656   : > { %v21490_v23 = vpack.c.bf16 %v17889_v53, %v17888_v39  ;;  %v17887_v33 = vsel %vm17599_vm8, %v17455_v51, %v17743_v38 }
 0x657   : > { %v21485_v19 = vpack.c.bf16 %v17887_v33, %v17886_v6 }
 0x658   : > { %21562 = vst [vmem:[%s27955_s8 + $0x238] sm:$0xff] %v21490_v23  }
 0x659   : > { %21561 = vst [vmem:[%s27955_s8 + $0x230] sm:$0xff] %v21485_v19  }
 0x65a   : > { %24863 = shalt.err (!%p24860_p6)
}
 0x65b   : > { %s24864_s6 = scalar_lea.hbm %s29112_s7, 9216  ;;  %s24868_s24 = scalar_lea.hbm %s29173_s3, 36864 }
 0x65c   : > { %p24865_p7 = scmp.ne.s32.totalorder %s29112_s7, %s24864_s6  ;;  %p24869_p11 = scmp.lt.u32.totalorder %s29112_s7, %s29173_s3 }
 0x65d   : > { %p24870_p12 = scmp.lt.u32.totalorder %s24868_s24, %s24864_s6  ;;  %p24872_p0 = scmp.lt.u32.totalorder %s24864_s6, %s29112_s7 }
 0x65e   : > { %p24866_p9 = pnand %p24865_p7, %p25020_p3 }
 0x65f   : > { %p24871_p13 = por %p24870_p12, %p24869_p11 }
 0x660   : > { %p24867_p10 = pneg %p24866_p9 }
 0x661   : > { %p24873_p1 = por %p24872_p0, %p24871_p13 }
 0x663   : > { %p24874_p2 = pnand %p24873_p1, %p24867_p10 }
 0x665   : > { %24877 = shalt.err (!%p24874_p2)
}
 0x666   : > { %s24947_s16 = smov 64   ;;  %s24948_s29 = smov 4  }
 0x667   : > { %24334 = dma.vmem_to_hbm [thread:$0]  (%p25020_p3), %s29107_s15, 9216, %s29112_s7, %s29118_s9, %s24947_s16, %s24947_s16, %s24948_s29  }
 0x668 PF: > { %p24340_p4 = scmp.ge.s32.totalorder %s24944_s19, 2  ;;  %s18641_s5 = sand.u32 1, %s24916_s12  }
 0x669   : > { %s18642_s10 = scalar_lea.sflag [#allocation3], %s18641_s5 }
 0x66a   : > { %p24337_p5 = pnand %p24340_p4, %p25029_p8 }
 0x66c   : > { %24911 = dma.done.wait (!%p24337_p5), %s18642_s10, 9216  }
 0x66d   : > { %24913 = vsyncadd (!%p24337_p5), %s18642_s10, 4294958080  ;;  %s16_s19 = sadd.s32 1, %s24944_s19   ;;  %s29416_s12 = smov %s24920_s13 }
 0x66e   : > { %p13_p6 = scmp.ge.s32.totalorder %s16_s19, 6   ;;  %s29417_s13 = smov %s24924_s14 }
 0x66f   : > { %s29418_s14 = smov %s25038_s30  ;;  %s29419_s15 = smov %s24936_s17 }
 0x670   : > { %s29420_s16 = smov %s24940_s18  ;;  %s29421_s17 = smov %s29424_s22 }
 0x671   : > { %s29422_s18 = smov %s29428_s23  ;;  %15 = sbr.rel (!%p13_p6) target bundleno = 5 (0x5), region = 78 }
 0x678   :  { %18647 = vsyncpa [#allocation3], 1 }
 0x679   :  { %18649 = vsyncpa [#allocation3 + $0x1], 1 }

</bundles_post_ra>
